<compile_context>
chip_gen: v7x
topology: tpu7x:2x2x1
jax: 0.10.0
libtpu: 0.0.40
codegen_flags: <defaults>
</compile_context>

<pallas_src>
import functools

import numpy as np
import jax
import jax.numpy as jnp
from jax.experimental import pallas as pl
from jax.experimental.pallas import tpu as pltpu

LRELU_SLOPE = 0.1
MXU_DTYPE = jnp.bfloat16            # MXU operand dtype; accumulation stays f32
VMEM_LIMIT_BYTES = 48 * 1024 * 1024


def _cparams(ngrid):
    return pltpu.CompilerParams(
        dimension_semantics=("parallel",) * ngrid,
        vmem_limit_bytes=VMEM_LIMIT_BYTES)


def _leaky(x, slope):
    return jnp.where(x >= 0, x, slope * x)


def _pick_cout_tile(cout, target=512):
    """Largest divisor of `cout` that is <= target and sublane aligned."""
    if cout <= target:
        return cout
    for d in range(target, 7, -1):
        if cout % d == 0 and d % 8 == 0:
            return d
    return cout


# ----------------------------------------------------------------------------
# In-kernel helper: 1-D (dilated) convolution of a (C, T) slab as ONE matmul.
# ----------------------------------------------------------------------------
def _im2col_matmul(x, w, b, K, pad_l, pad_r, dil=1):
    """x: (Cin, T) value, w: (Cout, K*Cin) value (tap-major columns),
    b: (Cout, 1).  Zero padding is materialised in VMEM; the K shifted views
    are stacked along sublanes so the conv is a single MXU dot."""
    x = x.astype(MXU_DTYPE)
    C, T = x.shape
    Tout = T + pad_l + pad_r - dil * (K - 1)
    parts = []
    if pad_l:
        parts.append(jnp.zeros((C, pad_l), x.dtype))
    parts.append(x)
    if pad_r:
        parts.append(jnp.zeros((C, pad_r), x.dtype))
    xp = jnp.concatenate(parts, axis=1) if len(parts) > 1 else x
    if K > 1:
        slab = jnp.concatenate(
            [xp[:, k * dil:k * dil + Tout] for k in range(K)], axis=0)
    else:
        slab = xp[:, :Tout]
    acc = jnp.dot(w.astype(MXU_DTYPE), slab,
                  preferred_element_type=jnp.float32)
    return acc + b


# ----------------------------------------------------------------------------
# Generic Conv1d kernel (optional fused input lrelu / output activation),
# with an output-channel-tiled grid for very wide convolutions.
# ----------------------------------------------------------------------------
def _conv1d_kernel(x_ref, w_ref, b_ref, o_ref, *, K, dil, pad_l, pad_r,
                   in_slope, out_mode, out_slope):
    xv = x_ref[0]
    if in_slope:
        xv = _leaky(xv, in_slope)          # activation before implicit padding
    acc = _im2col_matmul(xv, w_ref[...], b_ref[...], K, pad_l, pad_r, dil)
    if out_mode == "lrelu":
        acc = _leaky(acc, out_slope)
    elif out_mode == "tanh":
        acc = jnp.tanh(acc)
    o_ref[...] = acc[None]


def pallas_conv1d(x, w, b, *, padding=(0, 0), dilation=1, in_slope=0.0,
                  out_mode=None, out_slope=0.0, cout_tile=None):
    """x: (B, Cin, T); w: (Cout, Cin, K) torch layout; b: (Cout,)."""
    B, Cin, T = x.shape
    Cout, _, K = w.shape
    pad_l, pad_r = padding
    Tout = T + pad_l + pad_r - dilation * (K - 1)
    w_r = jnp.transpose(w, (0, 2, 1)).reshape(Cout, K * Cin).astype(MXU_DTYPE)
    b_r = b.reshape(Cout, 1).astype(jnp.float32)
    ct = cout_tile if cout_tile is not None else _pick_cout_tile(Cout)
    kern = functools.partial(_conv1d_kernel, K=K, dil=dilation, pad_l=pad_l,
                             pad_r=pad_r, in_slope=in_slope, out_mode=out_mode,
                             out_slope=out_slope)
    return pl.pallas_call(
        kern,
        out_shape=jax.ShapeDtypeStruct((B, Cout, Tout), jnp.float32),
        grid=(B, Cout // ct),
        in_specs=[pl.BlockSpec((1, Cin, T), lambda i, j: (i, 0, 0)),
                  pl.BlockSpec((ct, K * Cin), lambda i, j: (j, 0)),
                  pl.BlockSpec((ct, 1), lambda i, j: (j, 0))],
        out_specs=pl.BlockSpec((1, ct, Tout), lambda i, j: (i, j, 0)),
        compiler_params=_cparams(2),
    )(x, w_r, b_r)


# ----------------------------------------------------------------------------
# Fused kernel-predictor trunk: input conv + 6 residual convs + residual add.
# ----------------------------------------------------------------------------
def _kp_trunk_kernel(c_ref, wi_ref, bi_ref, wr_ref, br_ref, o_ref, *,
                     Kin, Kres, n_res):
    cv = c_ref[0]
    pad_in = (Kin - 1) // 2
    h = _leaky(_im2col_matmul(cv, wi_ref[...], bi_ref[...],
                              Kin, pad_in, pad_in), 0.1)
    r = h
    pad = (Kres - 1) // 2
    for i in range(n_res):
        r = _leaky(_im2col_matmul(r, wr_ref[i], br_ref[i], Kres, pad, pad), 0.1)
    o_ref[...] = (h + r)[None]


def pallas_kp_trunk(c, wi, bi, res_w, res_b):
    B, cond, L = c.shape
    Kh, _, Kin = wi.shape
    Kres = res_w[0].shape[2]
    n_res = len(res_w)
    wi_r = jnp.transpose(wi, (0, 2, 1)).reshape(Kh, Kin * cond).astype(MXU_DTYPE)
    bi_r = bi.reshape(Kh, 1).astype(jnp.float32)
    wr = jnp.stack([jnp.transpose(w, (0, 2, 1)).reshape(Kh, Kres * Kh)
                    for w in res_w]).astype(MXU_DTYPE)
    br = jnp.stack([b.reshape(Kh, 1) for b in res_b]).astype(jnp.float32)
    kern = functools.partial(_kp_trunk_kernel, Kin=Kin, Kres=Kres, n_res=n_res)
    return pl.pallas_call(
        kern,
        out_shape=jax.ShapeDtypeStruct((B, Kh, L), jnp.float32),
        grid=(B,),
        in_specs=[pl.BlockSpec((1, cond, L), lambda i: (i, 0, 0)),
                  pl.BlockSpec((Kh, Kin * cond), lambda i: (0, 0)),
                  pl.BlockSpec((Kh, 1), lambda i: (0, 0)),
                  pl.BlockSpec((n_res, Kh, Kres * Kh), lambda i: (0, 0, 0)),
                  pl.BlockSpec((n_res, Kh, 1), lambda i: (0, 0, 0))],
        out_specs=pl.BlockSpec((1, Kh, L), lambda i: (i, 0, 0)),
        compiler_params=_cparams(1),
    )(c, wi_r, bi_r, wr, br)


# ----------------------------------------------------------------------------
# Polyphase ConvTranspose1d (kernel=2*stride, stride, padding=stride//2 +
# stride%2, output_padding=stride%2) with fused leaky_relu(0.2) on the input.
# ----------------------------------------------------------------------------
def _upsample_poly_kernel(x_ref, w_ref, b_ref, o_ref):
    xv = _leaky(x_ref[0], 0.2)
    # all `stride` phase filters stacked on the output-channel axis; each uses
    # a 3-tap window of the un-upsampled input -> one matmul, no zero-stuffing
    o_ref[...] = _im2col_matmul(xv, w_ref[...], b_ref[...], 3, 1, 1)[None]


def _polyphase_upsample_weights(w, b, stride):
    """torch ConvTranspose1d weights (Cin, Cout, 2*stride) -> per-phase 3-tap
    forward-conv filters stacked on the output-channel axis."""
    Cin, Cout, K = w.shape
    pad = stride // 2 + stride % 2
    left = K - 1 - pad
    # equivalent forward conv on the zero-stuffed signal: flip taps, swap io
    w_eff = jnp.flip(jnp.transpose(w, (1, 0, 2)), axis=-1)    # (Cout, Cin, K)
    phases = []
    for r in range(stride):
        a = left - r
        j0, delta = a % stride, -(a // stride)                # delta in {-1, 0}
        wp = jnp.zeros((Cout, 3, Cin), w.dtype)
        wp = wp.at[:, 1 + delta, :].set(w_eff[:, :, j0])
        wp = wp.at[:, 2 + delta, :].set(w_eff[:, :, j0 + stride])
        phases.append(wp.reshape(Cout, 3 * Cin))
    w_all = jnp.concatenate(phases, axis=0).astype(MXU_DTYPE)  # (s*Cout, 3Cin)
    b_all = jnp.tile(b, stride).reshape(stride * Cout, 1).astype(jnp.float32)
    return w_all, b_all


def pallas_conv_transpose1d(x, w, b, *, stride):
    B, C, T = x.shape
    _, Cout, K = w.shape
    assert K == 2 * stride
    w_all, b_all = _polyphase_upsample_weights(w, b, stride)
    ph = pl.pallas_call(
        _upsample_poly_kernel,
        out_shape=jax.ShapeDtypeStruct((B, stride * Cout, T), jnp.float32),
        grid=(B,),
        in_specs=[pl.BlockSpec((1, C, T), lambda i: (i, 0, 0)),
                  pl.BlockSpec((stride * Cout, 3 * C), lambda i: (0, 0)),
                  pl.BlockSpec((stride * Cout, 1), lambda i: (0, 0))],
        out_specs=pl.BlockSpec((1, stride * Cout, T), lambda i: (i, 0, 0)),
        compiler_params=_cparams(1),
    )(x, w_all, b_all)
    # interleave the phases: out[:, o, t*stride + r] = ph[:, r*Cout + o, t]
    return ph.reshape(B, stride, Cout, T).transpose(0, 2, 3, 1).reshape(
        B, Cout, T * stride)


# ----------------------------------------------------------------------------
# Fused LVC block: for each of `layers` layers -- lrelu -> dilated conv ->
# lrelu -> location-variable conv -> gated residual -- with the activation
# kept in VMEM (the output block) across layers.
# ----------------------------------------------------------------------------
def _lvc_block_kernel(x_ref, wc_ref, bc_ref, wk_ref, bk_ref, o_ref, *,
                      layers, K, hop, L):
    C = o_ref.shape[1]
    pad = (K - 1) // 2
    xv = x_ref[0]                                          # (C, L*hop), f32
    for i in range(layers):
        dil = 3 ** i
        # dilated conv block: lrelu(0.2) -> conv -> lrelu(0.2), one matmul
        y = _im2col_matmul(_leaky(xv, 0.2), wc_ref[i], bc_ref[i],
                           K, dil * pad, dil * pad, dil)
        y = _leaky(y, 0.2).astype(MXU_DTYPE)
        Tin = y.shape[1]
        # location-variable conv (dilation=1, 'same'): one shared im2col slab,
        # one small matmul per conditioning frame, gated residual written
        # straight into the output block via slice stores.
        if pad:
            y = jnp.concatenate([jnp.zeros((C, pad), y.dtype), y,
                                 jnp.zeros((C, pad), y.dtype)], axis=1)
        slab = jnp.concatenate([y[:, k:k + Tin] for k in range(K)], axis=0)
        for l in range(L):
            z = jnp.dot(wk_ref[0, i, l], slab[:, l * hop:(l + 1) * hop],
                        preferred_element_type=jnp.float32) + bk_ref[0, i, l]
            gate = jax.nn.sigmoid(z[:C]) * jnp.tanh(z[C:])
            o_ref[0, :, l * hop:(l + 1) * hop] = (
                xv[:, l * hop:(l + 1) * hop] + gate)
        if i + 1 < layers:
            xv = o_ref[0]        # next layer's input, still resident in VMEM


def pallas_lvc_block(x, wc, bc, wk, bk, *, hop, K, layers):
    B, C, Tin = x.shape
    L = wk.shape[2]
    assert Tin == L * hop
    kern = functools.partial(_lvc_block_kernel, layers=layers, K=K, hop=hop,
                             L=L)
    return pl.pallas_call(
        kern,
        out_shape=jax.ShapeDtypeStruct((B, C, Tin), jnp.float32),
        grid=(B,),
        in_specs=[pl.BlockSpec((1, C, Tin), lambda i: (i, 0, 0)),
                  pl.BlockSpec((layers, C, K * C), lambda i: (0, 0, 0)),
                  pl.BlockSpec((layers, C, 1), lambda i: (0, 0, 0)),
                  pl.BlockSpec((1, layers, L, 2 * C, K * C),
                               lambda i: (i, 0, 0, 0, 0)),
                  pl.BlockSpec((1, layers, L, 2 * C, 1),
                               lambda i: (i, 0, 0, 0, 0))],
        out_specs=pl.BlockSpec((1, C, Tin), lambda i: (i, 0, 0)),
        compiler_params=_cparams(1),
    )(x, wc, bc, wk, bk)


# ----------------------------------------------------------------------------
# Model forward (thin XLA glue around the Pallas kernels above)
# ----------------------------------------------------------------------------
def kernel_predictor(kp, c, *, conv_layers, cin, cout, K_lvc):
    """Returns the predicted LVC weights in matmul-ready layout:
    wk: (B, layers, L, 2C, K*C) bf16, bk: (B, layers, L, 2C, 1) f32."""
    B, _, L = c.shape
    h = pallas_kp_trunk(c, kp["input_w"], kp["input_b"],
                        kp["res_w"], kp["res_b"])
    pad = (kp["kernel_w"].shape[2] - 1) // 2
    kvals = pallas_conv1d(h, kp["kernel_w"], kp["kernel_b"],
                          padding=(pad, pad))           # Cout-tiled grid inside
    bvals = pallas_conv1d(h, kp["bias_w"], kp["bias_b"], padding=(pad, pad))
    # Same channel split as torch's .view(B, layers, cin, cout, K, L); the
    # relayout to the kernel's (layers, L, cout, K*cin) layout happens ONCE
    # per block here instead of once per LVC layer.
    kern = kvals.reshape(B, conv_layers, cin, cout, K_lvc, L)
    wk = jnp.transpose(kern, (0, 1, 5, 3, 4, 2)).reshape(
        B, conv_layers, L, cout, K_lvc * cin).astype(MXU_DTYPE)
    bk = jnp.transpose(bvals.reshape(B, conv_layers, cout, L),
                       (0, 1, 3, 2))[..., None].astype(jnp.float32)
    return wk, bk


def lvc_block_forward(p, x, c, *, upsample_ratio, cond_hop_length,
                      conv_layers, K_lvc):
    B, C, _ = x.shape
    wk, bk = kernel_predictor(p["kp"], c, conv_layers=conv_layers,
                              cin=C, cout=2 * C, K_lvc=K_lvc)
    # leaky_relu(x, 0.2) fused into the polyphase transposed-conv kernel
    x = pallas_conv_transpose1d(x, p["up_w"], p["up_b"], stride=upsample_ratio)
    wc = jnp.stack([jnp.transpose(w, (0, 2, 1)).reshape(C, K_lvc * C)
                    for w in p["conv_w"]]).astype(MXU_DTYPE)
    bc = jnp.stack([b.reshape(C, 1) for b in p["conv_b"]]).astype(jnp.float32)
    return pallas_lvc_block(x, wc, bc, wk, bk, hop=cond_hop_length,
                            K=K_lvc, layers=conv_layers)


def univnet_forward(params, cfg, c, noise):
    x = pallas_conv1d(noise, params["first_w"], params["first_b"],
                      padding=(3, 3))
    hop = 1
    for n, up in enumerate(cfg["upsample_factors"]):
        hop *= up
        x = lvc_block_forward(params["lvc_blocks"][n], x, c,
                              upsample_ratio=up, cond_hop_length=hop,
                              conv_layers=cfg["lvc_layers_each_block"],
                              K_lvc=cfg["lvc_kernel_size"])
    # F.leaky_relu(x, 0.1) -> last conv -> tanh fused into one kernel call
    return pallas_conv1d(x, params["last_w"], params["last_b"],
                         padding=(3, 3), in_slope=LRELU_SLOPE, out_mode="tanh")


# ----------------------------------------------------------------------------
# Deterministic synthetic parameter initialization (torch layouts)
# ----------------------------------------------------------------------------
def _conv_params(key, cout, cin, k, scale=0.1):
    kw, kb = jax.random.split(key)
    w = scale * jax.random.normal(kw, (cout, cin, k), jnp.float32)
    b = scale * jax.random.normal(kb, (cout,), jnp.float32)
    return w, b


def init_params(key, cfg):
    H = cfg["hidden_channels"]
    Kh = cfg["kpnet_hidden_channels"]
    kpc = cfg["kpnet_conv_size"]
    Klvc = cfg["lvc_kernel_size"]
    layers = cfg["lvc_layers_each_block"]
    keys = iter(jax.random.split(key, 256))
    params = {}
    params["first_w"], params["first_b"] = _conv_params(
        next(keys), H, cfg["in_channels"], 7)
    blocks = []
    for up in cfg["upsample_factors"]:
        blk = {}
        kw, kb = jax.random.split(next(keys))
        blk["up_w"] = 0.1 * jax.random.normal(kw, (H, H, 2 * up), jnp.float32)
        blk["up_b"] = 0.1 * jax.random.normal(kb, (H,), jnp.float32)
        blk["conv_w"], blk["conv_b"] = [], []
        for _ in range(layers):
            w, b = _conv_params(next(keys), H, H, Klvc)
            blk["conv_w"].append(w)
            blk["conv_b"].append(b)
        kp = {}
        kp["input_w"], kp["input_b"] = _conv_params(
            next(keys), Kh, cfg["cond_channels"], 5)
        kp["res_w"], kp["res_b"] = [], []
        for _ in range(6):
            w, b = _conv_params(next(keys), Kh, Kh, kpc)
            kp["res_w"].append(w)
            kp["res_b"].append(b)
        l_w = H * (2 * H) * Klvc * layers
        l_b = (2 * H) * layers
        kp["kernel_w"], kp["kernel_b"] = _conv_params(next(keys), l_w, Kh, kpc,
                                                      scale=0.02)
        kp["bias_w"], kp["bias_b"] = _conv_params(next(keys), l_b, Kh, kpc,
                                                  scale=0.02)
        blk["kp"] = kp
        blocks.append(blk)
    params["lvc_blocks"] = blocks
    params["last_w"], params["last_b"] = _conv_params(
        next(keys), cfg["out_channels"], H, 7)
    return params


if __name__ == "__main__":
    cfg = dict(
        in_channels=4,
        out_channels=1,
        hidden_channels=8,
        cond_channels=6,
        upsample_factors=[2, 2],
        lvc_layers_each_block=2,
        lvc_kernel_size=3,
        kpnet_hidden_channels=8,
        kpnet_conv_size=3,
        dropout=0.0,
    )
    B, Tc = 2, 8

    key = jax.random.PRNGKey(0)
    k_params, k_cond, k_noise = jax.random.split(key, 3)
    params = init_params(k_params, cfg)

    c = jax.random.normal(k_cond, (B, cfg["cond_channels"], Tc), jnp.float32)
    # torch.randn noise input replaced by jax.random.normal (same distribution)
    noise = jax.random.normal(k_noise, (B, cfg["in_channels"], Tc), jnp.float32)

    fwd = jax.jit(lambda p, cc, nn: univnet_forward(p, cfg, cc, nn))
    out = jax.block_until_ready(fwd(params, c, noise))

    total_up = int(np.prod(cfg["upsample_factors"]))
    assert out.shape == (B, cfg["out_channels"], Tc * total_up), out.shape
    assert bool(jnp.all(jnp.isfinite(out)))
    assert bool(jnp.all(jnp.abs(out) <= 1.0))  # tanh output range
    print("KERNEL_OK")
</pallas_src>

<mosaic_0001>
module attributes {stable_mosaic.version = 11 : i64} {
  func.func @_conv1d_kernel(%arg0: i32, %arg1: i32, %arg2: memref<1x4x8xf32, #tpu.memory_space<vmem>>, %arg3: memref<8x28xbf16, #tpu.memory_space<vmem>>, %arg4: memref<8x1xf32, #tpu.memory_space<vmem>>, %arg5: memref<1x8x8xf32, #tpu.memory_space<vmem>>) attributes {dimension_semantics = [#tpu.dimension_semantics<parallel>, #tpu.dimension_semantics<parallel>], iteration_bounds = array<i64: 2, 1>, scalar_prefetch = 0 : i64, scratch_operands = 0 : i64, tpu.core_type = #tpu.core_type<tc>, window_params = [{transform_indices = @transform_0, window_bounds = array<i64: 1, 4, 8>}, {transform_indices = @transform_1, window_bounds = array<i64: 8, 28>}, {transform_indices = @transform_2, window_bounds = array<i64: 8, 1>}, {transform_indices = @transform_3, window_bounds = array<i64: 1, 8, 8>}]} {
    %c0 = arith.constant 0 : index
    %c0_0 = arith.constant 0 : index
    %c0_1 = arith.constant 0 : index
    %0 = vector.load %arg2[%c0, %c0_0, %c0_1] : memref<1x4x8xf32, #tpu.memory_space<vmem>>, vector<1x4x8xf32>
    %1 = vector.shape_cast %0 : vector<1x4x8xf32> to vector<4x8xf32>
    %c0_2 = arith.constant 0 : index
    %c0_3 = arith.constant 0 : index
    %2 = vector.load %arg3[%c0_2, %c0_3] : memref<8x28xbf16, #tpu.memory_space<vmem>>, vector<8x28xbf16>
    %c0_4 = arith.constant 0 : index
    %c0_5 = arith.constant 0 : index
    %3 = vector.load %arg4[%c0_4, %c0_5] : memref<8x1xf32, #tpu.memory_space<vmem>>, vector<8x1xf32>
    %4 = arith.truncf %1 : vector<4x8xf32> to vector<4x8xbf16>
    %cst = arith.constant 0.000000e+00 : bf16
    %5 = vector.broadcast %cst : bf16 to vector<4x3xbf16>
    %cst_6 = arith.constant 0.000000e+00 : bf16
    %6 = vector.broadcast %cst_6 : bf16 to vector<4x3xbf16>
    %7 = tpu.concatenate %5, %4, %6 in 1 : vector<4x3xbf16>, vector<4x8xbf16>, vector<4x3xbf16> -> vector<4x14xbf16>
    %8 = vector.extract_strided_slice %7 {offsets = [0, 0], sizes = [4, 8], strides = [1, 1]} : vector<4x14xbf16> to vector<4x8xbf16>
    %9 = vector.extract_strided_slice %7 {offsets = [0, 1], sizes = [4, 8], strides = [1, 1]} : vector<4x14xbf16> to vector<4x8xbf16>
    %10 = vector.extract_strided_slice %7 {offsets = [0, 2], sizes = [4, 8], strides = [1, 1]} : vector<4x14xbf16> to vector<4x8xbf16>
    %11 = vector.extract_strided_slice %7 {offsets = [0, 3], sizes = [4, 8], strides = [1, 1]} : vector<4x14xbf16> to vector<4x8xbf16>
    %12 = vector.extract_strided_slice %7 {offsets = [0, 4], sizes = [4, 8], strides = [1, 1]} : vector<4x14xbf16> to vector<4x8xbf16>
    %13 = vector.extract_strided_slice %7 {offsets = [0, 5], sizes = [4, 8], strides = [1, 1]} : vector<4x14xbf16> to vector<4x8xbf16>
    %14 = vector.extract_strided_slice %7 {offsets = [0, 6], sizes = [4, 8], strides = [1, 1]} : vector<4x14xbf16> to vector<4x8xbf16>
    %15 = tpu.concatenate %8, %9, %10, %11, %12, %13, %14 in 0 : vector<4x8xbf16>, vector<4x8xbf16>, vector<4x8xbf16>, vector<4x8xbf16>, vector<4x8xbf16>, vector<4x8xbf16>, vector<4x8xbf16> -> vector<28x8xbf16>
    %cst_7 = arith.constant dense<0.000000e+00> : vector<8x8xf32>
    %16 = tpu.matmul %2, %15, %cst_7 {dimension_numbers = #tpu.dot_dimension_numbers<[1], [0], [0], [1], [0, 0, 1, 1], [], []>} : vector<8x28xbf16>, vector<28x8xbf16>, vector<8x8xf32> -> vector<8x8xf32>
    %17 = vector.broadcast %3 : vector<8x1xf32> to vector<8x8xf32>
    %18 = arith.addf %16, %17 : vector<8x8xf32>
    %19 = vector.shape_cast %18 : vector<8x8xf32> to vector<1x8x8xf32>
    %c0_8 = arith.constant 0 : index
    %c0_9 = arith.constant 0 : index
    %c0_10 = arith.constant 0 : index
    %20 = vector.load %arg5[%c0_8, %c0_9, %c0_10] : memref<1x8x8xf32, #tpu.memory_space<vmem>>, vector<1x8x8xf32>
    tpu.vector_store %arg5[%c0_8, %c0_9, %c0_10], %19 {strides = array<i32>} : memref<1x8x8xf32, #tpu.memory_space<vmem>>, vector<1x8x8xf32>,
    return
  }
  func.func @transform_0(%arg0: i32, %arg1: i32) -> (i32, i32, i32) {
    %c0_i32 = arith.constant 0 : i32
    %c0_i32_0 = arith.constant 0 : i32
    %c0_i32_1 = arith.constant 0 : i32
    return %arg0, %c0_i32, %c0_i32_0 : i32, i32, i32
  }
  func.func @transform_1(%arg0: i32, %arg1: i32) -> (i32, i32) {
    %c0_i32 = arith.constant 0 : i32
    %c0_i32_0 = arith.constant 0 : i32
    return %arg1, %c0_i32 : i32, i32
  }
  func.func @transform_2(%arg0: i32, %arg1: i32) -> (i32, i32) {
    %c0_i32 = arith.constant 0 : i32
    %c0_i32_0 = arith.constant 0 : i32
    return %arg1, %c0_i32 : i32, i32
  }
  func.func @transform_3(%arg0: i32, %arg1: i32) -> (i32, i32, i32) {
    %c0_i32 = arith.constant 0 : i32
    %c0_i32_0 = arith.constant 0 : i32
    return %arg0, %arg1, %c0_i32 : i32, i32, i32
  }
}

module attributes {stable_mosaic.version = 11 : i64} {
  func.func @_upsample_poly_kernel(%arg0: i32, %arg1: memref<1x8x8xf32, #tpu.memory_space<vmem>>, %arg2: memref<16x24xbf16, #tpu.memory_space<vmem>>, %arg3: memref<16x1xf32, #tpu.memory_space<vmem>>, %arg4: memref<1x16x8xf32, #tpu.memory_space<vmem>>) attributes {dimension_semantics = [#tpu.dimension_semantics<parallel>], iteration_bounds = array<i64: 2>, scalar_prefetch = 0 : i64, scratch_operands = 0 : i64, tpu.core_type = #tpu.core_type<tc>, window_params = [{transform_indices = @transform_0, window_bounds = array<i64: 1, 8, 8>}, {pipeline_mode = #tpu.pipeline_mode<synchronous>, transform_indices = @transform_1, window_bounds = array<i64: 16, 24>}, {pipeline_mode = #tpu.pipeline_mode<synchronous>, transform_indices = @transform_2, window_bounds = array<i64: 16, 1>}, {transform_indices = @transform_3, window_bounds = array<i64: 1, 16, 8>}]} {
    %c0 = arith.constant 0 : index
    %c0_0 = arith.constant 0 : index
    %c0_1 = arith.constant 0 : index
    %0 = vector.load %arg1[%c0, %c0_0, %c0_1] : memref<1x8x8xf32, #tpu.memory_space<vmem>>, vector<1x8x8xf32>
    %1 = vector.shape_cast %0 : vector<1x8x8xf32> to vector<8x8xf32>
    %cst = arith.constant 0.000000e+00 : f32
    %2 = vector.broadcast %cst : f32 to vector<8x8xf32>
    %3 = arith.cmpf oge, %1, %2 : vector<8x8xf32>
    %cst_2 = arith.constant 2.000000e-01 : f32
    %4 = vector.broadcast %cst_2 : f32 to vector<8x8xf32>
    %5 = arith.mulf %4, %1 : vector<8x8xf32>
    %6 = arith.select %3, %1, %5 : vector<8x8xi1>, vector<8x8xf32>
    %c0_3 = arith.constant 0 : index
    %c0_4 = arith.constant 0 : index
    %7 = vector.load %arg2[%c0_3, %c0_4] : memref<16x24xbf16, #tpu.memory_space<vmem>>, vector<16x24xbf16>
    %c0_5 = arith.constant 0 : index
    %c0_6 = arith.constant 0 : index
    %8 = vector.load %arg3[%c0_5, %c0_6] : memref<16x1xf32, #tpu.memory_space<vmem>>, vector<16x1xf32>
    %9 = arith.truncf %6 : vector<8x8xf32> to vector<8x8xbf16>
    %cst_7 = arith.constant 0.000000e+00 : bf16
    %10 = vector.broadcast %cst_7 : bf16 to vector<8x1xbf16>
    %cst_8 = arith.constant 0.000000e+00 : bf16
    %11 = vector.broadcast %cst_8 : bf16 to vector<8x1xbf16>
    %12 = tpu.concatenate %10, %9, %11 in 1 : vector<8x1xbf16>, vector<8x8xbf16>, vector<8x1xbf16> -> vector<8x10xbf16>
    %13 = vector.extract_strided_slice %12 {offsets = [0, 0], sizes = [8, 8], strides = [1, 1]} : vector<8x10xbf16> to vector<8x8xbf16>
    %14 = vector.extract_strided_slice %12 {offsets = [0, 1], sizes = [8, 8], strides = [1, 1]} : vector<8x10xbf16> to vector<8x8xbf16>
    %15 = vector.extract_strided_slice %12 {offsets = [0, 2], sizes = [8, 8], strides = [1, 1]} : vector<8x10xbf16> to vector<8x8xbf16>
    %16 = tpu.concatenate %13, %14, %15 in 0 : vector<8x8xbf16>, vector<8x8xbf16>, vector<8x8xbf16> -> vector<24x8xbf16>
    %cst_9 = arith.constant dense<0.000000e+00> : vector<16x8xf32>
    %17 = tpu.matmul %7, %16, %cst_9 {dimension_numbers = #tpu.dot_dimension_numbers<[1], [0], [0], [1], [0, 0, 1, 1], [], []>} : vector<16x24xbf16>, vector<24x8xbf16>, vector<16x8xf32> -> vector<16x8xf32>
    %18 = vector.broadcast %8 : vector<16x1xf32> to vector<16x8xf32>
    %19 = arith.addf %17, %18 : vector<16x8xf32>
    %20 = vector.shape_cast %19 : vector<16x8xf32> to vector<1x16x8xf32>
    %c0_10 = arith.constant 0 : index
    %c0_11 = arith.constant 0 : index
    %c0_12 = arith.constant 0 : index
    %21 = vector.load %arg4[%c0_10, %c0_11, %c0_12] : memref<1x16x8xf32, #tpu.memory_space<vmem>>, vector<1x16x8xf32>
    tpu.vector_store %arg4[%c0_10, %c0_11, %c0_12], %20 {strides = array<i32>} : memref<1x16x8xf32, #tpu.memory_space<vmem>>, vector<1x16x8xf32>,
    return
  }
  func.func @transform_0(%arg0: i32) -> (i32, i32, i32) {
    %c0_i32 = arith.constant 0 : i32
    %c0_i32_0 = arith.constant 0 : i32
    %c0_i32_1 = arith.constant 0 : i32
    return %arg0, %c0_i32, %c0_i32_0 : i32, i32, i32
  }
  func.func @transform_1(%arg0: i32) -> (i32, i32) {
    %c0_i32 = arith.constant 0 : i32
    %c0_i32_0 = arith.constant 0 : i32
    %c0_i32_1 = arith.constant 0 : i32
    return %c0_i32, %c0_i32_0 : i32, i32
  }
  func.func @transform_2(%arg0: i32) -> (i32, i32) {
    %c0_i32 = arith.constant 0 : i32
    %c0_i32_0 = arith.constant 0 : i32
    %c0_i32_1 = arith.constant 0 : i32
    return %c0_i32, %c0_i32_0 : i32, i32
  }
  func.func @transform_3(%arg0: i32) -> (i32, i32, i32) {
    %c0_i32 = arith.constant 0 : i32
    %c0_i32_0 = arith.constant 0 : i32
    %c0_i32_1 = arith.constant 0 : i32
    return %arg0, %c0_i32, %c0_i32_0 : i32, i32, i32
  }
}

module attributes {stable_mosaic.version = 11 : i64} {
  func.func @_kp_trunk_kernel(%arg0: i32, %arg1: memref<1x6x8xf32, #tpu.memory_space<vmem>>, %arg2: memref<8x30xbf16, #tpu.memory_space<vmem>>, %arg3: memref<8x1xf32, #tpu.memory_space<vmem>>, %arg4: memref<6x8x24xbf16, #tpu.memory_space<vmem>>, %arg5: memref<6x8x1xf32, #tpu.memory_space<vmem>>, %arg6: memref<1x8x8xf32, #tpu.memory_space<vmem>>) attributes {dimension_semantics = [#tpu.dimension_semantics<parallel>], iteration_bounds = array<i64: 2>, scalar_prefetch = 0 : i64, scratch_operands = 0 : i64, tpu.core_type = #tpu.core_type<tc>, window_params = [{transform_indices = @transform_0, window_bounds = array<i64: 1, 6, 8>}, {pipeline_mode = #tpu.pipeline_mode<synchronous>, transform_indices = @transform_1, window_bounds = array<i64: 8, 30>}, {pipeline_mode = #tpu.pipeline_mode<synchronous>, transform_indices = @transform_2, window_bounds = array<i64: 8, 1>}, {pipeline_mode = #tpu.pipeline_mode<synchronous>, transform_indices = @transform_3, window_bounds = array<i64: 6, 8, 24>}, {pipeline_mode = #tpu.pipeline_mode<synchronous>, transform_indices = @transform_4, window_bounds = array<i64: 6, 8, 1>}, {transform_indices = @transform_5, window_bounds = array<i64: 1, 8, 8>}]} {
    %c0 = arith.constant 0 : index
    %c0_0 = arith.constant 0 : index
    %c0_1 = arith.constant 0 : index
    %0 = vector.load %arg1[%c0, %c0_0, %c0_1] : memref<1x6x8xf32, #tpu.memory_space<vmem>>, vector<1x6x8xf32>
    %1 = vector.shape_cast %0 : vector<1x6x8xf32> to vector<6x8xf32>
    %c0_2 = arith.constant 0 : index
    %c0_3 = arith.constant 0 : index
    %2 = vector.load %arg2[%c0_2, %c0_3] : memref<8x30xbf16, #tpu.memory_space<vmem>>, vector<8x30xbf16>
    %c0_4 = arith.constant 0 : index
    %c0_5 = arith.constant 0 : index
    %3 = vector.load %arg3[%c0_4, %c0_5] : memref<8x1xf32, #tpu.memory_space<vmem>>, vector<8x1xf32>
    %4 = arith.truncf %1 : vector<6x8xf32> to vector<6x8xbf16>
    %cst = arith.constant 0.000000e+00 : bf16
    %5 = vector.broadcast %cst : bf16 to vector<6x2xbf16>
    %cst_6 = arith.constant 0.000000e+00 : bf16
    %6 = vector.broadcast %cst_6 : bf16 to vector<6x2xbf16>
    %7 = tpu.concatenate %5, %4, %6 in 1 : vector<6x2xbf16>, vector<6x8xbf16>, vector<6x2xbf16> -> vector<6x12xbf16>
    %8 = vector.extract_strided_slice %7 {offsets = [0, 0], sizes = [6, 8], strides = [1, 1]} : vector<6x12xbf16> to vector<6x8xbf16>
    %9 = vector.extract_strided_slice %7 {offsets = [0, 1], sizes = [6, 8], strides = [1, 1]} : vector<6x12xbf16> to vector<6x8xbf16>
    %10 = vector.extract_strided_slice %7 {offsets = [0, 2], sizes = [6, 8], strides = [1, 1]} : vector<6x12xbf16> to vector<6x8xbf16>
    %11 = vector.extract_strided_slice %7 {offsets = [0, 3], sizes = [6, 8], strides = [1, 1]} : vector<6x12xbf16> to vector<6x8xbf16>
    %12 = vector.extract_strided_slice %7 {offsets = [0, 4], sizes = [6, 8], strides = [1, 1]} : vector<6x12xbf16> to vector<6x8xbf16>
    %13 = tpu.concatenate %8, %9, %10, %11, %12 in 0 : vector<6x8xbf16>, vector<6x8xbf16>, vector<6x8xbf16>, vector<6x8xbf16>, vector<6x8xbf16> -> vector<30x8xbf16>
    %cst_7 = arith.constant dense<0.000000e+00> : vector<8x8xf32>
    %14 = tpu.matmul %2, %13, %cst_7 {dimension_numbers = #tpu.dot_dimension_numbers<[1], [0], [0], [1], [0, 0, 1, 1], [], []>} : vector<8x30xbf16>, vector<30x8xbf16>, vector<8x8xf32> -> vector<8x8xf32>
    %15 = vector.broadcast %3 : vector<8x1xf32> to vector<8x8xf32>
    %16 = arith.addf %14, %15 : vector<8x8xf32>
    %cst_8 = arith.constant 0.000000e+00 : f32
    %17 = vector.broadcast %cst_8 : f32 to vector<8x8xf32>
    %18 = arith.cmpf oge, %16, %17 : vector<8x8xf32>
    %cst_9 = arith.constant 1.000000e-01 : f32
    %19 = vector.broadcast %cst_9 : f32 to vector<8x8xf32>
    %20 = arith.mulf %19, %16 : vector<8x8xf32>
    %21 = arith.select %18, %16, %20 : vector<8x8xi1>, vector<8x8xf32>
    %c0_10 = arith.constant 0 : index
    %c0_11 = arith.constant 0 : index
    %c0_12 = arith.constant 0 : index
    %22 = vector.load %arg4[%c0_10, %c0_11, %c0_12] : memref<6x8x24xbf16, #tpu.memory_space<vmem>>, vector<1x8x24xbf16>
    %23 = vector.shape_cast %22 : vector<1x8x24xbf16> to vector<8x24xbf16>
    %c0_13 = arith.constant 0 : index
    %c0_14 = arith.constant 0 : index
    %c0_15 = arith.constant 0 : index
    %24 = vector.load %arg5[%c0_13, %c0_14, %c0_15] : memref<6x8x1xf32, #tpu.memory_space<vmem>>, vector<1x8x1xf32>
    %25 = vector.shape_cast %24 : vector<1x8x1xf32> to vector<8x1xf32>
    %26 = arith.truncf %21 : vector<8x8xf32> to vector<8x8xbf16>
    %cst_16 = arith.constant 0.000000e+00 : bf16
    %27 = vector.broadcast %cst_16 : bf16 to vector<8x1xbf16>
    %cst_17 = arith.constant 0.000000e+00 : bf16
    %28 = vector.broadcast %cst_17 : bf16 to vector<8x1xbf16>
    %29 = tpu.concatenate %27, %26, %28 in 1 : vector<8x1xbf16>, vector<8x8xbf16>, vector<8x1xbf16> -> vector<8x10xbf16>
    %30 = vector.extract_strided_slice %29 {offsets = [0, 0], sizes = [8, 8], strides = [1, 1]} : vector<8x10xbf16> to vector<8x8xbf16>
    %31 = vector.extract_strided_slice %29 {offsets = [0, 1], sizes = [8, 8], strides = [1, 1]} : vector<8x10xbf16> to vector<8x8xbf16>
    %32 = vector.extract_strided_slice %29 {offsets = [0, 2], sizes = [8, 8], strides = [1, 1]} : vector<8x10xbf16> to vector<8x8xbf16>
    %33 = tpu.concatenate %30, %31, %32 in 0 : vector<8x8xbf16>, vector<8x8xbf16>, vector<8x8xbf16> -> vector<24x8xbf16>
    %cst_18 = arith.constant dense<0.000000e+00> : vector<8x8xf32>
    %34 = tpu.matmul %23, %33, %cst_18 {dimension_numbers = #tpu.dot_dimension_numbers<[1], [0], [0], [1], [0, 0, 1, 1], [], []>} : vector<8x24xbf16>, vector<24x8xbf16>, vector<8x8xf32> -> vector<8x8xf32>
    %35 = vector.broadcast %25 : vector<8x1xf32> to vector<8x8xf32>
    %36 = arith.addf %34, %35 : vector<8x8xf32>
    %cst_19 = arith.constant 0.000000e+00 : f32
    %37 = vector.broadcast %cst_19 : f32 to vector<8x8xf32>
    %38 = arith.cmpf oge, %36, %37 : vector<8x8xf32>
    %cst_20 = arith.constant 1.000000e-01 : f32
    %39 = vector.broadcast %cst_20 : f32 to vector<8x8xf32>
    %40 = arith.mulf %39, %36 : vector<8x8xf32>
    %41 = arith.select %38, %36, %40 : vector<8x8xi1>, vector<8x8xf32>
    %c1 = arith.constant 1 : index
    %c0_21 = arith.constant 0 : index
    %c0_22 = arith.constant 0 : index
    %42 = vector.load %arg4[%c1, %c0_21, %c0_22] : memref<6x8x24xbf16, #tpu.memory_space<vmem>>, vector<1x8x24xbf16>
    %43 = vector.shape_cast %42 : vector<1x8x24xbf16> to vector<8x24xbf16>
    %c1_23 = arith.constant 1 : index
    %c0_24 = arith.constant 0 : index
    %c0_25 = arith.constant 0 : index
    %44 = vector.load %arg5[%c1_23, %c0_24, %c0_25] : memref<6x8x1xf32, #tpu.memory_space<vmem>>, vector<1x8x1xf32>
    %45 = vector.shape_cast %44 : vector<1x8x1xf32> to vector<8x1xf32>
    %46 = arith.truncf %41 : vector<8x8xf32> to vector<8x8xbf16>
    %cst_26 = arith.constant 0.000000e+00 : bf16
    %47 = vector.broadcast %cst_26 : bf16 to vector<8x1xbf16>
    %cst_27 = arith.constant 0.000000e+00 : bf16
    %48 = vector.broadcast %cst_27 : bf16 to vector<8x1xbf16>
    %49 = tpu.concatenate %47, %46, %48 in 1 : vector<8x1xbf16>, vector<8x8xbf16>, vector<8x1xbf16> -> vector<8x10xbf16>
    %50 = vector.extract_strided_slice %49 {offsets = [0, 0], sizes = [8, 8], strides = [1, 1]} : vector<8x10xbf16> to vector<8x8xbf16>
    %51 = vector.extract_strided_slice %49 {offsets = [0, 1], sizes = [8, 8], strides = [1, 1]} : vector<8x10xbf16> to vector<8x8xbf16>
    %52 = vector.extract_strided_slice %49 {offsets = [0, 2], sizes = [8, 8], strides = [1, 1]} : vector<8x10xbf16> to vector<8x8xbf16>
    %53 = tpu.concatenate %50, %51, %52 in 0 : vector<8x8xbf16>, vector<8x8xbf16>, vector<8x8xbf16> -> vector<24x8xbf16>
    %cst_28 = arith.constant dense<0.000000e+00> : vector<8x8xf32>
    %54 = tpu.matmul %43, %53, %cst_28 {dimension_numbers = #tpu.dot_dimension_numbers<[1], [0], [0], [1], [0, 0, 1, 1], [], []>} : vector<8x24xbf16>, vector<24x8xbf16>, vector<8x8xf32> -> vector<8x8xf32>
    %55 = vector.broadcast %45 : vector<8x1xf32> to vector<8x8xf32>
    %56 = arith.addf %54, %55 : vector<8x8xf32>
    %cst_29 = arith.constant 0.000000e+00 : f32
    %57 = vector.broadcast %cst_29 : f32 to vector<8x8xf32>
    %58 = arith.cmpf oge, %56, %57 : vector<8x8xf32>
    %cst_30 = arith.constant 1.000000e-01 : f32
    %59 = vector.broadcast %cst_30 : f32 to vector<8x8xf32>
    %60 = arith.mulf %59, %56 : vector<8x8xf32>
    %61 = arith.select %58, %56, %60 : vector<8x8xi1>, vector<8x8xf32>
    %c2 = arith.constant 2 : index
    %c0_31 = arith.constant 0 : index
    %c0_32 = arith.constant 0 : index
    %62 = vector.load %arg4[%c2, %c0_31, %c0_32] : memref<6x8x24xbf16, #tpu.memory_space<vmem>>, vector<1x8x24xbf16>
    %63 = vector.shape_cast %62 : vector<1x8x24xbf16> to vector<8x24xbf16>
    %c2_33 = arith.constant 2 : index
    %c0_34 = arith.constant 0 : index
    %c0_35 = arith.constant 0 : index
    %64 = vector.load %arg5[%c2_33, %c0_34, %c0_35] : memref<6x8x1xf32, #tpu.memory_space<vmem>>, vector<1x8x1xf32>
    %65 = vector.shape_cast %64 : vector<1x8x1xf32> to vector<8x1xf32>
    %66 = arith.truncf %61 : vector<8x8xf32> to vector<8x8xbf16>
    %cst_36 = arith.constant 0.000000e+00 : bf16
    %67 = vector.broadcast %cst_36 : bf16 to vector<8x1xbf16>
    %cst_37 = arith.constant 0.000000e+00 : bf16
    %68 = vector.broadcast %cst_37 : bf16 to vector<8x1xbf16>
    %69 = tpu.concatenate %67, %66, %68 in 1 : vector<8x1xbf16>, vector<8x8xbf16>, vector<8x1xbf16> -> vector<8x10xbf16>
    %70 = vector.extract_strided_slice %69 {offsets = [0, 0], sizes = [8, 8], strides = [1, 1]} : vector<8x10xbf16> to vector<8x8xbf16>
    %71 = vector.extract_strided_slice %69 {offsets = [0, 1], sizes = [8, 8], strides = [1, 1]} : vector<8x10xbf16> to vector<8x8xbf16>
    %72 = vector.extract_strided_slice %69 {offsets = [0, 2], sizes = [8, 8], strides = [1, 1]} : vector<8x10xbf16> to vector<8x8xbf16>
    %73 = tpu.concatenate %70, %71, %72 in 0 : vector<8x8xbf16>, vector<8x8xbf16>, vector<8x8xbf16> -> vector<24x8xbf16>
    %cst_38 = arith.constant dense<0.000000e+00> : vector<8x8xf32>
    %74 = tpu.matmul %63, %73, %cst_38 {dimension_numbers = #tpu.dot_dimension_numbers<[1], [0], [0], [1], [0, 0, 1, 1], [], []>} : vector<8x24xbf16>, vector<24x8xbf16>, vector<8x8xf32> -> vector<8x8xf32>
    %75 = vector.broadcast %65 : vector<8x1xf32> to vector<8x8xf32>
    %76 = arith.addf %74, %75 : vector<8x8xf32>
    %cst_39 = arith.constant 0.000000e+00 : f32
    %77 = vector.broadcast %cst_39 : f32 to vector<8x8xf32>
    %78 = arith.cmpf oge, %76, %77 : vector<8x8xf32>
    %cst_40 = arith.constant 1.000000e-01 : f32
    %79 = vector.broadcast %cst_40 : f32 to vector<8x8xf32>
    %80 = arith.mulf %79, %76 : vector<8x8xf32>
    %81 = arith.select %78, %76, %80 : vector<8x8xi1>, vector<8x8xf32>
    %c3 = arith.constant 3 : index
    %c0_41 = arith.constant 0 : index
    %c0_42 = arith.constant 0 : index
    %82 = vector.load %arg4[%c3, %c0_41, %c0_42] : memref<6x8x24xbf16, #tpu.memory_space<vmem>>, vector<1x8x24xbf16>
    %83 = vector.shape_cast %82 : vector<1x8x24xbf16> to vector<8x24xbf16>
    %c3_43 = arith.constant 3 : index
    %c0_44 = arith.constant 0 : index
    %c0_45 = arith.constant 0 : index
    %84 = vector.load %arg5[%c3_43, %c0_44, %c0_45] : memref<6x8x1xf32, #tpu.memory_space<vmem>>, vector<1x8x1xf32>
    %85 = vector.shape_cast %84 : vector<1x8x1xf32> to vector<8x1xf32>
    %86 = arith.truncf %81 : vector<8x8xf32> to vector<8x8xbf16>
    %cst_46 = arith.constant 0.000000e+00 : bf16
    %87 = vector.broadcast %cst_46 : bf16 to vector<8x1xbf16>
    %cst_47 = arith.constant 0.000000e+00 : bf16
    %88 = vector.broadcast %cst_47 : bf16 to vector<8x1xbf16>
    %89 = tpu.concatenate %87, %86, %88 in 1 : vector<8x1xbf16>, vector<8x8xbf16>, vector<8x1xbf16> -> vector<8x10xbf16>
    %90 = vector.extract_strided_slice %89 {offsets = [0, 0], sizes = [8, 8], strides = [1, 1]} : vector<8x10xbf16> to vector<8x8xbf16>
    %91 = vector.extract_strided_slice %89 {offsets = [0, 1], sizes = [8, 8], strides = [1, 1]} : vector<8x10xbf16> to vector<8x8xbf16>
    %92 = vector.extract_strided_slice %89 {offsets = [0, 2], sizes = [8, 8], strides = [1, 1]} : vector<8x10xbf16> to vector<8x8xbf16>
    %93 = tpu.concatenate %90, %91, %92 in 0 : vector<8x8xbf16>, vector<8x8xbf16>, vector<8x8xbf16> -> vector<24x8xbf16>
    %cst_48 = arith.constant dense<0.000000e+00> : vector<8x8xf32>
    %94 = tpu.matmul %83, %93, %cst_48 {dimension_numbers = #tpu.dot_dimension_numbers<[1], [0], [0], [1], [0, 0, 1, 1], [], []>} : vector<8x24xbf16>, vector<24x8xbf16>, vector<8x8xf32> -> vector<8x8xf32>
    %95 = vector.broadcast %85 : vector<8x1xf32> to vector<8x8xf32>
    %96 = arith.addf %94, %95 : vector<8x8xf32>
    %cst_49 = arith.constant 0.000000e+00 : f32
    %97 = vector.broadcast %cst_49 : f32 to vector<8x8xf32>
    %98 = arith.cmpf oge, %96, %97 : vector<8x8xf32>
    %cst_50 = arith.constant 1.000000e-01 : f32
    %99 = vector.broadcast %cst_50 : f32 to vector<8x8xf32>
    %100 = arith.mulf %99, %96 : vector<8x8xf32>
    %101 = arith.select %98, %96, %100 : vector<8x8xi1>, vector<8x8xf32>
    %c4 = arith.constant 4 : index
    %c0_51 = arith.constant 0 : index
    %c0_52 = arith.constant 0 : index
    %102 = vector.load %arg4[%c4, %c0_51, %c0_52] : memref<6x8x24xbf16, #tpu.memory_space<vmem>>, vector<1x8x24xbf16>
    %103 = vector.shape_cast %102 : vector<1x8x24xbf16> to vector<8x24xbf16>
    %c4_53 = arith.constant 4 : index
    %c0_54 = arith.constant 0 : index
    %c0_55 = arith.constant 0 : index
    %104 = vector.load %arg5[%c4_53, %c0_54, %c0_55] : memref<6x8x1xf32, #tpu.memory_space<vmem>>, vector<1x8x1xf32>
    %105 = vector.shape_cast %104 : vector<1x8x1xf32> to vector<8x1xf32>
    %106 = arith.truncf %101 : vector<8x8xf32> to vector<8x8xbf16>
    %cst_56 = arith.constant 0.000000e+00 : bf16
    %107 = vector.broadcast %cst_56 : bf16 to vector<8x1xbf16>
    %cst_57 = arith.constant 0.000000e+00 : bf16
    %108 = vector.broadcast %cst_57 : bf16 to vector<8x1xbf16>
    %109 = tpu.concatenate %107, %106, %108 in 1 : vector<8x1xbf16>, vector<8x8xbf16>, vector<8x1xbf16> -> vector<8x10xbf16>
    %110 = vector.extract_strided_slice %109 {offsets = [0, 0], sizes = [8, 8], strides = [1, 1]} : vector<8x10xbf16> to vector<8x8xbf16>
    %111 = vector.extract_strided_slice %109 {offsets = [0, 1], sizes = [8, 8], strides = [1, 1]} : vector<8x10xbf16> to vector<8x8xbf16>
    %112 = vector.extract_strided_slice %109 {offsets = [0, 2], sizes = [8, 8], strides = [1, 1]} : vector<8x10xbf16> to vector<8x8xbf16>
    %113 = tpu.concatenate %110, %111, %112 in 0 : vector<8x8xbf16>, vector<8x8xbf16>, vector<8x8xbf16> -> vector<24x8xbf16>
    %cst_58 = arith.constant dense<0.000000e+00> : vector<8x8xf32>
    %114 = tpu.matmul %103, %113, %cst_58 {dimension_numbers = #tpu.dot_dimension_numbers<[1], [0], [0], [1], [0, 0, 1, 1], [], []>} : vector<8x24xbf16>, vector<24x8xbf16>, vector<8x8xf32> -> vector<8x8xf32>
    %115 = vector.broadcast %105 : vector<8x1xf32> to vector<8x8xf32>
    %116 = arith.addf %114, %115 : vector<8x8xf32>
    %cst_59 = arith.constant 0.000000e+00 : f32
    %117 = vector.broadcast %cst_59 : f32 to vector<8x8xf32>
    %118 = arith.cmpf oge, %116, %117 : vector<8x8xf32>
    %cst_60 = arith.constant 1.000000e-01 : f32
    %119 = vector.broadcast %cst_60 : f32 to vector<8x8xf32>
    %120 = arith.mulf %119, %116 : vector<8x8xf32>
    %121 = arith.select %118, %116, %120 : vector<8x8xi1>, vector<8x8xf32>
    %c5 = arith.constant 5 : index
    %c0_61 = arith.constant 0 : index
    %c0_62 = arith.constant 0 : index
    %122 = vector.load %arg4[%c5, %c0_61, %c0_62] : memref<6x8x24xbf16, #tpu.memory_space<vmem>>, vector<1x8x24xbf16>
    %123 = vector.shape_cast %122 : vector<1x8x24xbf16> to vector<8x24xbf16>
    %c5_63 = arith.constant 5 : index
    %c0_64 = arith.constant 0 : index
    %c0_65 = arith.constant 0 : index
    %124 = vector.load %arg5[%c5_63, %c0_64, %c0_65] : memref<6x8x1xf32, #tpu.memory_space<vmem>>, vector<1x8x1xf32>
    %125 = vector.shape_cast %124 : vector<1x8x1xf32> to vector<8x1xf32>
    %126 = arith.truncf %121 : vector<8x8xf32> to vector<8x8xbf16>
    %cst_66 = arith.constant 0.000000e+00 : bf16
    %127 = vector.broadcast %cst_66 : bf16 to vector<8x1xbf16>
    %cst_67 = arith.constant 0.000000e+00 : bf16
    %128 = vector.broadcast %cst_67 : bf16 to vector<8x1xbf16>
    %129 = tpu.concatenate %127, %126, %128 in 1 : vector<8x1xbf16>, vector<8x8xbf16>, vector<8x1xbf16> -> vector<8x10xbf16>
    %130 = vector.extract_strided_slice %129 {offsets = [0, 0], sizes = [8, 8], strides = [1, 1]} : vector<8x10xbf16> to vector<8x8xbf16>
    %131 = vector.extract_strided_slice %129 {offsets = [0, 1], sizes = [8, 8], strides = [1, 1]} : vector<8x10xbf16> to vector<8x8xbf16>
    %132 = vector.extract_strided_slice %129 {offsets = [0, 2], sizes = [8, 8], strides = [1, 1]} : vector<8x10xbf16> to vector<8x8xbf16>
    %133 = tpu.concatenate %130, %131, %132 in 0 : vector<8x8xbf16>, vector<8x8xbf16>, vector<8x8xbf16> -> vector<24x8xbf16>
    %cst_68 = arith.constant dense<0.000000e+00> : vector<8x8xf32>
    %134 = tpu.matmul %123, %133, %cst_68 {dimension_numbers = #tpu.dot_dimension_numbers<[1], [0], [0], [1], [0, 0, 1, 1], [], []>} : vector<8x24xbf16>, vector<24x8xbf16>, vector<8x8xf32> -> vector<8x8xf32>
    %135 = vector.broadcast %125 : vector<8x1xf32> to vector<8x8xf32>
    %136 = arith.addf %134, %135 : vector<8x8xf32>
    %cst_69 = arith.constant 0.000000e+00 : f32
    %137 = vector.broadcast %cst_69 : f32 to vector<8x8xf32>
    %138 = arith.cmpf oge, %136, %137 : vector<8x8xf32>
    %cst_70 = arith.constant 1.000000e-01 : f32
    %139 = vector.broadcast %cst_70 : f32 to vector<8x8xf32>
    %140 = arith.mulf %139, %136 : vector<8x8xf32>
    %141 = arith.select %138, %136, %140 : vector<8x8xi1>, vector<8x8xf32>
    %142 = arith.addf %21, %141 : vector<8x8xf32>
    %143 = vector.shape_cast %142 : vector<8x8xf32> to vector<1x8x8xf32>
    %c0_71 = arith.constant 0 : index
    %c0_72 = arith.constant 0 : index
    %c0_73 = arith.constant 0 : index
    %144 = vector.load %arg6[%c0_71, %c0_72, %c0_73] : memref<1x8x8xf32, #tpu.memory_space<vmem>>, vector<1x8x8xf32>
    tpu.vector_store %arg6[%c0_71, %c0_72, %c0_73], %143 {strides = array<i32>} : memref<1x8x8xf32, #tpu.memory_space<vmem>>, vector<1x8x8xf32>,
    return
  }
  func.func @transform_0(%arg0: i32) -> (i32, i32, i32) {
    %c0_i32 = arith.constant 0 : i32
    %c0_i32_0 = arith.constant 0 : i32
    %c0_i32_1 = arith.constant 0 : i32
    return %arg0, %c0_i32, %c0_i32_0 : i32, i32, i32
  }
  func.func @transform_1(%arg0: i32) -> (i32, i32) {
    %c0_i32 = arith.constant 0 : i32
    %c0_i32_0 = arith.constant 0 : i32
    %c0_i32_1 = arith.constant 0 : i32
    return %c0_i32, %c0_i32_0 : i32, i32
  }
  func.func @transform_2(%arg0: i32) -> (i32, i32) {
    %c0_i32 = arith.constant 0 : i32
    %c0_i32_0 = arith.constant 0 : i32
    %c0_i32_1 = arith.constant 0 : i32
    return %c0_i32, %c0_i32_0 : i32, i32
  }
  func.func @transform_3(%arg0: i32) -> (i32, i32, i32) {
    %c0_i32 = arith.constant 0 : i32
    %c0_i32_0 = arith.constant 0 : i32
    %c0_i32_1 = arith.constant 0 : i32
    %c0_i32_2 = arith.constant 0 : i32
    return %c0_i32, %c0_i32_0, %c0_i32_1 : i32, i32, i32
  }
  func.func @transform_4(%arg0: i32) -> (i32, i32, i32) {
    %c0_i32 = arith.constant 0 : i32
    %c0_i32_0 = arith.constant 0 : i32
    %c0_i32_1 = arith.constant 0 : i32
    %c0_i32_2 = arith.constant 0 : i32
    return %c0_i32, %c0_i32_0, %c0_i32_1 : i32, i32, i32
  }
  func.func @transform_5(%arg0: i32) -> (i32, i32, i32) {
    %c0_i32 = arith.constant 0 : i32
    %c0_i32_0 = arith.constant 0 : i32
    %c0_i32_1 = arith.constant 0 : i32
    return %arg0, %c0_i32, %c0_i32_0 : i32, i32, i32
  }
}

module attributes {stable_mosaic.version = 11 : i64} {
  func.func @_conv1d_kernel(%arg0: i32, %arg1: i32, %arg2: memref<1x8x8xf32, #tpu.memory_space<vmem>>, %arg3: memref<384x24xbf16, #tpu.memory_space<vmem>>, %arg4: memref<384x1xf32, #tpu.memory_space<vmem>>, %arg5: memref<1x384x8xf32, #tpu.memory_space<vmem>>) attributes {dimension_semantics = [#tpu.dimension_semantics<parallel>, #tpu.dimension_semantics<parallel>], iteration_bounds = array<i64: 2, 2>, scalar_prefetch = 0 : i64, scratch_operands = 0 : i64, tpu.core_type = #tpu.core_type<tc>, window_params = [{transform_indices = @transform_0, window_bounds = array<i64: 1, 8, 8>}, {transform_indices = @transform_1, window_bounds = array<i64: 384, 24>}, {transform_indices = @transform_2, window_bounds = array<i64: 384, 1>}, {transform_indices = @transform_3, window_bounds = array<i64: 1, 384, 8>}]} {
    %c0 = arith.constant 0 : index
    %c0_0 = arith.constant 0 : index
    %c0_1 = arith.constant 0 : index
    %0 = vector.load %arg2[%c0, %c0_0, %c0_1] : memref<1x8x8xf32, #tpu.memory_space<vmem>>, vector<1x8x8xf32>
    %1 = vector.shape_cast %0 : vector<1x8x8xf32> to vector<8x8xf32>
    %c0_2 = arith.constant 0 : index
    %c0_3 = arith.constant 0 : index
    %2 = vector.load %arg3[%c0_2, %c0_3] : memref<384x24xbf16, #tpu.memory_space<vmem>>, vector<384x24xbf16>
    %c0_4 = arith.constant 0 : index
    %c0_5 = arith.constant 0 : index
    %3 = vector.load %arg4[%c0_4, %c0_5] : memref<384x1xf32, #tpu.memory_space<vmem>>, vector<384x1xf32>
    %4 = arith.truncf %1 : vector<8x8xf32> to vector<8x8xbf16>
    %cst = arith.constant 0.000000e+00 : bf16
    %5 = vector.broadcast %cst : bf16 to vector<8x1xbf16>
    %cst_6 = arith.constant 0.000000e+00 : bf16
    %6 = vector.broadcast %cst_6 : bf16 to vector<8x1xbf16>
    %7 = tpu.concatenate %5, %4, %6 in 1 : vector<8x1xbf16>, vector<8x8xbf16>, vector<8x1xbf16> -> vector<8x10xbf16>
    %8 = vector.extract_strided_slice %7 {offsets = [0, 0], sizes = [8, 8], strides = [1, 1]} : vector<8x10xbf16> to vector<8x8xbf16>
    %9 = vector.extract_strided_slice %7 {offsets = [0, 1], sizes = [8, 8], strides = [1, 1]} : vector<8x10xbf16> to vector<8x8xbf16>
    %10 = vector.extract_strided_slice %7 {offsets = [0, 2], sizes = [8, 8], strides = [1, 1]} : vector<8x10xbf16> to vector<8x8xbf16>
    %11 = tpu.concatenate %8, %9, %10 in 0 : vector<8x8xbf16>, vector<8x8xbf16>, vector<8x8xbf16> -> vector<24x8xbf16>
    %cst_7 = arith.constant dense<0.000000e+00> : vector<384x8xf32>
    %12 = tpu.matmul %2, %11, %cst_7 {dimension_numbers = #tpu.dot_dimension_numbers<[1], [0], [0], [1], [0, 0, 1, 1], [], []>} : vector<384x24xbf16>, vector<24x8xbf16>, vector<384x8xf32> -> vector<384x8xf32>
    %13 = vector.broadcast %3 : vector<384x1xf32> to vector<384x8xf32>
    %14 = arith.addf %12, %13 : vector<384x8xf32>
    %15 = vector.shape_cast %14 : vector<384x8xf32> to vector<1x384x8xf32>
    %c0_8 = arith.constant 0 : index
    %c0_9 = arith.constant 0 : index
    %c0_10 = arith.constant 0 : index
    %16 = vector.load %arg5[%c0_8, %c0_9, %c0_10] : memref<1x384x8xf32, #tpu.memory_space<vmem>>, vector<1x384x8xf32>
    tpu.vector_store %arg5[%c0_8, %c0_9, %c0_10], %15 {strides = array<i32>} : memref<1x384x8xf32, #tpu.memory_space<vmem>>, vector<1x384x8xf32>,
    return
  }
  func.func @transform_0(%arg0: i32, %arg1: i32) -> (i32, i32, i32) {
    %c0_i32 = arith.constant 0 : i32
    %c0_i32_0 = arith.constant 0 : i32
    %c0_i32_1 = arith.constant 0 : i32
    return %arg0, %c0_i32, %c0_i32_0 : i32, i32, i32
  }
  func.func @transform_1(%arg0: i32, %arg1: i32) -> (i32, i32) {
    %c0_i32 = arith.constant 0 : i32
    %c0_i32_0 = arith.constant 0 : i32
    return %arg1, %c0_i32 : i32, i32
  }
  func.func @transform_2(%arg0: i32, %arg1: i32) -> (i32, i32) {
    %c0_i32 = arith.constant 0 : i32
    %c0_i32_0 = arith.constant 0 : i32
    return %arg1, %c0_i32 : i32, i32
  }
  func.func @transform_3(%arg0: i32, %arg1: i32) -> (i32, i32, i32) {
    %c0_i32 = arith.constant 0 : i32
    %c0_i32_0 = arith.constant 0 : i32
    return %arg0, %arg1, %c0_i32 : i32, i32, i32
  }
}

module attributes {stable_mosaic.version = 11 : i64} {
  func.func @_conv1d_kernel(%arg0: i32, %arg1: i32, %arg2: memref<1x8x8xf32, #tpu.memory_space<vmem>>, %arg3: memref<32x24xbf16, #tpu.memory_space<vmem>>, %arg4: memref<32x1xf32, #tpu.memory_space<vmem>>, %arg5: memref<1x32x8xf32, #tpu.memory_space<vmem>>) attributes {dimension_semantics = [#tpu.dimension_semantics<parallel>, #tpu.dimension_semantics<parallel>], iteration_bounds = array<i64: 2, 1>, scalar_prefetch = 0 : i64, scratch_operands = 0 : i64, tpu.core_type = #tpu.core_type<tc>, window_params = [{transform_indices = @transform_0, window_bounds = array<i64: 1, 8, 8>}, {transform_indices = @transform_1, window_bounds = array<i64: 32, 24>}, {transform_indices = @transform_2, window_bounds = array<i64: 32, 1>}, {transform_indices = @transform_3, window_bounds = array<i64: 1, 32, 8>}]} {
    %c0 = arith.constant 0 : index
    %c0_0 = arith.constant 0 : index
    %c0_1 = arith.constant 0 : index
    %0 = vector.load %arg2[%c0, %c0_0, %c0_1] : memref<1x8x8xf32, #tpu.memory_space<vmem>>, vector<1x8x8xf32>
    %1 = vector.shape_cast %0 : vector<1x8x8xf32> to vector<8x8xf32>
    %c0_2 = arith.constant 0 : index
    %c0_3 = arith.constant 0 : index
    %2 = vector.load %arg3[%c0_2, %c0_3] : memref<32x24xbf16, #tpu.memory_space<vmem>>, vector<32x24xbf16>
    %c0_4 = arith.constant 0 : index
    %c0_5 = arith.constant 0 : index
    %3 = vector.load %arg4[%c0_4, %c0_5] : memref<32x1xf32, #tpu.memory_space<vmem>>, vector<32x1xf32>
    %4 = arith.truncf %1 : vector<8x8xf32> to vector<8x8xbf16>
    %cst = arith.constant 0.000000e+00 : bf16
    %5 = vector.broadcast %cst : bf16 to vector<8x1xbf16>
    %cst_6 = arith.constant 0.000000e+00 : bf16
    %6 = vector.broadcast %cst_6 : bf16 to vector<8x1xbf16>
    %7 = tpu.concatenate %5, %4, %6 in 1 : vector<8x1xbf16>, vector<8x8xbf16>, vector<8x1xbf16> -> vector<8x10xbf16>
    %8 = vector.extract_strided_slice %7 {offsets = [0, 0], sizes = [8, 8], strides = [1, 1]} : vector<8x10xbf16> to vector<8x8xbf16>
    %9 = vector.extract_strided_slice %7 {offsets = [0, 1], sizes = [8, 8], strides = [1, 1]} : vector<8x10xbf16> to vector<8x8xbf16>
    %10 = vector.extract_strided_slice %7 {offsets = [0, 2], sizes = [8, 8], strides = [1, 1]} : vector<8x10xbf16> to vector<8x8xbf16>
    %11 = tpu.concatenate %8, %9, %10 in 0 : vector<8x8xbf16>, vector<8x8xbf16>, vector<8x8xbf16> -> vector<24x8xbf16>
    %cst_7 = arith.constant dense<0.000000e+00> : vector<32x8xf32>
    %12 = tpu.matmul %2, %11, %cst_7 {dimension_numbers = #tpu.dot_dimension_numbers<[1], [0], [0], [1], [0, 0, 1, 1], [], []>} : vector<32x24xbf16>, vector<24x8xbf16>, vector<32x8xf32> -> vector<32x8xf32>
    %13 = vector.broadcast %3 : vector<32x1xf32> to vector<32x8xf32>
    %14 = arith.addf %12, %13 : vector<32x8xf32>
    %15 = vector.shape_cast %14 : vector<32x8xf32> to vector<1x32x8xf32>
    %c0_8 = arith.constant 0 : index
    %c0_9 = arith.constant 0 : index
    %c0_10 = arith.constant 0 : index
    %16 = vector.load %arg5[%c0_8, %c0_9, %c0_10] : memref<1x32x8xf32, #tpu.memory_space<vmem>>, vector<1x32x8xf32>
    tpu.vector_store %arg5[%c0_8, %c0_9, %c0_10], %15 {strides = array<i32>} : memref<1x32x8xf32, #tpu.memory_space<vmem>>, vector<1x32x8xf32>,
    return
  }
  func.func @transform_0(%arg0: i32, %arg1: i32) -> (i32, i32, i32) {
    %c0_i32 = arith.constant 0 : i32
    %c0_i32_0 = arith.constant 0 : i32
    %c0_i32_1 = arith.constant 0 : i32
    return %arg0, %c0_i32, %c0_i32_0 : i32, i32, i32
  }
  func.func @transform_1(%arg0: i32, %arg1: i32) -> (i32, i32) {
    %c0_i32 = arith.constant 0 : i32
    %c0_i32_0 = arith.constant 0 : i32
    return %arg1, %c0_i32 : i32, i32
  }
  func.func @transform_2(%arg0: i32, %arg1: i32) -> (i32, i32) {
    %c0_i32 = arith.constant 0 : i32
    %c0_i32_0 = arith.constant 0 : i32
    return %arg1, %c0_i32 : i32, i32
  }
  func.func @transform_3(%arg0: i32, %arg1: i32) -> (i32, i32, i32) {
    %c0_i32 = arith.constant 0 : i32
    %c0_i32_0 = arith.constant 0 : i32
    return %arg0, %arg1, %c0_i32 : i32, i32, i32
  }
}

module attributes {stable_mosaic.version = 11 : i64} {
  func.func @_lvc_block_kernel(%arg0: i32, %arg1: memref<1x8x16xf32, #tpu.memory_space<vmem>>, %arg2: memref<2x8x24xbf16, #tpu.memory_space<vmem>>, %arg3: memref<2x8x1xf32, #tpu.memory_space<vmem>>, %arg4: memref<1x2x8x16x24xbf16, #tpu.memory_space<vmem>>, %arg5: memref<1x2x8x16x1xf32, #tpu.memory_space<vmem>>, %arg6: memref<1x8x16xf32, #tpu.memory_space<vmem>>) attributes {dimension_semantics = [#tpu.dimension_semantics<parallel>], iteration_bounds = array<i64: 2>, scalar_prefetch = 0 : i64, scratch_operands = 0 : i64, tpu.core_type = #tpu.core_type<tc>, window_params = [{transform_indices = @transform_0, window_bounds = array<i64: 1, 8, 16>}, {pipeline_mode = #tpu.pipeline_mode<synchronous>, transform_indices = @transform_1, window_bounds = array<i64: 2, 8, 24>}, {pipeline_mode = #tpu.pipeline_mode<synchronous>, transform_indices = @transform_2, window_bounds = array<i64: 2, 8, 1>}, {transform_indices = @transform_3, window_bounds = array<i64: 1, 2, 8, 16, 24>}, {transform_indices = @transform_4, window_bounds = array<i64: 1, 2, 8, 16, 1>}, {transform_indices = @transform_5, window_bounds = array<i64: 1, 8, 16>}]} {
    %c0 = arith.constant 0 : index
    %c0_0 = arith.constant 0 : index
    %c0_1 = arith.constant 0 : index
    %0 = vector.load %arg1[%c0, %c0_0, %c0_1] : memref<1x8x16xf32, #tpu.memory_space<vmem>>, vector<1x8x16xf32>
    %1 = vector.shape_cast %0 : vector<1x8x16xf32> to vector<8x16xf32>
    %cst = arith.constant 0.000000e+00 : f32
    %2 = vector.broadcast %cst : f32 to vector<8x16xf32>
    %3 = arith.cmpf oge, %1, %2 : vector<8x16xf32>
    %cst_2 = arith.constant 2.000000e-01 : f32
    %4 = vector.broadcast %cst_2 : f32 to vector<8x16xf32>
    %5 = arith.mulf %4, %1 : vector<8x16xf32>
    %6 = arith.select %3, %1, %5 : vector<8x16xi1>, vector<8x16xf32>
    %c0_3 = arith.constant 0 : index
    %c0_4 = arith.constant 0 : index
    %c0_5 = arith.constant 0 : index
    %7 = vector.load %arg2[%c0_3, %c0_4, %c0_5] : memref<2x8x24xbf16, #tpu.memory_space<vmem>>, vector<1x8x24xbf16>
    %8 = vector.shape_cast %7 : vector<1x8x24xbf16> to vector<8x24xbf16>
    %c0_6 = arith.constant 0 : index
    %c0_7 = arith.constant 0 : index
    %c0_8 = arith.constant 0 : index
    %9 = vector.load %arg3[%c0_6, %c0_7, %c0_8] : memref<2x8x1xf32, #tpu.memory_space<vmem>>, vector<1x8x1xf32>
    %10 = vector.shape_cast %9 : vector<1x8x1xf32> to vector<8x1xf32>
    %11 = arith.truncf %6 : vector<8x16xf32> to vector<8x16xbf16>
    %cst_9 = arith.constant 0.000000e+00 : bf16
    %12 = vector.broadcast %cst_9 : bf16 to vector<8x1xbf16>
    %cst_10 = arith.constant 0.000000e+00 : bf16
    %13 = vector.broadcast %cst_10 : bf16 to vector<8x1xbf16>
    %14 = tpu.concatenate %12, %11, %13 in 1 : vector<8x1xbf16>, vector<8x16xbf16>, vector<8x1xbf16> -> vector<8x18xbf16>
    %15 = vector.extract_strided_slice %14 {offsets = [0, 0], sizes = [8, 16], strides = [1, 1]} : vector<8x18xbf16> to vector<8x16xbf16>
    %16 = vector.extract_strided_slice %14 {offsets = [0, 1], sizes = [8, 16], strides = [1, 1]} : vector<8x18xbf16> to vector<8x16xbf16>
    %17 = vector.extract_strided_slice %14 {offsets = [0, 2], sizes = [8, 16], strides = [1, 1]} : vector<8x18xbf16> to vector<8x16xbf16>
    %18 = tpu.concatenate %15, %16, %17 in 0 : vector<8x16xbf16>, vector<8x16xbf16>, vector<8x16xbf16> -> vector<24x16xbf16>
    %cst_11 = arith.constant dense<0.000000e+00> : vector<8x16xf32>
    %19 = tpu.matmul %8, %18, %cst_11 {dimension_numbers = #tpu.dot_dimension_numbers<[1], [0], [0], [1], [0, 0, 1, 1], [], []>} : vector<8x24xbf16>, vector<24x16xbf16>, vector<8x16xf32> -> vector<8x16xf32>
    %20 = vector.broadcast %10 : vector<8x1xf32> to vector<8x16xf32>
    %21 = arith.addf %19, %20 : vector<8x16xf32>
    %cst_12 = arith.constant 0.000000e+00 : f32
    %22 = vector.broadcast %cst_12 : f32 to vector<8x16xf32>
    %23 = arith.cmpf oge, %21, %22 : vector<8x16xf32>
    %cst_13 = arith.constant 2.000000e-01 : f32
    %24 = vector.broadcast %cst_13 : f32 to vector<8x16xf32>
    %25 = arith.mulf %24, %21 : vector<8x16xf32>
    %26 = arith.select %23, %21, %25 : vector<8x16xi1>, vector<8x16xf32>
    %27 = arith.truncf %26 : vector<8x16xf32> to vector<8x16xbf16>
    %cst_14 = arith.constant 0.000000e+00 : bf16
    %28 = vector.broadcast %cst_14 : bf16 to vector<8x1xbf16>
    %cst_15 = arith.constant 0.000000e+00 : bf16
    %29 = vector.broadcast %cst_15 : bf16 to vector<8x1xbf16>
    %30 = tpu.concatenate %28, %27, %29 in 1 : vector<8x1xbf16>, vector<8x16xbf16>, vector<8x1xbf16> -> vector<8x18xbf16>
    %31 = vector.extract_strided_slice %30 {offsets = [0, 0], sizes = [8, 16], strides = [1, 1]} : vector<8x18xbf16> to vector<8x16xbf16>
    %32 = vector.extract_strided_slice %30 {offsets = [0, 1], sizes = [8, 16], strides = [1, 1]} : vector<8x18xbf16> to vector<8x16xbf16>
    %33 = vector.extract_strided_slice %30 {offsets = [0, 2], sizes = [8, 16], strides = [1, 1]} : vector<8x18xbf16> to vector<8x16xbf16>
    %34 = tpu.concatenate %31, %32, %33 in 0 : vector<8x16xbf16>, vector<8x16xbf16>, vector<8x16xbf16> -> vector<24x16xbf16>
    %c0_16 = arith.constant 0 : index
    %c0_17 = arith.constant 0 : index
    %c0_18 = arith.constant 0 : index
    %c0_19 = arith.constant 0 : index
    %c0_20 = arith.constant 0 : index
    %35 = vector.load %arg4[%c0_16, %c0_17, %c0_18, %c0_19, %c0_20] : memref<1x2x8x16x24xbf16, #tpu.memory_space<vmem>>, vector<1x1x1x16x24xbf16>
    %36 = vector.shape_cast %35 : vector<1x1x1x16x24xbf16> to vector<16x24xbf16>
    %37 = vector.extract_strided_slice %34 {offsets = [0, 0], sizes = [24, 2], strides = [1, 1]} : vector<24x16xbf16> to vector<24x2xbf16>
    %cst_21 = arith.constant dense<0.000000e+00> : vector<16x2xf32>
    %38 = tpu.matmul %36, %37, %cst_21 {dimension_numbers = #tpu.dot_dimension_numbers<[1], [0], [0], [1], [0, 0, 1, 1], [], []>} : vector<16x24xbf16>, vector<24x2xbf16>, vector<16x2xf32> -> vector<16x2xf32>
    %c0_22 = arith.constant 0 : index
    %c0_23 = arith.constant 0 : index
    %c0_24 = arith.constant 0 : index
    %c0_25 = arith.constant 0 : index
    %c0_26 = arith.constant 0 : index
    %39 = vector.load %arg5[%c0_22, %c0_23, %c0_24, %c0_25, %c0_26] : memref<1x2x8x16x1xf32, #tpu.memory_space<vmem>>, vector<1x1x1x16x1xf32>
    %40 = vector.shape_cast %39 : vector<1x1x1x16x1xf32> to vector<16x1xf32>
    %41 = vector.broadcast %40 : vector<16x1xf32> to vector<16x2xf32>
    %42 = arith.addf %38, %41 : vector<16x2xf32>
    %43 = vector.extract_strided_slice %42 {offsets = [0, 0], sizes = [8, 2], strides = [1, 1]} : vector<16x2xf32> to vector<8x2xf32>
    %44 = arith.negf %43 : vector<8x2xf32>
    %45 = math.exp %44 : vector<8x2xf32>
    %cst_27 = arith.constant 1.000000e+00 : f32
    %46 = vector.broadcast %cst_27 : f32 to vector<8x2xf32>
    %47 = arith.addf %46, %45 : vector<8x2xf32>
    %48 = arith.divf %46, %47 : vector<8x2xf32>
    %49 = vector.extract_strided_slice %42 {offsets = [8, 0], sizes = [8, 2], strides = [1, 1]} : vector<16x2xf32> to vector<8x2xf32>
    %50 = math.tanh %49 : vector<8x2xf32>
    %51 = arith.mulf %48, %50 : vector<8x2xf32>
    %52 = vector.extract_strided_slice %1 {offsets = [0, 0], sizes = [8, 2], strides = [1, 1]} : vector<8x16xf32> to vector<8x2xf32>
    %53 = arith.addf %52, %51 : vector<8x2xf32>
    %c0_28 = arith.constant 0 : index
    %c0_29 = arith.constant 0 : index
    %c0_30 = arith.constant 0 : index
    %54 = vector.load %arg6[%c0_28, %c0_29, %c0_30] : memref<1x8x16xf32, #tpu.memory_space<vmem>>, vector<1x8x2xf32>
    %55 = vector.shape_cast %54 : vector<1x8x2xf32> to vector<8x2xf32>
    %56 = vector.shape_cast %53 : vector<8x2xf32> to vector<1x8x2xf32>
    tpu.vector_store %arg6[%c0_28, %c0_29, %c0_30], %56 {strides = array<i32>} : memref<1x8x16xf32, #tpu.memory_space<vmem>>, vector<1x8x2xf32>,
    %c0_31 = arith.constant 0 : index
    %c0_32 = arith.constant 0 : index
    %c1 = arith.constant 1 : index
    %c0_33 = arith.constant 0 : index
    %c0_34 = arith.constant 0 : index
    %57 = vector.load %arg4[%c0_31, %c0_32, %c1, %c0_33, %c0_34] : memref<1x2x8x16x24xbf16, #tpu.memory_space<vmem>>, vector<1x1x1x16x24xbf16>
    %58 = vector.shape_cast %57 : vector<1x1x1x16x24xbf16> to vector<16x24xbf16>
    %59 = vector.extract_strided_slice %34 {offsets = [0, 2], sizes = [24, 2], strides = [1, 1]} : vector<24x16xbf16> to vector<24x2xbf16>
    %cst_35 = arith.constant dense<0.000000e+00> : vector<16x2xf32>
    %60 = tpu.matmul %58, %59, %cst_35 {dimension_numbers = #tpu.dot_dimension_numbers<[1], [0], [0], [1], [0, 0, 1, 1], [], []>} : vector<16x24xbf16>, vector<24x2xbf16>, vector<16x2xf32> -> vector<16x2xf32>
    %c0_36 = arith.constant 0 : index
    %c0_37 = arith.constant 0 : index
    %c1_38 = arith.constant 1 : index
    %c0_39 = arith.constant 0 : index
    %c0_40 = arith.constant 0 : index
    %61 = vector.load %arg5[%c0_36, %c0_37, %c1_38, %c0_39, %c0_40] : memref<1x2x8x16x1xf32, #tpu.memory_space<vmem>>, vector<1x1x1x16x1xf32>
    %62 = vector.shape_cast %61 : vector<1x1x1x16x1xf32> to vector<16x1xf32>
    %63 = vector.broadcast %62 : vector<16x1xf32> to vector<16x2xf32>
    %64 = arith.addf %60, %63 : vector<16x2xf32>
    %65 = vector.extract_strided_slice %64 {offsets = [0, 0], sizes = [8, 2], strides = [1, 1]} : vector<16x2xf32> to vector<8x2xf32>
    %66 = arith.negf %65 : vector<8x2xf32>
    %67 = math.exp %66 : vector<8x2xf32>
    %cst_41 = arith.constant 1.000000e+00 : f32
    %68 = vector.broadcast %cst_41 : f32 to vector<8x2xf32>
    %69 = arith.addf %68, %67 : vector<8x2xf32>
    %70 = arith.divf %68, %69 : vector<8x2xf32>
    %71 = vector.extract_strided_slice %64 {offsets = [8, 0], sizes = [8, 2], strides = [1, 1]} : vector<16x2xf32> to vector<8x2xf32>
    %72 = math.tanh %71 : vector<8x2xf32>
    %73 = arith.mulf %70, %72 : vector<8x2xf32>
    %74 = vector.extract_strided_slice %1 {offsets = [0, 2], sizes = [8, 2], strides = [1, 1]} : vector<8x16xf32> to vector<8x2xf32>
    %75 = arith.addf %74, %73 : vector<8x2xf32>
    %c0_42 = arith.constant 0 : index
    %c0_43 = arith.constant 0 : index
    %c2 = arith.constant 2 : index
    %76 = vector.load %arg6[%c0_42, %c0_43, %c2] : memref<1x8x16xf32, #tpu.memory_space<vmem>>, vector<1x8x2xf32>
    %77 = vector.shape_cast %76 : vector<1x8x2xf32> to vector<8x2xf32>
    %78 = vector.shape_cast %75 : vector<8x2xf32> to vector<1x8x2xf32>
    tpu.vector_store %arg6[%c0_42, %c0_43, %c2], %78 {strides = array<i32>} : memref<1x8x16xf32, #tpu.memory_space<vmem>>, vector<1x8x2xf32>,
    %c0_44 = arith.constant 0 : index
    %c0_45 = arith.constant 0 : index
    %c2_46 = arith.constant 2 : index
    %c0_47 = arith.constant 0 : index
    %c0_48 = arith.constant 0 : index
    %79 = vector.load %arg4[%c0_44, %c0_45, %c2_46, %c0_47, %c0_48] : memref<1x2x8x16x24xbf16, #tpu.memory_space<vmem>>, vector<1x1x1x16x24xbf16>
    %80 = vector.shape_cast %79 : vector<1x1x1x16x24xbf16> to vector<16x24xbf16>
    %81 = vector.extract_strided_slice %34 {offsets = [0, 4], sizes = [24, 2], strides = [1, 1]} : vector<24x16xbf16> to vector<24x2xbf16>
    %cst_49 = arith.constant dense<0.000000e+00> : vector<16x2xf32>
    %82 = tpu.matmul %80, %81, %cst_49 {dimension_numbers = #tpu.dot_dimension_numbers<[1], [0], [0], [1], [0, 0, 1, 1], [], []>} : vector<16x24xbf16>, vector<24x2xbf16>, vector<16x2xf32> -> vector<16x2xf32>
    %c0_50 = arith.constant 0 : index
    %c0_51 = arith.constant 0 : index
    %c2_52 = arith.constant 2 : index
    %c0_53 = arith.constant 0 : index
    %c0_54 = arith.constant 0 : index
    %83 = vector.load %arg5[%c0_50, %c0_51, %c2_52, %c0_53, %c0_54] : memref<1x2x8x16x1xf32, #tpu.memory_space<vmem>>, vector<1x1x1x16x1xf32>
    %84 = vector.shape_cast %83 : vector<1x1x1x16x1xf32> to vector<16x1xf32>
    %85 = vector.broadcast %84 : vector<16x1xf32> to vector<16x2xf32>
    %86 = arith.addf %82, %85 : vector<16x2xf32>
    %87 = vector.extract_strided_slice %86 {offsets = [0, 0], sizes = [8, 2], strides = [1, 1]} : vector<16x2xf32> to vector<8x2xf32>
    %88 = arith.negf %87 : vector<8x2xf32>
    %89 = math.exp %88 : vector<8x2xf32>
    %cst_55 = arith.constant 1.000000e+00 : f32
    %90 = vector.broadcast %cst_55 : f32 to vector<8x2xf32>
    %91 = arith.addf %90, %89 : vector<8x2xf32>
    %92 = arith.divf %90, %91 : vector<8x2xf32>
    %93 = vector.extract_strided_slice %86 {offsets = [8, 0], sizes = [8, 2], strides = [1, 1]} : vector<16x2xf32> to vector<8x2xf32>
    %94 = math.tanh %93 : vector<8x2xf32>
    %95 = arith.mulf %92, %94 : vector<8x2xf32>
    %96 = vector.extract_strided_slice %1 {offsets = [0, 4], sizes = [8, 2], strides = [1, 1]} : vector<8x16xf32> to vector<8x2xf32>
    %97 = arith.addf %96, %95 : vector<8x2xf32>
    %c0_56 = arith.constant 0 : index
    %c0_57 = arith.constant 0 : index
    %c4 = arith.constant 4 : index
    %98 = vector.load %arg6[%c0_56, %c0_57, %c4] : memref<1x8x16xf32, #tpu.memory_space<vmem>>, vector<1x8x2xf32>
    %99 = vector.shape_cast %98 : vector<1x8x2xf32> to vector<8x2xf32>
    %100 = vector.shape_cast %97 : vector<8x2xf32> to vector<1x8x2xf32>
    tpu.vector_store %arg6[%c0_56, %c0_57, %c4], %100 {strides = array<i32>} : memref<1x8x16xf32, #tpu.memory_space<vmem>>, vector<1x8x2xf32>,
    %c0_58 = arith.constant 0 : index
    %c0_59 = arith.constant 0 : index
    %c3 = arith.constant 3 : index
    %c0_60 = arith.constant 0 : index
    %c0_61 = arith.constant 0 : index
    %101 = vector.load %arg4[%c0_58, %c0_59, %c3, %c0_60, %c0_61] : memref<1x2x8x16x24xbf16, #tpu.memory_space<vmem>>, vector<1x1x1x16x24xbf16>
    %102 = vector.shape_cast %101 : vector<1x1x1x16x24xbf16> to vector<16x24xbf16>
    %103 = vector.extract_strided_slice %34 {offsets = [0, 6], sizes = [24, 2], strides = [1, 1]} : vector<24x16xbf16> to vector<24x2xbf16>
    %cst_62 = arith.constant dense<0.000000e+00> : vector<16x2xf32>
    %104 = tpu.matmul %102, %103, %cst_62 {dimension_numbers = #tpu.dot_dimension_numbers<[1], [0], [0], [1], [0, 0, 1, 1], [], []>} : vector<16x24xbf16>, vector<24x2xbf16>, vector<16x2xf32> -> vector<16x2xf32>
    %c0_63 = arith.constant 0 : index
    %c0_64 = arith.constant 0 : index
    %c3_65 = arith.constant 3 : index
    %c0_66 = arith.constant 0 : index
    %c0_67 = arith.constant 0 : index
    %105 = vector.load %arg5[%c0_63, %c0_64, %c3_65, %c0_66, %c0_67] : memref<1x2x8x16x1xf32, #tpu.memory_space<vmem>>, vector<1x1x1x16x1xf32>
    %106 = vector.shape_cast %105 : vector<1x1x1x16x1xf32> to vector<16x1xf32>
    %107 = vector.broadcast %106 : vector<16x1xf32> to vector<16x2xf32>
    %108 = arith.addf %104, %107 : vector<16x2xf32>
    %109 = vector.extract_strided_slice %108 {offsets = [0, 0], sizes = [8, 2], strides = [1, 1]} : vector<16x2xf32> to vector<8x2xf32>
    %110 = arith.negf %109 : vector<8x2xf32>
    %111 = math.exp %110 : vector<8x2xf32>
    %cst_68 = arith.constant 1.000000e+00 : f32
    %112 = vector.broadcast %cst_68 : f32 to vector<8x2xf32>
    %113 = arith.addf %112, %111 : vector<8x2xf32>
    %114 = arith.divf %112, %113 : vector<8x2xf32>
    %115 = vector.extract_strided_slice %108 {offsets = [8, 0], sizes = [8, 2], strides = [1, 1]} : vector<16x2xf32> to vector<8x2xf32>
    %116 = math.tanh %115 : vector<8x2xf32>
    %117 = arith.mulf %114, %116 : vector<8x2xf32>
    %118 = vector.extract_strided_slice %1 {offsets = [0, 6], sizes = [8, 2], strides = [1, 1]} : vector<8x16xf32> to vector<8x2xf32>
    %119 = arith.addf %118, %117 : vector<8x2xf32>
    %c0_69 = arith.constant 0 : index
    %c0_70 = arith.constant 0 : index
    %c6 = arith.constant 6 : index
    %120 = vector.load %arg6[%c0_69, %c0_70, %c6] : memref<1x8x16xf32, #tpu.memory_space<vmem>>, vector<1x8x2xf32>
    %121 = vector.shape_cast %120 : vector<1x8x2xf32> to vector<8x2xf32>
    %122 = vector.shape_cast %119 : vector<8x2xf32> to vector<1x8x2xf32>
    tpu.vector_store %arg6[%c0_69, %c0_70, %c6], %122 {strides = array<i32>} : memref<1x8x16xf32, #tpu.memory_space<vmem>>, vector<1x8x2xf32>,
    %c0_71 = arith.constant 0 : index
    %c0_72 = arith.constant 0 : index
    %c4_73 = arith.constant 4 : index
    %c0_74 = arith.constant 0 : index
    %c0_75 = arith.constant 0 : index
    %123 = vector.load %arg4[%c0_71, %c0_72, %c4_73, %c0_74, %c0_75] : memref<1x2x8x16x24xbf16, #tpu.memory_space<vmem>>, vector<1x1x1x16x24xbf16>
    %124 = vector.shape_cast %123 : vector<1x1x1x16x24xbf16> to vector<16x24xbf16>
    %125 = vector.extract_strided_slice %34 {offsets = [0, 8], sizes = [24, 2], strides = [1, 1]} : vector<24x16xbf16> to vector<24x2xbf16>
    %cst_76 = arith.constant dense<0.000000e+00> : vector<16x2xf32>
    %126 = tpu.matmul %124, %125, %cst_76 {dimension_numbers = #tpu.dot_dimension_numbers<[1], [0], [0], [1], [0, 0, 1, 1], [], []>} : vector<16x24xbf16>, vector<24x2xbf16>, vector<16x2xf32> -> vector<16x2xf32>
    %c0_77 = arith.constant 0 : index
    %c0_78 = arith.constant 0 : index
    %c4_79 = arith.constant 4 : index
    %c0_80 = arith.constant 0 : index
    %c0_81 = arith.constant 0 : index
    %127 = vector.load %arg5[%c0_77, %c0_78, %c4_79, %c0_80, %c0_81] : memref<1x2x8x16x1xf32, #tpu.memory_space<vmem>>, vector<1x1x1x16x1xf32>
    %128 = vector.shape_cast %127 : vector<1x1x1x16x1xf32> to vector<16x1xf32>
    %129 = vector.broadcast %128 : vector<16x1xf32> to vector<16x2xf32>
    %130 = arith.addf %126, %129 : vector<16x2xf32>
    %131 = vector.extract_strided_slice %130 {offsets = [0, 0], sizes = [8, 2], strides = [1, 1]} : vector<16x2xf32> to vector<8x2xf32>
    %132 = arith.negf %131 : vector<8x2xf32>
    %133 = math.exp %132 : vector<8x2xf32>
    %cst_82 = arith.constant 1.000000e+00 : f32
    %134 = vector.broadcast %cst_82 : f32 to vector<8x2xf32>
    %135 = arith.addf %134, %133 : vector<8x2xf32>
    %136 = arith.divf %134, %135 : vector<8x2xf32>
    %137 = vector.extract_strided_slice %130 {offsets = [8, 0], sizes = [8, 2], strides = [1, 1]} : vector<16x2xf32> to vector<8x2xf32>
    %138 = math.tanh %137 : vector<8x2xf32>
    %139 = arith.mulf %136, %138 : vector<8x2xf32>
    %140 = vector.extract_strided_slice %1 {offsets = [0, 8], sizes = [8, 2], strides = [1, 1]} : vector<8x16xf32> to vector<8x2xf32>
    %141 = arith.addf %140, %139 : vector<8x2xf32>
    %c0_83 = arith.constant 0 : index
    %c0_84 = arith.constant 0 : index
    %c8 = arith.constant 8 : index
    %142 = vector.load %arg6[%c0_83, %c0_84, %c8] : memref<1x8x16xf32, #tpu.memory_space<vmem>>, vector<1x8x2xf32>
    %143 = vector.shape_cast %142 : vector<1x8x2xf32> to vector<8x2xf32>
    %144 = vector.shape_cast %141 : vector<8x2xf32> to vector<1x8x2xf32>
    tpu.vector_store %arg6[%c0_83, %c0_84, %c8], %144 {strides = array<i32>} : memref<1x8x16xf32, #tpu.memory_space<vmem>>, vector<1x8x2xf32>,
    %c0_85 = arith.constant 0 : index
    %c0_86 = arith.constant 0 : index
    %c5 = arith.constant 5 : index
    %c0_87 = arith.constant 0 : index
    %c0_88 = arith.constant 0 : index
    %145 = vector.load %arg4[%c0_85, %c0_86, %c5, %c0_87, %c0_88] : memref<1x2x8x16x24xbf16, #tpu.memory_space<vmem>>, vector<1x1x1x16x24xbf16>
    %146 = vector.shape_cast %145 : vector<1x1x1x16x24xbf16> to vector<16x24xbf16>
    %147 = vector.extract_strided_slice %34 {offsets = [0, 10], sizes = [24, 2], strides = [1, 1]} : vector<24x16xbf16> to vector<24x2xbf16>
    %cst_89 = arith.constant dense<0.000000e+00> : vector<16x2xf32>
    %148 = tpu.matmul %146, %147, %cst_89 {dimension_numbers = #tpu.dot_dimension_numbers<[1], [0], [0], [1], [0, 0, 1, 1], [], []>} : vector<16x24xbf16>, vector<24x2xbf16>, vector<16x2xf32> -> vector<16x2xf32>
    %c0_90 = arith.constant 0 : index
    %c0_91 = arith.constant 0 : index
    %c5_92 = arith.constant 5 : index
    %c0_93 = arith.constant 0 : index
    %c0_94 = arith.constant 0 : index
    %149 = vector.load %arg5[%c0_90, %c0_91, %c5_92, %c0_93, %c0_94] : memref<1x2x8x16x1xf32, #tpu.memory_space<vmem>>, vector<1x1x1x16x1xf32>
    %150 = vector.shape_cast %149 : vector<1x1x1x16x1xf32> to vector<16x1xf32>
    %151 = vector.broadcast %150 : vector<16x1xf32> to vector<16x2xf32>
    %152 = arith.addf %148, %151 : vector<16x2xf32>
    %153 = vector.extract_strided_slice %152 {offsets = [0, 0], sizes = [8, 2], strides = [1, 1]} : vector<16x2xf32> to vector<8x2xf32>
    %154 = arith.negf %153 : vector<8x2xf32>
    %155 = math.exp %154 : vector<8x2xf32>
    %cst_95 = arith.constant 1.000000e+00 : f32
    %156 = vector.broadcast %cst_95 : f32 to vector<8x2xf32>
    %157 = arith.addf %156, %155 : vector<8x2xf32>
    %158 = arith.divf %156, %157 : vector<8x2xf32>
    %159 = vector.extract_strided_slice %152 {offsets = [8, 0], sizes = [8, 2], strides = [1, 1]} : vector<16x2xf32> to vector<8x2xf32>
    %160 = math.tanh %159 : vector<8x2xf32>
    %161 = arith.mulf %158, %160 : vector<8x2xf32>
    %162 = vector.extract_strided_slice %1 {offsets = [0, 10], sizes = [8, 2], strides = [1, 1]} : vector<8x16xf32> to vector<8x2xf32>
    %163 = arith.addf %162, %161 : vector<8x2xf32>
    %c0_96 = arith.constant 0 : index
    %c0_97 = arith.constant 0 : index
    %c10 = arith.constant 10 : index
    %164 = vector.load %arg6[%c0_96, %c0_97, %c10] : memref<1x8x16xf32, #tpu.memory_space<vmem>>, vector<1x8x2xf32>
    %165 = vector.shape_cast %164 : vector<1x8x2xf32> to vector<8x2xf32>
    %166 = vector.shape_cast %163 : vector<8x2xf32> to vector<1x8x2xf32>
    tpu.vector_store %arg6[%c0_96, %c0_97, %c10], %166 {strides = array<i32>} : memref<1x8x16xf32, #tpu.memory_space<vmem>>, vector<1x8x2xf32>,
    %c0_98 = arith.constant 0 : index
    %c0_99 = arith.constant 0 : index
    %c6_100 = arith.constant 6 : index
    %c0_101 = arith.constant 0 : index
    %c0_102 = arith.constant 0 : index
    %167 = vector.load %arg4[%c0_98, %c0_99, %c6_100, %c0_101, %c0_102] : memref<1x2x8x16x24xbf16, #tpu.memory_space<vmem>>, vector<1x1x1x16x24xbf16>
    %168 = vector.shape_cast %167 : vector<1x1x1x16x24xbf16> to vector<16x24xbf16>
    %169 = vector.extract_strided_slice %34 {offsets = [0, 12], sizes = [24, 2], strides = [1, 1]} : vector<24x16xbf16> to vector<24x2xbf16>
    %cst_103 = arith.constant dense<0.000000e+00> : vector<16x2xf32>
    %170 = tpu.matmul %168, %169, %cst_103 {dimension_numbers = #tpu.dot_dimension_numbers<[1], [0], [0], [1], [0, 0, 1, 1], [], []>} : vector<16x24xbf16>, vector<24x2xbf16>, vector<16x2xf32> -> vector<16x2xf32>
    %c0_104 = arith.constant 0 : index
    %c0_105 = arith.constant 0 : index
    %c6_106 = arith.constant 6 : index
    %c0_107 = arith.constant 0 : index
    %c0_108 = arith.constant 0 : index
    %171 = vector.load %arg5[%c0_104, %c0_105, %c6_106, %c0_107, %c0_108] : memref<1x2x8x16x1xf32, #tpu.memory_space<vmem>>, vector<1x1x1x16x1xf32>
    %172 = vector.shape_cast %171 : vector<1x1x1x16x1xf32> to vector<16x1xf32>
    %173 = vector.broadcast %172 : vector<16x1xf32> to vector<16x2xf32>
    %174 = arith.addf %170, %173 : vector<16x2xf32>
    %175 = vector.extract_strided_slice %174 {offsets = [0, 0], sizes = [8, 2], strides = [1, 1]} : vector<16x2xf32> to vector<8x2xf32>
    %176 = arith.negf %175 : vector<8x2xf32>
    %177 = math.exp %176 : vector<8x2xf32>
    %cst_109 = arith.constant 1.000000e+00 : f32
    %178 = vector.broadcast %cst_109 : f32 to vector<8x2xf32>
    %179 = arith.addf %178, %177 : vector<8x2xf32>
    %180 = arith.divf %178, %179 : vector<8x2xf32>
    %181 = vector.extract_strided_slice %174 {offsets = [8, 0], sizes = [8, 2], strides = [1, 1]} : vector<16x2xf32> to vector<8x2xf32>
    %182 = math.tanh %181 : vector<8x2xf32>
    %183 = arith.mulf %180, %182 : vector<8x2xf32>
    %184 = vector.extract_strided_slice %1 {offsets = [0, 12], sizes = [8, 2], strides = [1, 1]} : vector<8x16xf32> to vector<8x2xf32>
    %185 = arith.addf %184, %183 : vector<8x2xf32>
    %c0_110 = arith.constant 0 : index
    %c0_111 = arith.constant 0 : index
    %c12 = arith.constant 12 : index
    %186 = vector.load %arg6[%c0_110, %c0_111, %c12] : memref<1x8x16xf32, #tpu.memory_space<vmem>>, vector<1x8x2xf32>
    %187 = vector.shape_cast %186 : vector<1x8x2xf32> to vector<8x2xf32>
    %188 = vector.shape_cast %185 : vector<8x2xf32> to vector<1x8x2xf32>
    tpu.vector_store %arg6[%c0_110, %c0_111, %c12], %188 {strides = array<i32>} : memref<1x8x16xf32, #tpu.memory_space<vmem>>, vector<1x8x2xf32>,
    %c0_112 = arith.constant 0 : index
    %c0_113 = arith.constant 0 : index
    %c7 = arith.constant 7 : index
    %c0_114 = arith.constant 0 : index
    %c0_115 = arith.constant 0 : index
    %189 = vector.load %arg4[%c0_112, %c0_113, %c7, %c0_114, %c0_115] : memref<1x2x8x16x24xbf16, #tpu.memory_space<vmem>>, vector<1x1x1x16x24xbf16>
    %190 = vector.shape_cast %189 : vector<1x1x1x16x24xbf16> to vector<16x24xbf16>
    %191 = vector.extract_strided_slice %34 {offsets = [0, 14], sizes = [24, 2], strides = [1, 1]} : vector<24x16xbf16> to vector<24x2xbf16>
    %cst_116 = arith.constant dense<0.000000e+00> : vector<16x2xf32>
    %192 = tpu.matmul %190, %191, %cst_116 {dimension_numbers = #tpu.dot_dimension_numbers<[1], [0], [0], [1], [0, 0, 1, 1], [], []>} : vector<16x24xbf16>, vector<24x2xbf16>, vector<16x2xf32> -> vector<16x2xf32>
    %c0_117 = arith.constant 0 : index
    %c0_118 = arith.constant 0 : index
    %c7_119 = arith.constant 7 : index
    %c0_120 = arith.constant 0 : index
    %c0_121 = arith.constant 0 : index
    %193 = vector.load %arg5[%c0_117, %c0_118, %c7_119, %c0_120, %c0_121] : memref<1x2x8x16x1xf32, #tpu.memory_space<vmem>>, vector<1x1x1x16x1xf32>
    %194 = vector.shape_cast %193 : vector<1x1x1x16x1xf32> to vector<16x1xf32>
    %195 = vector.broadcast %194 : vector<16x1xf32> to vector<16x2xf32>
    %196 = arith.addf %192, %195 : vector<16x2xf32>
    %197 = vector.extract_strided_slice %196 {offsets = [0, 0], sizes = [8, 2], strides = [1, 1]} : vector<16x2xf32> to vector<8x2xf32>
    %198 = arith.negf %197 : vector<8x2xf32>
    %199 = math.exp %198 : vector<8x2xf32>
    %cst_122 = arith.constant 1.000000e+00 : f32
    %200 = vector.broadcast %cst_122 : f32 to vector<8x2xf32>
    %201 = arith.addf %200, %199 : vector<8x2xf32>
    %202 = arith.divf %200, %201 : vector<8x2xf32>
    %203 = vector.extract_strided_slice %196 {offsets = [8, 0], sizes = [8, 2], strides = [1, 1]} : vector<16x2xf32> to vector<8x2xf32>
    %204 = math.tanh %203 : vector<8x2xf32>
    %205 = arith.mulf %202, %204 : vector<8x2xf32>
    %206 = vector.extract_strided_slice %1 {offsets = [0, 14], sizes = [8, 2], strides = [1, 1]} : vector<8x16xf32> to vector<8x2xf32>
    %207 = arith.addf %206, %205 : vector<8x2xf32>
    %c0_123 = arith.constant 0 : index
    %c0_124 = arith.constant 0 : index
    %c14 = arith.constant 14 : index
    %208 = vector.load %arg6[%c0_123, %c0_124, %c14] : memref<1x8x16xf32, #tpu.memory_space<vmem>>, vector<1x8x2xf32>
    %209 = vector.shape_cast %208 : vector<1x8x2xf32> to vector<8x2xf32>
    %210 = vector.shape_cast %207 : vector<8x2xf32> to vector<1x8x2xf32>
    tpu.vector_store %arg6[%c0_123, %c0_124, %c14], %210 {strides = array<i32>} : memref<1x8x16xf32, #tpu.memory_space<vmem>>, vector<1x8x2xf32>,
    %c0_125 = arith.constant 0 : index
    %c0_126 = arith.constant 0 : index
    %c0_127 = arith.constant 0 : index
    %211 = vector.load %arg6[%c0_125, %c0_126, %c0_127] : memref<1x8x16xf32, #tpu.memory_space<vmem>>, vector<1x8x16xf32>
    %212 = vector.shape_cast %211 : vector<1x8x16xf32> to vector<8x16xf32>
    %cst_128 = arith.constant 0.000000e+00 : f32
    %213 = vector.broadcast %cst_128 : f32 to vector<8x16xf32>
    %214 = arith.cmpf oge, %212, %213 : vector<8x16xf32>
    %cst_129 = arith.constant 2.000000e-01 : f32
    %215 = vector.broadcast %cst_129 : f32 to vector<8x16xf32>
    %216 = arith.mulf %215, %212 : vector<8x16xf32>
    %217 = arith.select %214, %212, %216 : vector<8x16xi1>, vector<8x16xf32>
    %c1_130 = arith.constant 1 : index
    %c0_131 = arith.constant 0 : index
    %c0_132 = arith.constant 0 : index
    %218 = vector.load %arg2[%c1_130, %c0_131, %c0_132] : memref<2x8x24xbf16, #tpu.memory_space<vmem>>, vector<1x8x24xbf16>
    %219 = vector.shape_cast %218 : vector<1x8x24xbf16> to vector<8x24xbf16>
    %c1_133 = arith.constant 1 : index
    %c0_134 = arith.constant 0 : index
    %c0_135 = arith.constant 0 : index
    %220 = vector.load %arg3[%c1_133, %c0_134, %c0_135] : memref<2x8x1xf32, #tpu.memory_space<vmem>>, vector<1x8x1xf32>
    %221 = vector.shape_cast %220 : vector<1x8x1xf32> to vector<8x1xf32>
    %222 = arith.truncf %217 : vector<8x16xf32> to vector<8x16xbf16>
    %cst_136 = arith.constant 0.000000e+00 : bf16
    %223 = vector.broadcast %cst_136 : bf16 to vector<8x3xbf16>
    %cst_137 = arith.constant 0.000000e+00 : bf16
    %224 = vector.broadcast %cst_137 : bf16 to vector<8x3xbf16>
    %225 = tpu.concatenate %223, %222, %224 in 1 : vector<8x3xbf16>, vector<8x16xbf16>, vector<8x3xbf16> -> vector<8x22xbf16>
    %226 = vector.extract_strided_slice %225 {offsets = [0, 0], sizes = [8, 16], strides = [1, 1]} : vector<8x22xbf16> to vector<8x16xbf16>
    %227 = vector.extract_strided_slice %225 {offsets = [0, 3], sizes = [8, 16], strides = [1, 1]} : vector<8x22xbf16> to vector<8x16xbf16>
    %228 = vector.extract_strided_slice %225 {offsets = [0, 6], sizes = [8, 16], strides = [1, 1]} : vector<8x22xbf16> to vector<8x16xbf16>
    %229 = tpu.concatenate %226, %227, %228 in 0 : vector<8x16xbf16>, vector<8x16xbf16>, vector<8x16xbf16> -> vector<24x16xbf16>
    %cst_138 = arith.constant dense<0.000000e+00> : vector<8x16xf32>
    %230 = tpu.matmul %219, %229, %cst_138 {dimension_numbers = #tpu.dot_dimension_numbers<[1], [0], [0], [1], [0, 0, 1, 1], [], []>} : vector<8x24xbf16>, vector<24x16xbf16>, vector<8x16xf32> -> vector<8x16xf32>
    %231 = vector.broadcast %221 : vector<8x1xf32> to vector<8x16xf32>
    %232 = arith.addf %230, %231 : vector<8x16xf32>
    %cst_139 = arith.constant 0.000000e+00 : f32
    %233 = vector.broadcast %cst_139 : f32 to vector<8x16xf32>
    %234 = arith.cmpf oge, %232, %233 : vector<8x16xf32>
    %cst_140 = arith.constant 2.000000e-01 : f32
    %235 = vector.broadcast %cst_140 : f32 to vector<8x16xf32>
    %236 = arith.mulf %235, %232 : vector<8x16xf32>
    %237 = arith.select %234, %232, %236 : vector<8x16xi1>, vector<8x16xf32>
    %238 = arith.truncf %237 : vector<8x16xf32> to vector<8x16xbf16>
    %cst_141 = arith.constant 0.000000e+00 : bf16
    %239 = vector.broadcast %cst_141 : bf16 to vector<8x1xbf16>
    %cst_142 = arith.constant 0.000000e+00 : bf16
    %240 = vector.broadcast %cst_142 : bf16 to vector<8x1xbf16>
    %241 = tpu.concatenate %239, %238, %240 in 1 : vector<8x1xbf16>, vector<8x16xbf16>, vector<8x1xbf16> -> vector<8x18xbf16>
    %242 = vector.extract_strided_slice %241 {offsets = [0, 0], sizes = [8, 16], strides = [1, 1]} : vector<8x18xbf16> to vector<8x16xbf16>
    %243 = vector.extract_strided_slice %241 {offsets = [0, 1], sizes = [8, 16], strides = [1, 1]} : vector<8x18xbf16> to vector<8x16xbf16>
    %244 = vector.extract_strided_slice %241 {offsets = [0, 2], sizes = [8, 16], strides = [1, 1]} : vector<8x18xbf16> to vector<8x16xbf16>
    %245 = tpu.concatenate %242, %243, %244 in 0 : vector<8x16xbf16>, vector<8x16xbf16>, vector<8x16xbf16> -> vector<24x16xbf16>
    %c0_143 = arith.constant 0 : index
    %c1_144 = arith.constant 1 : index
    %c0_145 = arith.constant 0 : index
    %c0_146 = arith.constant 0 : index
    %c0_147 = arith.constant 0 : index
    %246 = vector.load %arg4[%c0_143, %c1_144, %c0_145, %c0_146, %c0_147] : memref<1x2x8x16x24xbf16, #tpu.memory_space<vmem>>, vector<1x1x1x16x24xbf16>
    %247 = vector.shape_cast %246 : vector<1x1x1x16x24xbf16> to vector<16x24xbf16>
    %248 = vector.extract_strided_slice %245 {offsets = [0, 0], sizes = [24, 2], strides = [1, 1]} : vector<24x16xbf16> to vector<24x2xbf16>
    %cst_148 = arith.constant dense<0.000000e+00> : vector<16x2xf32>
    %249 = tpu.matmul %247, %248, %cst_148 {dimension_numbers = #tpu.dot_dimension_numbers<[1], [0], [0], [1], [0, 0, 1, 1], [], []>} : vector<16x24xbf16>, vector<24x2xbf16>, vector<16x2xf32> -> vector<16x2xf32>
    %c0_149 = arith.constant 0 : index
    %c1_150 = arith.constant 1 : index
    %c0_151 = arith.constant 0 : index
    %c0_152 = arith.constant 0 : index
    %c0_153 = arith.constant 0 : index
    %250 = vector.load %arg5[%c0_149, %c1_150, %c0_151, %c0_152, %c0_153] : memref<1x2x8x16x1xf32, #tpu.memory_space<vmem>>, vector<1x1x1x16x1xf32>
    %251 = vector.shape_cast %250 : vector<1x1x1x16x1xf32> to vector<16x1xf32>
    %252 = vector.broadcast %251 : vector<16x1xf32> to vector<16x2xf32>
    %253 = arith.addf %249, %252 : vector<16x2xf32>
    %254 = vector.extract_strided_slice %253 {offsets = [0, 0], sizes = [8, 2], strides = [1, 1]} : vector<16x2xf32> to vector<8x2xf32>
    %255 = arith.negf %254 : vector<8x2xf32>
    %256 = math.exp %255 : vector<8x2xf32>
    %cst_154 = arith.constant 1.000000e+00 : f32
    %257 = vector.broadcast %cst_154 : f32 to vector<8x2xf32>
    %258 = arith.addf %257, %256 : vector<8x2xf32>
    %259 = arith.divf %257, %258 : vector<8x2xf32>
    %260 = vector.extract_strided_slice %253 {offsets = [8, 0], sizes = [8, 2], strides = [1, 1]} : vector<16x2xf32> to vector<8x2xf32>
    %261 = math.tanh %260 : vector<8x2xf32>
    %262 = arith.mulf %259, %261 : vector<8x2xf32>
    %263 = vector.extract_strided_slice %212 {offsets = [0, 0], sizes = [8, 2], strides = [1, 1]} : vector<8x16xf32> to vector<8x2xf32>
    %264 = arith.addf %263, %262 : vector<8x2xf32>
    %c0_155 = arith.constant 0 : index
    %c0_156 = arith.constant 0 : index
    %c0_157 = arith.constant 0 : index
    %265 = vector.load %arg6[%c0_155, %c0_156, %c0_157] : memref<1x8x16xf32, #tpu.memory_space<vmem>>, vector<1x8x2xf32>
    %266 = vector.shape_cast %265 : vector<1x8x2xf32> to vector<8x2xf32>
    %267 = vector.shape_cast %264 : vector<8x2xf32> to vector<1x8x2xf32>
    tpu.vector_store %arg6[%c0_155, %c0_156, %c0_157], %267 {strides = array<i32>} : memref<1x8x16xf32, #tpu.memory_space<vmem>>, vector<1x8x2xf32>,
    %c0_158 = arith.constant 0 : index
    %c1_159 = arith.constant 1 : index
    %c1_160 = arith.constant 1 : index
    %c0_161 = arith.constant 0 : index
    %c0_162 = arith.constant 0 : index
    %268 = vector.load %arg4[%c0_158, %c1_159, %c1_160, %c0_161, %c0_162] : memref<1x2x8x16x24xbf16, #tpu.memory_space<vmem>>, vector<1x1x1x16x24xbf16>
    %269 = vector.shape_cast %268 : vector<1x1x1x16x24xbf16> to vector<16x24xbf16>
    %270 = vector.extract_strided_slice %245 {offsets = [0, 2], sizes = [24, 2], strides = [1, 1]} : vector<24x16xbf16> to vector<24x2xbf16>
    %cst_163 = arith.constant dense<0.000000e+00> : vector<16x2xf32>
    %271 = tpu.matmul %269, %270, %cst_163 {dimension_numbers = #tpu.dot_dimension_numbers<[1], [0], [0], [1], [0, 0, 1, 1], [], []>} : vector<16x24xbf16>, vector<24x2xbf16>, vector<16x2xf32> -> vector<16x2xf32>
    %c0_164 = arith.constant 0 : index
    %c1_165 = arith.constant 1 : index
    %c1_166 = arith.constant 1 : index
    %c0_167 = arith.constant 0 : index
    %c0_168 = arith.constant 0 : index
    %272 = vector.load %arg5[%c0_164, %c1_165, %c1_166, %c0_167, %c0_168] : memref<1x2x8x16x1xf32, #tpu.memory_space<vmem>>, vector<1x1x1x16x1xf32>
    %273 = vector.shape_cast %272 : vector<1x1x1x16x1xf32> to vector<16x1xf32>
    %274 = vector.broadcast %273 : vector<16x1xf32> to vector<16x2xf32>
    %275 = arith.addf %271, %274 : vector<16x2xf32>
    %276 = vector.extract_strided_slice %275 {offsets = [0, 0], sizes = [8, 2], strides = [1, 1]} : vector<16x2xf32> to vector<8x2xf32>
    %277 = arith.negf %276 : vector<8x2xf32>
    %278 = math.exp %277 : vector<8x2xf32>
    %cst_169 = arith.constant 1.000000e+00 : f32
    %279 = vector.broadcast %cst_169 : f32 to vector<8x2xf32>
    %280 = arith.addf %279, %278 : vector<8x2xf32>
    %281 = arith.divf %279, %280 : vector<8x2xf32>
    %282 = vector.extract_strided_slice %275 {offsets = [8, 0], sizes = [8, 2], strides = [1, 1]} : vector<16x2xf32> to vector<8x2xf32>
    %283 = math.tanh %282 : vector<8x2xf32>
    %284 = arith.mulf %281, %283 : vector<8x2xf32>
    %285 = vector.extract_strided_slice %212 {offsets = [0, 2], sizes = [8, 2], strides = [1, 1]} : vector<8x16xf32> to vector<8x2xf32>
    %286 = arith.addf %285, %284 : vector<8x2xf32>
    %c0_170 = arith.constant 0 : index
    %c0_171 = arith.constant 0 : index
    %c2_172 = arith.constant 2 : index
    %287 = vector.load %arg6[%c0_170, %c0_171, %c2_172] : memref<1x8x16xf32, #tpu.memory_space<vmem>>, vector<1x8x2xf32>
    %288 = vector.shape_cast %287 : vector<1x8x2xf32> to vector<8x2xf32>
    %289 = vector.shape_cast %286 : vector<8x2xf32> to vector<1x8x2xf32>
    tpu.vector_store %arg6[%c0_170, %c0_171, %c2_172], %289 {strides = array<i32>} : memref<1x8x16xf32, #tpu.memory_space<vmem>>, vector<1x8x2xf32>,
    %c0_173 = arith.constant 0 : index
    %c1_174 = arith.constant 1 : index
    %c2_175 = arith.constant 2 : index
    %c0_176 = arith.constant 0 : index
    %c0_177 = arith.constant 0 : index
    %290 = vector.load %arg4[%c0_173, %c1_174, %c2_175, %c0_176, %c0_177] : memref<1x2x8x16x24xbf16, #tpu.memory_space<vmem>>, vector<1x1x1x16x24xbf16>
    %291 = vector.shape_cast %290 : vector<1x1x1x16x24xbf16> to vector<16x24xbf16>
    %292 = vector.extract_strided_slice %245 {offsets = [0, 4], sizes = [24, 2], strides = [1, 1]} : vector<24x16xbf16> to vector<24x2xbf16>
    %cst_178 = arith.constant dense<0.000000e+00> : vector<16x2xf32>
    %293 = tpu.matmul %291, %292, %cst_178 {dimension_numbers = #tpu.dot_dimension_numbers<[1], [0], [0], [1], [0, 0, 1, 1], [], []>} : vector<16x24xbf16>, vector<24x2xbf16>, vector<16x2xf32> -> vector<16x2xf32>
    %c0_179 = arith.constant 0 : index
    %c1_180 = arith.constant 1 : index
    %c2_181 = arith.constant 2 : index
    %c0_182 = arith.constant 0 : index
    %c0_183 = arith.constant 0 : index
    %294 = vector.load %arg5[%c0_179, %c1_180, %c2_181, %c0_182, %c0_183] : memref<1x2x8x16x1xf32, #tpu.memory_space<vmem>>, vector<1x1x1x16x1xf32>
    %295 = vector.shape_cast %294 : vector<1x1x1x16x1xf32> to vector<16x1xf32>
    %296 = vector.broadcast %295 : vector<16x1xf32> to vector<16x2xf32>
    %297 = arith.addf %293, %296 : vector<16x2xf32>
    %298 = vector.extract_strided_slice %297 {offsets = [0, 0], sizes = [8, 2], strides = [1, 1]} : vector<16x2xf32> to vector<8x2xf32>
    %299 = arith.negf %298 : vector<8x2xf32>
    %300 = math.exp %299 : vector<8x2xf32>
    %cst_184 = arith.constant 1.000000e+00 : f32
    %301 = vector.broadcast %cst_184 : f32 to vector<8x2xf32>
    %302 = arith.addf %301, %300 : vector<8x2xf32>
    %303 = arith.divf %301, %302 : vector<8x2xf32>
    %304 = vector.extract_strided_slice %297 {offsets = [8, 0], sizes = [8, 2], strides = [1, 1]} : vector<16x2xf32> to vector<8x2xf32>
    %305 = math.tanh %304 : vector<8x2xf32>
    %306 = arith.mulf %303, %305 : vector<8x2xf32>
    %307 = vector.extract_strided_slice %212 {offsets = [0, 4], sizes = [8, 2], strides = [1, 1]} : vector<8x16xf32> to vector<8x2xf32>
    %308 = arith.addf %307, %306 : vector<8x2xf32>
    %c0_185 = arith.constant 0 : index
    %c0_186 = arith.constant 0 : index
    %c4_187 = arith.constant 4 : index
    %309 = vector.load %arg6[%c0_185, %c0_186, %c4_187] : memref<1x8x16xf32, #tpu.memory_space<vmem>>, vector<1x8x2xf32>
    %310 = vector.shape_cast %309 : vector<1x8x2xf32> to vector<8x2xf32>
    %311 = vector.shape_cast %308 : vector<8x2xf32> to vector<1x8x2xf32>
    tpu.vector_store %arg6[%c0_185, %c0_186, %c4_187], %311 {strides = array<i32>} : memref<1x8x16xf32, #tpu.memory_space<vmem>>, vector<1x8x2xf32>,
    %c0_188 = arith.constant 0 : index
    %c1_189 = arith.constant 1 : index
    %c3_190 = arith.constant 3 : index
    %c0_191 = arith.constant 0 : index
    %c0_192 = arith.constant 0 : index
    %312 = vector.load %arg4[%c0_188, %c1_189, %c3_190, %c0_191, %c0_192] : memref<1x2x8x16x24xbf16, #tpu.memory_space<vmem>>, vector<1x1x1x16x24xbf16>
    %313 = vector.shape_cast %312 : vector<1x1x1x16x24xbf16> to vector<16x24xbf16>
    %314 = vector.extract_strided_slice %245 {offsets = [0, 6], sizes = [24, 2], strides = [1, 1]} : vector<24x16xbf16> to vector<24x2xbf16>
    %cst_193 = arith.constant dense<0.000000e+00> : vector<16x2xf32>
    %315 = tpu.matmul %313, %314, %cst_193 {dimension_numbers = #tpu.dot_dimension_numbers<[1], [0], [0], [1], [0, 0, 1, 1], [], []>} : vector<16x24xbf16>, vector<24x2xbf16>, vector<16x2xf32> -> vector<16x2xf32>
    %c0_194 = arith.constant 0 : index
    %c1_195 = arith.constant 1 : index
    %c3_196 = arith.constant 3 : index
    %c0_197 = arith.constant 0 : index
    %c0_198 = arith.constant 0 : index
    %316 = vector.load %arg5[%c0_194, %c1_195, %c3_196, %c0_197, %c0_198] : memref<1x2x8x16x1xf32, #tpu.memory_space<vmem>>, vector<1x1x1x16x1xf32>
    %317 = vector.shape_cast %316 : vector<1x1x1x16x1xf32> to vector<16x1xf32>
    %318 = vector.broadcast %317 : vector<16x1xf32> to vector<16x2xf32>
    %319 = arith.addf %315, %318 : vector<16x2xf32>
    %320 = vector.extract_strided_slice %319 {offsets = [0, 0], sizes = [8, 2], strides = [1, 1]} : vector<16x2xf32> to vector<8x2xf32>
    %321 = arith.negf %320 : vector<8x2xf32>
    %322 = math.exp %321 : vector<8x2xf32>
    %cst_199 = arith.constant 1.000000e+00 : f32
    %323 = vector.broadcast %cst_199 : f32 to vector<8x2xf32>
    %324 = arith.addf %323, %322 : vector<8x2xf32>
    %325 = arith.divf %323, %324 : vector<8x2xf32>
    %326 = vector.extract_strided_slice %319 {offsets = [8, 0], sizes = [8, 2], strides = [1, 1]} : vector<16x2xf32> to vector<8x2xf32>
    %327 = math.tanh %326 : vector<8x2xf32>
    %328 = arith.mulf %325, %327 : vector<8x2xf32>
    %329 = vector.extract_strided_slice %212 {offsets = [0, 6], sizes = [8, 2], strides = [1, 1]} : vector<8x16xf32> to vector<8x2xf32>
    %330 = arith.addf %329, %328 : vector<8x2xf32>
    %c0_200 = arith.constant 0 : index
    %c0_201 = arith.constant 0 : index
    %c6_202 = arith.constant 6 : index
    %331 = vector.load %arg6[%c0_200, %c0_201, %c6_202] : memref<1x8x16xf32, #tpu.memory_space<vmem>>, vector<1x8x2xf32>
    %332 = vector.shape_cast %331 : vector<1x8x2xf32> to vector<8x2xf32>
    %333 = vector.shape_cast %330 : vector<8x2xf32> to vector<1x8x2xf32>
    tpu.vector_store %arg6[%c0_200, %c0_201, %c6_202], %333 {strides = array<i32>} : memref<1x8x16xf32, #tpu.memory_space<vmem>>, vector<1x8x2xf32>,
    %c0_203 = arith.constant 0 : index
    %c1_204 = arith.constant 1 : index
    %c4_205 = arith.constant 4 : index
    %c0_206 = arith.constant 0 : index
    %c0_207 = arith.constant 0 : index
    %334 = vector.load %arg4[%c0_203, %c1_204, %c4_205, %c0_206, %c0_207] : memref<1x2x8x16x24xbf16, #tpu.memory_space<vmem>>, vector<1x1x1x16x24xbf16>
    %335 = vector.shape_cast %334 : vector<1x1x1x16x24xbf16> to vector<16x24xbf16>
    %336 = vector.extract_strided_slice %245 {offsets = [0, 8], sizes = [24, 2], strides = [1, 1]} : vector<24x16xbf16> to vector<24x2xbf16>
    %cst_208 = arith.constant dense<0.000000e+00> : vector<16x2xf32>
    %337 = tpu.matmul %335, %336, %cst_208 {dimension_numbers = #tpu.dot_dimension_numbers<[1], [0], [0], [1], [0, 0, 1, 1], [], []>} : vector<16x24xbf16>, vector<24x2xbf16>, vector<16x2xf32> -> vector<16x2xf32>
    %c0_209 = arith.constant 0 : index
    %c1_210 = arith.constant 1 : index
    %c4_211 = arith.constant 4 : index
    %c0_212 = arith.constant 0 : index
    %c0_213 = arith.constant 0 : index
    %338 = vector.load %arg5[%c0_209, %c1_210, %c4_211, %c0_212, %c0_213] : memref<1x2x8x16x1xf32, #tpu.memory_space<vmem>>, vector<1x1x1x16x1xf32>
    %339 = vector.shape_cast %338 : vector<1x1x1x16x1xf32> to vector<16x1xf32>
    %340 = vector.broadcast %339 : vector<16x1xf32> to vector<16x2xf32>
    %341 = arith.addf %337, %340 : vector<16x2xf32>
    %342 = vector.extract_strided_slice %341 {offsets = [0, 0], sizes = [8, 2], strides = [1, 1]} : vector<16x2xf32> to vector<8x2xf32>
    %343 = arith.negf %342 : vector<8x2xf32>
    %344 = math.exp %343 : vector<8x2xf32>
    %cst_214 = arith.constant 1.000000e+00 : f32
    %345 = vector.broadcast %cst_214 : f32 to vector<8x2xf32>
    %346 = arith.addf %345, %344 : vector<8x2xf32>
    %347 = arith.divf %345, %346 : vector<8x2xf32>
    %348 = vector.extract_strided_slice %341 {offsets = [8, 0], sizes = [8, 2], strides = [1, 1]} : vector<16x2xf32> to vector<8x2xf32>
    %349 = math.tanh %348 : vector<8x2xf32>
    %350 = arith.mulf %347, %349 : vector<8x2xf32>
    %351 = vector.extract_strided_slice %212 {offsets = [0, 8], sizes = [8, 2], strides = [1, 1]} : vector<8x16xf32> to vector<8x2xf32>
    %352 = arith.addf %351, %350 : vector<8x2xf32>
    %c0_215 = arith.constant 0 : index
    %c0_216 = arith.constant 0 : index
    %c8_217 = arith.constant 8 : index
    %353 = vector.load %arg6[%c0_215, %c0_216, %c8_217] : memref<1x8x16xf32, #tpu.memory_space<vmem>>, vector<1x8x2xf32>
    %354 = vector.shape_cast %353 : vector<1x8x2xf32> to vector<8x2xf32>
    %355 = vector.shape_cast %352 : vector<8x2xf32> to vector<1x8x2xf32>
    tpu.vector_store %arg6[%c0_215, %c0_216, %c8_217], %355 {strides = array<i32>} : memref<1x8x16xf32, #tpu.memory_space<vmem>>, vector<1x8x2xf32>,
    %c0_218 = arith.constant 0 : index
    %c1_219 = arith.constant 1 : index
    %c5_220 = arith.constant 5 : index
    %c0_221 = arith.constant 0 : index
    %c0_222 = arith.constant 0 : index
    %356 = vector.load %arg4[%c0_218, %c1_219, %c5_220, %c0_221, %c0_222] : memref<1x2x8x16x24xbf16, #tpu.memory_space<vmem>>, vector<1x1x1x16x24xbf16>
    %357 = vector.shape_cast %356 : vector<1x1x1x16x24xbf16> to vector<16x24xbf16>
    %358 = vector.extract_strided_slice %245 {offsets = [0, 10], sizes = [24, 2], strides = [1, 1]} : vector<24x16xbf16> to vector<24x2xbf16>
    %cst_223 = arith.constant dense<0.000000e+00> : vector<16x2xf32>
    %359 = tpu.matmul %357, %358, %cst_223 {dimension_numbers = #tpu.dot_dimension_numbers<[1], [0], [0], [1], [0, 0, 1, 1], [], []>} : vector<16x24xbf16>, vector<24x2xbf16>, vector<16x2xf32> -> vector<16x2xf32>
    %c0_224 = arith.constant 0 : index
    %c1_225 = arith.constant 1 : index
    %c5_226 = arith.constant 5 : index
    %c0_227 = arith.constant 0 : index
    %c0_228 = arith.constant 0 : index
    %360 = vector.load %arg5[%c0_224, %c1_225, %c5_226, %c0_227, %c0_228] : memref<1x2x8x16x1xf32, #tpu.memory_space<vmem>>, vector<1x1x1x16x1xf32>
    %361 = vector.shape_cast %360 : vector<1x1x1x16x1xf32> to vector<16x1xf32>
    %362 = vector.broadcast %361 : vector<16x1xf32> to vector<16x2xf32>
    %363 = arith.addf %359, %362 : vector<16x2xf32>
    %364 = vector.extract_strided_slice %363 {offsets = [0, 0], sizes = [8, 2], strides = [1, 1]} : vector<16x2xf32> to vector<8x2xf32>
    %365 = arith.negf %364 : vector<8x2xf32>
    %366 = math.exp %365 : vector<8x2xf32>
    %cst_229 = arith.constant 1.000000e+00 : f32
    %367 = vector.broadcast %cst_229 : f32 to vector<8x2xf32>
    %368 = arith.addf %367, %366 : vector<8x2xf32>
    %369 = arith.divf %367, %368 : vector<8x2xf32>
    %370 = vector.extract_strided_slice %363 {offsets = [8, 0], sizes = [8, 2], strides = [1, 1]} : vector<16x2xf32> to vector<8x2xf32>
    %371 = math.tanh %370 : vector<8x2xf32>
    %372 = arith.mulf %369, %371 : vector<8x2xf32>
    %373 = vector.extract_strided_slice %212 {offsets = [0, 10], sizes = [8, 2], strides = [1, 1]} : vector<8x16xf32> to vector<8x2xf32>
    %374 = arith.addf %373, %372 : vector<8x2xf32>
    %c0_230 = arith.constant 0 : index
    %c0_231 = arith.constant 0 : index
    %c10_232 = arith.constant 10 : index
    %375 = vector.load %arg6[%c0_230, %c0_231, %c10_232] : memref<1x8x16xf32, #tpu.memory_space<vmem>>, vector<1x8x2xf32>
    %376 = vector.shape_cast %375 : vector<1x8x2xf32> to vector<8x2xf32>
    %377 = vector.shape_cast %374 : vector<8x2xf32> to vector<1x8x2xf32>
    tpu.vector_store %arg6[%c0_230, %c0_231, %c10_232], %377 {strides = array<i32>} : memref<1x8x16xf32, #tpu.memory_space<vmem>>, vector<1x8x2xf32>,
    %c0_233 = arith.constant 0 : index
    %c1_234 = arith.constant 1 : index
    %c6_235 = arith.constant 6 : index
    %c0_236 = arith.constant 0 : index
    %c0_237 = arith.constant 0 : index
    %378 = vector.load %arg4[%c0_233, %c1_234, %c6_235, %c0_236, %c0_237] : memref<1x2x8x16x24xbf16, #tpu.memory_space<vmem>>, vector<1x1x1x16x24xbf16>
    %379 = vector.shape_cast %378 : vector<1x1x1x16x24xbf16> to vector<16x24xbf16>
    %380 = vector.extract_strided_slice %245 {offsets = [0, 12], sizes = [24, 2], strides = [1, 1]} : vector<24x16xbf16> to vector<24x2xbf16>
    %cst_238 = arith.constant dense<0.000000e+00> : vector<16x2xf32>
    %381 = tpu.matmul %379, %380, %cst_238 {dimension_numbers = #tpu.dot_dimension_numbers<[1], [0], [0], [1], [0, 0, 1, 1], [], []>} : vector<16x24xbf16>, vector<24x2xbf16>, vector<16x2xf32> -> vector<16x2xf32>
    %c0_239 = arith.constant 0 : index
    %c1_240 = arith.constant 1 : index
    %c6_241 = arith.constant 6 : index
    %c0_242 = arith.constant 0 : index
    %c0_243 = arith.constant 0 : index
    %382 = vector.load %arg5[%c0_239, %c1_240, %c6_241, %c0_242, %c0_243] : memref<1x2x8x16x1xf32, #tpu.memory_space<vmem>>, vector<1x1x1x16x1xf32>
    %383 = vector.shape_cast %382 : vector<1x1x1x16x1xf32> to vector<16x1xf32>
    %384 = vector.broadcast %383 : vector<16x1xf32> to vector<16x2xf32>
    %385 = arith.addf %381, %384 : vector<16x2xf32>
    %386 = vector.extract_strided_slice %385 {offsets = [0, 0], sizes = [8, 2], strides = [1, 1]} : vector<16x2xf32> to vector<8x2xf32>
    %387 = arith.negf %386 : vector<8x2xf32>
    %388 = math.exp %387 : vector<8x2xf32>
    %cst_244 = arith.constant 1.000000e+00 : f32
    %389 = vector.broadcast %cst_244 : f32 to vector<8x2xf32>
    %390 = arith.addf %389, %388 : vector<8x2xf32>
    %391 = arith.divf %389, %390 : vector<8x2xf32>
    %392 = vector.extract_strided_slice %385 {offsets = [8, 0], sizes = [8, 2], strides = [1, 1]} : vector<16x2xf32> to vector<8x2xf32>
    %393 = math.tanh %392 : vector<8x2xf32>
    %394 = arith.mulf %391, %393 : vector<8x2xf32>
    %395 = vector.extract_strided_slice %212 {offsets = [0, 12], sizes = [8, 2], strides = [1, 1]} : vector<8x16xf32> to vector<8x2xf32>
    %396 = arith.addf %395, %394 : vector<8x2xf32>
    %c0_245 = arith.constant 0 : index
    %c0_246 = arith.constant 0 : index
    %c12_247 = arith.constant 12 : index
    %397 = vector.load %arg6[%c0_245, %c0_246, %c12_247] : memref<1x8x16xf32, #tpu.memory_space<vmem>>, vector<1x8x2xf32>
    %398 = vector.shape_cast %397 : vector<1x8x2xf32> to vector<8x2xf32>
    %399 = vector.shape_cast %396 : vector<8x2xf32> to vector<1x8x2xf32>
    tpu.vector_store %arg6[%c0_245, %c0_246, %c12_247], %399 {strides = array<i32>} : memref<1x8x16xf32, #tpu.memory_space<vmem>>, vector<1x8x2xf32>,
    %c0_248 = arith.constant 0 : index
    %c1_249 = arith.constant 1 : index
    %c7_250 = arith.constant 7 : index
    %c0_251 = arith.constant 0 : index
    %c0_252 = arith.constant 0 : index
    %400 = vector.load %arg4[%c0_248, %c1_249, %c7_250, %c0_251, %c0_252] : memref<1x2x8x16x24xbf16, #tpu.memory_space<vmem>>, vector<1x1x1x16x24xbf16>
    %401 = vector.shape_cast %400 : vector<1x1x1x16x24xbf16> to vector<16x24xbf16>
    %402 = vector.extract_strided_slice %245 {offsets = [0, 14], sizes = [24, 2], strides = [1, 1]} : vector<24x16xbf16> to vector<24x2xbf16>
    %cst_253 = arith.constant dense<0.000000e+00> : vector<16x2xf32>
    %403 = tpu.matmul %401, %402, %cst_253 {dimension_numbers = #tpu.dot_dimension_numbers<[1], [0], [0], [1], [0, 0, 1, 1], [], []>} : vector<16x24xbf16>, vector<24x2xbf16>, vector<16x2xf32> -> vector<16x2xf32>
    %c0_254 = arith.constant 0 : index
    %c1_255 = arith.constant 1 : index
    %c7_256 = arith.constant 7 : index
    %c0_257 = arith.constant 0 : index
    %c0_258 = arith.constant 0 : index
    %404 = vector.load %arg5[%c0_254, %c1_255, %c7_256, %c0_257, %c0_258] : memref<1x2x8x16x1xf32, #tpu.memory_space<vmem>>, vector<1x1x1x16x1xf32>
    %405 = vector.shape_cast %404 : vector<1x1x1x16x1xf32> to vector<16x1xf32>
    %406 = vector.broadcast %405 : vector<16x1xf32> to vector<16x2xf32>
    %407 = arith.addf %403, %406 : vector<16x2xf32>
    %408 = vector.extract_strided_slice %407 {offsets = [0, 0], sizes = [8, 2], strides = [1, 1]} : vector<16x2xf32> to vector<8x2xf32>
    %409 = arith.negf %408 : vector<8x2xf32>
    %410 = math.exp %409 : vector<8x2xf32>
    %cst_259 = arith.constant 1.000000e+00 : f32
    %411 = vector.broadcast %cst_259 : f32 to vector<8x2xf32>
    %412 = arith.addf %411, %410 : vector<8x2xf32>
    %413 = arith.divf %411, %412 : vector<8x2xf32>
    %414 = vector.extract_strided_slice %407 {offsets = [8, 0], sizes = [8, 2], strides = [1, 1]} : vector<16x2xf32> to vector<8x2xf32>
    %415 = math.tanh %414 : vector<8x2xf32>
    %416 = arith.mulf %413, %415 : vector<8x2xf32>
    %417 = vector.extract_strided_slice %212 {offsets = [0, 14], sizes = [8, 2], strides = [1, 1]} : vector<8x16xf32> to vector<8x2xf32>
    %418 = arith.addf %417, %416 : vector<8x2xf32>
    %c0_260 = arith.constant 0 : index
    %c0_261 = arith.constant 0 : index
    %c14_262 = arith.constant 14 : index
    %419 = vector.load %arg6[%c0_260, %c0_261, %c14_262] : memref<1x8x16xf32, #tpu.memory_space<vmem>>, vector<1x8x2xf32>
    %420 = vector.shape_cast %419 : vector<1x8x2xf32> to vector<8x2xf32>
    %421 = vector.shape_cast %418 : vector<8x2xf32> to vector<1x8x2xf32>
    tpu.vector_store %arg6[%c0_260, %c0_261, %c14_262], %421 {strides = array<i32>} : memref<1x8x16xf32, #tpu.memory_space<vmem>>, vector<1x8x2xf32>,
    return
  }
  func.func @transform_0(%arg0: i32) -> (i32, i32, i32) {
    %c0_i32 = arith.constant 0 : i32
    %c0_i32_0 = arith.constant 0 : i32
    %c0_i32_1 = arith.constant 0 : i32
    return %arg0, %c0_i32, %c0_i32_0 : i32, i32, i32
  }
  func.func @transform_1(%arg0: i32) -> (i32, i32, i32) {
    %c0_i32 = arith.constant 0 : i32
    %c0_i32_0 = arith.constant 0 : i32
    %c0_i32_1 = arith.constant 0 : i32
    %c0_i32_2 = arith.constant 0 : i32
    return %c0_i32, %c0_i32_0, %c0_i32_1 : i32, i32, i32
  }
  func.func @transform_2(%arg0: i32) -> (i32, i32, i32) {
    %c0_i32 = arith.constant 0 : i32
    %c0_i32_0 = arith.constant 0 : i32
    %c0_i32_1 = arith.constant 0 : i32
    %c0_i32_2 = arith.constant 0 : i32
    return %c0_i32, %c0_i32_0, %c0_i32_1 : i32, i32, i32
  }
  func.func @transform_3(%arg0: i32) -> (i32, i32, i32, i32, i32) {
    %c0_i32 = arith.constant 0 : i32
    %c0_i32_0 = arith.constant 0 : i32
    %c0_i32_1 = arith.constant 0 : i32
    %c0_i32_2 = arith.constant 0 : i32
    %c0_i32_3 = arith.constant 0 : i32
    return %arg0, %c0_i32, %c0_i32_0, %c0_i32_1, %c0_i32_2 : i32, i32, i32, i32, i32
  }
  func.func @transform_4(%arg0: i32) -> (i32, i32, i32, i32, i32) {
    %c0_i32 = arith.constant 0 : i32
    %c0_i32_0 = arith.constant 0 : i32
    %c0_i32_1 = arith.constant 0 : i32
    %c0_i32_2 = arith.constant 0 : i32
    %c0_i32_3 = arith.constant 0 : i32
    return %arg0, %c0_i32, %c0_i32_0, %c0_i32_1, %c0_i32_2 : i32, i32, i32, i32, i32
  }
  func.func @transform_5(%arg0: i32) -> (i32, i32, i32) {
    %c0_i32 = arith.constant 0 : i32
    %c0_i32_0 = arith.constant 0 : i32
    %c0_i32_1 = arith.constant 0 : i32
    return %arg0, %c0_i32, %c0_i32_0 : i32, i32, i32
  }
}

module attributes {stable_mosaic.version = 11 : i64} {
  func.func @_upsample_poly_kernel(%arg0: i32, %arg1: memref<1x8x16xf32, #tpu.memory_space<vmem>>, %arg2: memref<16x24xbf16, #tpu.memory_space<vmem>>, %arg3: memref<16x1xf32, #tpu.memory_space<vmem>>, %arg4: memref<1x16x16xf32, #tpu.memory_space<vmem>>) attributes {dimension_semantics = [#tpu.dimension_semantics<parallel>], iteration_bounds = array<i64: 2>, scalar_prefetch = 0 : i64, scratch_operands = 0 : i64, tpu.core_type = #tpu.core_type<tc>, window_params = [{transform_indices = @transform_0, window_bounds = array<i64: 1, 8, 16>}, {pipeline_mode = #tpu.pipeline_mode<synchronous>, transform_indices = @transform_1, window_bounds = array<i64: 16, 24>}, {pipeline_mode = #tpu.pipeline_mode<synchronous>, transform_indices = @transform_2, window_bounds = array<i64: 16, 1>}, {transform_indices = @transform_3, window_bounds = array<i64: 1, 16, 16>}]} {
    %c0 = arith.constant 0 : index
    %c0_0 = arith.constant 0 : index
    %c0_1 = arith.constant 0 : index
    %0 = vector.load %arg1[%c0, %c0_0, %c0_1] : memref<1x8x16xf32, #tpu.memory_space<vmem>>, vector<1x8x16xf32>
    %1 = vector.shape_cast %0 : vector<1x8x16xf32> to vector<8x16xf32>
    %cst = arith.constant 0.000000e+00 : f32
    %2 = vector.broadcast %cst : f32 to vector<8x16xf32>
    %3 = arith.cmpf oge, %1, %2 : vector<8x16xf32>
    %cst_2 = arith.constant 2.000000e-01 : f32
    %4 = vector.broadcast %cst_2 : f32 to vector<8x16xf32>
    %5 = arith.mulf %4, %1 : vector<8x16xf32>
    %6 = arith.select %3, %1, %5 : vector<8x16xi1>, vector<8x16xf32>
    %c0_3 = arith.constant 0 : index
    %c0_4 = arith.constant 0 : index
    %7 = vector.load %arg2[%c0_3, %c0_4] : memref<16x24xbf16, #tpu.memory_space<vmem>>, vector<16x24xbf16>
    %c0_5 = arith.constant 0 : index
    %c0_6 = arith.constant 0 : index
    %8 = vector.load %arg3[%c0_5, %c0_6] : memref<16x1xf32, #tpu.memory_space<vmem>>, vector<16x1xf32>
    %9 = arith.truncf %6 : vector<8x16xf32> to vector<8x16xbf16>
    %cst_7 = arith.constant 0.000000e+00 : bf16
    %10 = vector.broadcast %cst_7 : bf16 to vector<8x1xbf16>
    %cst_8 = arith.constant 0.000000e+00 : bf16
    %11 = vector.broadcast %cst_8 : bf16 to vector<8x1xbf16>
    %12 = tpu.concatenate %10, %9, %11 in 1 : vector<8x1xbf16>, vector<8x16xbf16>, vector<8x1xbf16> -> vector<8x18xbf16>
    %13 = vector.extract_strided_slice %12 {offsets = [0, 0], sizes = [8, 16], strides = [1, 1]} : vector<8x18xbf16> to vector<8x16xbf16>
    %14 = vector.extract_strided_slice %12 {offsets = [0, 1], sizes = [8, 16], strides = [1, 1]} : vector<8x18xbf16> to vector<8x16xbf16>
    %15 = vector.extract_strided_slice %12 {offsets = [0, 2], sizes = [8, 16], strides = [1, 1]} : vector<8x18xbf16> to vector<8x16xbf16>
    %16 = tpu.concatenate %13, %14, %15 in 0 : vector<8x16xbf16>, vector<8x16xbf16>, vector<8x16xbf16> -> vector<24x16xbf16>
    %cst_9 = arith.constant dense<0.000000e+00> : vector<16x16xf32>
    %17 = tpu.matmul %7, %16, %cst_9 {dimension_numbers = #tpu.dot_dimension_numbers<[1], [0], [0], [1], [0, 0, 1, 1], [], []>} : vector<16x24xbf16>, vector<24x16xbf16>, vector<16x16xf32> -> vector<16x16xf32>
    %18 = vector.broadcast %8 : vector<16x1xf32> to vector<16x16xf32>
    %19 = arith.addf %17, %18 : vector<16x16xf32>
    %20 = vector.shape_cast %19 : vector<16x16xf32> to vector<1x16x16xf32>
    %c0_10 = arith.constant 0 : index
    %c0_11 = arith.constant 0 : index
    %c0_12 = arith.constant 0 : index
    %21 = vector.load %arg4[%c0_10, %c0_11, %c0_12] : memref<1x16x16xf32, #tpu.memory_space<vmem>>, vector<1x16x16xf32>
    tpu.vector_store %arg4[%c0_10, %c0_11, %c0_12], %20 {strides = array<i32>} : memref<1x16x16xf32, #tpu.memory_space<vmem>>, vector<1x16x16xf32>,
    return
  }
  func.func @transform_0(%arg0: i32) -> (i32, i32, i32) {
    %c0_i32 = arith.constant 0 : i32
    %c0_i32_0 = arith.constant 0 : i32
    %c0_i32_1 = arith.constant 0 : i32
    return %arg0, %c0_i32, %c0_i32_0 : i32, i32, i32
  }
  func.func @transform_1(%arg0: i32) -> (i32, i32) {
    %c0_i32 = arith.constant 0 : i32
    %c0_i32_0 = arith.constant 0 : i32
    %c0_i32_1 = arith.constant 0 : i32
    return %c0_i32, %c0_i32_0 : i32, i32
  }
  func.func @transform_2(%arg0: i32) -> (i32, i32) {
    %c0_i32 = arith.constant 0 : i32
    %c0_i32_0 = arith.constant 0 : i32
    %c0_i32_1 = arith.constant 0 : i32
    return %c0_i32, %c0_i32_0 : i32, i32
  }
  func.func @transform_3(%arg0: i32) -> (i32, i32, i32) {
    %c0_i32 = arith.constant 0 : i32
    %c0_i32_0 = arith.constant 0 : i32
    %c0_i32_1 = arith.constant 0 : i32
    return %arg0, %c0_i32, %c0_i32_0 : i32, i32, i32
  }
}

module attributes {stable_mosaic.version = 11 : i64} {
  func.func @_lvc_block_kernel(%arg0: i32, %arg1: memref<1x8x32xf32, #tpu.memory_space<vmem>>, %arg2: memref<2x8x24xbf16, #tpu.memory_space<vmem>>, %arg3: memref<2x8x1xf32, #tpu.memory_space<vmem>>, %arg4: memref<1x2x8x16x24xbf16, #tpu.memory_space<vmem>>, %arg5: memref<1x2x8x16x1xf32, #tpu.memory_space<vmem>>, %arg6: memref<1x8x32xf32, #tpu.memory_space<vmem>>) attributes {dimension_semantics = [#tpu.dimension_semantics<parallel>], iteration_bounds = array<i64: 2>, scalar_prefetch = 0 : i64, scratch_operands = 0 : i64, tpu.core_type = #tpu.core_type<tc>, window_params = [{transform_indices = @transform_0, window_bounds = array<i64: 1, 8, 32>}, {pipeline_mode = #tpu.pipeline_mode<synchronous>, transform_indices = @transform_1, window_bounds = array<i64: 2, 8, 24>}, {pipeline_mode = #tpu.pipeline_mode<synchronous>, transform_indices = @transform_2, window_bounds = array<i64: 2, 8, 1>}, {transform_indices = @transform_3, window_bounds = array<i64: 1, 2, 8, 16, 24>}, {transform_indices = @transform_4, window_bounds = array<i64: 1, 2, 8, 16, 1>}, {transform_indices = @transform_5, window_bounds = array<i64: 1, 8, 32>}]} {
    %c0 = arith.constant 0 : index
    %c0_0 = arith.constant 0 : index
    %c0_1 = arith.constant 0 : index
    %0 = vector.load %arg1[%c0, %c0_0, %c0_1] : memref<1x8x32xf32, #tpu.memory_space<vmem>>, vector<1x8x32xf32>
    %1 = vector.shape_cast %0 : vector<1x8x32xf32> to vector<8x32xf32>
    %cst = arith.constant 0.000000e+00 : f32
    %2 = vector.broadcast %cst : f32 to vector<8x32xf32>
    %3 = arith.cmpf oge, %1, %2 : vector<8x32xf32>
    %cst_2 = arith.constant 2.000000e-01 : f32
    %4 = vector.broadcast %cst_2 : f32 to vector<8x32xf32>
    %5 = arith.mulf %4, %1 : vector<8x32xf32>
    %6 = arith.select %3, %1, %5 : vector<8x32xi1>, vector<8x32xf32>
    %c0_3 = arith.constant 0 : index
    %c0_4 = arith.constant 0 : index
    %c0_5 = arith.constant 0 : index
    %7 = vector.load %arg2[%c0_3, %c0_4, %c0_5] : memref<2x8x24xbf16, #tpu.memory_space<vmem>>, vector<1x8x24xbf16>
    %8 = vector.shape_cast %7 : vector<1x8x24xbf16> to vector<8x24xbf16>
    %c0_6 = arith.constant 0 : index
    %c0_7 = arith.constant 0 : index
    %c0_8 = arith.constant 0 : index
    %9 = vector.load %arg3[%c0_6, %c0_7, %c0_8] : memref<2x8x1xf32, #tpu.memory_space<vmem>>, vector<1x8x1xf32>
    %10 = vector.shape_cast %9 : vector<1x8x1xf32> to vector<8x1xf32>
    %11 = arith.truncf %6 : vector<8x32xf32> to vector<8x32xbf16>
    %cst_9 = arith.constant 0.000000e+00 : bf16
    %12 = vector.broadcast %cst_9 : bf16 to vector<8x1xbf16>
    %cst_10 = arith.constant 0.000000e+00 : bf16
    %13 = vector.broadcast %cst_10 : bf16 to vector<8x1xbf16>
    %14 = tpu.concatenate %12, %11, %13 in 1 : vector<8x1xbf16>, vector<8x32xbf16>, vector<8x1xbf16> -> vector<8x34xbf16>
    %15 = vector.extract_strided_slice %14 {offsets = [0, 0], sizes = [8, 32], strides = [1, 1]} : vector<8x34xbf16> to vector<8x32xbf16>
    %16 = vector.extract_strided_slice %14 {offsets = [0, 1], sizes = [8, 32], strides = [1, 1]} : vector<8x34xbf16> to vector<8x32xbf16>
    %17 = vector.extract_strided_slice %14 {offsets = [0, 2], sizes = [8, 32], strides = [1, 1]} : vector<8x34xbf16> to vector<8x32xbf16>
    %18 = tpu.concatenate %15, %16, %17 in 0 : vector<8x32xbf16>, vector<8x32xbf16>, vector<8x32xbf16> -> vector<24x32xbf16>
    %cst_11 = arith.constant dense<0.000000e+00> : vector<8x32xf32>
    %19 = tpu.matmul %8, %18, %cst_11 {dimension_numbers = #tpu.dot_dimension_numbers<[1], [0], [0], [1], [0, 0, 1, 1], [], []>} : vector<8x24xbf16>, vector<24x32xbf16>, vector<8x32xf32> -> vector<8x32xf32>
    %20 = vector.broadcast %10 : vector<8x1xf32> to vector<8x32xf32>
    %21 = arith.addf %19, %20 : vector<8x32xf32>
    %cst_12 = arith.constant 0.000000e+00 : f32
    %22 = vector.broadcast %cst_12 : f32 to vector<8x32xf32>
    %23 = arith.cmpf oge, %21, %22 : vector<8x32xf32>
    %cst_13 = arith.constant 2.000000e-01 : f32
    %24 = vector.broadcast %cst_13 : f32 to vector<8x32xf32>
    %25 = arith.mulf %24, %21 : vector<8x32xf32>
    %26 = arith.select %23, %21, %25 : vector<8x32xi1>, vector<8x32xf32>
    %27 = arith.truncf %26 : vector<8x32xf32> to vector<8x32xbf16>
    %cst_14 = arith.constant 0.000000e+00 : bf16
    %28 = vector.broadcast %cst_14 : bf16 to vector<8x1xbf16>
    %cst_15 = arith.constant 0.000000e+00 : bf16
    %29 = vector.broadcast %cst_15 : bf16 to vector<8x1xbf16>
    %30 = tpu.concatenate %28, %27, %29 in 1 : vector<8x1xbf16>, vector<8x32xbf16>, vector<8x1xbf16> -> vector<8x34xbf16>
    %31 = vector.extract_strided_slice %30 {offsets = [0, 0], sizes = [8, 32], strides = [1, 1]} : vector<8x34xbf16> to vector<8x32xbf16>
    %32 = vector.extract_strided_slice %30 {offsets = [0, 1], sizes = [8, 32], strides = [1, 1]} : vector<8x34xbf16> to vector<8x32xbf16>
    %33 = vector.extract_strided_slice %30 {offsets = [0, 2], sizes = [8, 32], strides = [1, 1]} : vector<8x34xbf16> to vector<8x32xbf16>
    %34 = tpu.concatenate %31, %32, %33 in 0 : vector<8x32xbf16>, vector<8x32xbf16>, vector<8x32xbf16> -> vector<24x32xbf16>
    %c0_16 = arith.constant 0 : index
    %c0_17 = arith.constant 0 : index
    %c0_18 = arith.constant 0 : index
    %c0_19 = arith.constant 0 : index
    %c0_20 = arith.constant 0 : index
    %35 = vector.load %arg4[%c0_16, %c0_17, %c0_18, %c0_19, %c0_20] : memref<1x2x8x16x24xbf16, #tpu.memory_space<vmem>>, vector<1x1x1x16x24xbf16>
    %36 = vector.shape_cast %35 : vector<1x1x1x16x24xbf16> to vector<16x24xbf16>
    %37 = vector.extract_strided_slice %34 {offsets = [0, 0], sizes = [24, 4], strides = [1, 1]} : vector<24x32xbf16> to vector<24x4xbf16>
    %cst_21 = arith.constant dense<0.000000e+00> : vector<16x4xf32>
    %38 = tpu.matmul %36, %37, %cst_21 {dimension_numbers = #tpu.dot_dimension_numbers<[1], [0], [0], [1], [0, 0, 1, 1], [], []>} : vector<16x24xbf16>, vector<24x4xbf16>, vector<16x4xf32> -> vector<16x4xf32>
    %c0_22 = arith.constant 0 : index
    %c0_23 = arith.constant 0 : index
    %c0_24 = arith.constant 0 : index
    %c0_25 = arith.constant 0 : index
    %c0_26 = arith.constant 0 : index
    %39 = vector.load %arg5[%c0_22, %c0_23, %c0_24, %c0_25, %c0_26] : memref<1x2x8x16x1xf32, #tpu.memory_space<vmem>>, vector<1x1x1x16x1xf32>
    %40 = vector.shape_cast %39 : vector<1x1x1x16x1xf32> to vector<16x1xf32>
    %41 = vector.broadcast %40 : vector<16x1xf32> to vector<16x4xf32>
    %42 = arith.addf %38, %41 : vector<16x4xf32>
    %43 = vector.extract_strided_slice %42 {offsets = [0, 0], sizes = [8, 4], strides = [1, 1]} : vector<16x4xf32> to vector<8x4xf32>
    %44 = arith.negf %43 : vector<8x4xf32>
    %45 = math.exp %44 : vector<8x4xf32>
    %cst_27 = arith.constant 1.000000e+00 : f32
    %46 = vector.broadcast %cst_27 : f32 to vector<8x4xf32>
    %47 = arith.addf %46, %45 : vector<8x4xf32>
    %48 = arith.divf %46, %47 : vector<8x4xf32>
    %49 = vector.extract_strided_slice %42 {offsets = [8, 0], sizes = [8, 4], strides = [1, 1]} : vector<16x4xf32> to vector<8x4xf32>
    %50 = math.tanh %49 : vector<8x4xf32>
    %51 = arith.mulf %48, %50 : vector<8x4xf32>
    %52 = vector.extract_strided_slice %1 {offsets = [0, 0], sizes = [8, 4], strides = [1, 1]} : vector<8x32xf32> to vector<8x4xf32>
    %53 = arith.addf %52, %51 : vector<8x4xf32>
    %c0_28 = arith.constant 0 : index
    %c0_29 = arith.constant 0 : index
    %c0_30 = arith.constant 0 : index
    %54 = vector.load %arg6[%c0_28, %c0_29, %c0_30] : memref<1x8x32xf32, #tpu.memory_space<vmem>>, vector<1x8x4xf32>
    %55 = vector.shape_cast %54 : vector<1x8x4xf32> to vector<8x4xf32>
    %56 = vector.shape_cast %53 : vector<8x4xf32> to vector<1x8x4xf32>
    tpu.vector_store %arg6[%c0_28, %c0_29, %c0_30], %56 {strides = array<i32>} : memref<1x8x32xf32, #tpu.memory_space<vmem>>, vector<1x8x4xf32>,
    %c0_31 = arith.constant 0 : index
    %c0_32 = arith.constant 0 : index
    %c1 = arith.constant 1 : index
    %c0_33 = arith.constant 0 : index
    %c0_34 = arith.constant 0 : index
    %57 = vector.load %arg4[%c0_31, %c0_32, %c1, %c0_33, %c0_34] : memref<1x2x8x16x24xbf16, #tpu.memory_space<vmem>>, vector<1x1x1x16x24xbf16>
    %58 = vector.shape_cast %57 : vector<1x1x1x16x24xbf16> to vector<16x24xbf16>
    %59 = vector.extract_strided_slice %34 {offsets = [0, 4], sizes = [24, 4], strides = [1, 1]} : vector<24x32xbf16> to vector<24x4xbf16>
    %cst_35 = arith.constant dense<0.000000e+00> : vector<16x4xf32>
    %60 = tpu.matmul %58, %59, %cst_35 {dimension_numbers = #tpu.dot_dimension_numbers<[1], [0], [0], [1], [0, 0, 1, 1], [], []>} : vector<16x24xbf16>, vector<24x4xbf16>, vector<16x4xf32> -> vector<16x4xf32>
    %c0_36 = arith.constant 0 : index
    %c0_37 = arith.constant 0 : index
    %c1_38 = arith.constant 1 : index
    %c0_39 = arith.constant 0 : index
    %c0_40 = arith.constant 0 : index
    %61 = vector.load %arg5[%c0_36, %c0_37, %c1_38, %c0_39, %c0_40] : memref<1x2x8x16x1xf32, #tpu.memory_space<vmem>>, vector<1x1x1x16x1xf32>
    %62 = vector.shape_cast %61 : vector<1x1x1x16x1xf32> to vector<16x1xf32>
    %63 = vector.broadcast %62 : vector<16x1xf32> to vector<16x4xf32>
    %64 = arith.addf %60, %63 : vector<16x4xf32>
    %65 = vector.extract_strided_slice %64 {offsets = [0, 0], sizes = [8, 4], strides = [1, 1]} : vector<16x4xf32> to vector<8x4xf32>
    %66 = arith.negf %65 : vector<8x4xf32>
    %67 = math.exp %66 : vector<8x4xf32>
    %cst_41 = arith.constant 1.000000e+00 : f32
    %68 = vector.broadcast %cst_41 : f32 to vector<8x4xf32>
    %69 = arith.addf %68, %67 : vector<8x4xf32>
    %70 = arith.divf %68, %69 : vector<8x4xf32>
    %71 = vector.extract_strided_slice %64 {offsets = [8, 0], sizes = [8, 4], strides = [1, 1]} : vector<16x4xf32> to vector<8x4xf32>
    %72 = math.tanh %71 : vector<8x4xf32>
    %73 = arith.mulf %70, %72 : vector<8x4xf32>
    %74 = vector.extract_strided_slice %1 {offsets = [0, 4], sizes = [8, 4], strides = [1, 1]} : vector<8x32xf32> to vector<8x4xf32>
    %75 = arith.addf %74, %73 : vector<8x4xf32>
    %c0_42 = arith.constant 0 : index
    %c0_43 = arith.constant 0 : index
    %c4 = arith.constant 4 : index
    %76 = vector.load %arg6[%c0_42, %c0_43, %c4] : memref<1x8x32xf32, #tpu.memory_space<vmem>>, vector<1x8x4xf32>
    %77 = vector.shape_cast %76 : vector<1x8x4xf32> to vector<8x4xf32>
    %78 = vector.shape_cast %75 : vector<8x4xf32> to vector<1x8x4xf32>
    tpu.vector_store %arg6[%c0_42, %c0_43, %c4], %78 {strides = array<i32>} : memref<1x8x32xf32, #tpu.memory_space<vmem>>, vector<1x8x4xf32>,
    %c0_44 = arith.constant 0 : index
    %c0_45 = arith.constant 0 : index
    %c2 = arith.constant 2 : index
    %c0_46 = arith.constant 0 : index
    %c0_47 = arith.constant 0 : index
    %79 = vector.load %arg4[%c0_44, %c0_45, %c2, %c0_46, %c0_47] : memref<1x2x8x16x24xbf16, #tpu.memory_space<vmem>>, vector<1x1x1x16x24xbf16>
    %80 = vector.shape_cast %79 : vector<1x1x1x16x24xbf16> to vector<16x24xbf16>
    %81 = vector.extract_strided_slice %34 {offsets = [0, 8], sizes = [24, 4], strides = [1, 1]} : vector<24x32xbf16> to vector<24x4xbf16>
    %cst_48 = arith.constant dense<0.000000e+00> : vector<16x4xf32>
    %82 = tpu.matmul %80, %81, %cst_48 {dimension_numbers = #tpu.dot_dimension_numbers<[1], [0], [0], [1], [0, 0, 1, 1], [], []>} : vector<16x24xbf16>, vector<24x4xbf16>, vector<16x4xf32> -> vector<16x4xf32>
    %c0_49 = arith.constant 0 : index
    %c0_50 = arith.constant 0 : index
    %c2_51 = arith.constant 2 : index
    %c0_52 = arith.constant 0 : index
    %c0_53 = arith.constant 0 : index
    %83 = vector.load %arg5[%c0_49, %c0_50, %c2_51, %c0_52, %c0_53] : memref<1x2x8x16x1xf32, #tpu.memory_space<vmem>>, vector<1x1x1x16x1xf32>
    %84 = vector.shape_cast %83 : vector<1x1x1x16x1xf32> to vector<16x1xf32>
    %85 = vector.broadcast %84 : vector<16x1xf32> to vector<16x4xf32>
    %86 = arith.addf %82, %85 : vector<16x4xf32>
    %87 = vector.extract_strided_slice %86 {offsets = [0, 0], sizes = [8, 4], strides = [1, 1]} : vector<16x4xf32> to vector<8x4xf32>
    %88 = arith.negf %87 : vector<8x4xf32>
    %89 = math.exp %88 : vector<8x4xf32>
    %cst_54 = arith.constant 1.000000e+00 : f32
    %90 = vector.broadcast %cst_54 : f32 to vector<8x4xf32>
    %91 = arith.addf %90, %89 : vector<8x4xf32>
    %92 = arith.divf %90, %91 : vector<8x4xf32>
    %93 = vector.extract_strided_slice %86 {offsets = [8, 0], sizes = [8, 4], strides = [1, 1]} : vector<16x4xf32> to vector<8x4xf32>
    %94 = math.tanh %93 : vector<8x4xf32>
    %95 = arith.mulf %92, %94 : vector<8x4xf32>
    %96 = vector.extract_strided_slice %1 {offsets = [0, 8], sizes = [8, 4], strides = [1, 1]} : vector<8x32xf32> to vector<8x4xf32>
    %97 = arith.addf %96, %95 : vector<8x4xf32>
    %c0_55 = arith.constant 0 : index
    %c0_56 = arith.constant 0 : index
    %c8 = arith.constant 8 : index
    %98 = vector.load %arg6[%c0_55, %c0_56, %c8] : memref<1x8x32xf32, #tpu.memory_space<vmem>>, vector<1x8x4xf32>
    %99 = vector.shape_cast %98 : vector<1x8x4xf32> to vector<8x4xf32>
    %100 = vector.shape_cast %97 : vector<8x4xf32> to vector<1x8x4xf32>
    tpu.vector_store %arg6[%c0_55, %c0_56, %c8], %100 {strides = array<i32>} : memref<1x8x32xf32, #tpu.memory_space<vmem>>, vector<1x8x4xf32>,
    %c0_57 = arith.constant 0 : index
    %c0_58 = arith.constant 0 : index
    %c3 = arith.constant 3 : index
    %c0_59 = arith.constant 0 : index
    %c0_60 = arith.constant 0 : index
    %101 = vector.load %arg4[%c0_57, %c0_58, %c3, %c0_59, %c0_60] : memref<1x2x8x16x24xbf16, #tpu.memory_space<vmem>>, vector<1x1x1x16x24xbf16>
    %102 = vector.shape_cast %101 : vector<1x1x1x16x24xbf16> to vector<16x24xbf16>
    %103 = vector.extract_strided_slice %34 {offsets = [0, 12], sizes = [24, 4], strides = [1, 1]} : vector<24x32xbf16> to vector<24x4xbf16>
    %cst_61 = arith.constant dense<0.000000e+00> : vector<16x4xf32>
    %104 = tpu.matmul %102, %103, %cst_61 {dimension_numbers = #tpu.dot_dimension_numbers<[1], [0], [0], [1], [0, 0, 1, 1], [], []>} : vector<16x24xbf16>, vector<24x4xbf16>, vector<16x4xf32> -> vector<16x4xf32>
    %c0_62 = arith.constant 0 : index
    %c0_63 = arith.constant 0 : index
    %c3_64 = arith.constant 3 : index
    %c0_65 = arith.constant 0 : index
    %c0_66 = arith.constant 0 : index
    %105 = vector.load %arg5[%c0_62, %c0_63, %c3_64, %c0_65, %c0_66] : memref<1x2x8x16x1xf32, #tpu.memory_space<vmem>>, vector<1x1x1x16x1xf32>
    %106 = vector.shape_cast %105 : vector<1x1x1x16x1xf32> to vector<16x1xf32>
    %107 = vector.broadcast %106 : vector<16x1xf32> to vector<16x4xf32>
    %108 = arith.addf %104, %107 : vector<16x4xf32>
    %109 = vector.extract_strided_slice %108 {offsets = [0, 0], sizes = [8, 4], strides = [1, 1]} : vector<16x4xf32> to vector<8x4xf32>
    %110 = arith.negf %109 : vector<8x4xf32>
    %111 = math.exp %110 : vector<8x4xf32>
    %cst_67 = arith.constant 1.000000e+00 : f32
    %112 = vector.broadcast %cst_67 : f32 to vector<8x4xf32>
    %113 = arith.addf %112, %111 : vector<8x4xf32>
    %114 = arith.divf %112, %113 : vector<8x4xf32>
    %115 = vector.extract_strided_slice %108 {offsets = [8, 0], sizes = [8, 4], strides = [1, 1]} : vector<16x4xf32> to vector<8x4xf32>
    %116 = math.tanh %115 : vector<8x4xf32>
    %117 = arith.mulf %114, %116 : vector<8x4xf32>
    %118 = vector.extract_strided_slice %1 {offsets = [0, 12], sizes = [8, 4], strides = [1, 1]} : vector<8x32xf32> to vector<8x4xf32>
    %119 = arith.addf %118, %117 : vector<8x4xf32>
    %c0_68 = arith.constant 0 : index
    %c0_69 = arith.constant 0 : index
    %c12 = arith.constant 12 : index
    %120 = vector.load %arg6[%c0_68, %c0_69, %c12] : memref<1x8x32xf32, #tpu.memory_space<vmem>>, vector<1x8x4xf32>
    %121 = vector.shape_cast %120 : vector<1x8x4xf32> to vector<8x4xf32>
    %122 = vector.shape_cast %119 : vector<8x4xf32> to vector<1x8x4xf32>
    tpu.vector_store %arg6[%c0_68, %c0_69, %c12], %122 {strides = array<i32>} : memref<1x8x32xf32, #tpu.memory_space<vmem>>, vector<1x8x4xf32>,
    %c0_70 = arith.constant 0 : index
    %c0_71 = arith.constant 0 : index
    %c4_72 = arith.constant 4 : index
    %c0_73 = arith.constant 0 : index
    %c0_74 = arith.constant 0 : index
    %123 = vector.load %arg4[%c0_70, %c0_71, %c4_72, %c0_73, %c0_74] : memref<1x2x8x16x24xbf16, #tpu.memory_space<vmem>>, vector<1x1x1x16x24xbf16>
    %124 = vector.shape_cast %123 : vector<1x1x1x16x24xbf16> to vector<16x24xbf16>
    %125 = vector.extract_strided_slice %34 {offsets = [0, 16], sizes = [24, 4], strides = [1, 1]} : vector<24x32xbf16> to vector<24x4xbf16>
    %cst_75 = arith.constant dense<0.000000e+00> : vector<16x4xf32>
    %126 = tpu.matmul %124, %125, %cst_75 {dimension_numbers = #tpu.dot_dimension_numbers<[1], [0], [0], [1], [0, 0, 1, 1], [], []>} : vector<16x24xbf16>, vector<24x4xbf16>, vector<16x4xf32> -> vector<16x4xf32>
    %c0_76 = arith.constant 0 : index
    %c0_77 = arith.constant 0 : index
    %c4_78 = arith.constant 4 : index
    %c0_79 = arith.constant 0 : index
    %c0_80 = arith.constant 0 : index
    %127 = vector.load %arg5[%c0_76, %c0_77, %c4_78, %c0_79, %c0_80] : memref<1x2x8x16x1xf32, #tpu.memory_space<vmem>>, vector<1x1x1x16x1xf32>
    %128 = vector.shape_cast %127 : vector<1x1x1x16x1xf32> to vector<16x1xf32>
    %129 = vector.broadcast %128 : vector<16x1xf32> to vector<16x4xf32>
    %130 = arith.addf %126, %129 : vector<16x4xf32>
    %131 = vector.extract_strided_slice %130 {offsets = [0, 0], sizes = [8, 4], strides = [1, 1]} : vector<16x4xf32> to vector<8x4xf32>
    %132 = arith.negf %131 : vector<8x4xf32>
    %133 = math.exp %132 : vector<8x4xf32>
    %cst_81 = arith.constant 1.000000e+00 : f32
    %134 = vector.broadcast %cst_81 : f32 to vector<8x4xf32>
    %135 = arith.addf %134, %133 : vector<8x4xf32>
    %136 = arith.divf %134, %135 : vector<8x4xf32>
    %137 = vector.extract_strided_slice %130 {offsets = [8, 0], sizes = [8, 4], strides = [1, 1]} : vector<16x4xf32> to vector<8x4xf32>
    %138 = math.tanh %137 : vector<8x4xf32>
    %139 = arith.mulf %136, %138 : vector<8x4xf32>
    %140 = vector.extract_strided_slice %1 {offsets = [0, 16], sizes = [8, 4], strides = [1, 1]} : vector<8x32xf32> to vector<8x4xf32>
    %141 = arith.addf %140, %139 : vector<8x4xf32>
    %c0_82 = arith.constant 0 : index
    %c0_83 = arith.constant 0 : index
    %c16 = arith.constant 16 : index
    %142 = vector.load %arg6[%c0_82, %c0_83, %c16] : memref<1x8x32xf32, #tpu.memory_space<vmem>>, vector<1x8x4xf32>
    %143 = vector.shape_cast %142 : vector<1x8x4xf32> to vector<8x4xf32>
    %144 = vector.shape_cast %141 : vector<8x4xf32> to vector<1x8x4xf32>
    tpu.vector_store %arg6[%c0_82, %c0_83, %c16], %144 {strides = array<i32>} : memref<1x8x32xf32, #tpu.memory_space<vmem>>, vector<1x8x4xf32>,
    %c0_84 = arith.constant 0 : index
    %c0_85 = arith.constant 0 : index
    %c5 = arith.constant 5 : index
    %c0_86 = arith.constant 0 : index
    %c0_87 = arith.constant 0 : index
    %145 = vector.load %arg4[%c0_84, %c0_85, %c5, %c0_86, %c0_87] : memref<1x2x8x16x24xbf16, #tpu.memory_space<vmem>>, vector<1x1x1x16x24xbf16>
    %146 = vector.shape_cast %145 : vector<1x1x1x16x24xbf16> to vector<16x24xbf16>
    %147 = vector.extract_strided_slice %34 {offsets = [0, 20], sizes = [24, 4], strides = [1, 1]} : vector<24x32xbf16> to vector<24x4xbf16>
    %cst_88 = arith.constant dense<0.000000e+00> : vector<16x4xf32>
    %148 = tpu.matmul %146, %147, %cst_88 {dimension_numbers = #tpu.dot_dimension_numbers<[1], [0], [0], [1], [0, 0, 1, 1], [], []>} : vector<16x24xbf16>, vector<24x4xbf16>, vector<16x4xf32> -> vector<16x4xf32>
    %c0_89 = arith.constant 0 : index
    %c0_90 = arith.constant 0 : index
    %c5_91 = arith.constant 5 : index
    %c0_92 = arith.constant 0 : index
    %c0_93 = arith.constant 0 : index
    %149 = vector.load %arg5[%c0_89, %c0_90, %c5_91, %c0_92, %c0_93] : memref<1x2x8x16x1xf32, #tpu.memory_space<vmem>>, vector<1x1x1x16x1xf32>
    %150 = vector.shape_cast %149 : vector<1x1x1x16x1xf32> to vector<16x1xf32>
    %151 = vector.broadcast %150 : vector<16x1xf32> to vector<16x4xf32>
    %152 = arith.addf %148, %151 : vector<16x4xf32>
    %153 = vector.extract_strided_slice %152 {offsets = [0, 0], sizes = [8, 4], strides = [1, 1]} : vector<16x4xf32> to vector<8x4xf32>
    %154 = arith.negf %153 : vector<8x4xf32>
    %155 = math.exp %154 : vector<8x4xf32>
    %cst_94 = arith.constant 1.000000e+00 : f32
    %156 = vector.broadcast %cst_94 : f32 to vector<8x4xf32>
    %157 = arith.addf %156, %155 : vector<8x4xf32>
    %158 = arith.divf %156, %157 : vector<8x4xf32>
    %159 = vector.extract_strided_slice %152 {offsets = [8, 0], sizes = [8, 4], strides = [1, 1]} : vector<16x4xf32> to vector<8x4xf32>
    %160 = math.tanh %159 : vector<8x4xf32>
    %161 = arith.mulf %158, %160 : vector<8x4xf32>
    %162 = vector.extract_strided_slice %1 {offsets = [0, 20], sizes = [8, 4], strides = [1, 1]} : vector<8x32xf32> to vector<8x4xf32>
    %163 = arith.addf %162, %161 : vector<8x4xf32>
    %c0_95 = arith.constant 0 : index
    %c0_96 = arith.constant 0 : index
    %c20 = arith.constant 20 : index
    %164 = vector.load %arg6[%c0_95, %c0_96, %c20] : memref<1x8x32xf32, #tpu.memory_space<vmem>>, vector<1x8x4xf32>
    %165 = vector.shape_cast %164 : vector<1x8x4xf32> to vector<8x4xf32>
    %166 = vector.shape_cast %163 : vector<8x4xf32> to vector<1x8x4xf32>
    tpu.vector_store %arg6[%c0_95, %c0_96, %c20], %166 {strides = array<i32>} : memref<1x8x32xf32, #tpu.memory_space<vmem>>, vector<1x8x4xf32>,
    %c0_97 = arith.constant 0 : index
    %c0_98 = arith.constant 0 : index
    %c6 = arith.constant 6 : index
    %c0_99 = arith.constant 0 : index
    %c0_100 = arith.constant 0 : index
    %167 = vector.load %arg4[%c0_97, %c0_98, %c6, %c0_99, %c0_100] : memref<1x2x8x16x24xbf16, #tpu.memory_space<vmem>>, vector<1x1x1x16x24xbf16>
    %168 = vector.shape_cast %167 : vector<1x1x1x16x24xbf16> to vector<16x24xbf16>
    %169 = vector.extract_strided_slice %34 {offsets = [0, 24], sizes = [24, 4], strides = [1, 1]} : vector<24x32xbf16> to vector<24x4xbf16>
    %cst_101 = arith.constant dense<0.000000e+00> : vector<16x4xf32>
    %170 = tpu.matmul %168, %169, %cst_101 {dimension_numbers = #tpu.dot_dimension_numbers<[1], [0], [0], [1], [0, 0, 1, 1], [], []>} : vector<16x24xbf16>, vector<24x4xbf16>, vector<16x4xf32> -> vector<16x4xf32>
    %c0_102 = arith.constant 0 : index
    %c0_103 = arith.constant 0 : index
    %c6_104 = arith.constant 6 : index
    %c0_105 = arith.constant 0 : index
    %c0_106 = arith.constant 0 : index
    %171 = vector.load %arg5[%c0_102, %c0_103, %c6_104, %c0_105, %c0_106] : memref<1x2x8x16x1xf32, #tpu.memory_space<vmem>>, vector<1x1x1x16x1xf32>
    %172 = vector.shape_cast %171 : vector<1x1x1x16x1xf32> to vector<16x1xf32>
    %173 = vector.broadcast %172 : vector<16x1xf32> to vector<16x4xf32>
    %174 = arith.addf %170, %173 : vector<16x4xf32>
    %175 = vector.extract_strided_slice %174 {offsets = [0, 0], sizes = [8, 4], strides = [1, 1]} : vector<16x4xf32> to vector<8x4xf32>
    %176 = arith.negf %175 : vector<8x4xf32>
    %177 = math.exp %176 : vector<8x4xf32>
    %cst_107 = arith.constant 1.000000e+00 : f32
    %178 = vector.broadcast %cst_107 : f32 to vector<8x4xf32>
    %179 = arith.addf %178, %177 : vector<8x4xf32>
    %180 = arith.divf %178, %179 : vector<8x4xf32>
    %181 = vector.extract_strided_slice %174 {offsets = [8, 0], sizes = [8, 4], strides = [1, 1]} : vector<16x4xf32> to vector<8x4xf32>
    %182 = math.tanh %181 : vector<8x4xf32>
    %183 = arith.mulf %180, %182 : vector<8x4xf32>
    %184 = vector.extract_strided_slice %1 {offsets = [0, 24], sizes = [8, 4], strides = [1, 1]} : vector<8x32xf32> to vector<8x4xf32>
    %185 = arith.addf %184, %183 : vector<8x4xf32>
    %c0_108 = arith.constant 0 : index
    %c0_109 = arith.constant 0 : index
    %c24 = arith.constant 24 : index
    %186 = vector.load %arg6[%c0_108, %c0_109, %c24] : memref<1x8x32xf32, #tpu.memory_space<vmem>>, vector<1x8x4xf32>
    %187 = vector.shape_cast %186 : vector<1x8x4xf32> to vector<8x4xf32>
    %188 = vector.shape_cast %185 : vector<8x4xf32> to vector<1x8x4xf32>
    tpu.vector_store %arg6[%c0_108, %c0_109, %c24], %188 {strides = array<i32>} : memref<1x8x32xf32, #tpu.memory_space<vmem>>, vector<1x8x4xf32>,
    %c0_110 = arith.constant 0 : index
    %c0_111 = arith.constant 0 : index
    %c7 = arith.constant 7 : index
    %c0_112 = arith.constant 0 : index
    %c0_113 = arith.constant 0 : index
    %189 = vector.load %arg4[%c0_110, %c0_111, %c7, %c0_112, %c0_113] : memref<1x2x8x16x24xbf16, #tpu.memory_space<vmem>>, vector<1x1x1x16x24xbf16>
    %190 = vector.shape_cast %189 : vector<1x1x1x16x24xbf16> to vector<16x24xbf16>
    %191 = vector.extract_strided_slice %34 {offsets = [0, 28], sizes = [24, 4], strides = [1, 1]} : vector<24x32xbf16> to vector<24x4xbf16>
    %cst_114 = arith.constant dense<0.000000e+00> : vector<16x4xf32>
    %192 = tpu.matmul %190, %191, %cst_114 {dimension_numbers = #tpu.dot_dimension_numbers<[1], [0], [0], [1], [0, 0, 1, 1], [], []>} : vector<16x24xbf16>, vector<24x4xbf16>, vector<16x4xf32> -> vector<16x4xf32>
    %c0_115 = arith.constant 0 : index
    %c0_116 = arith.constant 0 : index
    %c7_117 = arith.constant 7 : index
    %c0_118 = arith.constant 0 : index
    %c0_119 = arith.constant 0 : index
    %193 = vector.load %arg5[%c0_115, %c0_116, %c7_117, %c0_118, %c0_119] : memref<1x2x8x16x1xf32, #tpu.memory_space<vmem>>, vector<1x1x1x16x1xf32>
    %194 = vector.shape_cast %193 : vector<1x1x1x16x1xf32> to vector<16x1xf32>
    %195 = vector.broadcast %194 : vector<16x1xf32> to vector<16x4xf32>
    %196 = arith.addf %192, %195 : vector<16x4xf32>
    %197 = vector.extract_strided_slice %196 {offsets = [0, 0], sizes = [8, 4], strides = [1, 1]} : vector<16x4xf32> to vector<8x4xf32>
    %198 = arith.negf %197 : vector<8x4xf32>
    %199 = math.exp %198 : vector<8x4xf32>
    %cst_120 = arith.constant 1.000000e+00 : f32
    %200 = vector.broadcast %cst_120 : f32 to vector<8x4xf32>
    %201 = arith.addf %200, %199 : vector<8x4xf32>
    %202 = arith.divf %200, %201 : vector<8x4xf32>
    %203 = vector.extract_strided_slice %196 {offsets = [8, 0], sizes = [8, 4], strides = [1, 1]} : vector<16x4xf32> to vector<8x4xf32>
    %204 = math.tanh %203 : vector<8x4xf32>
    %205 = arith.mulf %202, %204 : vector<8x4xf32>
    %206 = vector.extract_strided_slice %1 {offsets = [0, 28], sizes = [8, 4], strides = [1, 1]} : vector<8x32xf32> to vector<8x4xf32>
    %207 = arith.addf %206, %205 : vector<8x4xf32>
    %c0_121 = arith.constant 0 : index
    %c0_122 = arith.constant 0 : index
    %c28 = arith.constant 28 : index
    %208 = vector.load %arg6[%c0_121, %c0_122, %c28] : memref<1x8x32xf32, #tpu.memory_space<vmem>>, vector<1x8x4xf32>
    %209 = vector.shape_cast %208 : vector<1x8x4xf32> to vector<8x4xf32>
    %210 = vector.shape_cast %207 : vector<8x4xf32> to vector<1x8x4xf32>
    tpu.vector_store %arg6[%c0_121, %c0_122, %c28], %210 {strides = array<i32>} : memref<1x8x32xf32, #tpu.memory_space<vmem>>, vector<1x8x4xf32>,
    %c0_123 = arith.constant 0 : index
    %c0_124 = arith.constant 0 : index
    %c0_125 = arith.constant 0 : index
    %211 = vector.load %arg6[%c0_123, %c0_124, %c0_125] : memref<1x8x32xf32, #tpu.memory_space<vmem>>, vector<1x8x32xf32>
    %212 = vector.shape_cast %211 : vector<1x8x32xf32> to vector<8x32xf32>
    %cst_126 = arith.constant 0.000000e+00 : f32
    %213 = vector.broadcast %cst_126 : f32 to vector<8x32xf32>
    %214 = arith.cmpf oge, %212, %213 : vector<8x32xf32>
    %cst_127 = arith.constant 2.000000e-01 : f32
    %215 = vector.broadcast %cst_127 : f32 to vector<8x32xf32>
    %216 = arith.mulf %215, %212 : vector<8x32xf32>
    %217 = arith.select %214, %212, %216 : vector<8x32xi1>, vector<8x32xf32>
    %c1_128 = arith.constant 1 : index
    %c0_129 = arith.constant 0 : index
    %c0_130 = arith.constant 0 : index
    %218 = vector.load %arg2[%c1_128, %c0_129, %c0_130] : memref<2x8x24xbf16, #tpu.memory_space<vmem>>, vector<1x8x24xbf16>
    %219 = vector.shape_cast %218 : vector<1x8x24xbf16> to vector<8x24xbf16>
    %c1_131 = arith.constant 1 : index
    %c0_132 = arith.constant 0 : index
    %c0_133 = arith.constant 0 : index
    %220 = vector.load %arg3[%c1_131, %c0_132, %c0_133] : memref<2x8x1xf32, #tpu.memory_space<vmem>>, vector<1x8x1xf32>
    %221 = vector.shape_cast %220 : vector<1x8x1xf32> to vector<8x1xf32>
    %222 = arith.truncf %217 : vector<8x32xf32> to vector<8x32xbf16>
    %cst_134 = arith.constant 0.000000e+00 : bf16
    %223 = vector.broadcast %cst_134 : bf16 to vector<8x3xbf16>
    %cst_135 = arith.constant 0.000000e+00 : bf16
    %224 = vector.broadcast %cst_135 : bf16 to vector<8x3xbf16>
    %225 = tpu.concatenate %223, %222, %224 in 1 : vector<8x3xbf16>, vector<8x32xbf16>, vector<8x3xbf16> -> vector<8x38xbf16>
    %226 = vector.extract_strided_slice %225 {offsets = [0, 0], sizes = [8, 32], strides = [1, 1]} : vector<8x38xbf16> to vector<8x32xbf16>
    %227 = vector.extract_strided_slice %225 {offsets = [0, 3], sizes = [8, 32], strides = [1, 1]} : vector<8x38xbf16> to vector<8x32xbf16>
    %228 = vector.extract_strided_slice %225 {offsets = [0, 6], sizes = [8, 32], strides = [1, 1]} : vector<8x38xbf16> to vector<8x32xbf16>
    %229 = tpu.concatenate %226, %227, %228 in 0 : vector<8x32xbf16>, vector<8x32xbf16>, vector<8x32xbf16> -> vector<24x32xbf16>
    %cst_136 = arith.constant dense<0.000000e+00> : vector<8x32xf32>
    %230 = tpu.matmul %219, %229, %cst_136 {dimension_numbers = #tpu.dot_dimension_numbers<[1], [0], [0], [1], [0, 0, 1, 1], [], []>} : vector<8x24xbf16>, vector<24x32xbf16>, vector<8x32xf32> -> vector<8x32xf32>
    %231 = vector.broadcast %221 : vector<8x1xf32> to vector<8x32xf32>
    %232 = arith.addf %230, %231 : vector<8x32xf32>
    %cst_137 = arith.constant 0.000000e+00 : f32
    %233 = vector.broadcast %cst_137 : f32 to vector<8x32xf32>
    %234 = arith.cmpf oge, %232, %233 : vector<8x32xf32>
    %cst_138 = arith.constant 2.000000e-01 : f32
    %235 = vector.broadcast %cst_138 : f32 to vector<8x32xf32>
    %236 = arith.mulf %235, %232 : vector<8x32xf32>
    %237 = arith.select %234, %232, %236 : vector<8x32xi1>, vector<8x32xf32>
    %238 = arith.truncf %237 : vector<8x32xf32> to vector<8x32xbf16>
    %cst_139 = arith.constant 0.000000e+00 : bf16
    %239 = vector.broadcast %cst_139 : bf16 to vector<8x1xbf16>
    %cst_140 = arith.constant 0.000000e+00 : bf16
    %240 = vector.broadcast %cst_140 : bf16 to vector<8x1xbf16>
    %241 = tpu.concatenate %239, %238, %240 in 1 : vector<8x1xbf16>, vector<8x32xbf16>, vector<8x1xbf16> -> vector<8x34xbf16>
    %242 = vector.extract_strided_slice %241 {offsets = [0, 0], sizes = [8, 32], strides = [1, 1]} : vector<8x34xbf16> to vector<8x32xbf16>
    %243 = vector.extract_strided_slice %241 {offsets = [0, 1], sizes = [8, 32], strides = [1, 1]} : vector<8x34xbf16> to vector<8x32xbf16>
    %244 = vector.extract_strided_slice %241 {offsets = [0, 2], sizes = [8, 32], strides = [1, 1]} : vector<8x34xbf16> to vector<8x32xbf16>
    %245 = tpu.concatenate %242, %243, %244 in 0 : vector<8x32xbf16>, vector<8x32xbf16>, vector<8x32xbf16> -> vector<24x32xbf16>
    %c0_141 = arith.constant 0 : index
    %c1_142 = arith.constant 1 : index
    %c0_143 = arith.constant 0 : index
    %c0_144 = arith.constant 0 : index
    %c0_145 = arith.constant 0 : index
    %246 = vector.load %arg4[%c0_141, %c1_142, %c0_143, %c0_144, %c0_145] : memref<1x2x8x16x24xbf16, #tpu.memory_space<vmem>>, vector<1x1x1x16x24xbf16>
    %247 = vector.shape_cast %246 : vector<1x1x1x16x24xbf16> to vector<16x24xbf16>
    %248 = vector.extract_strided_slice %245 {offsets = [0, 0], sizes = [24, 4], strides = [1, 1]} : vector<24x32xbf16> to vector<24x4xbf16>
    %cst_146 = arith.constant dense<0.000000e+00> : vector<16x4xf32>
    %249 = tpu.matmul %247, %248, %cst_146 {dimension_numbers = #tpu.dot_dimension_numbers<[1], [0], [0], [1], [0, 0, 1, 1], [], []>} : vector<16x24xbf16>, vector<24x4xbf16>, vector<16x4xf32> -> vector<16x4xf32>
    %c0_147 = arith.constant 0 : index
    %c1_148 = arith.constant 1 : index
    %c0_149 = arith.constant 0 : index
    %c0_150 = arith.constant 0 : index
    %c0_151 = arith.constant 0 : index
    %250 = vector.load %arg5[%c0_147, %c1_148, %c0_149, %c0_150, %c0_151] : memref<1x2x8x16x1xf32, #tpu.memory_space<vmem>>, vector<1x1x1x16x1xf32>
    %251 = vector.shape_cast %250 : vector<1x1x1x16x1xf32> to vector<16x1xf32>
    %252 = vector.broadcast %251 : vector<16x1xf32> to vector<16x4xf32>
    %253 = arith.addf %249, %252 : vector<16x4xf32>
    %254 = vector.extract_strided_slice %253 {offsets = [0, 0], sizes = [8, 4], strides = [1, 1]} : vector<16x4xf32> to vector<8x4xf32>
    %255 = arith.negf %254 : vector<8x4xf32>
    %256 = math.exp %255 : vector<8x4xf32>
    %cst_152 = arith.constant 1.000000e+00 : f32
    %257 = vector.broadcast %cst_152 : f32 to vector<8x4xf32>
    %258 = arith.addf %257, %256 : vector<8x4xf32>
    %259 = arith.divf %257, %258 : vector<8x4xf32>
    %260 = vector.extract_strided_slice %253 {offsets = [8, 0], sizes = [8, 4], strides = [1, 1]} : vector<16x4xf32> to vector<8x4xf32>
    %261 = math.tanh %260 : vector<8x4xf32>
    %262 = arith.mulf %259, %261 : vector<8x4xf32>
    %263 = vector.extract_strided_slice %212 {offsets = [0, 0], sizes = [8, 4], strides = [1, 1]} : vector<8x32xf32> to vector<8x4xf32>
    %264 = arith.addf %263, %262 : vector<8x4xf32>
    %c0_153 = arith.constant 0 : index
    %c0_154 = arith.constant 0 : index
    %c0_155 = arith.constant 0 : index
    %265 = vector.load %arg6[%c0_153, %c0_154, %c0_155] : memref<1x8x32xf32, #tpu.memory_space<vmem>>, vector<1x8x4xf32>
    %266 = vector.shape_cast %265 : vector<1x8x4xf32> to vector<8x4xf32>
    %267 = vector.shape_cast %264 : vector<8x4xf32> to vector<1x8x4xf32>
    tpu.vector_store %arg6[%c0_153, %c0_154, %c0_155], %267 {strides = array<i32>} : memref<1x8x32xf32, #tpu.memory_space<vmem>>, vector<1x8x4xf32>,
    %c0_156 = arith.constant 0 : index
    %c1_157 = arith.constant 1 : index
    %c1_158 = arith.constant 1 : index
    %c0_159 = arith.constant 0 : index
    %c0_160 = arith.constant 0 : index
    %268 = vector.load %arg4[%c0_156, %c1_157, %c1_158, %c0_159, %c0_160] : memref<1x2x8x16x24xbf16, #tpu.memory_space<vmem>>, vector<1x1x1x16x24xbf16>
    %269 = vector.shape_cast %268 : vector<1x1x1x16x24xbf16> to vector<16x24xbf16>
    %270 = vector.extract_strided_slice %245 {offsets = [0, 4], sizes = [24, 4], strides = [1, 1]} : vector<24x32xbf16> to vector<24x4xbf16>
    %cst_161 = arith.constant dense<0.000000e+00> : vector<16x4xf32>
    %271 = tpu.matmul %269, %270, %cst_161 {dimension_numbers = #tpu.dot_dimension_numbers<[1], [0], [0], [1], [0, 0, 1, 1], [], []>} : vector<16x24xbf16>, vector<24x4xbf16>, vector<16x4xf32> -> vector<16x4xf32>
    %c0_162 = arith.constant 0 : index
    %c1_163 = arith.constant 1 : index
    %c1_164 = arith.constant 1 : index
    %c0_165 = arith.constant 0 : index
    %c0_166 = arith.constant 0 : index
    %272 = vector.load %arg5[%c0_162, %c1_163, %c1_164, %c0_165, %c0_166] : memref<1x2x8x16x1xf32, #tpu.memory_space<vmem>>, vector<1x1x1x16x1xf32>
    %273 = vector.shape_cast %272 : vector<1x1x1x16x1xf32> to vector<16x1xf32>
    %274 = vector.broadcast %273 : vector<16x1xf32> to vector<16x4xf32>
    %275 = arith.addf %271, %274 : vector<16x4xf32>
    %276 = vector.extract_strided_slice %275 {offsets = [0, 0], sizes = [8, 4], strides = [1, 1]} : vector<16x4xf32> to vector<8x4xf32>
    %277 = arith.negf %276 : vector<8x4xf32>
    %278 = math.exp %277 : vector<8x4xf32>
    %cst_167 = arith.constant 1.000000e+00 : f32
    %279 = vector.broadcast %cst_167 : f32 to vector<8x4xf32>
    %280 = arith.addf %279, %278 : vector<8x4xf32>
    %281 = arith.divf %279, %280 : vector<8x4xf32>
    %282 = vector.extract_strided_slice %275 {offsets = [8, 0], sizes = [8, 4], strides = [1, 1]} : vector<16x4xf32> to vector<8x4xf32>
    %283 = math.tanh %282 : vector<8x4xf32>
    %284 = arith.mulf %281, %283 : vector<8x4xf32>
    %285 = vector.extract_strided_slice %212 {offsets = [0, 4], sizes = [8, 4], strides = [1, 1]} : vector<8x32xf32> to vector<8x4xf32>
    %286 = arith.addf %285, %284 : vector<8x4xf32>
    %c0_168 = arith.constant 0 : index
    %c0_169 = arith.constant 0 : index
    %c4_170 = arith.constant 4 : index
    %287 = vector.load %arg6[%c0_168, %c0_169, %c4_170] : memref<1x8x32xf32, #tpu.memory_space<vmem>>, vector<1x8x4xf32>
    %288 = vector.shape_cast %287 : vector<1x8x4xf32> to vector<8x4xf32>
    %289 = vector.shape_cast %286 : vector<8x4xf32> to vector<1x8x4xf32>
    tpu.vector_store %arg6[%c0_168, %c0_169, %c4_170], %289 {strides = array<i32>} : memref<1x8x32xf32, #tpu.memory_space<vmem>>, vector<1x8x4xf32>,
    %c0_171 = arith.constant 0 : index
    %c1_172 = arith.constant 1 : index
    %c2_173 = arith.constant 2 : index
    %c0_174 = arith.constant 0 : index
    %c0_175 = arith.constant 0 : index
    %290 = vector.load %arg4[%c0_171, %c1_172, %c2_173, %c0_174, %c0_175] : memref<1x2x8x16x24xbf16, #tpu.memory_space<vmem>>, vector<1x1x1x16x24xbf16>
    %291 = vector.shape_cast %290 : vector<1x1x1x16x24xbf16> to vector<16x24xbf16>
    %292 = vector.extract_strided_slice %245 {offsets = [0, 8], sizes = [24, 4], strides = [1, 1]} : vector<24x32xbf16> to vector<24x4xbf16>
    %cst_176 = arith.constant dense<0.000000e+00> : vector<16x4xf32>
    %293 = tpu.matmul %291, %292, %cst_176 {dimension_numbers = #tpu.dot_dimension_numbers<[1], [0], [0], [1], [0, 0, 1, 1], [], []>} : vector<16x24xbf16>, vector<24x4xbf16>, vector<16x4xf32> -> vector<16x4xf32>
    %c0_177 = arith.constant 0 : index
    %c1_178 = arith.constant 1 : index
    %c2_179 = arith.constant 2 : index
    %c0_180 = arith.constant 0 : index
    %c0_181 = arith.constant 0 : index
    %294 = vector.load %arg5[%c0_177, %c1_178, %c2_179, %c0_180, %c0_181] : memref<1x2x8x16x1xf32, #tpu.memory_space<vmem>>, vector<1x1x1x16x1xf32>
    %295 = vector.shape_cast %294 : vector<1x1x1x16x1xf32> to vector<16x1xf32>
    %296 = vector.broadcast %295 : vector<16x1xf32> to vector<16x4xf32>
    %297 = arith.addf %293, %296 : vector<16x4xf32>
    %298 = vector.extract_strided_slice %297 {offsets = [0, 0], sizes = [8, 4], strides = [1, 1]} : vector<16x4xf32> to vector<8x4xf32>
    %299 = arith.negf %298 : vector<8x4xf32>
    %300 = math.exp %299 : vector<8x4xf32>
    %cst_182 = arith.constant 1.000000e+00 : f32
    %301 = vector.broadcast %cst_182 : f32 to vector<8x4xf32>
    %302 = arith.addf %301, %300 : vector<8x4xf32>
    %303 = arith.divf %301, %302 : vector<8x4xf32>
    %304 = vector.extract_strided_slice %297 {offsets = [8, 0], sizes = [8, 4], strides = [1, 1]} : vector<16x4xf32> to vector<8x4xf32>
    %305 = math.tanh %304 : vector<8x4xf32>
    %306 = arith.mulf %303, %305 : vector<8x4xf32>
    %307 = vector.extract_strided_slice %212 {offsets = [0, 8], sizes = [8, 4], strides = [1, 1]} : vector<8x32xf32> to vector<8x4xf32>
    %308 = arith.addf %307, %306 : vector<8x4xf32>
    %c0_183 = arith.constant 0 : index
    %c0_184 = arith.constant 0 : index
    %c8_185 = arith.constant 8 : index
    %309 = vector.load %arg6[%c0_183, %c0_184, %c8_185] : memref<1x8x32xf32, #tpu.memory_space<vmem>>, vector<1x8x4xf32>
    %310 = vector.shape_cast %309 : vector<1x8x4xf32> to vector<8x4xf32>
    %311 = vector.shape_cast %308 : vector<8x4xf32> to vector<1x8x4xf32>
    tpu.vector_store %arg6[%c0_183, %c0_184, %c8_185], %311 {strides = array<i32>} : memref<1x8x32xf32, #tpu.memory_space<vmem>>, vector<1x8x4xf32>,
    %c0_186 = arith.constant 0 : index
    %c1_187 = arith.constant 1 : index
    %c3_188 = arith.constant 3 : index
    %c0_189 = arith.constant 0 : index
    %c0_190 = arith.constant 0 : index
    %312 = vector.load %arg4[%c0_186, %c1_187, %c3_188, %c0_189, %c0_190] : memref<1x2x8x16x24xbf16, #tpu.memory_space<vmem>>, vector<1x1x1x16x24xbf16>
    %313 = vector.shape_cast %312 : vector<1x1x1x16x24xbf16> to vector<16x24xbf16>
    %314 = vector.extract_strided_slice %245 {offsets = [0, 12], sizes = [24, 4], strides = [1, 1]} : vector<24x32xbf16> to vector<24x4xbf16>
    %cst_191 = arith.constant dense<0.000000e+00> : vector<16x4xf32>
    %315 = tpu.matmul %313, %314, %cst_191 {dimension_numbers = #tpu.dot_dimension_numbers<[1], [0], [0], [1], [0, 0, 1, 1], [], []>} : vector<16x24xbf16>, vector<24x4xbf16>, vector<16x4xf32> -> vector<16x4xf32>
    %c0_192 = arith.constant 0 : index
    %c1_193 = arith.constant 1 : index
    %c3_194 = arith.constant 3 : index
    %c0_195 = arith.constant 0 : index
    %c0_196 = arith.constant 0 : index
    %316 = vector.load %arg5[%c0_192, %c1_193, %c3_194, %c0_195, %c0_196] : memref<1x2x8x16x1xf32, #tpu.memory_space<vmem>>, vector<1x1x1x16x1xf32>
    %317 = vector.shape_cast %316 : vector<1x1x1x16x1xf32> to vector<16x1xf32>
    %318 = vector.broadcast %317 : vector<16x1xf32> to vector<16x4xf32>
    %319 = arith.addf %315, %318 : vector<16x4xf32>
    %320 = vector.extract_strided_slice %319 {offsets = [0, 0], sizes = [8, 4], strides = [1, 1]} : vector<16x4xf32> to vector<8x4xf32>
    %321 = arith.negf %320 : vector<8x4xf32>
    %322 = math.exp %321 : vector<8x4xf32>
    %cst_197 = arith.constant 1.000000e+00 : f32
    %323 = vector.broadcast %cst_197 : f32 to vector<8x4xf32>
    %324 = arith.addf %323, %322 : vector<8x4xf32>
    %325 = arith.divf %323, %324 : vector<8x4xf32>
    %326 = vector.extract_strided_slice %319 {offsets = [8, 0], sizes = [8, 4], strides = [1, 1]} : vector<16x4xf32> to vector<8x4xf32>
    %327 = math.tanh %326 : vector<8x4xf32>
    %328 = arith.mulf %325, %327 : vector<8x4xf32>
    %329 = vector.extract_strided_slice %212 {offsets = [0, 12], sizes = [8, 4], strides = [1, 1]} : vector<8x32xf32> to vector<8x4xf32>
    %330 = arith.addf %329, %328 : vector<8x4xf32>
    %c0_198 = arith.constant 0 : index
    %c0_199 = arith.constant 0 : index
    %c12_200 = arith.constant 12 : index
    %331 = vector.load %arg6[%c0_198, %c0_199, %c12_200] : memref<1x8x32xf32, #tpu.memory_space<vmem>>, vector<1x8x4xf32>
    %332 = vector.shape_cast %331 : vector<1x8x4xf32> to vector<8x4xf32>
    %333 = vector.shape_cast %330 : vector<8x4xf32> to vector<1x8x4xf32>
    tpu.vector_store %arg6[%c0_198, %c0_199, %c12_200], %333 {strides = array<i32>} : memref<1x8x32xf32, #tpu.memory_space<vmem>>, vector<1x8x4xf32>,
    %c0_201 = arith.constant 0 : index
    %c1_202 = arith.constant 1 : index
    %c4_203 = arith.constant 4 : index
    %c0_204 = arith.constant 0 : index
    %c0_205 = arith.constant 0 : index
    %334 = vector.load %arg4[%c0_201, %c1_202, %c4_203, %c0_204, %c0_205] : memref<1x2x8x16x24xbf16, #tpu.memory_space<vmem>>, vector<1x1x1x16x24xbf16>
    %335 = vector.shape_cast %334 : vector<1x1x1x16x24xbf16> to vector<16x24xbf16>
    %336 = vector.extract_strided_slice %245 {offsets = [0, 16], sizes = [24, 4], strides = [1, 1]} : vector<24x32xbf16> to vector<24x4xbf16>
    %cst_206 = arith.constant dense<0.000000e+00> : vector<16x4xf32>
    %337 = tpu.matmul %335, %336, %cst_206 {dimension_numbers = #tpu.dot_dimension_numbers<[1], [0], [0], [1], [0, 0, 1, 1], [], []>} : vector<16x24xbf16>, vector<24x4xbf16>, vector<16x4xf32> -> vector<16x4xf32>
    %c0_207 = arith.constant 0 : index
    %c1_208 = arith.constant 1 : index
    %c4_209 = arith.constant 4 : index
    %c0_210 = arith.constant 0 : index
    %c0_211 = arith.constant 0 : index
    %338 = vector.load %arg5[%c0_207, %c1_208, %c4_209, %c0_210, %c0_211] : memref<1x2x8x16x1xf32, #tpu.memory_space<vmem>>, vector<1x1x1x16x1xf32>
    %339 = vector.shape_cast %338 : vector<1x1x1x16x1xf32> to vector<16x1xf32>
    %340 = vector.broadcast %339 : vector<16x1xf32> to vector<16x4xf32>
    %341 = arith.addf %337, %340 : vector<16x4xf32>
    %342 = vector.extract_strided_slice %341 {offsets = [0, 0], sizes = [8, 4], strides = [1, 1]} : vector<16x4xf32> to vector<8x4xf32>
    %343 = arith.negf %342 : vector<8x4xf32>
    %344 = math.exp %343 : vector<8x4xf32>
    %cst_212 = arith.constant 1.000000e+00 : f32
    %345 = vector.broadcast %cst_212 : f32 to vector<8x4xf32>
    %346 = arith.addf %345, %344 : vector<8x4xf32>
    %347 = arith.divf %345, %346 : vector<8x4xf32>
    %348 = vector.extract_strided_slice %341 {offsets = [8, 0], sizes = [8, 4], strides = [1, 1]} : vector<16x4xf32> to vector<8x4xf32>
    %349 = math.tanh %348 : vector<8x4xf32>
    %350 = arith.mulf %347, %349 : vector<8x4xf32>
    %351 = vector.extract_strided_slice %212 {offsets = [0, 16], sizes = [8, 4], strides = [1, 1]} : vector<8x32xf32> to vector<8x4xf32>
    %352 = arith.addf %351, %350 : vector<8x4xf32>
    %c0_213 = arith.constant 0 : index
    %c0_214 = arith.constant 0 : index
    %c16_215 = arith.constant 16 : index
    %353 = vector.load %arg6[%c0_213, %c0_214, %c16_215] : memref<1x8x32xf32, #tpu.memory_space<vmem>>, vector<1x8x4xf32>
    %354 = vector.shape_cast %353 : vector<1x8x4xf32> to vector<8x4xf32>
    %355 = vector.shape_cast %352 : vector<8x4xf32> to vector<1x8x4xf32>
    tpu.vector_store %arg6[%c0_213, %c0_214, %c16_215], %355 {strides = array<i32>} : memref<1x8x32xf32, #tpu.memory_space<vmem>>, vector<1x8x4xf32>,
    %c0_216 = arith.constant 0 : index
    %c1_217 = arith.constant 1 : index
    %c5_218 = arith.constant 5 : index
    %c0_219 = arith.constant 0 : index
    %c0_220 = arith.constant 0 : index
    %356 = vector.load %arg4[%c0_216, %c1_217, %c5_218, %c0_219, %c0_220] : memref<1x2x8x16x24xbf16, #tpu.memory_space<vmem>>, vector<1x1x1x16x24xbf16>
    %357 = vector.shape_cast %356 : vector<1x1x1x16x24xbf16> to vector<16x24xbf16>
    %358 = vector.extract_strided_slice %245 {offsets = [0, 20], sizes = [24, 4], strides = [1, 1]} : vector<24x32xbf16> to vector<24x4xbf16>
    %cst_221 = arith.constant dense<0.000000e+00> : vector<16x4xf32>
    %359 = tpu.matmul %357, %358, %cst_221 {dimension_numbers = #tpu.dot_dimension_numbers<[1], [0], [0], [1], [0, 0, 1, 1], [], []>} : vector<16x24xbf16>, vector<24x4xbf16>, vector<16x4xf32> -> vector<16x4xf32>
    %c0_222 = arith.constant 0 : index
    %c1_223 = arith.constant 1 : index
    %c5_224 = arith.constant 5 : index
    %c0_225 = arith.constant 0 : index
    %c0_226 = arith.constant 0 : index
    %360 = vector.load %arg5[%c0_222, %c1_223, %c5_224, %c0_225, %c0_226] : memref<1x2x8x16x1xf32, #tpu.memory_space<vmem>>, vector<1x1x1x16x1xf32>
    %361 = vector.shape_cast %360 : vector<1x1x1x16x1xf32> to vector<16x1xf32>
    %362 = vector.broadcast %361 : vector<16x1xf32> to vector<16x4xf32>
    %363 = arith.addf %359, %362 : vector<16x4xf32>
    %364 = vector.extract_strided_slice %363 {offsets = [0, 0], sizes = [8, 4], strides = [1, 1]} : vector<16x4xf32> to vector<8x4xf32>
    %365 = arith.negf %364 : vector<8x4xf32>
    %366 = math.exp %365 : vector<8x4xf32>
    %cst_227 = arith.constant 1.000000e+00 : f32
    %367 = vector.broadcast %cst_227 : f32 to vector<8x4xf32>
    %368 = arith.addf %367, %366 : vector<8x4xf32>
    %369 = arith.divf %367, %368 : vector<8x4xf32>
    %370 = vector.extract_strided_slice %363 {offsets = [8, 0], sizes = [8, 4], strides = [1, 1]} : vector<16x4xf32> to vector<8x4xf32>
    %371 = math.tanh %370 : vector<8x4xf32>
    %372 = arith.mulf %369, %371 : vector<8x4xf32>
    %373 = vector.extract_strided_slice %212 {offsets = [0, 20], sizes = [8, 4], strides = [1, 1]} : vector<8x32xf32> to vector<8x4xf32>
    %374 = arith.addf %373, %372 : vector<8x4xf32>
    %c0_228 = arith.constant 0 : index
    %c0_229 = arith.constant 0 : index
    %c20_230 = arith.constant 20 : index
    %375 = vector.load %arg6[%c0_228, %c0_229, %c20_230] : memref<1x8x32xf32, #tpu.memory_space<vmem>>, vector<1x8x4xf32>
    %376 = vector.shape_cast %375 : vector<1x8x4xf32> to vector<8x4xf32>
    %377 = vector.shape_cast %374 : vector<8x4xf32> to vector<1x8x4xf32>
    tpu.vector_store %arg6[%c0_228, %c0_229, %c20_230], %377 {strides = array<i32>} : memref<1x8x32xf32, #tpu.memory_space<vmem>>, vector<1x8x4xf32>,
    %c0_231 = arith.constant 0 : index
    %c1_232 = arith.constant 1 : index
    %c6_233 = arith.constant 6 : index
    %c0_234 = arith.constant 0 : index
    %c0_235 = arith.constant 0 : index
    %378 = vector.load %arg4[%c0_231, %c1_232, %c6_233, %c0_234, %c0_235] : memref<1x2x8x16x24xbf16, #tpu.memory_space<vmem>>, vector<1x1x1x16x24xbf16>
    %379 = vector.shape_cast %378 : vector<1x1x1x16x24xbf16> to vector<16x24xbf16>
    %380 = vector.extract_strided_slice %245 {offsets = [0, 24], sizes = [24, 4], strides = [1, 1]} : vector<24x32xbf16> to vector<24x4xbf16>
    %cst_236 = arith.constant dense<0.000000e+00> : vector<16x4xf32>
    %381 = tpu.matmul %379, %380, %cst_236 {dimension_numbers = #tpu.dot_dimension_numbers<[1], [0], [0], [1], [0, 0, 1, 1], [], []>} : vector<16x24xbf16>, vector<24x4xbf16>, vector<16x4xf32> -> vector<16x4xf32>
    %c0_237 = arith.constant 0 : index
    %c1_238 = arith.constant 1 : index
    %c6_239 = arith.constant 6 : index
    %c0_240 = arith.constant 0 : index
    %c0_241 = arith.constant 0 : index
    %382 = vector.load %arg5[%c0_237, %c1_238, %c6_239, %c0_240, %c0_241] : memref<1x2x8x16x1xf32, #tpu.memory_space<vmem>>, vector<1x1x1x16x1xf32>
    %383 = vector.shape_cast %382 : vector<1x1x1x16x1xf32> to vector<16x1xf32>
    %384 = vector.broadcast %383 : vector<16x1xf32> to vector<16x4xf32>
    %385 = arith.addf %381, %384 : vector<16x4xf32>
    %386 = vector.extract_strided_slice %385 {offsets = [0, 0], sizes = [8, 4], strides = [1, 1]} : vector<16x4xf32> to vector<8x4xf32>
    %387 = arith.negf %386 : vector<8x4xf32>
    %388 = math.exp %387 : vector<8x4xf32>
    %cst_242 = arith.constant 1.000000e+00 : f32
    %389 = vector.broadcast %cst_242 : f32 to vector<8x4xf32>
    %390 = arith.addf %389, %388 : vector<8x4xf32>
    %391 = arith.divf %389, %390 : vector<8x4xf32>
    %392 = vector.extract_strided_slice %385 {offsets = [8, 0], sizes = [8, 4], strides = [1, 1]} : vector<16x4xf32> to vector<8x4xf32>
    %393 = math.tanh %392 : vector<8x4xf32>
    %394 = arith.mulf %391, %393 : vector<8x4xf32>
    %395 = vector.extract_strided_slice %212 {offsets = [0, 24], sizes = [8, 4], strides = [1, 1]} : vector<8x32xf32> to vector<8x4xf32>
    %396 = arith.addf %395, %394 : vector<8x4xf32>
    %c0_243 = arith.constant 0 : index
    %c0_244 = arith.constant 0 : index
    %c24_245 = arith.constant 24 : index
    %397 = vector.load %arg6[%c0_243, %c0_244, %c24_245] : memref<1x8x32xf32, #tpu.memory_space<vmem>>, vector<1x8x4xf32>
    %398 = vector.shape_cast %397 : vector<1x8x4xf32> to vector<8x4xf32>
    %399 = vector.shape_cast %396 : vector<8x4xf32> to vector<1x8x4xf32>
    tpu.vector_store %arg6[%c0_243, %c0_244, %c24_245], %399 {strides = array<i32>} : memref<1x8x32xf32, #tpu.memory_space<vmem>>, vector<1x8x4xf32>,
    %c0_246 = arith.constant 0 : index
    %c1_247 = arith.constant 1 : index
    %c7_248 = arith.constant 7 : index
    %c0_249 = arith.constant 0 : index
    %c0_250 = arith.constant 0 : index
    %400 = vector.load %arg4[%c0_246, %c1_247, %c7_248, %c0_249, %c0_250] : memref<1x2x8x16x24xbf16, #tpu.memory_space<vmem>>, vector<1x1x1x16x24xbf16>
    %401 = vector.shape_cast %400 : vector<1x1x1x16x24xbf16> to vector<16x24xbf16>
    %402 = vector.extract_strided_slice %245 {offsets = [0, 28], sizes = [24, 4], strides = [1, 1]} : vector<24x32xbf16> to vector<24x4xbf16>
    %cst_251 = arith.constant dense<0.000000e+00> : vector<16x4xf32>
    %403 = tpu.matmul %401, %402, %cst_251 {dimension_numbers = #tpu.dot_dimension_numbers<[1], [0], [0], [1], [0, 0, 1, 1], [], []>} : vector<16x24xbf16>, vector<24x4xbf16>, vector<16x4xf32> -> vector<16x4xf32>
    %c0_252 = arith.constant 0 : index
    %c1_253 = arith.constant 1 : index
    %c7_254 = arith.constant 7 : index
    %c0_255 = arith.constant 0 : index
    %c0_256 = arith.constant 0 : index
    %404 = vector.load %arg5[%c0_252, %c1_253, %c7_254, %c0_255, %c0_256] : memref<1x2x8x16x1xf32, #tpu.memory_space<vmem>>, vector<1x1x1x16x1xf32>
    %405 = vector.shape_cast %404 : vector<1x1x1x16x1xf32> to vector<16x1xf32>
    %406 = vector.broadcast %405 : vector<16x1xf32> to vector<16x4xf32>
    %407 = arith.addf %403, %406 : vector<16x4xf32>
    %408 = vector.extract_strided_slice %407 {offsets = [0, 0], sizes = [8, 4], strides = [1, 1]} : vector<16x4xf32> to vector<8x4xf32>
    %409 = arith.negf %408 : vector<8x4xf32>
    %410 = math.exp %409 : vector<8x4xf32>
    %cst_257 = arith.constant 1.000000e+00 : f32
    %411 = vector.broadcast %cst_257 : f32 to vector<8x4xf32>
    %412 = arith.addf %411, %410 : vector<8x4xf32>
    %413 = arith.divf %411, %412 : vector<8x4xf32>
    %414 = vector.extract_strided_slice %407 {offsets = [8, 0], sizes = [8, 4], strides = [1, 1]} : vector<16x4xf32> to vector<8x4xf32>
    %415 = math.tanh %414 : vector<8x4xf32>
    %416 = arith.mulf %413, %415 : vector<8x4xf32>
    %417 = vector.extract_strided_slice %212 {offsets = [0, 28], sizes = [8, 4], strides = [1, 1]} : vector<8x32xf32> to vector<8x4xf32>
    %418 = arith.addf %417, %416 : vector<8x4xf32>
    %c0_258 = arith.constant 0 : index
    %c0_259 = arith.constant 0 : index
    %c28_260 = arith.constant 28 : index
    %419 = vector.load %arg6[%c0_258, %c0_259, %c28_260] : memref<1x8x32xf32, #tpu.memory_space<vmem>>, vector<1x8x4xf32>
    %420 = vector.shape_cast %419 : vector<1x8x4xf32> to vector<8x4xf32>
    %421 = vector.shape_cast %418 : vector<8x4xf32> to vector<1x8x4xf32>
    tpu.vector_store %arg6[%c0_258, %c0_259, %c28_260], %421 {strides = array<i32>} : memref<1x8x32xf32, #tpu.memory_space<vmem>>, vector<1x8x4xf32>,
    return
  }
  func.func @transform_0(%arg0: i32) -> (i32, i32, i32) {
    %c0_i32 = arith.constant 0 : i32
    %c0_i32_0 = arith.constant 0 : i32
    %c0_i32_1 = arith.constant 0 : i32
    return %arg0, %c0_i32, %c0_i32_0 : i32, i32, i32
  }
  func.func @transform_1(%arg0: i32) -> (i32, i32, i32) {
    %c0_i32 = arith.constant 0 : i32
    %c0_i32_0 = arith.constant 0 : i32
    %c0_i32_1 = arith.constant 0 : i32
    %c0_i32_2 = arith.constant 0 : i32
    return %c0_i32, %c0_i32_0, %c0_i32_1 : i32, i32, i32
  }
  func.func @transform_2(%arg0: i32) -> (i32, i32, i32) {
    %c0_i32 = arith.constant 0 : i32
    %c0_i32_0 = arith.constant 0 : i32
    %c0_i32_1 = arith.constant 0 : i32
    %c0_i32_2 = arith.constant 0 : i32
    return %c0_i32, %c0_i32_0, %c0_i32_1 : i32, i32, i32
  }
  func.func @transform_3(%arg0: i32) -> (i32, i32, i32, i32, i32) {
    %c0_i32 = arith.constant 0 : i32
    %c0_i32_0 = arith.constant 0 : i32
    %c0_i32_1 = arith.constant 0 : i32
    %c0_i32_2 = arith.constant 0 : i32
    %c0_i32_3 = arith.constant 0 : i32
    return %arg0, %c0_i32, %c0_i32_0, %c0_i32_1, %c0_i32_2 : i32, i32, i32, i32, i32
  }
  func.func @transform_4(%arg0: i32) -> (i32, i32, i32, i32, i32) {
    %c0_i32 = arith.constant 0 : i32
    %c0_i32_0 = arith.constant 0 : i32
    %c0_i32_1 = arith.constant 0 : i32
    %c0_i32_2 = arith.constant 0 : i32
    %c0_i32_3 = arith.constant 0 : i32
    return %arg0, %c0_i32, %c0_i32_0, %c0_i32_1, %c0_i32_2 : i32, i32, i32, i32, i32
  }
  func.func @transform_5(%arg0: i32) -> (i32, i32, i32) {
    %c0_i32 = arith.constant 0 : i32
    %c0_i32_0 = arith.constant 0 : i32
    %c0_i32_1 = arith.constant 0 : i32
    return %arg0, %c0_i32, %c0_i32_0 : i32, i32, i32
  }
}

module attributes {stable_mosaic.version = 11 : i64} {
  func.func @_conv1d_kernel(%arg0: i32, %arg1: i32, %arg2: memref<1x8x32xf32, #tpu.memory_space<vmem>>, %arg3: memref<1x56xbf16, #tpu.memory_space<vmem>>, %arg4: memref<1x1xf32, #tpu.memory_space<vmem>>, %arg5: memref<1x1x32xf32, #tpu.memory_space<vmem>>) attributes {dimension_semantics = [#tpu.dimension_semantics<parallel>, #tpu.dimension_semantics<parallel>], iteration_bounds = array<i64: 2, 1>, scalar_prefetch = 0 : i64, scratch_operands = 0 : i64, tpu.core_type = #tpu.core_type<tc>, window_params = [{transform_indices = @transform_0, window_bounds = array<i64: 1, 8, 32>}, {transform_indices = @transform_1, window_bounds = array<i64: 1, 56>}, {transform_indices = @transform_2, window_bounds = array<i64: 1, 1>}, {transform_indices = @transform_3, window_bounds = array<i64: 1, 1, 32>}]} {
    %c0 = arith.constant 0 : index
    %c0_0 = arith.constant 0 : index
    %c0_1 = arith.constant 0 : index
    %0 = vector.load %arg2[%c0, %c0_0, %c0_1] : memref<1x8x32xf32, #tpu.memory_space<vmem>>, vector<1x8x32xf32>
    %1 = vector.shape_cast %0 : vector<1x8x32xf32> to vector<8x32xf32>
    %cst = arith.constant 0.000000e+00 : f32
    %2 = vector.broadcast %cst : f32 to vector<8x32xf32>
    %3 = arith.cmpf oge, %1, %2 : vector<8x32xf32>
    %cst_2 = arith.constant 1.000000e-01 : f32
    %4 = vector.broadcast %cst_2 : f32 to vector<8x32xf32>
    %5 = arith.mulf %4, %1 : vector<8x32xf32>
    %6 = arith.select %3, %1, %5 : vector<8x32xi1>, vector<8x32xf32>
    %c0_3 = arith.constant 0 : index
    %c0_4 = arith.constant 0 : index
    %7 = vector.load %arg3[%c0_3, %c0_4] : memref<1x56xbf16, #tpu.memory_space<vmem>>, vector<1x56xbf16>
    %c0_5 = arith.constant 0 : index
    %c0_6 = arith.constant 0 : index
    %8 = vector.load %arg4[%c0_5, %c0_6] : memref<1x1xf32, #tpu.memory_space<vmem>>, vector<1x1xf32>
    %9 = arith.truncf %6 : vector<8x32xf32> to vector<8x32xbf16>
    %cst_7 = arith.constant 0.000000e+00 : bf16
    %10 = vector.broadcast %cst_7 : bf16 to vector<8x3xbf16>
    %cst_8 = arith.constant 0.000000e+00 : bf16
    %11 = vector.broadcast %cst_8 : bf16 to vector<8x3xbf16>
    %12 = tpu.concatenate %10, %9, %11 in 1 : vector<8x3xbf16>, vector<8x32xbf16>, vector<8x3xbf16> -> vector<8x38xbf16>
    %13 = vector.extract_strided_slice %12 {offsets = [0, 0], sizes = [8, 32], strides = [1, 1]} : vector<8x38xbf16> to vector<8x32xbf16>
    %14 = vector.extract_strided_slice %12 {offsets = [0, 1], sizes = [8, 32], strides = [1, 1]} : vector<8x38xbf16> to vector<8x32xbf16>
    %15 = vector.extract_strided_slice %12 {offsets = [0, 2], sizes = [8, 32], strides = [1, 1]} : vector<8x38xbf16> to vector<8x32xbf16>
    %16 = vector.extract_strided_slice %12 {offsets = [0, 3], sizes = [8, 32], strides = [1, 1]} : vector<8x38xbf16> to vector<8x32xbf16>
    %17 = vector.extract_strided_slice %12 {offsets = [0, 4], sizes = [8, 32], strides = [1, 1]} : vector<8x38xbf16> to vector<8x32xbf16>
    %18 = vector.extract_strided_slice %12 {offsets = [0, 5], sizes = [8, 32], strides = [1, 1]} : vector<8x38xbf16> to vector<8x32xbf16>
    %19 = vector.extract_strided_slice %12 {offsets = [0, 6], sizes = [8, 32], strides = [1, 1]} : vector<8x38xbf16> to vector<8x32xbf16>
    %20 = tpu.concatenate %13, %14, %15, %16, %17, %18, %19 in 0 : vector<8x32xbf16>, vector<8x32xbf16>, vector<8x32xbf16>, vector<8x32xbf16>, vector<8x32xbf16>, vector<8x32xbf16>, vector<8x32xbf16> -> vector<56x32xbf16>
    %cst_9 = arith.constant dense<0.000000e+00> : vector<1x32xf32>
    %21 = tpu.matmul %7, %20, %cst_9 {dimension_numbers = #tpu.dot_dimension_numbers<[1], [0], [0], [1], [0, 0, 1, 1], [], []>} : vector<1x56xbf16>, vector<56x32xbf16>, vector<1x32xf32> -> vector<1x32xf32>
    %22 = vector.broadcast %8 : vector<1x1xf32> to vector<1x32xf32>
    %23 = arith.addf %21, %22 : vector<1x32xf32>
    %24 = math.tanh %23 : vector<1x32xf32>
    %25 = vector.shape_cast %24 : vector<1x32xf32> to vector<1x1x32xf32>
    %c0_10 = arith.constant 0 : index
    %c0_11 = arith.constant 0 : index
    %c0_12 = arith.constant 0 : index
    %26 = vector.load %arg5[%c0_10, %c0_11, %c0_12] : memref<1x1x32xf32, #tpu.memory_space<vmem>>, vector<1x1x32xf32>
    tpu.vector_store %arg5[%c0_10, %c0_11, %c0_12], %25 {strides = array<i32>} : memref<1x1x32xf32, #tpu.memory_space<vmem>>, vector<1x1x32xf32>,
    return
  }
  func.func @transform_0(%arg0: i32, %arg1: i32) -> (i32, i32, i32) {
    %c0_i32 = arith.constant 0 : i32
    %c0_i32_0 = arith.constant 0 : i32
    %c0_i32_1 = arith.constant 0 : i32
    return %arg0, %c0_i32, %c0_i32_0 : i32, i32, i32
  }
  func.func @transform_1(%arg0: i32, %arg1: i32) -> (i32, i32) {
    %c0_i32 = arith.constant 0 : i32
    %c0_i32_0 = arith.constant 0 : i32
    return %arg1, %c0_i32 : i32, i32
  }
  func.func @transform_2(%arg0: i32, %arg1: i32) -> (i32, i32) {
    %c0_i32 = arith.constant 0 : i32
    %c0_i32_0 = arith.constant 0 : i32
    return %arg1, %c0_i32 : i32, i32
  }
  func.func @transform_3(%arg0: i32, %arg1: i32) -> (i32, i32, i32) {
    %c0_i32 = arith.constant 0 : i32
    %c0_i32_0 = arith.constant 0 : i32
    return %arg0, %arg1, %c0_i32 : i32, i32, i32
  }
}

</mosaic_0001>

<bundles_post_ra>
// kernel: tile.13
= control target key start
LH: loop header
LB: loop body
LE: loop exit
PB: predicated region body
PF: predicated region fallthrough
CT: control target
= control target key end

     0   :  { %s22_s0 = inlined_call_operand.vmem [shape: f32[8], index: 0, kind: input, shape index: {}]   ;;  %s23_s1 = inlined_call_operand.vmem [shape: f32[2,8], index: 1, kind: output, shape index: {}]  }
   0x1   :  { %v4_v0 = vld [vmem:[%s22_s0] ss:$0 sm:$0xff] }
   0x2   :  { %5 = vst [vmem:[%s23_s1] sm:$0x3] %v4_v0 }

// kernel: tile.0
= control target key start
LH: loop header
LB: loop body
LE: loop exit
PB: predicated region body
PF: predicated region fallthrough
CT: control target
= control target key end

     0   :  { %s66_s8 = smov 125   ;;  %vm7_vm0 = vcmask 7168   ;;  %s67_s11 = smov 126   ;;  %s117_s0 = inlined_call_operand.vmem [shape: f32[2,8], index: 0, kind: input, shape index: {}]   ;;  %s118_s1 = inlined_call_operand.vmem [shape: f32[16,1], index: 1, kind: output, shape index: {}]  }
   0x1   :  { %v4_v0 = vld [vmem:[%s117_s0] sm:$0x3]  ;;  %s65_s0 = smov 127   ;;  %s68_s12 = smov 124  }
   0x2   :  { %5 = vst [vmem:[#allocation0] sm:$0x3] %v4_v0  ;;  %s69_s13 = smov 123   ;;  %s70_s14 = smov 122  }
   0x3   :  { %s71_s15 = smov 121  }
   0x9   :  { %v9_v1 = vld [vmem:[#allocation0] sm:$0x3]  }
   0xa   :  { %v21_v2 = vld [vmem:[#allocation0] sm:$0x3]   ;;  %10 = vrot.lane.b32.xlu0 %v9_v1, %s65_s0 }
   0xb   :  { %22 = vrot.lane.b32.xlu1 %v21_v2, %s66_s8  ;;  %v15_v3 = vld [vmem:[#allocation0] sm:$0x3]  }
   0xc   :  { %v27_v4 = vld [vmem:[#allocation0] sm:$0x3]  }
   0xd   :  { %v6_v5 = vld [vmem:[#allocation0] sm:$0x3]  }
   0xe   :  { %8 = vst.msk [vmem:[%s118_s1] ss:$8 sm:$0x3] %vm7_vm0, %v6_v5   ;;  %16 = vrot.lane.b32.xlu0 %v15_v3, %s67_s11  ;;  %v33_v6 = vld [vmem:[#allocation0] sm:$0x3]  }
   0xf   :  { %28 = vrot.lane.b32.xlu1 %v27_v4, %s68_s12  ;;  %v39_v7 = vld [vmem:[#allocation0] sm:$0x3]  }
  0x10   :  { %v45_v8 = vld [vmem:[#allocation0] sm:$0x3]  }
  0x12   :  { %34 = vrot.lane.b32.xlu0 %v33_v6, %s69_s13 }
  0x13   :  { %40 = vrot.lane.b32.xlu1 %v39_v7, %s70_s14 }
  0x16   :  { %46 = vrot.lane.b32.xlu0 %v45_v8, %s71_s15 }
  0x7c   :  { %v11_v9 = vpop.permute.xlu0 %10  }
  0x7d   :  { %v23_v10 = vpop.permute.xlu1 %22   ;;  %51 = vst.msk [vmem:[%s118_s1 + $0x1] ss:$8 sm:$0x3] %vm7_vm0, %v11_v9  }
  0x7e   :  { %53 = vst.msk [vmem:[%s118_s1 + $0x3] ss:$8 sm:$0x3] %vm7_vm0, %v23_v10  }
  0x80   :  { %v17_v11 = vpop.permute.xlu0 %16  }
  0x81   :  { %v29_v12 = vpop.permute.xlu1 %28   ;;  %52 = vst.msk [vmem:[%s118_s1 + $0x2] ss:$8 sm:$0x3] %vm7_vm0, %v17_v11  }
  0x82   :  { %54 = vst.msk [vmem:[%s118_s1 + $0x4] ss:$8 sm:$0x3] %vm7_vm0, %v29_v12  }
  0x84   :  { %v35_v13 = vpop.permute.xlu0 %34  }
  0x85   :  { %v41_v14 = vpop.permute.xlu1 %40   ;;  %55 = vst.msk [vmem:[%s118_s1 + $0x5] ss:$8 sm:$0x3] %vm7_vm0, %v35_v13  }
  0x86   :  { %56 = vst.msk [vmem:[%s118_s1 + $0x6] ss:$8 sm:$0x3] %vm7_vm0, %v41_v14  }
  0x88   :  { %v47_v15 = vpop.permute.xlu0 %46  }
  0x89   :  { %57 = vst.msk [vmem:[%s118_s1 + $0x7] ss:$8 sm:$0x3] %vm7_vm0, %v47_v15  }

// kernel: _lambda_.16
= control target key start
LH: loop header
LB: loop body
LE: loop exit
PB: predicated region body
PF: predicated region fallthrough
CT: control target
= control target key end

     0   :  { %s393_s12 = smov 0   ;;  %s423_s0 = inlined_call_operand.vmem [shape: f32[2,8,8], index: 0, kind: input, shape index: {}]   ;;  %s424_s1 = inlined_call_operand.vmem [shape: bf16[16,24], index: 1, kind: input, shape index: {}]   ;;  %s425_s2 = inlined_call_operand.vmem [shape: f32[16,1], index: 2, kind: input, shape index: {}]   ;;  %s426_s3 = inlined_call_operand.vmem [shape: f32[2,16,8], index: 3, kind: output, shape index: {}]  }
   0x1 LB: > { %s318_s13 = sadd.s32 4294967295, %s365_s12   ;;  %p322_p0 = scmp.ge.s32.totalorder %s365_s12, 1  ;;  %s365_s12 = sphi %s393_s12, %s13_s12  }
   0x2   : > { %p136_p1 = scmp.lt.s32.totalorder %s365_s12, 3 }
   0x4   : > { %p137_p2 = pnand %p322_p0, %p136_p1 }
   0x5   : > { %p159_p3 = scmp.lt.s32.totalorder (!%p137_p2), %s318_s13, 1  ;;  %s367_s18 = smov (!%p137_p2), 1   ;;  %v368_v4 = vmov (!%p137_p2), 0.0   ;;  %vm181_vm1 = vcmask (!%p137_p2), 7168   ;;  %vm369_vm2 = vmmov (!%p137_p2), 0   ;;  %vm185_vm3 = vcmask (!%p137_p2), 72704  }
   0x6   : > { %140 = sbr.rel (%p137_p2) target bundleno = 481 (0x1e1), region = 32  ;;  %334 = vmatprep.subr.bf16.mxu0 (!%p137_p2), %v368_v4  ;;  %338 = vmatprep.mubr.msk.bf16.mxu0 (!%p137_p2), %vm369_vm2, %v368_v4  ;;  %v370_v7 = vmov (!%p137_p2), 0   ;;  %s371_s19 = smov (!%p137_p2), 126   ;;  %v175_v10 = vld [vmem:[%s425_s2] sm:$0xff] (!%p137_p2)  ;;  %v176_v11 = vld [vmem:[%s425_s2 + $0x8] sm:$0xff] (!%p137_p2)  ;;  %vm193_vm4 = vcmask (!%p137_p2), 1043456  }
   0x7   : > { %356 = vset.pattern.permute.xlu1 (!%p137_p2), %v370_v7  ;;  %357 = vset.pattern.permute.xlu0 (!%p137_p2), %v370_v7  ;;  %s372_s22 = smov (!%p137_p2), 127   ;;  %v358_v16 = vld [vmem:[%s424_s1] sm:$0xff] (!%p137_p2)   ;;  %vm212_vm5 = vcmask (!%p137_p2), 195584   ;;  %vm260_vm6 = vcmask (!%p137_p2), 64512  }
   0xd   : > { %s428_s13 = smov (!%p159_p3, %s318_s13), 1 }
   0xe   : > { %s323_s14 = sshll.u32 %s428_s13, 3  ;;  %s330_s27 = sshll.u32 %s428_s13, 4 }
   0xf   : > { %s162_s17 = scalar_lea.vmem %s423_s0, %s323_s14  ;;  %s167_s30 = scalar_lea.vmem %s426_s3, %s330_s27 }
  0x10   : > { %v169_v0 = vld [vmem:[%s162_s17] sm:$0xff] }
  0x11   : > { %vm170_vm0 = vcmp.ge.f32.partialorder %v169_v0, 0.0  ;;  %v171_v1 = vmul.f32 0.2, %v169_v0 }
  0x13   : > { %v172_v2 = vsel %vm170_vm0, %v169_v0, %v171_v1 }
  0x14   : > { %v177_v3 = vpack.c.bf16 %v172_v2, %v172_v2 }
  0x16   : > { %179 = vrot.lane.b32.xlu0 %v177_v3, %s367_s18 }
  0x88   : > { %v180_v5 = vpop.permute.xlu0 %179 }
  0x89   : > { %v184_v6 = vsel %vm181_vm1, 0, %v180_v5 }
  0x8a   : > { %v186_v8 = vsel %vm185_vm3, %v184_v6, 0 }
  0x8b   : > { %v188_v9 = vrot.slane %v186_v8, 4  ;;  %191 = vrot.lane.b32.xlu1 %v186_v8, %s371_s19 }
  0x8d   : > { %189 = vrot.lane.b32.xlu0 %v188_v9, %s372_s22 }
  0x8f   : > { %199 = vperm.xlu1 %356, %v175_v10  }
  0x91   : > { %204 = vperm.xlu0 %357, %v176_v11  }
  0xfd   : > { %v192_v14 = vpop.permute.xlu1 %191 }
  0xfe   : > { %v217_v15 = vsel %vm193_vm4, %v192_v14, 0 }
  0xff   : > { %v190_v12 = vpop.permute.xlu0 %189 }
 0x100   : > { %v195_v13 = vsel %vm193_vm4, %v186_v8, %v190_v12 }
 0x101   : > { %335 = vmatpush3.bf16.msra.mxu0 %v195_v13 }
 0x102   : > { %336 = vmatprep.subr.bf16.mxu0 %v368_v4 }
 0x105   : > { %337 = vmatpush3.bf16.msra.mxu0 %v217_v15 }
 0x108   : > { %339 = vmatmul.mubr.msk.bf16.vlgmr.msra.gmra.mrb[0].mxu0 %vm212_vm5, %v358_v16 }
 0x10e   : > { %v200_v17 = vpop.permute.xlu1 %199 }
 0x110   : > { %v205_v19 = vpop.permute.xlu0 %204 }
 0x1db   : > { %v253_v18 = vpop.f32.mrb[0].mxu0 }
 0x1dc   : > { %v254_v20 = vadd.f32 %v253_v18, %v200_v17  ;;  %v340_v21 = vpop.f32.mrb[1].mxu0 }
 0x1dd   : > { %v256_v22 = vpop.f32.mrb[2].mxu0 }
 0x1de   : > { %261 = vst.msk [vmem:[%s167_s30] sm:$0xff] %vm260_vm6, %v254_v20  ;;  %v257_v23 = vadd.f32 %v256_v22, %v205_v19  ;;  %v341_v24 = vpop.f32.mrb[3].mxu0 }
 0x1e0   : > { %262 = vst.msk [vmem:[%s167_s30 + $0x8] sm:$0xff] %vm260_vm6, %v257_v23 }
 0x1e1 PF: > { %s13_s12 = sadd.s32 1, %s365_s12  }
 0x1e2   : > { %p10_p4 = scmp.ge.s32.totalorder %s13_s12, 4  }
 0x1e4   :  { %12 = sbr.rel (!%p10_p4) target bundleno = 1 (0x1), region = 62 }

// kernel: _lambda_.12
= control target key start
LH: loop header
LB: loop body
LE: loop exit
PB: predicated region body
PF: predicated region fallthrough
CT: control target
= control target key end

     0   :  { %s533_s12 = smov 0   ;;  %s535_s13 = smov 0   ;;  %s576_s0 = inlined_call_operand.vmem [shape: f32[2,4,8], index: 0, kind: input, shape index: {}]   ;;  %s577_s1 = inlined_call_operand.vmem [shape: bf16[8,28], index: 1, kind: input, shape index: {}]   ;;  %s578_s2 = inlined_call_operand.vmem [shape: f32[8,1], index: 2, kind: input, shape index: {}]   ;;  %s579_s3 = inlined_call_operand.vmem [shape: f32[2,8,8], index: 3, kind: output, shape index: {}]  }
   0x1   :  { %s537_s14 = smov 0  }
   0x2 LB: > { %s25_s15 = sadd.s32 1, %s497_s13  ;;  %p426_p0 = scmp.ge.s32.totalorder %s501_s14, 1  ;;  %s501_s14 = sphi %s537_s14, %s13_s14   ;;  %s497_s13 = sphi %s535_s13, %s581_s13   ;;  %s493_s12 = sphi %s533_s12, %s580_s12  }
   0x3   : > { %p27_p1 = scmp.ge.s32.totalorder %s25_s15, 2  ;;  %p168_p2 = scmp.lt.s32.totalorder %s501_s14, 3 }
   0x5   : > { %s583_s15 = smov (%p27_p1, %s25_s15), 0  ;;  %p169_p3 = pnand %p426_p0, %p168_p2 }
   0x6   : > { %p201_p4 = scmp.lt.s32.totalorder (!%p169_p3), %s493_s12, 1  ;;  %s503_s20 = smov (!%p169_p3), 3   ;;  %v504_v2 = vmov (!%p169_p3), 0.0   ;;  %vm228_vm0 = vcmask (!%p169_p3), 23552   ;;  %vm232_vm1 = vcmask (!%p169_p3), 89088   ;;  %vm505_vm2 = vmmov (!%p169_p3), 0  }
   0x7   : > { %172 = sbr.rel (%p169_p3) target bundleno = 483 (0x1e3), region = 32  ;;  %435 = vmatprep.subr.bf16.mxu0 (!%p169_p3), %v504_v2  ;;  %439 = vmatprep.mubr.msk.bf16.mxu0 (!%p169_p3), %vm505_vm2, %v504_v2  ;;  %s506_s21 = smov (!%p169_p3), 126   ;;  %v508_v9 = vmov (!%p169_p3), 0   ;;  %v223_v10 = vld [vmem:[%s578_s2] sm:$0xff] (!%p169_p3)  ;;  %vm250_vm3 = vcmask (!%p169_p3), 1041408   ;;  %vm253_vm4 = vcmask (!%p169_p3), 1043456  }
   0x8   : > { %s507_s22 = smov (!%p169_p3), 127   ;;  %477 = vset.pattern.permute.xlu1 (!%p169_p3), %v508_v9  ;;  %478 = vset.pattern.permute.xlu0 (!%p169_p3), %v508_v9  ;;  %s509_s23 = smov (!%p169_p3), 125   ;;  %vm256_vm5 = vcmask (!%p169_p3), 1045504   ;;  %v222_v23 = vld [vmem:[%s577_s1] sm:$0xf] (!%p169_p3)  ;;  %vm270_vm6 = vcmask (!%p169_p3), 228352  }
   0x9   : > { %s510_s24 = smov (!%p169_p3), 124   ;;  %s511_s25 = smov (!%p169_p3), 123   ;;  %vm316_vm7 = vcmask (!%p169_p3), 64512  }
   0xa   : > { %s512_s26 = smov (!%p169_p3), 122  }
   0xe   : > { %s585_s12 = smov (!%p201_p4, %s493_s12), 1 }
   0xf   : > { %s427_s16 = sshll.u32 %s585_s12, 2  ;;  %s428_s4 = sshll.u32 %s585_s12, 3 }
  0x10   : > { %s204_s19 = scalar_lea.vmem %s576_s0, %s427_s16  ;;  %s219_s7 = scalar_lea.vmem %s579_s3, %s428_s4 }
  0x11   : > { %v221_v0 = vld [vmem:[%s204_s19] sm:$0xf] }
  0x12   : > { %v224_v1 = vpack.c.bf16 %v221_v0, %v221_v0 }
  0x14   : > { %226 = vrot.lane.b32.xlu0 %v224_v1, %s503_s20 }
  0x86   : > { %v227_v3 = vpop.permute.xlu0 %226 }
  0x87   : > { %v231_v4 = vsel %vm228_vm0, 0, %v227_v3 }
  0x88   : > { %v233_v5 = vsel %vm232_vm1, %v231_v4, 0 }
  0x89   : > { %v238_v6 = vrot.slane %v233_v5, 4  ;;  %v235_v7 = vrot.slane %v233_v5, 6  ;;  %v241_v8 = vrot.slane %v233_v5, 2 }
  0x8b   : > { %239 = vrot.lane.b32.xlu1 %v238_v6, %s506_s21  ;;  %236 = vrot.lane.b32.xlu0 %v235_v7, %s507_s22 }
  0x8f   : > { %242 = vrot.lane.b32.xlu1 %v241_v8, %s509_s23  ;;  %244 = vrot.lane.b32.xlu0 %v233_v5, %s510_s24 }
  0x93   : > { %246 = vrot.lane.b32.xlu1 %v235_v7, %s511_s25  ;;  %248 = vrot.lane.b32.xlu0 %v238_v6, %s512_s26 }
  0x97   : > { %267 = vperm.xlu1 %477, %v223_v10  }
  0xfd   : > { %v240_v11 = vpop.permute.xlu1 %239  ;;  %v237_v12 = vpop.permute.xlu0 %236 }
  0xfe   : > { %v252_v13 = vsel %vm250_vm3, %v233_v5, %v237_v12 }
  0xff   : > { %v255_v16 = vsel %vm253_vm4, %v252_v13, %v240_v11 }
 0x101   : > { %v243_v14 = vpop.permute.xlu1 %242  ;;  %v245_v15 = vpop.permute.xlu0 %244 }
 0x102   : > { %v258_v17 = vsel %vm256_vm5, %v255_v16, %v243_v14 }
 0x103   : > { %436 = vmatpush3.bf16.msra.mxu0 %v258_v17 }
 0x104   : > { %437 = vmatprep.subr.bf16.mxu0 %v504_v2 }
 0x105   : > { %v247_v18 = vpop.permute.xlu1 %246  ;;  %v249_v19 = vpop.permute.xlu0 %248 }
 0x106   : > { %v262_v20 = vsel %vm250_vm3, %v245_v15, %v247_v18 }
 0x107   : > { %v264_v21 = vsel %vm253_vm4, %v262_v20, %v249_v19 }
 0x108   : > { %v274_v22 = vsel %vm256_vm5, %v264_v21, 0 }
 0x109   : > { %438 = vmatpush3.bf16.msra.mxu0 %v274_v22 }
 0x10c   : > { %440 = vmatmul.mubr.msk.bf16.vlgmr.msra.gmra.mrb[0].mxu0 %vm270_vm6, %v222_v23 }
 0x116   : > { %v268_v24 = vpop.permute.xlu1 %267 }
 0x1df   : > { %v310_v25 = vpop.f32.mrb[0].mxu0 }
 0x1e0   : > { %v311_v26 = vadd.f32 %v310_v25, %v268_v24  ;;  %v441_v27 = vpop.f32.mrb[1].mxu0 }
 0x1e1   : > { %v313_v28 = vpop.f32.mrb[2].mxu0 }
 0x1e2   : > { %317 = vst.msk [vmem:[%s219_s7] sm:$0xff] %vm316_vm7, %v311_v26  ;;  %v442_v29 = vpop.f32.mrb[3].mxu0 }
 0x1e3 PF: > { %s13_s14 = sadd.s32 1, %s501_s14   ;;  %s580_s12 = smov %s497_s13 }
 0x1e4   : > { %p10_p5 = scmp.ge.s32.totalorder %s13_s14, 4   ;;  %s581_s13 = smov %s583_s15 }
 0x1e6   :  { %12 = sbr.rel (!%p10_p5) target bundleno = 2 (0x2), region = 68 }

// kernel: _lambda_.13
= control target key start
LH: loop header
LB: loop body
LE: loop exit
PB: predicated region body
PF: predicated region fallthrough
CT: control target
= control target key end

     0   :  { %s985_s18 = smov 0   ;;  %s1135_s0 = inlined_call_operand.vmem [shape: f32[2,6,8], index: 0, kind: input, shape index: {}]   ;;  %s1136_s1 = inlined_call_operand.vmem [shape: bf16[8,30], index: 1, kind: input, shape index: {}]   ;;  %s1137_s2 = inlined_call_operand.vmem [shape: f32[8,1], index: 2, kind: input, shape index: {}]   ;;  %s1138_s3 = inlined_call_operand.vmem [shape: bf16[6,8,24], index: 3, kind: input, shape index: {}]   ;;  %s1139_s4 = inlined_call_operand.vmem [shape: f32[6,8,1], index: 4, kind: input, shape index: {}]   ;;  %s1140_s5 = inlined_call_operand.vmem [shape: f32[2,8,8], index: 5, kind: output, shape index: {}]  }
   0x1 LB: > { %s816_s19 = sadd.s32 4294967295, %s944_s18   ;;  %p820_p0 = scmp.ge.s32.totalorder %s944_s18, 1  ;;  %s944_s18 = sphi %s985_s18, %s15_s18  }
   0x2   : > { %p186_p1 = scmp.lt.s32.totalorder %s944_s18, 3 }
   0x4   : > { %p187_p2 = pnand %p820_p0, %p186_p1 }
   0x5   : > { %p212_p3 = scmp.lt.s32.totalorder (!%p187_p2), %s816_s19, 1  ;;  %s946_s24 = smov (!%p187_p2), 2   ;;  %v947_v2 = vmov (!%p187_p2), 0.0   ;;  %vm228_vm0 = vcmask (!%p187_p2), 15360   ;;  %vm232_vm1 = vcmask (!%p187_p2), 80896   ;;  %vm948_vm2 = vmmov (!%p187_p2), 0  }
   0x6   : > { %190 = sbr.rel (%p187_p2) target bundleno = 3249 (0xcb1), region = 40  ;;  %863 = vmatprep.subr.bf16.mxu0 (!%p187_p2), %v947_v2  ;;  %871 = vmatprep.subr.bf16.mxu1 (!%p187_p2), %v947_v2  ;;  %v949_v8 = vmov (!%p187_p2), 0   ;;  %s950_s25 = smov (!%p187_p2), 126   ;;  %v223_v11 = vld [vmem:[%s1137_s2] sm:$0xff] (!%p187_p2)  ;;  %vm247_vm3 = vcmask (!%p187_p2), 1042432   ;;  %vm250_vm4 = vcmask (!%p187_p2), 1045504  }
   0x7   : > { %867 = vmatprep.mubr.msk.bf16.mxu0 (!%p187_p2), %vm948_vm2, %v947_v2  ;;  %875 = vmatprep.mubr.msk.bf16.mxu1 (!%p187_p2), %vm948_vm2, %v947_v2  ;;  %s951_s26 = smov (!%p187_p2), 127   ;;  %s952_s27 = smov (!%p187_p2), 125   ;;  %vm254_vm5 = vcmask (!%p187_p2), 1040384   ;;  %vm257_vm6 = vcmask (!%p187_p2), 1043456   ;;  %vm269_vm7 = vcmask (!%p187_p2), 1046528   ;;  %vm265_vm8 = vcmask (!%p187_p2), 244736  }
   0x8   : > { %936 = vset.pattern.permute.xlu1 (!%p187_p2), %v949_v8  ;;  %937 = vset.pattern.permute.xlu0 (!%p187_p2), %v949_v8  ;;  %s953_s28 = smov (!%p187_p2), 124   ;;  %v222_v21 = vld [vmem:[%s1136_s1] sm:$0xf] (!%p187_p2)  ;;  %s954_s8 = smov (!%p187_p2), 1   ;;  %vm321_vm10 = vcmask (!%p187_p2), 7168   ;;  %vm324_vm11 = vcmask (!%p187_p2), 72704  }
   0x9   : > { %v316_v35 = vld [vmem:[%s1139_s4] sm:$0xff] (!%p187_p2)  ;;  %vm340_vm12 = vcmask (!%p187_p2), 195584   ;;  %v826_v54 = vld [vmem:[%s1139_s4 + $0x8] sm:$0xff] (!%p187_p2) }
   0xa   : > { %v315_v40 = vld [vmem:[%s1138_s3] sm:$0xf] (!%p187_p2)  ;;  %v825_v59 = vld [vmem:[%s1138_s3 + $0x4] sm:$0xf] (!%p187_p2) }
   0xd   : > { %s1142_s19 = smov (!%p212_p3, %s816_s19), 1 }
   0xe   : > { %s821_s20 = sshll.u32 %s1142_s19, 3 }
   0xf   : > { %s215_s23 = scalar_lea.vmem %s1135_s0, %s821_s20  ;;  %s219_s13 = scalar_lea.vmem %s1140_s5, %s821_s20 }
  0x10   : > { %v221_v0 = vld [vmem:[%s215_s23] sm:$0x3f] }
  0x11   : > { %v224_v1 = vpack.c.bf16 %v221_v0, %v221_v0 }
  0x13   : > { %226 = vrot.lane.b32.xlu0 %v224_v1, %s946_s24 }
  0x85   : > { %v227_v3 = vpop.permute.xlu0 %226 }
  0x86   : > { %v231_v4 = vsel %vm228_vm0, 0, %v227_v3 }
  0x87   : > { %v233_v5 = vsel %vm232_vm1, %v231_v4, 0 }
  0x88   : > { %v238_v6 = vrot.slane %v233_v5, 2  ;;  %v235_v7 = vrot.slane %v233_v5, 5  ;;  %v241_v9 = vrot.slane %v233_v5, 7  ;;  %v244_v10 = vrot.slane %v233_v5, 4 }
  0x8a   : > { %239 = vrot.lane.b32.xlu1 %v238_v6, %s950_s25  ;;  %236 = vrot.lane.b32.xlu0 %v235_v7, %s951_s26 }
  0x8e   : > { %242 = vrot.lane.b32.xlu1 %v241_v9, %s952_s27  ;;  %245 = vrot.lane.b32.xlu0 %v244_v10, %s953_s28  ;;  %v829_v10 = vld [vmem:[%s1139_s4 + $0x10] sm:$0xff] }
  0x92   : > { %262 = vperm.xlu1 %936, %v223_v11  }
  0xfc   : > { %v240_v12 = vpop.permute.xlu1 %239  ;;  %v237_v13 = vpop.permute.xlu0 %236 }
  0xfd   : > { %v249_v14 = vsel %vm247_vm3, %v233_v5, %v237_v13  ;;  %vm761_vm3 = vcmask 64512  }
  0xfe   : > { %v252_v15 = vsel %vm250_vm4, %v249_v14, %v240_v12 }
  0xff   : > { %864 = vmatpush3.bf16.msra.mxu0 %v252_v15  ;;  %v828_v15 = vld [vmem:[%s1138_s3 + $0x8] sm:$0xf] }
 0x100   : > { %v243_v16 = vpop.permute.xlu1 %242  ;;  %v246_v17 = vpop.permute.xlu0 %245  ;;  %865 = vmatprep.subr.bf16.mxu0 %v947_v2 }
 0x101   : > { %v256_v18 = vsel %vm254_vm5, %v240_v12, %v243_v16 }
 0x102   : > { %v259_v19 = vsel %vm257_vm6, %v256_v18, %v246_v17 }
 0x103   : > { %v270_v20 = vsel %vm269_vm7, %v259_v19, 0 }
 0x104   : > { %866 = vmatpush3.bf16.msra.mxu0 %v270_v20 }
 0x105   : > { %879 = vmatprep.subr.bf16.mxu0 %v947_v2 }
 0x107   : > { %868 = vmatmul.mubr.msk.bf16.vlgmr.msra.gmra.mrb[0].mxu0 %vm265_vm8, %v222_v21 }
 0x108   : > { %883 = vmatprep.mubr.msk.bf16.mxu0 %vm948_vm2, %v947_v2 }
 0x111   : > { %v263_v22 = vpop.permute.xlu1 %262 }
 0x1da   : > { %v306_v23 = vpop.f32.mrb[0].mxu0 }
 0x1db   : > { %v307_v24 = vadd.f32 %v306_v23, %v263_v22  ;;  %v869_v25 = vpop.f32.mrb[1].mxu0 }
 0x1dc   : > { %v309_v26 = vpop.f32.mrb[2].mxu0 }
 0x1dd   : > { %vm312_vm9 = vcmp.ge.f32.partialorder %v307_v24, 0.0  ;;  %v313_v27 = vmul.f32 0.1, %v307_v24  ;;  %v870_v28 = vpop.f32.mrb[3].mxu0 }
 0x1df   : > { %v1020_v29 = vsel %vm312_vm9, %v307_v24, %v313_v27 }
 0x1e0   : > { %v317_v30 = vpack.c.bf16 %v1020_v29, %v1020_v29 }
 0x1e2   : > { %319 = vrot.lane.b32.xlu0 %v317_v30, %s954_s8  ;;  %v832_v30 = vld [vmem:[%s1139_s4 + $0x18] sm:$0xff] }
 0x254   : > { %v320_v31 = vpop.permute.xlu0 %319 }
 0x255   : > { %v323_v32 = vsel %vm321_vm10, 0, %v320_v31 }
 0x256   : > { %v325_v33 = vsel %vm324_vm11, %v323_v32, 0 }
 0x257   : > { %v327_v34 = vrot.slane %v325_v33, 4  ;;  %330 = vrot.lane.b32.xlu0 %v325_v33, %s950_s25 }
 0x259   : > { %328 = vrot.lane.b32.xlu1 %v327_v34, %s951_s26 }
 0x25d   : > { %337 = vperm.xlu1 %936, %v316_v35   ;;  %v831_v35 = vld [vmem:[%s1138_s3 + $0xc] sm:$0xf] }
 0x2c9   : > { %v331_v38 = vpop.permute.xlu0 %330 }
 0x2ca   : > { %v345_v39 = vsel %vm257_vm6, %v331_v38, 0 }
 0x2cb   : > { %v329_v36 = vpop.permute.xlu1 %328 }
 0x2cc   : > { %v333_v37 = vsel %vm257_vm6, %v325_v33, %v329_v36 }
 0x2cd   : > { %872 = vmatpush3.bf16.msra.mxu1 %v333_v37 }
 0x2ce   : > { %873 = vmatprep.subr.bf16.mxu1 %v947_v2 }
 0x2d1   : > { %874 = vmatpush3.bf16.msra.mxu1 %v345_v39 }
 0x2d2   : > { %887 = vmatprep.subr.bf16.mxu1 %v947_v2 }
 0x2d4   : > { %876 = vmatmul.mubr.msk.bf16.vlgmr.msra.gmra.mrb[0].mxu1 %vm340_vm12, %v315_v40 }
 0x2d5   : > { %891 = vmatprep.mubr.msk.bf16.mxu1 %vm948_vm2, %v947_v2 }
 0x2dc   : > { %v338_v41 = vpop.permute.xlu1 %337 }
 0x3a7   : > { %v381_v42 = vpop.f32.mrb[0].mxu1 }
 0x3a8   : > { %v382_v43 = vadd.f32 %v381_v42, %v338_v41  ;;  %v877_v44 = vpop.f32.mrb[1].mxu1 }
 0x3a9   : > { %v384_v45 = vpop.f32.mrb[2].mxu1 }
 0x3aa   : > { %vm387_vm13 = vcmp.ge.f32.partialorder %v382_v43, 0.0  ;;  %v388_v46 = vmul.f32 0.1, %v382_v43  ;;  %v878_v47 = vpop.f32.mrb[3].mxu1 }
 0x3ac   : > { %v389_v48 = vsel %vm387_vm13, %v382_v43, %v388_v46 }
 0x3ad   : > { %v394_v49 = vpack.c.bf16 %v389_v48, %v389_v48 }
 0x3af   : > { %396 = vrot.lane.b32.xlu0 %v394_v49, %s954_s8  ;;  %v835_v49 = vld [vmem:[%s1139_s4 + $0x20] sm:$0xff] }
 0x421   : > { %v397_v50 = vpop.permute.xlu0 %396 }
 0x422   : > { %v399_v51 = vsel %vm321_vm10, 0, %v397_v50 }
 0x423   : > { %v400_v52 = vsel %vm324_vm11, %v399_v51, 0 }
 0x424   : > { %v402_v53 = vrot.slane %v400_v52, 4  ;;  %405 = vrot.lane.b32.xlu0 %v400_v52, %s950_s25 }
 0x426   : > { %403 = vrot.lane.b32.xlu1 %v402_v53, %s951_s26 }
 0x42a   : > { %412 = vperm.xlu1 %936, %v826_v54   ;;  %v834_v54 = vld [vmem:[%s1138_s3 + $0x10] sm:$0xf] }
 0x496   : > { %v406_v57 = vpop.permute.xlu0 %405 }
 0x497   : > { %v419_v58 = vsel %vm257_vm6, %v406_v57, 0 }
 0x498   : > { %v404_v55 = vpop.permute.xlu1 %403 }
 0x499   : > { %v408_v56 = vsel %vm257_vm6, %v400_v52, %v404_v55 }
 0x49a   : > { %880 = vmatpush3.bf16.msra.mxu0 %v408_v56 }
 0x49b   : > { %881 = vmatprep.subr.bf16.mxu0 %v947_v2 }
 0x49e   : > { %882 = vmatpush3.bf16.msra.mxu0 %v419_v58 }
 0x49f   : > { %895 = vmatprep.subr.bf16.mxu0 %v947_v2 }
 0x4a1   : > { %884 = vmatmul.mubr.msk.bf16.vlgmr.msra.gmra.mrb[4].mxu0 %vm340_vm12, %v825_v59 }
 0x4a2   : > { %899 = vmatprep.mubr.msk.bf16.mxu0 %vm948_vm2, %v947_v2 }
 0x4a9   : > { %v413_v60 = vpop.permute.xlu1 %412 }
 0x574   : > { %v455_v61 = vpop.f32.mrb[4].mxu0 }
 0x575   : > { %v456_v62 = vadd.f32 %v455_v61, %v413_v60  ;;  %v885_v63 = vpop.f32.mrb[5].mxu0 }
 0x576   : > { %v458_v0 = vpop.f32.mrb[6].mxu0 }
 0x577   : > { %vm461_vm14 = vcmp.ge.f32.partialorder %v456_v62, 0.0  ;;  %v462_v1 = vmul.f32 0.1, %v456_v62  ;;  %v886_v3 = vpop.f32.mrb[7].mxu0 }
 0x579   : > { %v463_v4 = vsel %vm461_vm14, %v456_v62, %v462_v1 }
 0x57a   : > { %v468_v5 = vpack.c.bf16 %v463_v4, %v463_v4 }
 0x57c   : > { %470 = vrot.lane.b32.xlu0 %v468_v5, %s954_s8  ;;  %v838_v5 = vld [vmem:[%s1139_s4 + $0x28] sm:$0xff] }
 0x5ee   : > { %v471_v6 = vpop.permute.xlu0 %470 }
 0x5ef   : > { %v473_v7 = vsel %vm321_vm10, 0, %v471_v6 }
 0x5f0   : > { %v474_v8 = vsel %vm324_vm11, %v473_v7, 0 }
 0x5f1   : > { %v476_v9 = vrot.slane %v474_v8, 4  ;;  %479 = vrot.lane.b32.xlu0 %v474_v8, %s950_s25 }
 0x5f3   : > { %477 = vrot.lane.b32.xlu1 %v476_v9, %s951_s26 }
 0x5f7   : > { %486 = vperm.xlu1 %936, %v829_v10   ;;  %v837_v10 = vld [vmem:[%s1138_s3 + $0x14] sm:$0xf] }
 0x663   : > { %v480_v13 = vpop.permute.xlu0 %479 }
 0x664   : > { %v493_v14 = vsel %vm257_vm6, %v480_v13, 0 }
 0x665   : > { %v478_v11 = vpop.permute.xlu1 %477 }
 0x666   : > { %v482_v12 = vsel %vm257_vm6, %v474_v8, %v478_v11 }
 0x667   : > { %888 = vmatpush3.bf16.msra.mxu1 %v482_v12 }
 0x668   : > { %889 = vmatprep.subr.bf16.mxu1 %v947_v2 }
 0x66b   : > { %890 = vmatpush3.bf16.msra.mxu1 %v493_v14 }
 0x66c   : > { %903 = vmatprep.subr.bf16.mxu1 %v947_v2 }
 0x66e   : > { %892 = vmatmul.mubr.msk.bf16.vlgmr.msra.gmra.mrb[4].mxu1 %vm340_vm12, %v828_v15 }
 0x66f   : > { %907 = vmatprep.mubr.msk.bf16.mxu1 %vm948_vm2, %v947_v2 }
 0x676   : > { %v487_v16 = vpop.permute.xlu1 %486 }
 0x741   : > { %v529_v17 = vpop.f32.mrb[4].mxu1 }
 0x742   : > { %v530_v18 = vadd.f32 %v529_v17, %v487_v16  ;;  %v893_v19 = vpop.f32.mrb[5].mxu1 }
 0x743   : > { %v532_v20 = vpop.f32.mrb[6].mxu1 }
 0x744   : > { %vm535_vm15 = vcmp.ge.f32.partialorder %v530_v18, 0.0  ;;  %v536_v21 = vmul.f32 0.1, %v530_v18  ;;  %v894_v22 = vpop.f32.mrb[7].mxu1 }
 0x746   : > { %v537_v23 = vsel %vm535_vm15, %v530_v18, %v536_v21 }
 0x747   : > { %v542_v24 = vpack.c.bf16 %v537_v23, %v537_v23 }
 0x749   : > { %544 = vrot.lane.b32.xlu0 %v542_v24, %s954_s8 }
 0x7bb   : > { %v545_v25 = vpop.permute.xlu0 %544 }
 0x7bc   : > { %v547_v26 = vsel %vm321_vm10, 0, %v545_v25 }
 0x7bd   : > { %v548_v27 = vsel %vm324_vm11, %v547_v26, 0 }
 0x7be   : > { %v550_v28 = vrot.slane %v548_v27, 4  ;;  %553 = vrot.lane.b32.xlu0 %v548_v27, %s950_s25 }
 0x7c0   : > { %551 = vrot.lane.b32.xlu1 %v550_v28, %s951_s26 }
 0x7c4   : > { %560 = vperm.xlu1 %936, %v832_v30  }
 0x830   : > { %v554_v33 = vpop.permute.xlu0 %553 }
 0x831   : > { %v567_v34 = vsel %vm257_vm6, %v554_v33, 0 }
 0x832   : > { %v552_v31 = vpop.permute.xlu1 %551 }
 0x833   : > { %v556_v32 = vsel %vm257_vm6, %v548_v27, %v552_v31 }
 0x834   : > { %896 = vmatpush3.bf16.msra.mxu0 %v556_v32 }
 0x835   : > { %897 = vmatprep.subr.bf16.mxu0 %v947_v2 }
 0x838   : > { %898 = vmatpush3.bf16.msra.mxu0 %v567_v34 }
 0x839   : > { %911 = vmatprep.subr.bf16.mxu0 %v947_v2 }
 0x83b   : > { %900 = vmatmul.mubr.msk.bf16.vlgmr.msra.gmra.mrb[8].mxu0 %vm340_vm12, %v831_v35 }
 0x83c   : > { %915 = vmatprep.mubr.msk.bf16.mxu0 %vm948_vm2, %v947_v2 }
 0x843   : > { %v561_v36 = vpop.permute.xlu1 %560 }
 0x90e   : > { %v603_v37 = vpop.f32.mrb[8].mxu0 }
 0x90f   : > { %v604_v38 = vadd.f32 %v603_v37, %v561_v36  ;;  %v901_v39 = vpop.f32.mrb[9].mxu0 }
 0x910   : > { %v606_v40 = vpop.f32.mrb[10].mxu0 }
 0x911   : > { %vm609_vm0 = vcmp.ge.f32.partialorder %v604_v38, 0.0  ;;  %v610_v41 = vmul.f32 0.1, %v604_v38  ;;  %v902_v42 = vpop.f32.mrb[11].mxu0 }
 0x913   : > { %v611_v43 = vsel %vm609_vm0, %v604_v38, %v610_v41 }
 0x914   : > { %v616_v44 = vpack.c.bf16 %v611_v43, %v611_v43 }
 0x916   : > { %618 = vrot.lane.b32.xlu0 %v616_v44, %s954_s8 }
 0x988   : > { %v619_v45 = vpop.permute.xlu0 %618 }
 0x989   : > { %v621_v46 = vsel %vm321_vm10, 0, %v619_v45 }
 0x98a   : > { %v622_v47 = vsel %vm324_vm11, %v621_v46, 0 }
 0x98b   : > { %v624_v48 = vrot.slane %v622_v47, 4  ;;  %627 = vrot.lane.b32.xlu0 %v622_v47, %s950_s25 }
 0x98d   : > { %625 = vrot.lane.b32.xlu1 %v624_v48, %s951_s26 }
 0x991   : > { %634 = vperm.xlu1 %936, %v835_v49  }
 0x9fd   : > { %v628_v52 = vpop.permute.xlu0 %627 }
 0x9fe   : > { %v641_v53 = vsel %vm257_vm6, %v628_v52, 0 }
 0x9ff   : > { %v626_v50 = vpop.permute.xlu1 %625 }
 0xa00   : > { %v630_v51 = vsel %vm257_vm6, %v622_v47, %v626_v50 }
 0xa01   : > { %904 = vmatpush3.bf16.msra.mxu1 %v630_v51 }
 0xa02   : > { %905 = vmatprep.subr.bf16.mxu1 %v947_v2 }
 0xa05   : > { %906 = vmatpush3.bf16.msra.mxu1 %v641_v53 }
 0xa08   : > { %908 = vmatmul.mubr.msk.bf16.vlgmr.msra.gmra.mrb[8].mxu1 %vm340_vm12, %v834_v54 }
 0xa10   : > { %v635_v55 = vpop.permute.xlu1 %634 }
 0xadb   : > { %v677_v56 = vpop.f32.mrb[8].mxu1 }
 0xadc   : > { %v678_v57 = vadd.f32 %v677_v56, %v635_v55  ;;  %v909_v58 = vpop.f32.mrb[9].mxu1 }
 0xadd   : > { %v680_v59 = vpop.f32.mrb[10].mxu1 }
 0xade   : > { %vm683_vm1 = vcmp.ge.f32.partialorder %v678_v57, 0.0  ;;  %v684_v60 = vmul.f32 0.1, %v678_v57  ;;  %v910_v61 = vpop.f32.mrb[11].mxu1 }
 0xae0   : > { %v685_v62 = vsel %vm683_vm1, %v678_v57, %v684_v60 }
 0xae1   : > { %v690_v63 = vpack.c.bf16 %v685_v62, %v685_v62 }
 0xae3   : > { %692 = vrot.lane.b32.xlu0 %v690_v63, %s954_s8 }
 0xb55   : > { %v693_v0 = vpop.permute.xlu0 %692 }
 0xb56   : > { %v695_v1 = vsel %vm321_vm10, 0, %v693_v0 }
 0xb57   : > { %v696_v3 = vsel %vm324_vm11, %v695_v1, 0 }
 0xb58   : > { %v698_v4 = vrot.slane %v696_v3, 4  ;;  %701 = vrot.lane.b32.xlu0 %v696_v3, %s950_s25 }
 0xb5a   : > { %699 = vrot.lane.b32.xlu1 %v698_v4, %s951_s26 }
 0xb5e   : > { %708 = vperm.xlu1 %936, %v838_v5  }
 0xbca   : > { %v702_v8 = vpop.permute.xlu0 %701 }
 0xbcb   : > { %v715_v9 = vsel %vm257_vm6, %v702_v8, 0 }
 0xbcc   : > { %v700_v6 = vpop.permute.xlu1 %699 }
 0xbcd   : > { %v704_v7 = vsel %vm257_vm6, %v696_v3, %v700_v6 }
 0xbce   : > { %912 = vmatpush3.bf16.msra.mxu0 %v704_v7 }
 0xbcf   : > { %913 = vmatprep.subr.bf16.mxu0 %v947_v2 }
 0xbd2   : > { %914 = vmatpush3.bf16.msra.mxu0 %v715_v9 }
 0xbd5   : > { %916 = vmatmul.mubr.msk.bf16.vlgmr.msra.gmra.mrb[12].mxu0 %vm340_vm12, %v837_v10 }
 0xbdd   : > { %v709_v11 = vpop.permute.xlu1 %708 }
 0xca8   : > { %v751_v12 = vpop.f32.mrb[12].mxu0 }
 0xca9   : > { %v752_v13 = vadd.f32 %v751_v12, %v709_v11  ;;  %v917_v14 = vpop.f32.mrb[13].mxu0 }
 0xcaa   : > { %v754_v15 = vpop.f32.mrb[14].mxu0 }
 0xcab   : > { %vm757_vm2 = vcmp.ge.f32.partialorder %v752_v13, 0.0  ;;  %v758_v16 = vmul.f32 0.1, %v752_v13  ;;  %v918_v17 = vpop.f32.mrb[15].mxu0 }
 0xcad   : > { %v759_v2 = vsel %vm757_vm2, %v752_v13, %v758_v16 }
 0xcae   : > { %v760_v18 = vadd.f32 %v759_v2, %v1020_v29 }
 0xcb0   : > { %762 = vst.msk [vmem:[%s219_s13] sm:$0xff] %vm761_vm3, %v760_v18 }
 0xcb1 PF: > { %s15_s18 = sadd.s32 1, %s944_s18  }
 0xcb2   : > { %p12_p4 = scmp.ge.s32.totalorder %s15_s18, 4  }
 0xcb4   :  { %14 = sbr.rel (!%p12_p4) target bundleno = 1 (0x1), region = 80 }

// kernel: _lambda_.14
= control target key start
LH: loop header
LB: loop body
LE: loop exit
PB: predicated region body
PF: predicated region fallthrough
CT: control target
= control target key end

     0   :  { %s1449_s12 = smov 0   ;;  %s1451_s13 = smov 0   ;;  %s1790_s0 = inlined_call_operand.vmem [shape: f32[2,8,8], index: 0, kind: input, shape index: {}]   ;;  %s1791_s1 = inlined_call_operand.vmem [shape: bf16[768,24], index: 1, kind: input, shape index: {}]   ;;  %s1792_s2 = inlined_call_operand.vmem [shape: f32[768,1], index: 2, kind: input, shape index: {}]   ;;  %s1793_s3 = inlined_call_operand.vmem [shape: f32[2,768,8], index: 3, kind: output, shape index: {}]  }
   0x1   :  { %s1453_s14 = smov 0   ;;  %s1455_s15 = smov 0  }
   0x2   :  { %s1457_s16 = smov 0  }
   0x3 LB: > { %s22_s17 = sadd.s32 1, %s1415_s14  ;;  %s25_s18 = sadd.s32 1, %s1419_s15  ;;  %s1423_s16 = sphi %s1457_s16, %s13_s16   ;;  %s1419_s15 = sphi %s1455_s15, %s1797_s15   ;;  %s1415_s14 = sphi %s1453_s14, %s1796_s14   ;;  %s1411_s13 = sphi %s1451_s13, %s1795_s13   ;;  %s1407_s12 = sphi %s1449_s12, %s1794_s12  }
   0x4   : > { %p23_p0 = scmp.ge.s32.totalorder %s22_s17, 2  ;;  %p1175_p1 = scmp.ge.s32.totalorder %s1423_s16, 1 }
   0x5   : > { %p172_p2 = scmp.lt.s32.totalorder %s1423_s16, 5 }
   0x6   : > { %s1799_s17 = smov (%p23_p0, %s22_s17), 0  ;;  %s1801_s18 = smov (!%p23_p0, %s25_s18), %s1419_s15 }
   0x7   : > { %p173_p3 = pnand %p1175_p1, %p172_p2  ;;  %p27_p4 = scmp.ge.s32.totalorder %s1801_s18, 2 }
   0x8   : > { %p209_p5 = scmp.lt.s32.totalorder (!%p173_p3), %s1411_s13, 1  ;;  %s213_s19 = smul.u32 (!%p173_p3), 48, %s1407_s12  ;;  %v1425_v0 = vmov (!%p173_p3), 0   ;;  %vm337_vm0 = vcmask (!%p173_p3), 7168   ;;  %vm713_vm1 = vcmask (!%p173_p3), 195584   ;;  %vm341_vm2 = vcmask (!%p173_p3), 72704  }
   0x9   : > { %s1803_s18 = smov (%p27_p4, %s1801_s18), 0  ;;  %176 = sbr.rel (%p173_p3) target bundleno = 523 (0x20b), region = 32 }
   0xa   : > { %1359 = vset.pattern.permute.xlu1 (!%p173_p3), %v1425_v0  ;;  %1360 = vset.pattern.permute.xlu0 (!%p173_p3), %v1425_v0  ;;  %p214_p6 = scmp.lt.s32.totalorder (!%p173_p3), %s213_s19, 95  ;;  %s1426_s26 = smov (!%p173_p3), 1   ;;  %vm349_vm3 = vcmask (!%p173_p3), 1043456   ;;  %vm1014_vm4 = vcmask (!%p173_p3), 64512  }
   0xb   : > { %s1427_s8 = smov (!%p173_p3), 126   ;;  %s1428_s9 = smov (!%p173_p3), 127  }
  0x10   : > { %s1805_s13 = smov (!%p209_p5, %s1411_s13), 1  ;;  %s1807_s19 = smov (!%p214_p6, %s213_s19), 95 }
  0x11   : > { %s1176_s20 = sshll.u32 %s1805_s13, 3  ;;  %s1314_s24 = smul.u32 96, %s1805_s13 }
  0x12   : > { %s212_s23 = scalar_lea.vmem %s1790_s0, %s1176_s20  ;;  %s1177_s25 = sshll.u32 %s1807_s19, 2 }
  0x13   : > { %v236_v1 = vld [vmem:[%s212_s23] sm:$0xff]  ;;  %s1485_s29 = scalar_lea.vmem %s1791_s1, %s1177_s25  ;;  %s1487_s30 = sadd.s32 %s1314_s24, %s1807_s19 }
  0x14   : > { %v333_v2 = vpack.c.bf16 %v236_v1, %v236_v1  ;;  %s1178_s4 = sshll.u32 %s1807_s19, 3  ;;  %v1361_v3 = vld [vmem:[%s1485_s29] sm:$0xff]   ;;  %v1363_v61 = vld [vmem:[%s1485_s29 + $0x8] sm:$0xff]   ;;  %v1365_v63 = vld [vmem:[%s1485_s29 + $0x10] sm:$0xff]   ;;  %s1179_s10 = sshll.u32 %s1487_s30, 3 }
  0x15   : > { %v1362_v4 = vld [vmem:[%s1485_s29 + $0x60] sm:$0xff]   ;;  %1260 = vmatprep.mubr.msk.bf16.mxu0 %vm713_vm1, %v1361_v3  ;;  %s1496_s7 = scalar_lea.vmem %s1792_s2, %s1178_s4  ;;  %v1364_v62 = vld [vmem:[%s1485_s29 + $0x68] sm:$0xff]   ;;  %v1366_v0 = vld [vmem:[%s1485_s29 + $0x70] sm:$0xff]   ;;  %s1647_s13 = scalar_lea.vmem %s1793_s3, %s1179_s10 }
  0x16   : > { %335 = vrot.lane.b32.xlu0 %v333_v2, %s1426_s26  ;;  %1284 = vmatprep.mubr.msk.bf16.mxu1 %vm713_vm1, %v1362_v4  ;;  %v285_v9 = vld [vmem:[%s1496_s7] sm:$0xff]  ;;  %v286_v10 = vld [vmem:[%s1496_s7 + $0x8] sm:$0xff]  ;;  %v287_v11 = vld [vmem:[%s1496_s7 + $0x10] sm:$0xff] }
  0x17   : > { %v289_v12 = vld [vmem:[%s1496_s7 + $0x20] sm:$0xff]  ;;  %v288_v13 = vld [vmem:[%s1496_s7 + $0x18] sm:$0xff]  ;;  %v291_v14 = vld [vmem:[%s1496_s7 + $0x30] sm:$0xff] }
  0x18   : > { %v290_v15 = vld [vmem:[%s1496_s7 + $0x28] sm:$0xff]  ;;  %v293_v16 = vld [vmem:[%s1496_s7 + $0x40] sm:$0xff]  ;;  %v292_v17 = vld [vmem:[%s1496_s7 + $0x38] sm:$0xff] }
  0x19   : > { %v295_v18 = vld [vmem:[%s1496_s7 + $0x50] sm:$0xff]  ;;  %v294_v19 = vld [vmem:[%s1496_s7 + $0x48] sm:$0xff]  ;;  %v297_v20 = vld [vmem:[%s1496_s7 + $0x60] sm:$0xff] }
  0x1a   : > { %v296_v21 = vld [vmem:[%s1496_s7 + $0x58] sm:$0xff]  ;;  %v299_v22 = vld [vmem:[%s1496_s7 + $0x70] sm:$0xff]  ;;  %v298_v23 = vld [vmem:[%s1496_s7 + $0x68] sm:$0xff] }
  0x1b   : > { %v301_v24 = vld [vmem:[%s1496_s7 + $0x80] sm:$0xff]  ;;  %v300_v25 = vld [vmem:[%s1496_s7 + $0x78] sm:$0xff]  ;;  %v303_v26 = vld [vmem:[%s1496_s7 + $0x90] sm:$0xff] }
  0x1c   : > { %v302_v27 = vld [vmem:[%s1496_s7 + $0x88] sm:$0xff]  ;;  %v305_v28 = vld [vmem:[%s1496_s7 + $0xa0] sm:$0xff]  ;;  %v304_v29 = vld [vmem:[%s1496_s7 + $0x98] sm:$0xff] }
  0x1d   : > { %v307_v30 = vld [vmem:[%s1496_s7 + $0xb0] sm:$0xff]  ;;  %v306_v31 = vld [vmem:[%s1496_s7 + $0xa8] sm:$0xff]  ;;  %v309_v32 = vld [vmem:[%s1496_s7 + $0xc0] sm:$0xff] }
  0x1e   : > { %v308_v33 = vld [vmem:[%s1496_s7 + $0xb8] sm:$0xff]  ;;  %v311_v34 = vld [vmem:[%s1496_s7 + $0xd0] sm:$0xff]  ;;  %v310_v35 = vld [vmem:[%s1496_s7 + $0xc8] sm:$0xff] }
  0x1f   : > { %v313_v36 = vld [vmem:[%s1496_s7 + $0xe0] sm:$0xff]  ;;  %v312_v37 = vld [vmem:[%s1496_s7 + $0xd8] sm:$0xff]  ;;  %v315_v38 = vld [vmem:[%s1496_s7 + $0xf0] sm:$0xff] }
  0x20   : > { %v314_v39 = vld [vmem:[%s1496_s7 + $0xe8] sm:$0xff]  ;;  %v317_v40 = vld [vmem:[%s1496_s7 + $0x100] sm:$0xff]  ;;  %v316_v41 = vld [vmem:[%s1496_s7 + $0xf8] sm:$0xff] }
  0x21   : > { %v319_v42 = vld [vmem:[%s1496_s7 + $0x110] sm:$0xff]  ;;  %v318_v43 = vld [vmem:[%s1496_s7 + $0x108] sm:$0xff]  ;;  %v321_v44 = vld [vmem:[%s1496_s7 + $0x120] sm:$0xff] }
  0x22   : > { %v320_v45 = vld [vmem:[%s1496_s7 + $0x118] sm:$0xff]  ;;  %v323_v46 = vld [vmem:[%s1496_s7 + $0x130] sm:$0xff]  ;;  %v322_v47 = vld [vmem:[%s1496_s7 + $0x128] sm:$0xff] }
  0x23   : > { %v325_v48 = vld [vmem:[%s1496_s7 + $0x140] sm:$0xff]  ;;  %v324_v49 = vld [vmem:[%s1496_s7 + $0x138] sm:$0xff]  ;;  %v327_v50 = vld [vmem:[%s1496_s7 + $0x150] sm:$0xff] }
  0x24   : > { %v326_v51 = vld [vmem:[%s1496_s7 + $0x148] sm:$0xff]  ;;  %v329_v52 = vld [vmem:[%s1496_s7 + $0x160] sm:$0xff]  ;;  %v328_v53 = vld [vmem:[%s1496_s7 + $0x158] sm:$0xff] }
  0x25   : > { %v331_v54 = vld [vmem:[%s1496_s7 + $0x170] sm:$0xff]  ;;  %v330_v55 = vld [vmem:[%s1496_s7 + $0x168] sm:$0xff]  ;;  %v332_v56 = vld [vmem:[%s1496_s7 + $0x178] sm:$0xff] }
  0x26   : > { %v1367_v1 = vld [vmem:[%s1485_s29 + $0x18] sm:$0xff]   ;;  %v1369_v3 = vld [vmem:[%s1485_s29 + $0x20] sm:$0xff]  }
  0x27   : > { %v1368_v2 = vld [vmem:[%s1485_s29 + $0x78] sm:$0xff]   ;;  %v1370_v4 = vld [vmem:[%s1485_s29 + $0x80] sm:$0xff]  }
  0x88   : > { %v336_v5 = vpop.permute.xlu0 %335 }
  0x89   : > { %v340_v6 = vsel %vm337_vm0, 0, %v336_v5  ;;  %v1371_v5 = vld [vmem:[%s1485_s29 + $0x28] sm:$0xff]  }
  0x8a   : > { %v1498_v7 = vsel %vm341_vm2, %v340_v6, 0  ;;  %v1372_v6 = vld [vmem:[%s1485_s29 + $0x88] sm:$0xff]  }
  0x8b   : > { %v344_v8 = vrot.slane %v1498_v7, 4  ;;  %347 = vrot.lane.b32.xlu1 %v1498_v7, %s1427_s8 }
  0x8d   : > { %345 = vrot.lane.b32.xlu0 %v344_v8, %s1428_s9  ;;  %v1374_v8 = vld [vmem:[%s1485_s29 + $0x90] sm:$0xff]  }
  0x8f   : > { %355 = vperm.xlu1 %1359, %v285_v9   ;;  %v1375_v9 = vld [vmem:[%s1485_s29 + $0x38] sm:$0xff]  }
  0x91   : > { %360 = vperm.xlu0 %1360, %v286_v10   ;;  %v1376_v10 = vld [vmem:[%s1485_s29 + $0x98] sm:$0xff]  }
  0x93   : > { %365 = vperm.xlu1 %1359, %v287_v11   ;;  %v1377_v11 = vld [vmem:[%s1485_s29 + $0x40] sm:$0xff]  }
  0x95   : > { %375 = vperm.xlu0 %1360, %v289_v12   ;;  %v1378_v12 = vld [vmem:[%s1485_s29 + $0xa0] sm:$0xff]  }
  0x97   : > { %370 = vperm.xlu1 %1359, %v288_v13   ;;  %v1379_v13 = vld [vmem:[%s1485_s29 + $0x48] sm:$0xff]  }
  0x99   : > { %385 = vperm.xlu0 %1360, %v291_v14   ;;  %v1380_v14 = vld [vmem:[%s1485_s29 + $0xa8] sm:$0xff]  }
  0x9b   : > { %380 = vperm.xlu1 %1359, %v290_v15   ;;  %v1381_v15 = vld [vmem:[%s1485_s29 + $0x50] sm:$0xff]  }
  0x9d   : > { %395 = vperm.xlu0 %1360, %v293_v16   ;;  %v1382_v16 = vld [vmem:[%s1485_s29 + $0xb0] sm:$0xff]  }
  0x9f   : > { %390 = vperm.xlu1 %1359, %v292_v17   ;;  %v1383_v17 = vld [vmem:[%s1485_s29 + $0x58] sm:$0xff]  }
  0xa1   : > { %405 = vperm.xlu0 %1360, %v295_v18   ;;  %v1384_v18 = vld [vmem:[%s1485_s29 + $0xb8] sm:$0xff]  }
  0xa3   : > { %400 = vperm.xlu1 %1359, %v294_v19  }
  0xa5   : > { %415 = vperm.xlu0 %1360, %v297_v20  }
  0xa7   : > { %410 = vperm.xlu1 %1359, %v296_v21  }
  0xa9   : > { %425 = vperm.xlu0 %1360, %v299_v22  }
  0xab   : > { %420 = vperm.xlu1 %1359, %v298_v23  }
  0xad   : > { %435 = vperm.xlu0 %1360, %v301_v24  }
  0xaf   : > { %430 = vperm.xlu1 %1359, %v300_v25  }
  0xb1   : > { %445 = vperm.xlu0 %1360, %v303_v26  }
  0xb3   : > { %440 = vperm.xlu1 %1359, %v302_v27  }
  0xb5   : > { %455 = vperm.xlu0 %1360, %v305_v28  }
  0xb7   : > { %450 = vperm.xlu1 %1359, %v304_v29  }
  0xb9   : > { %465 = vperm.xlu0 %1360, %v307_v30  }
  0xbb   : > { %460 = vperm.xlu1 %1359, %v306_v31  }
  0xbd   : > { %475 = vperm.xlu0 %1360, %v309_v32  }
  0xbf   : > { %470 = vperm.xlu1 %1359, %v308_v33  }
  0xc1   : > { %485 = vperm.xlu0 %1360, %v311_v34  }
  0xc3   : > { %480 = vperm.xlu1 %1359, %v310_v35  }
  0xc5   : > { %495 = vperm.xlu0 %1360, %v313_v36  }
  0xc7   : > { %490 = vperm.xlu1 %1359, %v312_v37  }
  0xc9   : > { %505 = vperm.xlu0 %1360, %v315_v38  }
  0xcb   : > { %500 = vperm.xlu1 %1359, %v314_v39  }
  0xcd   : > { %515 = vperm.xlu0 %1360, %v317_v40  }
  0xcf   : > { %510 = vperm.xlu1 %1359, %v316_v41  }
  0xd1   : > { %525 = vperm.xlu0 %1360, %v319_v42  }
  0xd3   : > { %520 = vperm.xlu1 %1359, %v318_v43  }
  0xd5   : > { %535 = vperm.xlu0 %1360, %v321_v44  }
  0xd7   : > { %530 = vperm.xlu1 %1359, %v320_v45  }
  0xd9   : > { %545 = vperm.xlu0 %1360, %v323_v46  }
  0xdb   : > { %540 = vperm.xlu1 %1359, %v322_v47  }
  0xdd   : > { %555 = vperm.xlu0 %1360, %v325_v48  }
  0xdf   : > { %550 = vperm.xlu1 %1359, %v324_v49  }
  0xe1   : > { %565 = vperm.xlu0 %1360, %v327_v50  }
  0xe3   : > { %560 = vperm.xlu1 %1359, %v326_v51  }
  0xe5   : > { %575 = vperm.xlu0 %1360, %v329_v52  }
  0xe7   : > { %570 = vperm.xlu1 %1359, %v328_v53  }
  0xe9   : > { %585 = vperm.xlu0 %1360, %v331_v54  }
  0xeb   : > { %580 = vperm.xlu1 %1359, %v330_v55  }
  0xef   : > { %590 = vperm.xlu1 %1359, %v332_v56  }
  0xfd   : > { %v348_v59 = vpop.permute.xlu1 %347 }
  0xfe   : > { %v787_v60 = vsel %vm349_vm3, %v348_v59, 0 }
  0xff   : > { %v346_v57 = vpop.permute.xlu0 %345 }
 0x100   : > { %v351_v58 = vsel %vm349_vm3, %v1498_v7, %v346_v57  ;;  %v1373_v7 = vld [vmem:[%s1485_s29 + $0x30] sm:$0xff]  }
 0x101   : > { %1256 = vmatprep.subr.bf16.mxu0 %v351_v58  ;;  %1308 = vmatprep.subr.bf16.mxu1 %v351_v58 }
 0x102   : > { %1257 = vmatpush3.bf16.msra.mxu0 %v351_v58  ;;  %1310 = vmatpush3.bf16.msra.mxu1 %v351_v58 }
 0x103   : > { %1312 = vmatprep.subr.msk.bf16.mxu0 %vm349_vm3, %v348_v59  ;;  %1313 = vmatprep.subr.msk.bf16.mxu1 %vm349_vm3, %v348_v59 }
 0x106   : > { %1259 = vmatpush3.bf16.msra.mxu0 %v787_v60  ;;  %1311 = vmatpush3.bf16.msra.mxu1 %v787_v60 }
 0x109   : > { %1261 = vmatmul.mubr.msk.bf16.vlgmr.msra.gmra.mrb[0].mxu0 %vm713_vm1, %v1363_v61  ;;  %1285 = vmatmul.mubr.msk.bf16.vlgmr.msra.gmra.mrb[0].mxu1 %vm713_vm1, %v1364_v62 }
 0x10a   : > { %1264 = vmatprep.mubr.msk.bf16.mxu0 %vm713_vm1, %v1365_v63  ;;  %1288 = vmatprep.mubr.msk.bf16.mxu1 %vm713_vm1, %v1366_v0 }
 0x10e   : > { %v356_v19 = vpop.permute.xlu1 %355 }
 0x110   : > { %v361_v22 = vpop.permute.xlu0 %360 }
 0x111   : > { %1265 = vmatmul.mubr.msk.bf16.gmra.mrb[4].mxu0 %vm713_vm1, %v1367_v1  ;;  %1289 = vmatmul.mubr.msk.bf16.gmra.mrb[4].mxu1 %vm713_vm1, %v1368_v2 }
 0x112   : > { %1268 = vmatprep.mubr.msk.bf16.mxu0 %vm713_vm1, %v1369_v3  ;;  %1292 = vmatprep.mubr.msk.bf16.mxu1 %vm713_vm1, %v1370_v4  ;;  %v366_v20 = vpop.permute.xlu1 %365 }
 0x114   : > { %v1597_v24 = vpop.permute.xlu0 %375 }
 0x116   : > { %v371_v21 = vpop.permute.xlu1 %370 }
 0x118   : > { %v386_v26 = vpop.permute.xlu0 %385 }
 0x119   : > { %1269 = vmatmul.mubr.msk.bf16.gmra.mrb[8].mxu0 %vm713_vm1, %v1371_v5  ;;  %1293 = vmatmul.mubr.msk.bf16.gmra.mrb[8].mxu1 %vm713_vm1, %v1372_v6 }
 0x11a   : > { %1272 = vmatprep.mubr.msk.bf16.mxu0 %vm713_vm1, %v1373_v7  ;;  %1296 = vmatprep.mubr.msk.bf16.mxu1 %vm713_vm1, %v1374_v8  ;;  %v1595_v23 = vpop.permute.xlu1 %380 }
 0x11c   : > { %v1603_v28 = vpop.permute.xlu0 %395 }
 0x11e   : > { %v1599_v25 = vpop.permute.xlu1 %390 }
 0x120   : > { %v1607_v30 = vpop.permute.xlu0 %405 }
 0x121   : > { %1273 = vmatmul.mubr.msk.bf16.gmra.mrb[12].mxu0 %vm713_vm1, %v1375_v9  ;;  %1297 = vmatmul.mubr.msk.bf16.gmra.mrb[12].mxu1 %vm713_vm1, %v1376_v10 }
 0x122   : > { %1276 = vmatprep.mubr.msk.bf16.mxu0 %vm713_vm1, %v1377_v11  ;;  %1300 = vmatprep.mubr.msk.bf16.mxu1 %vm713_vm1, %v1378_v12  ;;  %v1601_v27 = vpop.permute.xlu1 %400 }
 0x124   : > { %v1611_v32 = vpop.permute.xlu0 %415 }
 0x126   : > { %v1605_v29 = vpop.permute.xlu1 %410 }
 0x128   : > { %v1615_v34 = vpop.permute.xlu0 %425 }
 0x129   : > { %1277 = vmatmul.mubr.msk.bf16.gmra.mrb[16].mxu0 %vm713_vm1, %v1379_v13  ;;  %1301 = vmatmul.mubr.msk.bf16.gmra.mrb[16].mxu1 %vm713_vm1, %v1380_v14 }
 0x12a   : > { %1280 = vmatprep.mubr.msk.bf16.mxu0 %vm713_vm1, %v1381_v15  ;;  %1304 = vmatprep.mubr.msk.bf16.mxu1 %vm713_vm1, %v1382_v16  ;;  %v1609_v31 = vpop.permute.xlu1 %420 }
 0x12c   : > { %v1619_v36 = vpop.permute.xlu0 %435 }
 0x12e   : > { %v1613_v33 = vpop.permute.xlu1 %430 }
 0x130   : > { %v1623_v38 = vpop.permute.xlu0 %445 }
 0x131   : > { %1281 = vmatmul.mubr.msk.bf16.gmra.mrb[20].mxu0 %vm713_vm1, %v1383_v17  ;;  %1305 = vmatmul.mubr.msk.bf16.gmra.mrb[20].mxu1 %vm713_vm1, %v1384_v18 }
 0x132   : > { %v1617_v35 = vpop.permute.xlu1 %440 }
 0x134   : > { %v1627_v40 = vpop.permute.xlu0 %455 }
 0x136   : > { %v1621_v37 = vpop.permute.xlu1 %450 }
 0x138   : > { %v1631_v42 = vpop.permute.xlu0 %465 }
 0x13a   : > { %v1625_v39 = vpop.permute.xlu1 %460 }
 0x13c   : > { %v476_v44 = vpop.permute.xlu0 %475 }
 0x13e   : > { %v1629_v41 = vpop.permute.xlu1 %470 }
 0x140   : > { %v486_v46 = vpop.permute.xlu0 %485 }
 0x142   : > { %v481_v43 = vpop.permute.xlu1 %480 }
 0x144   : > { %v496_v48 = vpop.permute.xlu0 %495 }
 0x146   : > { %v491_v45 = vpop.permute.xlu1 %490 }
 0x148   : > { %v506_v50 = vpop.permute.xlu0 %505 }
 0x14a   : > { %v501_v47 = vpop.permute.xlu1 %500 }
 0x14c   : > { %v1635_v52 = vpop.permute.xlu0 %515 }
 0x14e   : > { %v511_v49 = vpop.permute.xlu1 %510 }
 0x150   : > { %v526_v54 = vpop.permute.xlu0 %525 }
 0x152   : > { %v1633_v51 = vpop.permute.xlu1 %520 }
 0x154   : > { %v1642_v56 = vpop.permute.xlu0 %535 }
 0x156   : > { %v1637_v53 = vpop.permute.xlu1 %530 }
 0x158   : > { %v546_v10 = vpop.permute.xlu0 %545 }
 0x15a   : > { %v1640_v55 = vpop.permute.xlu1 %540 }
 0x15e   : > { %v1665_v9 = vpop.permute.xlu1 %550 }
 0x1dc   : > { %v1262_v57 = vpop.f32.mrb[0].mxu0  ;;  %v1286_v58 = vpop.f32.mrb[0].mxu1 }
 0x1dd   : > { %v832_v59 = vadd.f32 %v1262_v57, %v366_v20  ;;  %v928_v60 = vadd.f32 %v1286_v58, %v486_v46  ;;  %v823_v61 = vpop.f32.mrb[1].mxu0  ;;  %v919_v62 = vpop.f32.mrb[1].mxu1 }
 0x1de   : > { %v824_v63 = vadd.f32 %v823_v61, %v356_v19  ;;  %v920_v0 = vadd.f32 %v919_v62, %v476_v44  ;;  %v1263_v1 = vpop.f32.mrb[2].mxu0  ;;  %v1287_v2 = vpop.f32.mrb[2].mxu1 }
 0x1df   : > { %1017 = vst.msk [vmem:[%s1647_s13 + $0x10] sm:$0xff] %vm1014_vm4, %v832_v59  ;;  %1041 = vst.msk [vmem:[%s1647_s13 + $0xd0] sm:$0xff] %vm1014_vm4, %v928_v60  ;;  %v835_v3 = vadd.f32 %v1263_v1, %v371_v21  ;;  %v931_v4 = vadd.f32 %v1287_v2, %v491_v45  ;;  %v826_v5 = vpop.f32.mrb[3].mxu0  ;;  %v922_v6 = vpop.f32.mrb[3].mxu1 }
 0x1e0   : > { %1015 = vst.msk [vmem:[%s1647_s13] sm:$0xff] %vm1014_vm4, %v824_v63  ;;  %1039 = vst.msk [vmem:[%s1647_s13 + $0xc0] sm:$0xff] %vm1014_vm4, %v920_v0  ;;  %v827_v7 = vadd.f32 %v826_v5, %v361_v22  ;;  %v923_v8 = vadd.f32 %v922_v6, %v481_v43  ;;  %v556_v45 = vpop.permute.xlu0 %555 }
 0x1e1   : > { %1018 = vst.msk [vmem:[%s1647_s13 + $0x18] sm:$0xff] %vm1014_vm4, %v835_v3  ;;  %1042 = vst.msk [vmem:[%s1647_s13 + $0xd8] sm:$0xff] %vm1014_vm4, %v931_v4 }
 0x1e2   : > { %1016 = vst.msk [vmem:[%s1647_s13 + $0x8] sm:$0xff] %vm1014_vm4, %v827_v7  ;;  %1040 = vst.msk [vmem:[%s1647_s13 + $0xc8] sm:$0xff] %vm1014_vm4, %v923_v8 }
 0x1e4   : > { %v1266_v11 = vpop.f32.mrb[4].mxu0  ;;  %v1290_v12 = vpop.f32.mrb[4].mxu1 }
 0x1e5   : > { %v848_v13 = vadd.f32 %v1266_v11, %v386_v26  ;;  %v944_v14 = vadd.f32 %v1290_v12, %v506_v50  ;;  %v839_v15 = vpop.f32.mrb[5].mxu0  ;;  %v935_v16 = vpop.f32.mrb[5].mxu1 }
 0x1e6   : > { %v840_v17 = vadd.f32 %v839_v15, %v1597_v24  ;;  %v936_v18 = vadd.f32 %v935_v16, %v496_v48  ;;  %v1267_v19 = vpop.f32.mrb[6].mxu0  ;;  %v1291_v20 = vpop.f32.mrb[6].mxu1 }
 0x1e7   : > { %1021 = vst.msk [vmem:[%s1647_s13 + $0x30] sm:$0xff] %vm1014_vm4, %v848_v13  ;;  %1045 = vst.msk [vmem:[%s1647_s13 + $0xf0] sm:$0xff] %vm1014_vm4, %v944_v14  ;;  %v851_v21 = vadd.f32 %v1267_v19, %v1599_v25  ;;  %v947_v22 = vadd.f32 %v1291_v20, %v511_v49  ;;  %v842_v26 = vpop.f32.mrb[7].mxu0  ;;  %v938_v43 = vpop.f32.mrb[7].mxu1 }
 0x1e8   : > { %1019 = vst.msk [vmem:[%s1647_s13 + $0x20] sm:$0xff] %vm1014_vm4, %v840_v17  ;;  %1043 = vst.msk [vmem:[%s1647_s13 + $0xe0] sm:$0xff] %vm1014_vm4, %v936_v18  ;;  %v843_v24 = vadd.f32 %v842_v26, %v1595_v23  ;;  %v939_v44 = vadd.f32 %v938_v43, %v501_v47  ;;  %v1686_v25 = vpop.permute.xlu1 %560 }
 0x1e9   : > { %1022 = vst.msk [vmem:[%s1647_s13 + $0x38] sm:$0xff] %vm1014_vm4, %v851_v21  ;;  %1046 = vst.msk [vmem:[%s1647_s13 + $0xf8] sm:$0xff] %vm1014_vm4, %v947_v22 }
 0x1ea   : > { %1020 = vst.msk [vmem:[%s1647_s13 + $0x28] sm:$0xff] %vm1014_vm4, %v843_v24  ;;  %1044 = vst.msk [vmem:[%s1647_s13 + $0xe8] sm:$0xff] %vm1014_vm4, %v939_v44 }
 0x1ec   : > { %v1270_v46 = vpop.f32.mrb[8].mxu0  ;;  %v1294_v48 = vpop.f32.mrb[8].mxu1 }
 0x1ed   : > { %v864_v23 = vadd.f32 %v1270_v46, %v1607_v30  ;;  %v960_v47 = vadd.f32 %v1294_v48, %v526_v54  ;;  %v855_v49 = vpop.f32.mrb[9].mxu0  ;;  %v951_v50 = vpop.f32.mrb[9].mxu1 }
 0x1ee   : > { %v856_v57 = vadd.f32 %v855_v49, %v1603_v28  ;;  %v952_v58 = vadd.f32 %v951_v50, %v1635_v52  ;;  %v1271_v59 = vpop.f32.mrb[10].mxu0  ;;  %v1295_v60 = vpop.f32.mrb[10].mxu1 }
 0x1ef   : > { %1025 = vst.msk [vmem:[%s1647_s13 + $0x50] sm:$0xff] %vm1014_vm4, %v864_v23  ;;  %1049 = vst.msk [vmem:[%s1647_s13 + $0x110] sm:$0xff] %vm1014_vm4, %v960_v47  ;;  %v867_v61 = vadd.f32 %v1271_v59, %v1605_v29  ;;  %v963_v30 = vadd.f32 %v1295_v60, %v1637_v53  ;;  %v858_v54 = vpop.f32.mrb[11].mxu0  ;;  %v954_v62 = vpop.f32.mrb[11].mxu1 }
 0x1f0   : > { %1023 = vst.msk [vmem:[%s1647_s13 + $0x40] sm:$0xff] %vm1014_vm4, %v856_v57  ;;  %1047 = vst.msk [vmem:[%s1647_s13 + $0x100] sm:$0xff] %vm1014_vm4, %v952_v58  ;;  %v859_v28 = vadd.f32 %v858_v54, %v1601_v27  ;;  %v955_v52 = vadd.f32 %v954_v62, %v1633_v51  ;;  %v571_v29 = vpop.permute.xlu1 %570  ;;  %v566_v53 = vpop.permute.xlu0 %565 }
 0x1f1   : > { %1026 = vst.msk [vmem:[%s1647_s13 + $0x58] sm:$0xff] %vm1014_vm4, %v867_v61  ;;  %1050 = vst.msk [vmem:[%s1647_s13 + $0x118] sm:$0xff] %vm1014_vm4, %v963_v30 }
 0x1f2   : > { %1024 = vst.msk [vmem:[%s1647_s13 + $0x48] sm:$0xff] %vm1014_vm4, %v859_v28  ;;  %1048 = vst.msk [vmem:[%s1647_s13 + $0x108] sm:$0xff] %vm1014_vm4, %v955_v52 }
 0x1f4   : > { %v1274_v63 = vpop.f32.mrb[12].mxu0  ;;  %v1298_v0 = vpop.f32.mrb[12].mxu1 }
 0x1f5   : > { %v880_v27 = vadd.f32 %v1274_v63, %v1615_v34  ;;  %v976_v1 = vadd.f32 %v1298_v0, %v546_v10  ;;  %v871_v51 = vpop.f32.mrb[13].mxu0  ;;  %v967_v2 = vpop.f32.mrb[13].mxu1 }
 0x1f6   : > { %v872_v3 = vadd.f32 %v871_v51, %v1611_v32  ;;  %v968_v4 = vadd.f32 %v967_v2, %v1642_v56  ;;  %v1275_v5 = vpop.f32.mrb[14].mxu0  ;;  %v1299_v6 = vpop.f32.mrb[14].mxu1 }
 0x1f7   : > { %1029 = vst.msk [vmem:[%s1647_s13 + $0x70] sm:$0xff] %vm1014_vm4, %v880_v27  ;;  %1053 = vst.msk [vmem:[%s1647_s13 + $0x130] sm:$0xff] %vm1014_vm4, %v976_v1  ;;  %v883_v7 = vadd.f32 %v1275_v5, %v1613_v33  ;;  %v979_v34 = vadd.f32 %v1299_v6, %v1665_v9  ;;  %v874_v8 = vpop.f32.mrb[15].mxu0  ;;  %v970_v10 = vpop.f32.mrb[15].mxu1 }
 0x1f8   : > { %1027 = vst.msk [vmem:[%s1647_s13 + $0x60] sm:$0xff] %vm1014_vm4, %v872_v3  ;;  %1051 = vst.msk [vmem:[%s1647_s13 + $0x120] sm:$0xff] %vm1014_vm4, %v968_v4  ;;  %v875_v32 = vadd.f32 %v874_v8, %v1609_v31  ;;  %v971_v56 = vadd.f32 %v970_v10, %v1640_v55  ;;  %v581_v33 = vpop.permute.xlu1 %580  ;;  %v576_v9 = vpop.permute.xlu0 %575 }
 0x1f9   : > { %1030 = vst.msk [vmem:[%s1647_s13 + $0x78] sm:$0xff] %vm1014_vm4, %v883_v7  ;;  %1054 = vst.msk [vmem:[%s1647_s13 + $0x138] sm:$0xff] %vm1014_vm4, %v979_v34 }
 0x1fa   : > { %1028 = vst.msk [vmem:[%s1647_s13 + $0x68] sm:$0xff] %vm1014_vm4, %v875_v32  ;;  %1052 = vst.msk [vmem:[%s1647_s13 + $0x128] sm:$0xff] %vm1014_vm4, %v971_v56 }
 0x1fc   : > { %v1278_v11 = vpop.f32.mrb[16].mxu0  ;;  %v1302_v12 = vpop.f32.mrb[16].mxu1 }
 0x1fd   : > { %v896_v31 = vadd.f32 %v1278_v11, %v1623_v38  ;;  %v992_v13 = vadd.f32 %v1302_v12, %v566_v53  ;;  %v887_v55 = vpop.f32.mrb[17].mxu0  ;;  %v983_v14 = vpop.f32.mrb[17].mxu1 }
 0x1fe   : > { %v888_v15 = vadd.f32 %v887_v55, %v1619_v36  ;;  %v984_v16 = vadd.f32 %v983_v14, %v556_v45  ;;  %v1279_v17 = vpop.f32.mrb[18].mxu0  ;;  %v1303_v18 = vpop.f32.mrb[18].mxu1 }
 0x1ff   : > { %1033 = vst.msk [vmem:[%s1647_s13 + $0x90] sm:$0xff] %vm1014_vm4, %v896_v31  ;;  %1057 = vst.msk [vmem:[%s1647_s13 + $0x150] sm:$0xff] %vm1014_vm4, %v992_v13  ;;  %v899_v19 = vadd.f32 %v1279_v17, %v1621_v37  ;;  %v995_v20 = vadd.f32 %v1303_v18, %v571_v29  ;;  %v890_v38 = vpop.f32.mrb[19].mxu0  ;;  %v986_v21 = vpop.f32.mrb[19].mxu1 }
 0x200   : > { %1031 = vst.msk [vmem:[%s1647_s13 + $0x80] sm:$0xff] %vm1014_vm4, %v888_v15  ;;  %1055 = vst.msk [vmem:[%s1647_s13 + $0x140] sm:$0xff] %vm1014_vm4, %v984_v16  ;;  %v891_v36 = vadd.f32 %v890_v38, %v1617_v35  ;;  %v987_v22 = vadd.f32 %v986_v21, %v1686_v25  ;;  %v591_v37 = vpop.permute.xlu1 %590  ;;  %v586_v26 = vpop.permute.xlu0 %585 }
 0x201   : > { %1034 = vst.msk [vmem:[%s1647_s13 + $0x98] sm:$0xff] %vm1014_vm4, %v899_v19  ;;  %1058 = vst.msk [vmem:[%s1647_s13 + $0x158] sm:$0xff] %vm1014_vm4, %v995_v20 }
 0x202   : > { %1032 = vst.msk [vmem:[%s1647_s13 + $0x88] sm:$0xff] %vm1014_vm4, %v891_v36  ;;  %1056 = vst.msk [vmem:[%s1647_s13 + $0x148] sm:$0xff] %vm1014_vm4, %v987_v22 }
 0x204   : > { %v1282_v43 = vpop.f32.mrb[20].mxu0  ;;  %v1306_v24 = vpop.f32.mrb[20].mxu1 }
 0x205   : > { %v912_v35 = vadd.f32 %v1282_v43, %v1631_v42  ;;  %v1008_v44 = vadd.f32 %v1306_v24, %v586_v26  ;;  %v903_v25 = vpop.f32.mrb[21].mxu0  ;;  %v999_v45 = vpop.f32.mrb[21].mxu1 }
 0x206   : > { %v904_v46 = vadd.f32 %v903_v25, %v1627_v40  ;;  %v1000_v48 = vadd.f32 %v999_v45, %v576_v9  ;;  %v1283_v23 = vpop.f32.mrb[22].mxu0  ;;  %v1307_v47 = vpop.f32.mrb[22].mxu1 }
 0x207   : > { %1037 = vst.msk [vmem:[%s1647_s13 + $0xb0] sm:$0xff] %vm1014_vm4, %v912_v35  ;;  %1061 = vst.msk [vmem:[%s1647_s13 + $0x170] sm:$0xff] %vm1014_vm4, %v1008_v44  ;;  %v915_v49 = vadd.f32 %v1283_v23, %v1629_v41  ;;  %v1011_v50 = vadd.f32 %v1307_v47, %v591_v37  ;;  %v906_v42 = vpop.f32.mrb[23].mxu0  ;;  %v1002_v57 = vpop.f32.mrb[23].mxu1 }
 0x208   : > { %1035 = vst.msk [vmem:[%s1647_s13 + $0xa0] sm:$0xff] %vm1014_vm4, %v904_v46  ;;  %1059 = vst.msk [vmem:[%s1647_s13 + $0x160] sm:$0xff] %vm1014_vm4, %v1000_v48  ;;  %v907_v40 = vadd.f32 %v906_v42, %v1625_v39  ;;  %v1003_v58 = vadd.f32 %v1002_v57, %v581_v33 }
 0x209   : > { %1038 = vst.msk [vmem:[%s1647_s13 + $0xb8] sm:$0xff] %vm1014_vm4, %v915_v49  ;;  %1062 = vst.msk [vmem:[%s1647_s13 + $0x178] sm:$0xff] %vm1014_vm4, %v1011_v50 }
 0x20a   : > { %1036 = vst.msk [vmem:[%s1647_s13 + $0xa8] sm:$0xff] %vm1014_vm4, %v907_v40  ;;  %1060 = vst.msk [vmem:[%s1647_s13 + $0x168] sm:$0xff] %vm1014_vm4, %v1003_v58 }
 0x20b PF: > { %s13_s16 = sadd.s32 1, %s1423_s16   ;;  %s1794_s12 = smov %s1415_s14 }
 0x20c   : > { %p10_p7 = scmp.ge.s32.totalorder %s13_s16, 6   ;;  %s1795_s13 = smov %s1419_s15 }
 0x20d   : > { %s1796_s14 = smov %s1799_s17  ;;  %s1797_s15 = smov %s1803_s18 }
 0x20e   :  { %12 = sbr.rel (!%p10_p7) target bundleno = 3 (0x3), region = 68 }

// kernel: _lambda_.15
= control target key start
LH: loop header
LB: loop body
LE: loop exit
PB: predicated region body
PF: predicated region fallthrough
CT: control target
= control target key end

     0   :  { %s580_s12 = smov 0   ;;  %s582_s13 = smov 0   ;;  %s637_s0 = inlined_call_operand.vmem [shape: f32[2,8,8], index: 0, kind: input, shape index: {}]   ;;  %s638_s1 = inlined_call_operand.vmem [shape: bf16[32,24], index: 1, kind: input, shape index: {}]   ;;  %s639_s2 = inlined_call_operand.vmem [shape: f32[32,1], index: 2, kind: input, shape index: {}]   ;;  %s640_s3 = inlined_call_operand.vmem [shape: f32[2,32,8], index: 3, kind: output, shape index: {}]  }
   0x1   :  { %s584_s14 = smov 0  }
   0x2 LB: > { %s25_s15 = sadd.s32 1, %s550_s13  ;;  %p476_p0 = scmp.ge.s32.totalorder %s554_s14, 1  ;;  %s554_s14 = sphi %s584_s14, %s13_s14   ;;  %s550_s13 = sphi %s582_s13, %s642_s13   ;;  %s546_s12 = sphi %s580_s12, %s641_s12  }
   0x3   : > { %p27_p1 = scmp.ge.s32.totalorder %s25_s15, 2  ;;  %p172_p2 = scmp.lt.s32.totalorder %s554_s14, 3 }
   0x5   : > { %s644_s15 = smov (%p27_p1, %s25_s15), 0  ;;  %p173_p3 = pnand %p476_p0, %p172_p2 }
   0x6   : > { %p209_p4 = scmp.lt.s32.totalorder (!%p173_p3), %s546_s12, 1  ;;  %s556_s20 = smov (!%p173_p3), 1   ;;  %vm249_vm0 = vcmask (!%p173_p3), 7168   ;;  %v530_v2 = vld [vmem:[%s638_s1] sm:$0xff] (!%p173_p3)   ;;  %vm295_vm1 = vcmask (!%p173_p3), 195584   ;;  %vm253_vm2 = vcmask (!%p173_p3), 72704  }
   0x7   : > { %176 = sbr.rel (%p173_p3) target bundleno = 481 (0x1e1), region = 32  ;;  %495 = vmatprep.mubr.msk.bf16.mxu0 (!%p173_p3), %vm295_vm1, %v530_v2  ;;  %v557_v6 = vmov (!%p173_p3), 0   ;;  %s558_s23 = smov (!%p173_p3), 126   ;;  %v241_v8 = vld [vmem:[%s639_s2] sm:$0xff] (!%p173_p3)  ;;  %v242_v9 = vld [vmem:[%s639_s2 + $0x8] sm:$0xff] (!%p173_p3)  ;;  %v243_v10 = vld [vmem:[%s639_s2 + $0x10] sm:$0xff] (!%p173_p3) }
   0x8   : > { %528 = vset.pattern.permute.xlu1 (!%p173_p3), %v557_v6  ;;  %529 = vset.pattern.permute.xlu0 (!%p173_p3), %v557_v6  ;;  %s559_s26 = smov (!%p173_p3), 127   ;;  %v244_v11 = vld [vmem:[%s639_s2 + $0x18] sm:$0xff] (!%p173_p3)  ;;  %vm261_vm3 = vcmask (!%p173_p3), 1043456   ;;  %v531_v16 = vld [vmem:[%s638_s1 + $0x8] sm:$0xff] (!%p173_p3)   ;;  %vm354_vm4 = vcmask (!%p173_p3), 64512  }
   0xe   : > { %s646_s12 = smov (!%p209_p4, %s546_s12), 1 }
   0xf   : > { %s477_s16 = sshll.u32 %s646_s12, 3  ;;  %s486_s8 = sshll.u32 %s646_s12, 5 }
  0x10   : > { %s212_s19 = scalar_lea.vmem %s637_s0, %s477_s16  ;;  %s233_s11 = scalar_lea.vmem %s640_s3, %s486_s8 }
  0x11   : > { %v236_v0 = vld [vmem:[%s212_s19] sm:$0xff] }
  0x12   : > { %v245_v1 = vpack.c.bf16 %v236_v0, %v236_v0 }
  0x14   : > { %247 = vrot.lane.b32.xlu0 %v245_v1, %s556_s20 }
  0x86   : > { %v248_v3 = vpop.permute.xlu0 %247 }
  0x87   : > { %v252_v4 = vsel %vm249_vm0, 0, %v248_v3 }
  0x88   : > { %v254_v5 = vsel %vm253_vm2, %v252_v4, 0 }
  0x89   : > { %v256_v7 = vrot.slane %v254_v5, 4  ;;  %259 = vrot.lane.b32.xlu1 %v254_v5, %s558_s23 }
  0x8b   : > { %257 = vrot.lane.b32.xlu0 %v256_v7, %s559_s26 }
  0x8d   : > { %267 = vperm.xlu1 %528, %v241_v8  }
  0x8f   : > { %272 = vperm.xlu0 %529, %v242_v9  }
  0x91   : > { %277 = vperm.xlu1 %528, %v243_v10  }
  0x95   : > { %282 = vperm.xlu1 %528, %v244_v11  }
  0xfb   : > { %v260_v14 = vpop.permute.xlu1 %259 }
  0xfc   : > { %v303_v15 = vsel %vm261_vm3, %v260_v14, 0 }
  0xfd   : > { %v258_v12 = vpop.permute.xlu0 %257 }
  0xfe   : > { %v263_v13 = vsel %vm261_vm3, %v254_v5, %v258_v12 }
  0xff   : > { %491 = vmatprep.subr.bf16.mxu0 %v263_v13 }
 0x100   : > { %492 = vmatpush3.bf16.msra.mxu0 %v263_v13 }
 0x101   : > { %499 = vmatprep.subr.msk.bf16.mxu0 %vm261_vm3, %v260_v14 }
 0x104   : > { %494 = vmatpush3.bf16.msra.mxu0 %v303_v15 }
 0x107   : > { %496 = vmatmul.mubr.msk.bf16.vlgmr.msra.gmra.mrb[0].mxu0 %vm295_vm1, %v531_v16 }
 0x10c   : > { %v268_v17 = vpop.permute.xlu1 %267 }
 0x10e   : > { %v273_v22 = vpop.permute.xlu0 %272 }
 0x110   : > { %v278_v18 = vpop.permute.xlu1 %277 }
 0x114   : > { %v283_v23 = vpop.permute.xlu1 %282 }
 0x1da   : > { %v497_v19 = vpop.f32.mrb[0].mxu0 }
 0x1db   : > { %v348_v20 = vadd.f32 %v497_v19, %v278_v18  ;;  %v339_v21 = vpop.f32.mrb[1].mxu0 }
 0x1dc   : > { %v340_v24 = vadd.f32 %v339_v21, %v268_v17  ;;  %v498_v25 = vpop.f32.mrb[2].mxu0 }
 0x1dd   : > { %357 = vst.msk [vmem:[%s233_s11 + $0x10] sm:$0xff] %vm354_vm4, %v348_v20  ;;  %v351_v26 = vadd.f32 %v498_v25, %v283_v23  ;;  %v342_v27 = vpop.f32.mrb[3].mxu0 }
 0x1de   : > { %355 = vst.msk [vmem:[%s233_s11] sm:$0xff] %vm354_vm4, %v340_v24  ;;  %v343_v28 = vadd.f32 %v342_v27, %v273_v22 }
 0x1df   : > { %358 = vst.msk [vmem:[%s233_s11 + $0x18] sm:$0xff] %vm354_vm4, %v351_v26 }
 0x1e0   : > { %356 = vst.msk [vmem:[%s233_s11 + $0x8] sm:$0xff] %vm354_vm4, %v343_v28 }
 0x1e1 PF: > { %s13_s14 = sadd.s32 1, %s554_s14   ;;  %s641_s12 = smov %s550_s13 }
 0x1e2   : > { %p10_p5 = scmp.ge.s32.totalorder %s13_s14, 4   ;;  %s642_s13 = smov %s644_s15 }
 0x1e4   :  { %12 = sbr.rel (!%p10_p5) target bundleno = 2 (0x2), region = 68 }

// kernel: _lambda_.21
= control target key start
LH: loop header
LB: loop body
LE: loop exit
PB: predicated region body
PF: predicated region fallthrough
CT: control target
= control target key end

     0   :  { %s393_s12 = smov 0   ;;  %s423_s0 = inlined_call_operand.vmem [shape: f32[2,8,16], index: 0, kind: input, shape index: {}]   ;;  %s424_s1 = inlined_call_operand.vmem [shape: bf16[16,24], index: 1, kind: input, shape index: {}]   ;;  %s425_s2 = inlined_call_operand.vmem [shape: f32[16,1], index: 2, kind: input, shape index: {}]   ;;  %s426_s3 = inlined_call_operand.vmem [shape: f32[2,16,16], index: 3, kind: output, shape index: {}]  }
   0x1 LB: > { %s318_s13 = sadd.s32 4294967295, %s365_s12   ;;  %p322_p0 = scmp.ge.s32.totalorder %s365_s12, 1  ;;  %s365_s12 = sphi %s393_s12, %s13_s12  }
   0x2   : > { %p136_p1 = scmp.lt.s32.totalorder %s365_s12, 3 }
   0x4   : > { %p137_p2 = pnand %p322_p0, %p136_p1 }
   0x5   : > { %p159_p3 = scmp.lt.s32.totalorder (!%p137_p2), %s318_s13, 1  ;;  %s367_s18 = smov (!%p137_p2), 1   ;;  %v368_v4 = vmov (!%p137_p2), 0.0   ;;  %vm181_vm1 = vcmask (!%p137_p2), 7168   ;;  %vm369_vm2 = vmmov (!%p137_p2), 0   ;;  %vm185_vm3 = vcmask (!%p137_p2), 138240  }
   0x6   : > { %140 = sbr.rel (%p137_p2) target bundleno = 481 (0x1e1), region = 32  ;;  %334 = vmatprep.subr.bf16.mxu0 (!%p137_p2), %v368_v4  ;;  %338 = vmatprep.mubr.msk.bf16.mxu0 (!%p137_p2), %vm369_vm2, %v368_v4  ;;  %v370_v7 = vmov (!%p137_p2), 0   ;;  %s371_s19 = smov (!%p137_p2), 126   ;;  %v175_v10 = vld [vmem:[%s425_s2] sm:$0xff] (!%p137_p2)  ;;  %v176_v11 = vld [vmem:[%s425_s2 + $0x8] sm:$0xff] (!%p137_p2)  ;;  %vm193_vm4 = vcmask (!%p137_p2), 1043456  }
   0x7   : > { %356 = vset.pattern.permute.xlu1 (!%p137_p2), %v370_v7  ;;  %357 = vset.pattern.permute.xlu0 (!%p137_p2), %v370_v7  ;;  %s372_s22 = smov (!%p137_p2), 127   ;;  %v358_v16 = vld [vmem:[%s424_s1] sm:$0xff] (!%p137_p2)   ;;  %vm212_vm5 = vcmask (!%p137_p2), 195584   ;;  %vm260_vm6 = vcmask (!%p137_p2), 130048  }
   0xd   : > { %s428_s13 = smov (!%p159_p3, %s318_s13), 1 }
   0xe   : > { %s323_s14 = sshll.u32 %s428_s13, 3  ;;  %s330_s27 = sshll.u32 %s428_s13, 4 }
   0xf   : > { %s162_s17 = scalar_lea.vmem %s423_s0, %s323_s14  ;;  %s167_s30 = scalar_lea.vmem %s426_s3, %s330_s27 }
  0x10   : > { %v169_v0 = vld [vmem:[%s162_s17] sm:$0xff] }
  0x11   : > { %vm170_vm0 = vcmp.ge.f32.partialorder %v169_v0, 0.0  ;;  %v171_v1 = vmul.f32 0.2, %v169_v0 }
  0x13   : > { %v172_v2 = vsel %vm170_vm0, %v169_v0, %v171_v1 }
  0x14   : > { %v177_v3 = vpack.c.bf16 %v172_v2, %v172_v2 }
  0x16   : > { %179 = vrot.lane.b32.xlu0 %v177_v3, %s367_s18 }
  0x88   : > { %v180_v5 = vpop.permute.xlu0 %179 }
  0x89   : > { %v184_v6 = vsel %vm181_vm1, 0, %v180_v5 }
  0x8a   : > { %v186_v8 = vsel %vm185_vm3, %v184_v6, 0 }
  0x8b   : > { %v188_v9 = vrot.slane %v186_v8, 4  ;;  %191 = vrot.lane.b32.xlu1 %v186_v8, %s371_s19 }
  0x8d   : > { %189 = vrot.lane.b32.xlu0 %v188_v9, %s372_s22 }
  0x8f   : > { %199 = vperm.xlu1 %356, %v175_v10  }
  0x91   : > { %204 = vperm.xlu0 %357, %v176_v11  }
  0xfd   : > { %v192_v14 = vpop.permute.xlu1 %191 }
  0xfe   : > { %v217_v15 = vsel %vm193_vm4, %v192_v14, 0 }
  0xff   : > { %v190_v12 = vpop.permute.xlu0 %189 }
 0x100   : > { %v195_v13 = vsel %vm193_vm4, %v186_v8, %v190_v12 }
 0x101   : > { %335 = vmatpush3.bf16.msra.mxu0 %v195_v13 }
 0x102   : > { %336 = vmatprep.subr.bf16.mxu0 %v368_v4 }
 0x105   : > { %337 = vmatpush3.bf16.msra.mxu0 %v217_v15 }
 0x108   : > { %339 = vmatmul.mubr.msk.bf16.vlgmr.msra.gmra.mrb[0].mxu0 %vm212_vm5, %v358_v16 }
 0x10e   : > { %v200_v17 = vpop.permute.xlu1 %199 }
 0x110   : > { %v205_v19 = vpop.permute.xlu0 %204 }
 0x1db   : > { %v253_v18 = vpop.f32.mrb[0].mxu0 }
 0x1dc   : > { %v254_v20 = vadd.f32 %v253_v18, %v200_v17  ;;  %v340_v21 = vpop.f32.mrb[1].mxu0 }
 0x1dd   : > { %v256_v22 = vpop.f32.mrb[2].mxu0 }
 0x1de   : > { %261 = vst.msk [vmem:[%s167_s30] sm:$0xff] %vm260_vm6, %v254_v20  ;;  %v257_v23 = vadd.f32 %v256_v22, %v205_v19  ;;  %v341_v24 = vpop.f32.mrb[3].mxu0 }
 0x1e0   : > { %262 = vst.msk [vmem:[%s167_s30 + $0x8] sm:$0xff] %vm260_vm6, %v257_v23 }
 0x1e1 PF: > { %s13_s12 = sadd.s32 1, %s365_s12  }
 0x1e2   : > { %p10_p4 = scmp.ge.s32.totalorder %s13_s12, 4  }
 0x1e4   :  { %12 = sbr.rel (!%p10_p4) target bundleno = 1 (0x1), region = 62 }

// kernel: _lambda_.17
= control target key start
LH: loop header
LB: loop body
LE: loop exit
PB: predicated region body
PF: predicated region fallthrough
CT: control target
= control target key end

     0   :  { %s2440_s18 = smov 0   ;;  %s2815_s0 = inlined_call_operand.vmem [shape: f32[2,8,16], index: 0, kind: input, shape index: {}]   ;;  %s2816_s1 = inlined_call_operand.vmem [shape: bf16[2,8,24], index: 1, kind: input, shape index: {}]   ;;  %s2817_s2 = inlined_call_operand.vmem [shape: f32[2,8,1], index: 2, kind: input, shape index: {}]   ;;  %s2818_s3 = inlined_call_operand.vmem [shape: bf16[2,2,8,16,24], index: 3, kind: input, shape index: {}]   ;;  %s2819_s4 = inlined_call_operand.vmem [shape: f32[2,2,8,16,1], index: 4, kind: input, shape index: {}]   ;;  %s2820_s5 = inlined_call_operand.vmem [shape: f32[2,8,16], index: 5, kind: output, shape index: {}]  }
   0x1 LB: > { %s1913_s19 = sadd.s32 4294967295, %s2387_s18   ;;  %p1917_p0 = scmp.ge.s32.totalorder %s2387_s18, 1  ;;  %s2387_s18 = sphi %s2440_s18, %s15_s18  }
   0x2   : > { %p206_p1 = scmp.lt.s32.totalorder %s2387_s18, 3 }
   0x4   : > { %p207_p2 = pnand %p1917_p0, %p206_p1 }
   0x5   : > { %p242_p3 = scmp.lt.s32.totalorder (!%p207_p2), %s1913_s19, 1  ;;  %s2389_s28 = smov (!%p207_p2), 1   ;;  %v2390_v4 = vmov (!%p207_p2), 0.0   ;;  %vm271_vm1 = vcmask (!%p207_p2), 7168   ;;  %vm2391_vm2 = vmmov (!%p207_p2), 0   ;;  %vm275_vm3 = vcmask (!%p207_p2), 138240  }
   0x6   : > { %210 = sbr.rel (%p207_p2) target bundleno = 2438 (0x986), region = 40  ;;  %2094 = vmatprep.subr.bf16.mxu0 (!%p207_p2), %v2390_v4  ;;  %2102 = vmatprep.subr.bf16.mxu1 (!%p207_p2), %v2390_v4  ;;  %v2392_v7 = vmov (!%p207_p2), 0   ;;  %s2393_s29 = smov (!%p207_p2), 126   ;;  %v266_v10 = vld [vmem:[%s2817_s2] sm:$0xff] (!%p207_p2)  ;;  %vm283_vm4 = vcmask (!%p207_p2), 1043456   ;;  %vm292_vm5 = vcmask (!%p207_p2), 195584  }
   0x7   : > { %2098 = vmatprep.mubr.msk.bf16.mxu0 (!%p207_p2), %vm2391_vm2, %v2390_v4  ;;  %2106 = vmatprep.mubr.msk.bf16.mxu1 (!%p207_p2), %vm2391_vm2, %v2390_v4  ;;  %s2394_s7 = smov (!%p207_p2), 127   ;;  %v265_v15 = vld [vmem:[%s2816_s1] sm:$0xf] (!%p207_p2)  ;;  %s2395_s10 = smov (!%p207_p2), 122   ;;  %vm433_vm7 = vcmask (!%p207_p2), 15360   ;;  %vm522_vm8 = vcmask (!%p207_p2), 31760  }
   0x8   : > { %2267 = vset.pattern.permute.xlu1 (!%p207_p2), %v2392_v7  ;;  %2268 = vset.pattern.permute.xlu0 (!%p207_p2), %v2392_v7  ;;  %s2396_s11 = smov (!%p207_p2), 124   ;;  %s2397_s12 = smov (!%p207_p2), 118   ;;  %vm610_vm9 = vcmask (!%p207_p2), 48160   ;;  %vm698_vm10 = vcmask (!%p207_p2), 64560   ;;  %vm786_vm11 = vcmask (!%p207_p2), 80960   ;;  %vm874_vm12 = vcmask (!%p207_p2), 97360  }
   0x9   : > { %s2398_s13 = smov (!%p207_p2), 120   ;;  %s2399_s14 = smov (!%p207_p2), 114   ;;  %vm962_vm13 = vcmask (!%p207_p2), 113760   ;;  %vm1050_vm14 = vcmask (!%p207_p2), 130160  }
   0xa   : > { %s2400_s16 = smov (!%p207_p2), 116   ;;  %s2403_s26 = smov (!%p207_p2), 6  }
   0xb   : > { %s2404_s30 = smov (!%p207_p2), 8   ;;  %s2405_s6 = smov (!%p207_p2), 10  }
   0xc   : > { %s2406_s8 = smov (!%p207_p2), 12   ;;  %s2407_s9 = smov (!%p207_p2), 14  }
   0xd   : > { %s2822_s19 = smov (!%p242_p3, %s1913_s19), 1  ;;  %s2409_s17 = smov 125  }
   0xe   : > { %s1918_s20 = sshll.u32 %s2822_s19, 3  ;;  %s2038_s21 = sshll.u32 %s2822_s19, 7 }
   0xf   : > { %s245_s24 = scalar_lea.vmem %s2815_s0, %s1918_s20  ;;  %s2460_s27 = scalar_lea.vmem %s2818_s3, %s2038_s21 }
  0x10   : > { %v2462_v0 = vld [vmem:[%s245_s24] sm:$0xff]  ;;  %s2039_s15 = sshll.u32 %s2822_s19, 8  ;;  %v2270_v55 = vld [vmem:[%s2460_s27 + $0x8] sm:$0xff]   ;;  %v2271_v60 = vld [vmem:[%s2460_s27 + $0x10] sm:$0xff]   ;;  %s2612_s25 = scalar_lea.vmem %s2820_s5, %s1918_s20 }
  0x11   : > { %vm262_vm0 = vcmp.ge.f32.partialorder %v2462_v0, 0.0  ;;  %v263_v1 = vmul.f32 0.2, %v2462_v0  ;;  %v2269_v33 = vld [vmem:[%s2460_s27] sm:$0xff]   ;;  %s2520_s22 = scalar_lea.vmem %s2819_s4, %s2039_s15  ;;  %v2272_v63 = vld [vmem:[%s2460_s27 + $0x18] sm:$0xff]   ;;  %s2401_s19 = smov 2  }
  0x12   : > { %v1937_v34 = vld [vmem:[%s2520_s22 + $0x20] sm:$0xff]  ;;  %v1930_v35 = vld [vmem:[%s2520_s22 + $0x10] sm:$0xff]  ;;  %v1938_v40 = vld [vmem:[%s2520_s22 + $0x28] sm:$0xff]  ;;  %s2402_s20 = smov 4   ;;  %s2408_s15 = smov 3  }
  0x13   : > { %v264_v2 = vsel %vm262_vm0, %v2462_v0, %v263_v1  ;;  %v1958_v36 = vld [vmem:[%s2520_s22 + $0x50] sm:$0xff]  ;;  %v1951_v39 = vld [vmem:[%s2520_s22 + $0x40] sm:$0xff]  ;;  %v1952_v42 = vld [vmem:[%s2520_s22 + $0x48] sm:$0xff]  ;;  %vm1064_vm0 = vcmask 23552  }
  0x14   : > { %v267_v3 = vpack.c.bf16 %v264_v2, %v264_v2  ;;  %v1944_v37 = vld [vmem:[%s2520_s22 + $0x30] sm:$0xff]  ;;  %v1965_v41 = vld [vmem:[%s2520_s22 + $0x60] sm:$0xff]  ;;  %v1931_v43 = vld [vmem:[%s2520_s22 + $0x18] sm:$0xff] }
  0x15   : > { %v1972_v38 = vld [vmem:[%s2520_s22 + $0x70] sm:$0xff]  ;;  %v1966_v44 = vld [vmem:[%s2520_s22 + $0x68] sm:$0xff]  ;;  %v1945_v45 = vld [vmem:[%s2520_s22 + $0x38] sm:$0xff] }
  0x16   : > { %269 = vrot.lane.b32.xlu0 %v267_v3, %s2389_s28  ;;  %v360_v46 = vld [vmem:[%s2520_s22] sm:$0xff]  ;;  %v1959_v47 = vld [vmem:[%s2520_s22 + $0x58] sm:$0xff]  ;;  %v361_v49 = vld [vmem:[%s2520_s22 + $0x8] sm:$0xff] }
  0x17   : > { %v1973_v48 = vld [vmem:[%s2520_s22 + $0x78] sm:$0xff] }
  0x88   : > { %v270_v5 = vpop.permute.xlu0 %269 }
  0x89   : > { %v274_v6 = vsel %vm271_vm1, 0, %v270_v5  ;;  %v2273_v5 = vld [vmem:[%s2460_s27 + $0x20] sm:$0xff]  }
  0x8a   : > { %v276_v8 = vsel %vm275_vm3, %v274_v6, 0 }
  0x8b   : > { %v278_v9 = vrot.slane %v276_v8, 4  ;;  %281 = vrot.lane.b32.xlu1 %v276_v8, %s2393_s29 }
  0x8d   : > { %279 = vrot.lane.b32.xlu0 %v278_v9, %s2394_s7  ;;  %v2274_v9 = vld [vmem:[%s2460_s27 + $0x28] sm:$0xff]  }
  0x8f   : > { %289 = vperm.xlu1 %2267, %v266_v10  }
  0xfd   : > { %v282_v13 = vpop.permute.xlu1 %281 }
  0xfe   : > { %v297_v14 = vsel %vm283_vm4, %v282_v13, 0  ;;  %v2275_v13 = vld [vmem:[%s2460_s27 + $0x30] sm:$0xff]  }
  0xff   : > { %v280_v11 = vpop.permute.xlu0 %279 }
 0x100   : > { %v285_v12 = vsel %vm283_vm4, %v276_v8, %v280_v11 }
 0x101   : > { %2095 = vmatpush3.bf16.msra.mxu0 %v285_v12 }
 0x102   : > { %2096 = vmatprep.subr.bf16.mxu0 %v2390_v4 }
 0x105   : > { %2097 = vmatpush3.bf16.msra.mxu0 %v297_v14 }
 0x106   : > { %2110 = vmatprep.subr.bf16.mxu0 %v2390_v4 }
 0x108   : > { %2099 = vmatmul.mubr.msk.bf16.vlgmr.msra.gmra.mrb[0].mxu0 %vm292_vm5, %v265_v15  ;;  %v2276_v15 = vld [vmem:[%s2460_s27 + $0x38] sm:$0xff]  }
 0x109   : > { %2114 = vmatprep.mubr.msk.bf16.mxu0 %vm2391_vm2, %v2390_v4 }
 0x10e   : > { %v290_v16 = vpop.permute.xlu1 %289 }
 0x1db   : > { %v333_v17 = vpop.f32.mrb[0].mxu0 }
 0x1dc   : > { %v334_v18 = vadd.f32 %v333_v17, %v290_v16  ;;  %v2100_v19 = vpop.f32.mrb[1].mxu0 }
 0x1dd   : > { %v336_v20 = vpop.f32.mrb[2].mxu0 }
 0x1de   : > { %vm339_vm6 = vcmp.ge.f32.partialorder %v334_v18, 0.0  ;;  %v340_v21 = vmul.f32 0.2, %v334_v18  ;;  %v2101_v22 = vpop.f32.mrb[3].mxu0 }
 0x1e0   : > { %v341_v23 = vsel %vm339_vm6, %v334_v18, %v340_v21  ;;  %vm1067_vm6 = vcmask 154624  }
 0x1e1   : > { %v342_v24 = vpack.c.bf16 %v341_v23, %v341_v23 }
 0x1e3   : > { %344 = vrot.lane.b32.xlu0 %v342_v24, %s2389_s28 }
 0x255   : > { %v345_v25 = vpop.permute.xlu0 %344 }
 0x256   : > { %v347_v26 = vsel %vm271_vm1, 0, %v345_v25 }
 0x257   : > { %v348_v27 = vsel %vm275_vm3, %v347_v26, 0 }
 0x258   : > { %v350_v28 = vrot.slane %v348_v27, 4  ;;  %353 = vrot.lane.b32.xlu0 %v348_v27, %s2393_s29 }
 0x25a   : > { %351 = vrot.lane.b32.xlu1 %v350_v28, %s2394_s7 }
 0x2ca   : > { %v354_v29 = vpop.permute.xlu0 %353 }
 0x2cb   : > { %459 = vrot.lane.b32.xlu0 %v354_v29, %s2393_s29  ;;  %v381_v32 = vsel %vm283_vm4, %v354_v29, 0 }
 0x2cc   : > { %v352_v30 = vpop.permute.xlu1 %351 }
 0x2cd   : > { %v356_v31 = vsel %vm283_vm4, %v348_v27, %v352_v30 }
 0x2ce   : > { %457 = vrot.lane.b32.xlu1 %v356_v31, %s2393_s29  ;;  %2103 = vmatpush3.bf16.msra.mxu1 %v356_v31 }
 0x2cf   : > { %633 = vrot.lane.b32.xlu0 %v356_v31, %s2395_s10  ;;  %2104 = vmatprep.subr.bf16.mxu1 %v2390_v4 }
 0x2d2   : > { %545 = vrot.lane.b32.xlu1 %v356_v31, %s2396_s11  ;;  %2105 = vmatpush3.bf16.msra.mxu1 %v381_v32 }
 0x2d3   : > { %635 = vrot.lane.b32.xlu0 %v354_v29, %s2395_s10  ;;  %2118 = vmatprep.subr.bf16.mxu1 %v2390_v4 }
 0x2d5   : > { %2107 = vmatmul.mubr.msk.bf16.vlgmr.msra.gmra.mrb[0].mxu1 %vm292_vm5, %v2269_v33 }
 0x2d6   : > { %547 = vrot.lane.b32.xlu1 %v354_v29, %s2396_s11  ;;  %2122 = vmatprep.mubr.msk.bf16.mxu1 %vm2391_vm2, %v2390_v4 }
 0x2d7   : > { %809 = vrot.lane.b32.xlu0 %v356_v31, %s2397_s12 }
 0x2da   : > { %721 = vrot.lane.b32.xlu1 %v356_v31, %s2398_s13 }
 0x2db   : > { %811 = vrot.lane.b32.xlu0 %v354_v29, %s2397_s12 }
 0x2de   : > { %723 = vrot.lane.b32.xlu1 %v354_v29, %s2398_s13 }
 0x2df   : > { %985 = vrot.lane.b32.xlu0 %v356_v31, %s2399_s14 }
 0x2e2   : > { %897 = vrot.lane.b32.xlu1 %v356_v31, %s2400_s16 }
 0x2e3   : > { %987 = vrot.lane.b32.xlu0 %v354_v29, %s2399_s14 }
 0x2e6   : > { %899 = vrot.lane.b32.xlu1 %v354_v29, %s2400_s16 }
 0x2e7   : > { %532 = vperm.xlu0 %2268, %v1937_v34  }
 0x2ea   : > { %443 = vperm.xlu1 %2267, %v1930_v35  }
 0x2eb   : > { %796 = vperm.xlu0 %2268, %v1958_v36  }
 0x2ee   : > { %620 = vperm.xlu1 %2267, %v1944_v37  }
 0x2ef   : > { %972 = vperm.xlu0 %2268, %v1972_v38  }
 0x2f2   : > { %708 = vperm.xlu1 %2267, %v1951_v39  }
 0x2f3   : > { %537 = vperm.xlu0 %2268, %v1938_v40  }
 0x2f6   : > { %884 = vperm.xlu1 %2267, %v1965_v41  }
 0x2f7   : > { %713 = vperm.xlu0 %2268, %v1952_v42  }
 0x2fa   : > { %448 = vperm.xlu1 %2267, %v1931_v43  }
 0x2fb   : > { %889 = vperm.xlu0 %2268, %v1966_v44  }
 0x2fe   : > { %625 = vperm.xlu1 %2267, %v1945_v45  }
 0x2ff   : > { %364 = vperm.xlu0 %2268, %v360_v46  }
 0x302   : > { %801 = vperm.xlu1 %2267, %v1959_v47  }
 0x306   : > { %977 = vperm.xlu1 %2267, %v1973_v48  }
 0x30a   : > { %369 = vperm.xlu1 %2267, %v361_v49  }
 0x33d   : > { %v460_v50 = vpop.permute.xlu0 %459 }
 0x33e   : > { %v466_v53 = vsel %vm283_vm4, %v460_v50, 0 }
 0x340   : > { %v458_v51 = vpop.permute.xlu1 %457 }
 0x341   : > { %v634_v52 = vpop.permute.xlu0 %633  ;;  %2111 = vmatpush3.bf16.msra.mxu0 %v458_v51 }
 0x342   : > { %2112 = vmatprep.subr.bf16.mxu0 %v2390_v4 }
 0x344   : > { %v546_v54 = vpop.permute.xlu1 %545 }
 0x345   : > { %v636_v56 = vpop.permute.xlu0 %635  ;;  %2113 = vmatpush3.bf16.msra.mxu0 %v466_v53  ;;  %2119 = vmatpush3.bf16.msra.mxu1 %v546_v54 }
 0x346   : > { %2126 = vmatprep.subr.bf16.mxu0 %v2390_v4  ;;  %2120 = vmatprep.subr.bf16.mxu1 %v2390_v4  ;;  %v642_v61 = vsel %vm283_vm4, %v636_v56, 0 }
 0x348   : > { %2115 = vmatmul.mubr.msk.bf16.vlgmr.msra.gmra.mrb[4].mxu0 %vm292_vm5, %v2270_v55  ;;  %v548_v57 = vpop.permute.xlu1 %547 }
 0x349   : > { %v554_v58 = vsel %vm283_vm4, %v548_v57, 0  ;;  %v810_v59 = vpop.permute.xlu0 %809  ;;  %2127 = vmatpush3.bf16.msra.mxu0 %v634_v52  ;;  %2130 = vmatprep.mubr.msk.bf16.mxu0 %vm2391_vm2, %v2390_v4 }
 0x34a   : > { %2121 = vmatpush3.bf16.msra.mxu1 %v554_v58  ;;  %2128 = vmatprep.subr.bf16.mxu0 %v2390_v4 }
 0x34b   : > { %2134 = vmatprep.subr.bf16.mxu1 %v2390_v4 }
 0x34c   : > { %v722_v62 = vpop.permute.xlu1 %721 }
 0x34d   : > { %v812_v1 = vpop.permute.xlu0 %811  ;;  %2123 = vmatmul.mubr.msk.bf16.vlgmr.msra.gmra.mrb[4].mxu1 %vm292_vm5, %v2271_v60  ;;  %2129 = vmatpush3.bf16.msra.mxu0 %v642_v61 }
 0x34e   : > { %2135 = vmatpush3.bf16.msra.mxu1 %v722_v62  ;;  %2142 = vmatprep.subr.bf16.mxu0 %v2390_v4  ;;  %v818_v7 = vsel %vm283_vm4, %v812_v1, 0 }
 0x34f   : > { %2136 = vmatprep.subr.bf16.mxu1 %v2390_v4  ;;  %2138 = vmatprep.mubr.msk.bf16.mxu1 %vm2391_vm2, %v2390_v4 }
 0x350   : > { %2131 = vmatmul.mubr.msk.bf16.vlgmr.msra.gmra.mrb[8].mxu0 %vm292_vm5, %v2272_v63  ;;  %v724_v2 = vpop.permute.xlu1 %723 }
 0x351   : > { %v730_v3 = vsel %vm283_vm4, %v724_v2, 0  ;;  %2143 = vmatpush3.bf16.msra.mxu0 %v810_v59  ;;  %2146 = vmatprep.mubr.msk.bf16.mxu0 %vm2391_vm2, %v2390_v4  ;;  %v986_v6 = vpop.permute.xlu0 %985 }
 0x352   : > { %2137 = vmatpush3.bf16.msra.mxu1 %v730_v3  ;;  %2144 = vmatprep.subr.bf16.mxu0 %v2390_v4 }
 0x353   : > { %2150 = vmatprep.subr.bf16.mxu1 %v2390_v4 }
 0x354   : > { %v898_v8 = vpop.permute.xlu1 %897 }
 0x355   : > { %2139 = vmatmul.mubr.msk.bf16.vlgmr.msra.gmra.mrb[8].mxu1 %vm292_vm5, %v2273_v5  ;;  %2145 = vmatpush3.bf16.msra.mxu0 %v818_v7  ;;  %v988_v11 = vpop.permute.xlu0 %987 }
 0x356   : > { %2151 = vmatpush3.bf16.msra.mxu1 %v898_v8  ;;  %2158 = vmatprep.subr.bf16.mxu0 %v2390_v4  ;;  %v994_v14 = vsel %vm283_vm4, %v988_v11, 0 }
 0x357   : > { %2152 = vmatprep.subr.bf16.mxu1 %v2390_v4  ;;  %2154 = vmatprep.mubr.msk.bf16.mxu1 %vm2391_vm2, %v2390_v4 }
 0x358   : > { %2147 = vmatmul.mubr.msk.bf16.vlgmr.msra.gmra.mrb[12].mxu0 %vm292_vm5, %v2274_v9  ;;  %v900_v10 = vpop.permute.xlu1 %899 }
 0x359   : > { %v906_v12 = vsel %vm283_vm4, %v900_v10, 0  ;;  %2159 = vmatpush3.bf16.msra.mxu0 %v986_v6  ;;  %2162 = vmatprep.mubr.msk.bf16.mxu0 %vm2391_vm2, %v2390_v4 }
 0x35a   : > { %2153 = vmatpush3.bf16.msra.mxu1 %v906_v12  ;;  %2160 = vmatprep.subr.bf16.mxu0 %v2390_v4 }
 0x35b   : > { %2166 = vmatprep.subr.bf16.mxu1 %v2390_v4 }
 0x35d   : > { %2155 = vmatmul.mubr.msk.bf16.vlgmr.msra.gmra.mrb[12].mxu1 %vm292_vm5, %v2275_v13  ;;  %2161 = vmatpush3.bf16.msra.mxu0 %v994_v14 }
 0x35e   : > { %2170 = vmatprep.mubr.msk.bf16.mxu1 %vm2391_vm2, %v2390_v4  ;;  %2174 = vmatprep.subr.bf16.mxu0 %v2390_v4 }
 0x360   : > { %2163 = vmatmul.mubr.msk.bf16.vlgmr.msra.gmra.mrb[16].mxu0 %vm292_vm5, %v2276_v15 }
 0x361   : > { %2178 = vmatprep.mubr.msk.bf16.mxu0 %vm2391_vm2, %v2390_v4 }
 0x366   : > { %v533_v16 = vpop.permute.xlu0 %532 }
 0x369   : > { %v444_v17 = vpop.permute.xlu1 %443 }
 0x36a   : > { %v2589_v18 = vpop.permute.xlu0 %796 }
 0x36d   : > { %v621_v19 = vpop.permute.xlu1 %620 }
 0x36e   : > { %v2591_v20 = vpop.permute.xlu0 %972 }
 0x371   : > { %v709_v21 = vpop.permute.xlu1 %708 }
 0x372   : > { %v2593_v22 = vpop.permute.xlu0 %537 }
 0x375   : > { %v2595_v23 = vpop.permute.xlu1 %884 }
 0x376   : > { %v2597_v24 = vpop.permute.xlu0 %713 }
 0x379   : > { %v449_v25 = vpop.permute.xlu1 %448 }
 0x37a   : > { %v2599_v26 = vpop.permute.xlu0 %889 }
 0x37d   : > { %v2601_v27 = vpop.permute.xlu1 %625 }
 0x37e   : > { %v365_v28 = vpop.permute.xlu0 %364 }
 0x381   : > { %v2603_v29 = vpop.permute.xlu1 %801 }
 0x385   : > { %v2605_v36 = vpop.permute.xlu1 %977 }
 0x389   : > { %v370_v37 = vpop.permute.xlu1 %369 }
 0x3a8   : > { %v417_v30 = vpop.f32.mrb[0].mxu1 }
 0x3a9   : > { %v418_v31 = vadd.f32 %v417_v30, %v365_v28  ;;  %v2108_v32 = vpop.f32.mrb[1].mxu1 }
 0x3aa   : > { %v420_v33 = vpop.f32.mrb[2].mxu1 }
 0x3ab   : > { %v1927_v34 = vmul.f32 -1.442695, %v418_v31  ;;  %v2109_v35 = vpop.f32.mrb[3].mxu1  ;;  %v421_v38 = vadd.f32 %v420_v33, %v370_v37 }
 0x3ad   : > { %2285 = vpow2.f32 %v1927_v34 }
 0x3ae   : > { %2287 = vtanh.f32 %v421_v38 }
 0x3b7   : > { %v2286_v39 = vpop.eup %2285 }
 0x3b8   : > { %v427_v40 = vadd.f32 1.0, %v2286_v39  ;;  %v2288_v41 = vpop.eup %2287 }
 0x3ba   : > { %2289 = vrcp.f32 %v427_v40 }
 0x3c4   : > { %v2290_v42 = vpop.eup %2289 }
 0x3c5   : > { %v431_v43 = vmul.f32 %v2290_v42, %v2288_v41 }
 0x3c7   : > { %v432_v44 = vadd.f32 %v431_v43, %v2462_v0 }
 0x3c9   : > { %434 = vst.msk [vmem:[%s2612_s25] sm:$0xff] %vm433_vm7, %v432_v44 }
 0x41b   : > { %v502_v45 = vpop.f32.mrb[4].mxu0 }
 0x41c   : > { %v503_v46 = vadd.f32 %v502_v45, %v444_v17  ;;  %v2116_v47 = vpop.f32.mrb[5].mxu0 }
 0x41d   : > { %v505_v48 = vpop.f32.mrb[6].mxu0 }
 0x41e   : > { %v1934_v49 = vmul.f32 -1.442695, %v503_v46  ;;  %v2117_v50 = vpop.f32.mrb[7].mxu0  ;;  %v506_v63 = vadd.f32 %v505_v48, %v449_v25 }
 0x420   : > { %2291 = vpow2.f32 %v1934_v49  ;;  %v590_v51 = vpop.f32.mrb[4].mxu1 }
 0x421   : > { %v591_v52 = vadd.f32 %v590_v51, %v533_v16  ;;  %v2124_v53 = vpop.f32.mrb[5].mxu1 }
 0x422   : > { %v593_v54 = vpop.f32.mrb[6].mxu1 }
 0x423   : > { %v1941_v55 = vmul.f32 -1.442695, %v591_v52  ;;  %v2125_v56 = vpop.f32.mrb[7].mxu1  ;;  %v678_v57 = vpop.f32.mrb[8].mxu0  ;;  %v594_v13 = vadd.f32 %v593_v54, %v2593_v22 }
 0x424   : > { %v679_v58 = vadd.f32 %v678_v57, %v621_v19  ;;  %v2132_v59 = vpop.f32.mrb[9].mxu0 }
 0x425   : > { %2293 = vpow2.f32 %v1941_v55  ;;  %v681_v60 = vpop.f32.mrb[10].mxu0 }
 0x426   : > { %v1948_v61 = vmul.f32 -1.442695, %v679_v58  ;;  %v2133_v62 = vpop.f32.mrb[11].mxu0 }
 0x428   : > { %2295 = vpow2.f32 %v1948_v61  ;;  %v766_v1 = vpop.f32.mrb[8].mxu1 }
 0x429   : > { %v767_v2 = vadd.f32 %v766_v1, %v709_v21  ;;  %v2140_v3 = vpop.f32.mrb[9].mxu1  ;;  %2297 = vtanh.f32 %v506_v63  ;;  %v682_v21 = vadd.f32 %v681_v60, %v2601_v27 }
 0x42a   : > { %v2292_v5 = vpop.eup %2291  ;;  %v769_v6 = vpop.f32.mrb[10].mxu1 }
 0x42b   : > { %v512_v7 = vadd.f32 1.0, %v2292_v5  ;;  %v1955_v8 = vmul.f32 -1.442695, %v767_v2  ;;  %v2141_v9 = vpop.f32.mrb[11].mxu1  ;;  %v854_v10 = vpop.f32.mrb[12].mxu0  ;;  %v770_v39 = vadd.f32 %v769_v6, %v2597_v24 }
 0x42c   : > { %v855_v11 = vadd.f32 %v854_v10, %v2589_v18  ;;  %v2148_v12 = vpop.f32.mrb[13].mxu0 }
 0x42d   : > { %2299 = vrcp.f32 %v512_v7  ;;  %v857_v14 = vpop.f32.mrb[14].mxu0 }
 0x42e   : > { %2301 = vpow2.f32 %v1955_v8  ;;  %v1962_v15 = vmul.f32 -1.442695, %v855_v11  ;;  %v2149_v16 = vpop.f32.mrb[15].mxu0  ;;  %v858_v43 = vadd.f32 %v857_v14, %v2603_v29 }
 0x42f   : > { %v2294_v17 = vpop.eup %2293 }
 0x430   : > { %v600_v19 = vadd.f32 1.0, %v2294_v17  ;;  %2303 = vpow2.f32 %v1962_v15  ;;  %v942_v25 = vpop.f32.mrb[12].mxu1 }
 0x431   : > { %2305 = vtanh.f32 %v594_v13  ;;  %v943_v28 = vadd.f32 %v942_v25, %v2595_v23  ;;  %v2156_v30 = vpop.f32.mrb[13].mxu1 }
 0x432   : > { %v2296_v31 = vpop.eup %2295  ;;  %2307 = vrcp.f32 %v600_v19  ;;  %v945_v18 = vpop.f32.mrb[14].mxu1 }
 0x433   : > { %v688_v32 = vadd.f32 1.0, %v2296_v31  ;;  %v1969_v33 = vmul.f32 -1.442695, %v943_v28  ;;  %v2157_v22 = vpop.f32.mrb[15].mxu1  ;;  %v1030_v34 = vpop.f32.mrb[16].mxu0  ;;  %2309 = vtanh.f32 %v682_v21  ;;  %v946_v50 = vadd.f32 %v945_v18, %v2599_v26 }
 0x434   : > { %v1031_v35 = vadd.f32 %v1030_v34, %v2591_v20  ;;  %v2164_v37 = vpop.f32.mrb[17].mxu0  ;;  %v2298_v27 = vpop.eup %2297 }
 0x435   : > { %2311 = vrcp.f32 %v688_v32  ;;  %v1033_v38 = vpop.f32.mrb[18].mxu0 }
 0x436   : > { %2313 = vpow2.f32 %v1969_v33  ;;  %v1976_v40 = vmul.f32 -1.442695, %v1031_v35  ;;  %v2165_v23 = vpop.f32.mrb[19].mxu0  ;;  %v1034_v52 = vadd.f32 %v1033_v38, %v2605_v36  ;;  %v1977_v38 = vld [vmem:[%s2816_s1 + $0x4] sm:$0xf] }
 0x437   : > { %v2300_v41 = vpop.eup %2299 }
 0x438   : > { %v2302_v42 = vpop.eup %2301  ;;  %2315 = vpow2.f32 %v1976_v40  ;;  %v516_v44 = vmul.f32 %v2300_v41, %v2298_v27 }
 0x439   : > { %v776_v45 = vadd.f32 1.0, %v2302_v42  ;;  %2317 = vtanh.f32 %v770_v39 }
 0x43a   : > { %v2304_v46 = vpop.eup %2303  ;;  %518 = vrot.lane.b32.xlu0 %v516_v44, %s2401_s19 }
 0x43b   : > { %v2306_v20 = vpop.eup %2305  ;;  %2319 = vrcp.f32 %v776_v45  ;;  %v864_v47 = vadd.f32 1.0, %v2304_v46 }
 0x43c   : > { %v2308_v48 = vpop.eup %2307  ;;  %2321 = vtanh.f32 %v858_v43 }
 0x43d   : > { %2323 = vrcp.f32 %v864_v47  ;;  %v604_v24 = vmul.f32 %v2308_v48, %v2306_v20  ;;  %v2310_v49 = vpop.eup %2309 }
 0x43e   : > { %2325 = vtanh.f32 %v946_v50 }
 0x43f   : > { %v2312_v51 = vpop.eup %2311  ;;  %606 = vrot.lane.b32.xlu1 %v604_v24, %s2402_s20 }
 0x440   : > { %v2314_v29 = vpop.eup %2313  ;;  %v692_v53 = vmul.f32 %v2312_v51, %v2310_v49 }
 0x441   : > { %v952_v54 = vadd.f32 1.0, %v2314_v29  ;;  %v2277_v29 = vld [vmem:[%s2460_s27 + $0x40] sm:$0xff]  }
 0x442   : > { %v2316_v55 = vpop.eup %2315  ;;  %694 = vrot.lane.b32.xlu0 %v692_v53, %s2403_s26  ;;  %v1989_v53 = vld [vmem:[%s2520_s22 + $0x90] sm:$0xff] }
 0x443   : > { %2327 = vrcp.f32 %v952_v54  ;;  %v1040_v56 = vadd.f32 1.0, %v2316_v55  ;;  %v2318_v57 = vpop.eup %2317  ;;  %v2010_v54 = vld [vmem:[%s2520_s22 + $0xc0] sm:$0xff]  ;;  %v2003_v55 = vld [vmem:[%s2520_s22 + $0xb0] sm:$0xff] }
 0x444   : > { %2329 = vtanh.f32 %v1034_v52  ;;  %v1996_v52 = vld [vmem:[%s2520_s22 + $0xa0] sm:$0xff] }
 0x445   : > { %v2320_v58 = vpop.eup %2319  ;;  %2331 = vrcp.f32 %v1040_v56  ;;  %v2024_v56 = vld [vmem:[%s2520_s22 + $0xe0] sm:$0xff] }
 0x446   : > { %v2322_v26 = vpop.eup %2321  ;;  %v780_v59 = vmul.f32 %v2320_v58, %v2318_v57  ;;  %v2017_v57 = vld [vmem:[%s2520_s22 + $0xd0] sm:$0xff]  ;;  %v1990_v58 = vld [vmem:[%s2520_s22 + $0x98] sm:$0xff] }
 0x447   : > { %v2324_v60 = vpop.eup %2323 }
 0x448   : > { %782 = vrot.lane.b32.xlu1 %v780_v59, %s2404_s30  ;;  %v868_v36 = vmul.f32 %v2324_v60, %v2322_v26  ;;  %v2326_v61 = vpop.eup %2325  ;;  %v2031_v26 = vld [vmem:[%s2520_s22 + $0xf0] sm:$0xff]  ;;  %v2004_v59 = vld [vmem:[%s2520_s22 + $0xb8] sm:$0xff]  ;;  %v1997_v60 = vld [vmem:[%s2520_s22 + $0xa8] sm:$0xff] }
 0x44a   : > { %870 = vrot.lane.b32.xlu0 %v868_v36, %s2405_s6  ;;  %v2018_v36 = vld [vmem:[%s2520_s22 + $0xd8] sm:$0xff] }
 0x44d   : > { %v2328_v62 = vpop.eup %2327 }
 0x44e   : > { %v2330_v63 = vpop.eup %2329  ;;  %v956_v1 = vmul.f32 %v2328_v62, %v2326_v61  ;;  %v2011_v61 = vld [vmem:[%s2520_s22 + $0xc8] sm:$0xff]  ;;  %v2032_v62 = vld [vmem:[%s2520_s22 + $0xf8] sm:$0xff] }
 0x44f   : > { %v2332_v2 = vpop.eup %2331 }
 0x450   : > { %958 = vrot.lane.b32.xlu1 %v956_v1, %s2406_s8  ;;  %v1044_v3 = vmul.f32 %v2332_v2, %v2330_v63  ;;  %v2025_v63 = vld [vmem:[%s2520_s22 + $0xe8] sm:$0xff]  ;;  %v1982_v2 = vld [vmem:[%s2520_s22 + $0x80] sm:$0xff] }
 0x451   : > { %v1983_v1 = vld [vmem:[%s2520_s22 + $0x88] sm:$0xff] }
 0x452   : > { %1046 = vrot.lane.b32.xlu0 %v1044_v3, %s2407_s9 }
 0x4ac   : > { %v519_v5 = vpop.permute.xlu0 %518 }
 0x4ad   : > { %v521_v6 = vadd.f32 %v519_v5, %v2462_v0 }
 0x4af   : > { %523 = vst.msk [vmem:[%s2612_s25] sm:$0xff] %vm522_vm8, %v521_v6 }
 0x4b1   : > { %v607_v7 = vpop.permute.xlu1 %606 }
 0x4b2   : > { %v609_v8 = vadd.f32 %v607_v7, %v2462_v0 }
 0x4b4   : > { %611 = vst.msk [vmem:[%s2612_s25] sm:$0xff] %vm610_vm9, %v609_v8  ;;  %v695_v9 = vpop.permute.xlu0 %694 }
 0x4b5   : > { %v697_v10 = vadd.f32 %v695_v9, %v2462_v0  ;;  %v2278_v9 = vld [vmem:[%s2460_s27 + $0x48] sm:$0xff]  }
 0x4b7   : > { %699 = vst.msk [vmem:[%s2612_s25] sm:$0xff] %vm698_vm10, %v697_v10 }
 0x4ba   : > { %v783_v11 = vpop.permute.xlu1 %782 }
 0x4bb   : > { %v785_v12 = vadd.f32 %v783_v11, %v2462_v0 }
 0x4bc   : > { %v871_v13 = vpop.permute.xlu0 %870 }
 0x4bd   : > { %787 = vst.msk [vmem:[%s2612_s25] sm:$0xff] %vm786_vm11, %v785_v12  ;;  %v873_v14 = vadd.f32 %v871_v13, %v2462_v0 }
 0x4bf   : > { %875 = vst.msk [vmem:[%s2612_s25] sm:$0xff] %vm874_vm12, %v873_v14  ;;  %v2279_v14 = vld [vmem:[%s2460_s27 + $0x50] sm:$0xff]  }
 0x4c2   : > { %v959_v15 = vpop.permute.xlu1 %958 }
 0x4c3   : > { %v961_v16 = vadd.f32 %v959_v15, %v2462_v0 }
 0x4c4   : > { %v1047_v17 = vpop.permute.xlu0 %1046 }
 0x4c5   : > { %963 = vst.msk [vmem:[%s2612_s25] sm:$0xff] %vm962_vm13, %v961_v16  ;;  %v1049_v19 = vadd.f32 %v1047_v17, %v2462_v0  ;;  %v1978_v0 = vld [vmem:[%s2817_s2 + $0x8] sm:$0xff]  ;;  %v2280_v17 = vld [vmem:[%s2460_s27 + $0x58] sm:$0xff]  }
 0x4c7   : > { %1051 = vst.msk [vmem:[%s2612_s25] sm:$0xff] %vm1050_vm14, %v1049_v19 }
 0x4ce   : > { %v2655_v21 = vld [vmem:[%s2612_s25] sm:$0xff] }
 0x4cf   : > { %vm1053_vm15 = vcmp.ge.f32.partialorder %v2655_v21, 0.0  ;;  %v1054_v25 = vmul.f32 0.2, %v2655_v21 }
 0x4d1   : > { %v1055_v28 = vsel %vm1053_vm15, %v2655_v21, %v1054_v25 }
 0x4d2   : > { %v1060_v30 = vpack.c.bf16 %v1055_v28, %v1055_v28 }
 0x4d4   : > { %1062 = vrot.lane.b32.xlu1 %v1060_v30, %s2408_s15  ;;  %v2281_v30 = vld [vmem:[%s2460_s27 + $0x60] sm:$0xff]  }
 0x546   : > { %v1063_v31 = vpop.permute.xlu1 %1062 }
 0x547   : > { %v1066_v18 = vsel %vm1064_vm0, 0, %v1063_v31 }
 0x548   : > { %v1068_v32 = vsel %vm1067_vm6, %v1066_v18, 0 }
 0x549   : > { %v1070_v33 = vrot.slane %v1068_v32, 4  ;;  %1073 = vrot.lane.b32.xlu1 %v1068_v32, %s2395_s10 }
 0x54b   : > { %1071 = vrot.lane.b32.xlu0 %v1070_v33, %s2409_s17  ;;  %v2282_v33 = vld [vmem:[%s2460_s27 + $0x68] sm:$0xff]  }
 0x54f   : > { %1080 = vperm.xlu0 %2268, %v1978_v0  }
 0x5bb   : > { %v1074_v35 = vpop.permute.xlu1 %1073 }
 0x5bc   : > { %v1087_v37 = vsel %vm283_vm4, %v1074_v35, 0  ;;  %v2283_v35 = vld [vmem:[%s2460_s27 + $0x70] sm:$0xff]  }
 0x5bd   : > { %v1072_v22 = vpop.permute.xlu0 %1071 }
 0x5be   : > { %v1076_v34 = vsel %vm283_vm4, %v1068_v32, %v1072_v22 }
 0x5bf   : > { %2167 = vmatpush3.bf16.msra.mxu1 %v1076_v34 }
 0x5c0   : > { %2168 = vmatprep.subr.bf16.mxu1 %v2390_v4 }
 0x5c3   : > { %2169 = vmatpush3.bf16.msra.mxu1 %v1087_v37 }
 0x5c4   : > { %2182 = vmatprep.subr.bf16.mxu1 %v2390_v4 }
 0x5c6   : > { %2171 = vmatmul.mubr.msk.bf16.vlgmr.msra.gmra.mrb[16].mxu1 %vm292_vm5, %v1977_v38  ;;  %v2284_v38 = vld [vmem:[%s2460_s27 + $0x78] sm:$0xff]  }
 0x5c7   : > { %2186 = vmatprep.mubr.msk.bf16.mxu1 %vm2391_vm2, %v2390_v4 }
 0x5ce   : > { %v1081_v27 = vpop.permute.xlu0 %1080 }
 0x699   : > { %v1123_v39 = vpop.f32.mrb[16].mxu1 }
 0x69a   : > { %v1124_v40 = vadd.f32 %v1123_v39, %v1081_v27  ;;  %v2172_v23 = vpop.f32.mrb[17].mxu1 }
 0x69b   : > { %v1126_v41 = vpop.f32.mrb[18].mxu1 }
 0x69c   : > { %vm1129_vm15 = vcmp.ge.f32.partialorder %v1124_v40, 0.0  ;;  %v1130_v42 = vmul.f32 0.2, %v1124_v40  ;;  %v2173_v43 = vpop.f32.mrb[19].mxu1 }
 0x69e   : > { %v1131_v44 = vsel %vm1129_vm15, %v1124_v40, %v1130_v42 }
 0x69f   : > { %v1132_v45 = vpack.c.bf16 %v1131_v44, %v1131_v44 }
 0x6a1   : > { %1134 = vrot.lane.b32.xlu1 %v1132_v45, %s2389_s28 }
 0x713   : > { %v1135_v46 = vpop.permute.xlu1 %1134 }
 0x714   : > { %v1137_v20 = vsel %vm271_vm1, 0, %v1135_v46 }
 0x715   : > { %v1138_v47 = vsel %vm275_vm3, %v1137_v20, 0 }
 0x716   : > { %v1140_v48 = vrot.slane %v1138_v47, 4  ;;  %1143 = vrot.lane.b32.xlu1 %v1138_v47, %s2393_s29 }
 0x718   : > { %1141 = vrot.lane.b32.xlu0 %v1140_v48, %s2394_s7 }
 0x788   : > { %v1144_v24 = vpop.permute.xlu1 %1143 }
 0x789   : > { %1250 = vrot.lane.b32.xlu1 %v1144_v24, %s2393_s29  ;;  %v1173_v51 = vsel %vm283_vm4, %v1144_v24, 0 }
 0x78a   : > { %v1142_v49 = vpop.permute.xlu0 %1141 }
 0x78b   : > { %v1146_v50 = vsel %vm283_vm4, %v1138_v47, %v1142_v49 }
 0x78c   : > { %1248 = vrot.lane.b32.xlu0 %v1146_v50, %s2393_s29  ;;  %2175 = vmatpush3.bf16.msra.mxu0 %v1146_v50 }
 0x78d   : > { %1422 = vrot.lane.b32.xlu1 %v1146_v50, %s2395_s10  ;;  %2176 = vmatprep.subr.bf16.mxu0 %v2390_v4 }
 0x790   : > { %1335 = vrot.lane.b32.xlu0 %v1146_v50, %s2396_s11  ;;  %2177 = vmatpush3.bf16.msra.mxu0 %v1173_v51 }
 0x791   : > { %1424 = vrot.lane.b32.xlu1 %v1144_v24, %s2395_s10  ;;  %2190 = vmatprep.subr.bf16.mxu0 %v2390_v4 }
 0x793   : > { %2179 = vmatmul.mubr.msk.bf16.vlgmr.msra.gmra.mrb[20].mxu0 %vm292_vm5, %v2277_v29 }
 0x794   : > { %1337 = vrot.lane.b32.xlu0 %v1144_v24, %s2396_s11  ;;  %2194 = vmatprep.mubr.msk.bf16.mxu0 %vm2391_vm2, %v2390_v4 }
 0x795   : > { %1596 = vrot.lane.b32.xlu1 %v1146_v50, %s2397_s12 }
 0x798   : > { %1509 = vrot.lane.b32.xlu0 %v1146_v50, %s2398_s13 }
 0x799   : > { %1598 = vrot.lane.b32.xlu1 %v1144_v24, %s2397_s12 }
 0x79c   : > { %1511 = vrot.lane.b32.xlu0 %v1144_v24, %s2398_s13 }
 0x79d   : > { %1770 = vrot.lane.b32.xlu1 %v1146_v50, %s2399_s14 }
 0x7a0   : > { %1683 = vrot.lane.b32.xlu0 %v1146_v50, %s2400_s16 }
 0x7a1   : > { %1772 = vrot.lane.b32.xlu1 %v1144_v24, %s2399_s14 }
 0x7a4   : > { %1685 = vrot.lane.b32.xlu0 %v1144_v24, %s2400_s16 }
 0x7a5   : > { %1322 = vperm.xlu1 %2267, %v1996_v52  }
 0x7a8   : > { %1234 = vperm.xlu0 %2268, %v1989_v53  }
 0x7a9   : > { %1496 = vperm.xlu1 %2267, %v2010_v54  }
 0x7ac   : > { %1409 = vperm.xlu0 %2268, %v2003_v55  }
 0x7ad   : > { %1670 = vperm.xlu1 %2267, %v2024_v56  }
 0x7b0   : > { %1583 = vperm.xlu0 %2268, %v2017_v57  }
 0x7b1   : > { %1239 = vperm.xlu1 %2267, %v1990_v58  }
 0x7b4   : > { %1757 = vperm.xlu0 %2268, %v2031_v26  }
 0x7b5   : > { %1414 = vperm.xlu1 %2267, %v2004_v59  }
 0x7b8   : > { %1327 = vperm.xlu0 %2268, %v1997_v60  }
 0x7b9   : > { %1588 = vperm.xlu1 %2267, %v2018_v36  }
 0x7bc   : > { %1501 = vperm.xlu0 %2268, %v2011_v61  }
 0x7bd   : > { %1762 = vperm.xlu1 %2267, %v2032_v62  }
 0x7c0   : > { %1675 = vperm.xlu0 %2268, %v2025_v63  }
 0x7c1   : > { %1161 = vperm.xlu1 %2267, %v1983_v1  }
 0x7c4   : > { %1156 = vperm.xlu0 %2268, %v1982_v2  }
 0x7fb   : > { %v1251_v3 = vpop.permute.xlu1 %1250 }
 0x7fc   : > { %v1257_v7 = vsel %vm283_vm4, %v1251_v3, 0 }
 0x7fe   : > { %v1249_v5 = vpop.permute.xlu0 %1248 }
 0x7ff   : > { %v1423_v6 = vpop.permute.xlu1 %1422  ;;  %2183 = vmatpush3.bf16.msra.mxu1 %v1249_v5 }
 0x800   : > { %2184 = vmatprep.subr.bf16.mxu1 %v2390_v4 }
 0x802   : > { %v1336_v8 = vpop.permute.xlu0 %1335 }
 0x803   : > { %v1425_v10 = vpop.permute.xlu1 %1424  ;;  %2185 = vmatpush3.bf16.msra.mxu1 %v1257_v7  ;;  %2191 = vmatpush3.bf16.msra.mxu0 %v1336_v8 }
 0x804   : > { %2198 = vmatprep.subr.bf16.mxu1 %v2390_v4  ;;  %2192 = vmatprep.subr.bf16.mxu0 %v2390_v4  ;;  %v1431_v15 = vsel %vm283_vm4, %v1425_v10, 0 }
 0x806   : > { %2187 = vmatmul.mubr.msk.bf16.vlgmr.msra.gmra.mrb[20].mxu1 %vm292_vm5, %v2278_v9  ;;  %v1338_v11 = vpop.permute.xlu0 %1337 }
 0x807   : > { %v1344_v12 = vsel %vm283_vm4, %v1338_v11, 0  ;;  %v1597_v13 = vpop.permute.xlu1 %1596  ;;  %2199 = vmatpush3.bf16.msra.mxu1 %v1423_v6  ;;  %2202 = vmatprep.mubr.msk.bf16.mxu1 %vm2391_vm2, %v2390_v4 }
 0x808   : > { %2193 = vmatpush3.bf16.msra.mxu0 %v1344_v12  ;;  %2200 = vmatprep.subr.bf16.mxu1 %v2390_v4 }
 0x809   : > { %2206 = vmatprep.subr.bf16.mxu0 %v2390_v4 }
 0x80a   : > { %v1510_v16 = vpop.permute.xlu0 %1509 }
 0x80b   : > { %v1599_v19 = vpop.permute.xlu1 %1598  ;;  %2195 = vmatmul.mubr.msk.bf16.vlgmr.msra.gmra.mrb[24].mxu0 %vm292_vm5, %v2279_v14  ;;  %2201 = vmatpush3.bf16.msra.mxu1 %v1431_v15 }
 0x80c   : > { %2207 = vmatpush3.bf16.msra.mxu0 %v1510_v16  ;;  %2214 = vmatprep.subr.bf16.mxu1 %v2390_v4  ;;  %v1605_v18 = vsel %vm283_vm4, %v1599_v19, 0 }
 0x80d   : > { %2208 = vmatprep.subr.bf16.mxu0 %v2390_v4  ;;  %2210 = vmatprep.mubr.msk.bf16.mxu0 %vm2391_vm2, %v2390_v4 }
 0x80e   : > { %2203 = vmatmul.mubr.msk.bf16.vlgmr.msra.gmra.mrb[24].mxu1 %vm292_vm5, %v2280_v17  ;;  %v1512_v25 = vpop.permute.xlu0 %1511 }
 0x80f   : > { %v1518_v28 = vsel %vm283_vm4, %v1512_v25, 0  ;;  %2215 = vmatpush3.bf16.msra.mxu1 %v1597_v13  ;;  %2218 = vmatprep.mubr.msk.bf16.mxu1 %vm2391_vm2, %v2390_v4  ;;  %v1771_v31 = vpop.permute.xlu1 %1770 }
 0x810   : > { %2209 = vmatpush3.bf16.msra.mxu0 %v1518_v28  ;;  %2216 = vmatprep.subr.bf16.mxu1 %v2390_v4 }
 0x811   : > { %2222 = vmatprep.subr.bf16.mxu0 %v2390_v4 }
 0x812   : > { %v1684_v32 = vpop.permute.xlu0 %1683 }
 0x813   : > { %2211 = vmatmul.mubr.msk.bf16.vlgmr.msra.gmra.mrb[28].mxu0 %vm292_vm5, %v2281_v30  ;;  %2217 = vmatpush3.bf16.msra.mxu1 %v1605_v18  ;;  %v1773_v22 = vpop.permute.xlu1 %1772 }
 0x814   : > { %2223 = vmatpush3.bf16.msra.mxu0 %v1684_v32  ;;  %2230 = vmatprep.subr.bf16.mxu1 %v2390_v4  ;;  %v1779_v37 = vsel %vm283_vm4, %v1773_v22, 0 }
 0x815   : > { %2224 = vmatprep.subr.bf16.mxu0 %v2390_v4  ;;  %2226 = vmatprep.mubr.msk.bf16.mxu0 %vm2391_vm2, %v2390_v4 }
 0x816   : > { %2219 = vmatmul.mubr.msk.bf16.vlgmr.msra.gmra.mrb[28].mxu1 %vm292_vm5, %v2282_v33  ;;  %v1686_v0 = vpop.permute.xlu0 %1685 }
 0x817   : > { %v1692_v34 = vsel %vm283_vm4, %v1686_v0, 0  ;;  %2231 = vmatpush3.bf16.msra.mxu1 %v1771_v31  ;;  %2234 = vmatprep.mubr.msk.bf16.mxu1 %vm2391_vm2, %v2390_v4 }
 0x818   : > { %2225 = vmatpush3.bf16.msra.mxu0 %v1692_v34  ;;  %2232 = vmatprep.subr.bf16.mxu1 %v2390_v4 }
 0x81b   : > { %2227 = vmatmul.mubr.msk.bf16.vlgmr.msra.gmra.mrb[32].mxu0 %vm292_vm5, %v2283_v35  ;;  %2233 = vmatpush3.bf16.msra.mxu1 %v1779_v37 }
 0x81e   : > { %2235 = vmatmul.mubr.msk.bf16.vlgmr.msra.gmra.mrb[32].mxu1 %vm292_vm5, %v2284_v38 }
 0x824   : > { %v1323_v40 = vpop.permute.xlu1 %1322 }
 0x827   : > { %v1235_v27 = vpop.permute.xlu0 %1234 }
 0x828   : > { %v1497_v41 = vpop.permute.xlu1 %1496 }
 0x82b   : > { %v1410_v39 = vpop.permute.xlu0 %1409 }
 0x82c   : > { %v2762_v43 = vpop.permute.xlu1 %1670 }
 0x82f   : > { %v1584_v23 = vpop.permute.xlu0 %1583 }
 0x830   : > { %v1240_v45 = vpop.permute.xlu1 %1239 }
 0x833   : > { %v2760_v42 = vpop.permute.xlu0 %1757 }
 0x834   : > { %v2766_v46 = vpop.permute.xlu1 %1414 }
 0x837   : > { %v1328_v44 = vpop.permute.xlu0 %1327 }
 0x838   : > { %v2770_v47 = vpop.permute.xlu1 %1588 }
 0x83b   : > { %v2764_v4 = vpop.permute.xlu0 %1501 }
 0x83c   : > { %v2772_v53 = vpop.permute.xlu1 %1762 }
 0x83f   : > { %v2768_v20 = vpop.permute.xlu0 %1675 }
 0x840   : > { %v1162_v54 = vpop.permute.xlu1 %1161 }
 0x843   : > { %v1157_v48 = vpop.permute.xlu0 %1156 }
 0x866   : > { %v1209_v24 = vpop.f32.mrb[20].mxu0 }
 0x867   : > { %v1210_v49 = vadd.f32 %v1209_v24, %v1157_v48  ;;  %v2180_v50 = vpop.f32.mrb[21].mxu0 }
 0x868   : > { %v1212_v51 = vpop.f32.mrb[22].mxu0 }
 0x869   : > { %v1986_v29 = vmul.f32 -1.442695, %v1210_v49  ;;  %v2181_v52 = vpop.f32.mrb[23].mxu0  ;;  %v1213_v55 = vadd.f32 %v1212_v51, %v1162_v54 }
 0x86b   : > { %2333 = vpow2.f32 %v1986_v29 }
 0x86c   : > { %2335 = vtanh.f32 %v1213_v55 }
 0x875   : > { %v2334_v56 = vpop.eup %2333 }
 0x876   : > { %v1219_v57 = vadd.f32 1.0, %v2334_v56  ;;  %v2336_v58 = vpop.eup %2335 }
 0x878   : > { %2337 = vrcp.f32 %v1219_v57 }
 0x882   : > { %v2338_v26 = vpop.eup %2337 }
 0x883   : > { %v1223_v59 = vmul.f32 %v2338_v26, %v2336_v58 }
 0x885   : > { %v1224_v60 = vadd.f32 %v1223_v59, %v2655_v21 }
 0x887   : > { %1225 = vst.msk [vmem:[%s2612_s25] sm:$0xff] %vm433_vm7, %v1224_v60 }
 0x8d9   : > { %v1293_v36 = vpop.f32.mrb[20].mxu1 }
 0x8da   : > { %v1294_v61 = vadd.f32 %v1293_v36, %v1235_v27  ;;  %v2188_v62 = vpop.f32.mrb[21].mxu1 }
 0x8db   : > { %v1296_v63 = vpop.f32.mrb[22].mxu1 }
 0x8dc   : > { %v1993_v1 = vmul.f32 -1.442695, %v1294_v61  ;;  %v2189_v2 = vpop.f32.mrb[23].mxu1  ;;  %v1297_v16 = vadd.f32 %v1296_v63, %v1240_v45 }
 0x8de   : > { %2339 = vpow2.f32 %v1993_v1  ;;  %v1380_v3 = vpop.f32.mrb[24].mxu0 }
 0x8df   : > { %v1381_v5 = vadd.f32 %v1380_v3, %v1323_v40  ;;  %v2196_v6 = vpop.f32.mrb[25].mxu0 }
 0x8e0   : > { %v1383_v7 = vpop.f32.mrb[26].mxu0 }
 0x8e1   : > { %v2000_v8 = vmul.f32 -1.442695, %v1381_v5  ;;  %v2197_v9 = vpop.f32.mrb[27].mxu0  ;;  %v1467_v10 = vpop.f32.mrb[24].mxu1  ;;  %v1384_v34 = vadd.f32 %v1383_v7, %v1328_v44 }
 0x8e2   : > { %v1468_v11 = vadd.f32 %v1467_v10, %v1410_v39  ;;  %v2204_v12 = vpop.f32.mrb[25].mxu1 }
 0x8e3   : > { %2341 = vpow2.f32 %v2000_v8  ;;  %v1470_v13 = vpop.f32.mrb[26].mxu1 }
 0x8e4   : > { %v2007_v14 = vmul.f32 -1.442695, %v1468_v11  ;;  %v2205_v15 = vpop.f32.mrb[27].mxu1  ;;  %v1471_v40 = vadd.f32 %v1470_v13, %v2766_v46 }
 0x8e6   : > { %2343 = vpow2.f32 %v2007_v14  ;;  %v1554_v17 = vpop.f32.mrb[28].mxu0 }
 0x8e7   : > { %v1555_v19 = vadd.f32 %v1554_v17, %v1497_v41  ;;  %v2212_v25 = vpop.f32.mrb[29].mxu0  ;;  %2345 = vtanh.f32 %v1297_v16 }
 0x8e8   : > { %v2340_v28 = vpop.eup %2339  ;;  %v1557_v30 = vpop.f32.mrb[30].mxu0 }
 0x8e9   : > { %v1303_v31 = vadd.f32 1.0, %v2340_v28  ;;  %v2014_v18 = vmul.f32 -1.442695, %v1555_v19  ;;  %v2213_v32 = vpop.f32.mrb[31].mxu0  ;;  %v1641_v33 = vpop.f32.mrb[28].mxu1  ;;  %v1558_v55 = vadd.f32 %v1557_v30, %v2764_v4 }
 0x8ea   : > { %v1642_v0 = vadd.f32 %v1641_v33, %v1584_v23  ;;  %v2220_v22 = vpop.f32.mrb[29].mxu1 }
 0x8eb   : > { %2347 = vrcp.f32 %v1303_v31  ;;  %v1644_v35 = vpop.f32.mrb[30].mxu1 }
 0x8ec   : > { %2349 = vpow2.f32 %v2014_v18  ;;  %v2021_v37 = vmul.f32 -1.442695, %v1642_v0  ;;  %v2221_v38 = vpop.f32.mrb[31].mxu1  ;;  %v1645_v26 = vadd.f32 %v1644_v35, %v2770_v47 }
 0x8ed   : > { %v2342_v27 = vpop.eup %2341 }
 0x8ee   : > { %v1390_v39 = vadd.f32 1.0, %v2342_v27  ;;  %2351 = vpow2.f32 %v2021_v37  ;;  %v1728_v41 = vpop.f32.mrb[32].mxu0 }
 0x8ef   : > { %2353 = vtanh.f32 %v1384_v34  ;;  %v1729_v45 = vadd.f32 %v1728_v41, %v2762_v43  ;;  %v2228_v48 = vpop.f32.mrb[33].mxu0 }
 0x8f0   : > { %v2344_v24 = vpop.eup %2343  ;;  %2355 = vrcp.f32 %v1390_v39  ;;  %v1731_v23 = vpop.f32.mrb[34].mxu0 }
 0x8f1   : > { %v1477_v49 = vadd.f32 1.0, %v2344_v24  ;;  %v2028_v50 = vmul.f32 -1.442695, %v1729_v45  ;;  %v2229_v44 = vpop.f32.mrb[35].mxu0  ;;  %v1815_v51 = vpop.f32.mrb[32].mxu1  ;;  %2357 = vtanh.f32 %v1471_v40  ;;  %v1732_v1 = vadd.f32 %v1731_v23, %v2768_v20 }
 0x8f2   : > { %v1816_v29 = vadd.f32 %v1815_v51, %v2760_v42  ;;  %v2236_v52 = vpop.f32.mrb[33].mxu1  ;;  %v2346_v46 = vpop.eup %2345 }
 0x8f3   : > { %2359 = vrcp.f32 %v1477_v49  ;;  %v1818_v54 = vpop.f32.mrb[34].mxu1 }
 0x8f4   : > { %2361 = vpow2.f32 %v2028_v50  ;;  %v2035_v56 = vmul.f32 -1.442695, %v1816_v29  ;;  %v2237_v43 = vpop.f32.mrb[35].mxu1  ;;  %v1819_v3 = vadd.f32 %v1818_v54, %v2772_v53 }
 0x8f5   : > { %v2348_v57 = vpop.eup %2347 }
 0x8f6   : > { %v2350_v58 = vpop.eup %2349  ;;  %2363 = vpow2.f32 %v2035_v56  ;;  %v1307_v59 = vmul.f32 %v2348_v57, %v2346_v46 }
 0x8f7   : > { %v1564_v60 = vadd.f32 1.0, %v2350_v58  ;;  %2365 = vtanh.f32 %v1558_v55 }
 0x8f8   : > { %v2352_v36 = vpop.eup %2351  ;;  %1309 = vrot.lane.b32.xlu0 %v1307_v59, %s2401_s19 }
 0x8f9   : > { %v2354_v42 = vpop.eup %2353  ;;  %2367 = vrcp.f32 %v1564_v60  ;;  %v1651_v61 = vadd.f32 1.0, %v2352_v36 }
 0x8fa   : > { %v2356_v62 = vpop.eup %2355  ;;  %2369 = vtanh.f32 %v1645_v26 }
 0x8fb   : > { %2371 = vrcp.f32 %v1651_v61  ;;  %v1394_v4 = vmul.f32 %v2356_v62, %v2354_v42  ;;  %v2358_v63 = vpop.eup %2357 }
 0x8fc   : > { %2373 = vtanh.f32 %v1732_v1 }
 0x8fd   : > { %v2360_v2 = vpop.eup %2359  ;;  %1396 = vrot.lane.b32.xlu1 %v1394_v4, %s2402_s20 }
 0x8fe   : > { %v2362_v47 = vpop.eup %2361  ;;  %v1481_v5 = vmul.f32 %v2360_v2, %v2358_v63 }
 0x8ff   : > { %v1738_v6 = vadd.f32 1.0, %v2362_v47 }
 0x900   : > { %v2364_v7 = vpop.eup %2363  ;;  %1483 = vrot.lane.b32.xlu0 %v1481_v5, %s2403_s26 }
 0x901   : > { %2375 = vrcp.f32 %v1738_v6  ;;  %v1825_v8 = vadd.f32 1.0, %v2364_v7  ;;  %v2366_v9 = vpop.eup %2365 }
 0x902   : > { %2377 = vtanh.f32 %v1819_v3 }
 0x903   : > { %v2368_v10 = vpop.eup %2367  ;;  %2379 = vrcp.f32 %v1825_v8 }
 0x904   : > { %v2370_v11 = vpop.eup %2369  ;;  %v1568_v20 = vmul.f32 %v2368_v10, %v2366_v9 }
 0x905   : > { %v2372_v12 = vpop.eup %2371 }
 0x906   : > { %1570 = vrot.lane.b32.xlu1 %v1568_v20, %s2404_s30  ;;  %v1655_v53 = vmul.f32 %v2372_v12, %v2370_v11  ;;  %v2374_v13 = vpop.eup %2373 }
 0x908   : > { %1657 = vrot.lane.b32.xlu0 %v1655_v53, %s2405_s6 }
 0x90b   : > { %v2376_v14 = vpop.eup %2375 }
 0x90c   : > { %v2378_v15 = vpop.eup %2377  ;;  %v1742_v16 = vmul.f32 %v2376_v14, %v2374_v13 }
 0x90d   : > { %v2380_v17 = vpop.eup %2379 }
 0x90e   : > { %1744 = vrot.lane.b32.xlu1 %v1742_v16, %s2406_s8  ;;  %v1829_v19 = vmul.f32 %v2380_v17, %v2378_v15 }
 0x910   : > { %1831 = vrot.lane.b32.xlu0 %v1829_v19, %s2407_s9 }
 0x96a   : > { %v1310_v25 = vpop.permute.xlu0 %1309 }
 0x96b   : > { %v1312_v28 = vadd.f32 %v1310_v25, %v2655_v21 }
 0x96d   : > { %1313 = vst.msk [vmem:[%s2612_s25] sm:$0xff] %vm522_vm8, %v1312_v28 }
 0x96f   : > { %v1397_v30 = vpop.permute.xlu1 %1396 }
 0x970   : > { %v1399_v31 = vadd.f32 %v1397_v30, %v2655_v21 }
 0x972   : > { %1400 = vst.msk [vmem:[%s2612_s25] sm:$0xff] %vm610_vm9, %v1399_v31  ;;  %v1484_v18 = vpop.permute.xlu0 %1483 }
 0x973   : > { %v1486_v32 = vadd.f32 %v1484_v18, %v2655_v21 }
 0x975   : > { %1487 = vst.msk [vmem:[%s2612_s25] sm:$0xff] %vm698_vm10, %v1486_v32 }
 0x978   : > { %v1571_v33 = vpop.permute.xlu1 %1570 }
 0x979   : > { %v1573_v0 = vadd.f32 %v1571_v33, %v2655_v21 }
 0x97a   : > { %v1658_v22 = vpop.permute.xlu0 %1657 }
 0x97b   : > { %1574 = vst.msk [vmem:[%s2612_s25] sm:$0xff] %vm786_vm11, %v1573_v0  ;;  %v1660_v34 = vadd.f32 %v1658_v22, %v2655_v21 }
 0x97d   : > { %1661 = vst.msk [vmem:[%s2612_s25] sm:$0xff] %vm874_vm12, %v1660_v34 }
 0x980   : > { %v1745_v35 = vpop.permute.xlu1 %1744 }
 0x981   : > { %v1747_v37 = vadd.f32 %v1745_v35, %v2655_v21 }
 0x982   : > { %v1832_v38 = vpop.permute.xlu0 %1831 }
 0x983   : > { %1748 = vst.msk [vmem:[%s2612_s25] sm:$0xff] %vm962_vm13, %v1747_v37  ;;  %v1834_v27 = vadd.f32 %v1832_v38, %v2655_v21 }
 0x985   : > { %1835 = vst.msk [vmem:[%s2612_s25] sm:$0xff] %vm1050_vm14, %v1834_v27 }
 0x986 PF: > { %s15_s18 = sadd.s32 1, %s2387_s18  }
 0x987   : > { %p12_p4 = scmp.ge.s32.totalorder %s15_s18, 4  }
 0x989   :  { %14 = sbr.rel (!%p12_p4) target bundleno = 1 (0x1), region = 108 }

// kernel: _lambda_.23
= control target key start
LH: loop header
LB: loop body
LE: loop exit
PB: predicated region body
PF: predicated region fallthrough
CT: control target
= control target key end

     0   :  { %s740_s0 = inlined_call_operand.vmem [shape: f32[2,8,32], index: 0, kind: input, shape index: {}]   ;;  %s741_s1 = inlined_call_operand.vmem [shape: bf16[1,56], index: 1, kind: input, shape index: {}]   ;;  %s742_s2 = inlined_call_operand.<no memory space> [shape: f32[1,1], index: 2, kind: input, shape index: {}]   ;;  %s743_s3 = inlined_call_operand.hbm [shape: f32[2,1,32], index: 3, kind: output, shape index: {}]  }
   0x1   :  { %v8_v0 = vstv %s742_s2 }
   0x2   :  { %9 = vst [vmem:[#allocation2] sm:$0x1] %v8_v0 }
   0x3   :  { %10 = vsyncpa [#allocation4], 0 }
   0x4   :  { %12 = vsyncpa [#allocation4 + $0x1], 0  ;;  %s625_s14 = smov 0   ;;  %s627_s15 = smov 0  }
   0x5   :  { %s629_s16 = smov 0   ;;  %s631_s17 = smov 0  }
   0x6   :  { %s633_s18 = smov 0   ;;  %s635_s19 = smov 0  }
   0x7 LB: > { %s413_s2 = sadd.s32 4294967295, %s589_s19   ;;  %s414_s20 = sadd.s32 4294967294, %s589_s19   ;;  %s589_s19 = sphi %s635_s19, %s18_s19   ;;  %s585_s18 = sphi %s633_s18, %s750_s18   ;;  %s581_s17 = sphi %s631_s17, %s749_s17   ;;  %s577_s16 = sphi %s629_s16, %s748_s16   ;;  %s573_s15 = sphi %s627_s15, %s747_s15   ;;  %s569_s14 = sphi %s625_s14, %s746_s14  }
   0x8   : > { %s30_s21 = sadd.s32 1, %s585_s18  ;;  %s117_s22 = sadd.s32 1, %s577_s16 }
   0x9   : > { %p32_p0 = scmp.ge.s32.totalorder %s30_s21, 2  ;;  %p127_p1 = scmp.ne.s32.totalorder %s577_s16, %s573_s15 }
   0xa   : > { %p128_p2 = scmp.eq.s32.totalorder %s413_s2, 1  ;;  %p133_p3 = scmp.ne.s32.totalorder %s573_s15, %s569_s14 }
   0xb   : > { %s752_s21 = smov (%p32_p0, %s30_s21), 0  ;;  %p134_p5 = scmp.eq.s32.totalorder %s414_s20, 1 }
   0xc   : > { %p665_p4 = por %p128_p2, %p127_p1  ;;  %s112_s24 = ssub.s32 %s585_s18, %s752_s21 }
   0xd   : > { %p419_p6 = scmp.ge.s32.totalorder %s589_s19, 1  ;;  %p115_p7 = scmp.eq.s32.totalorder %s112_s24, 0 }
   0xe   : > { %p672_p8 = por %p134_p5, %p133_p3  ;;  %p171_p9 = scmp.lt.s32.totalorder %s589_s19, 3 }
   0xf   : > { %s678_s26 = scalar_select %p115_p7, %s577_s16, %s117_s22  }
  0x10   : > { %p172_p10 = pnand %p419_p6, %p171_p9 }
  0x11   : > { %p199_p11 = scmp.lt.s32.totalorder (!%p172_p10), %s581_s17, 1  ;;  %s591_s5 = smov (!%p172_p10), 3   ;;  %v592_v5 = vmov (!%p172_p10), 0.0   ;;  %vm220_vm1 = vcmask (!%p172_p10), 23552   ;;  %vm224_vm2 = vcmask (!%p172_p10), 285696   ;;  %vm595_vm3 = vmmov (!%p172_p10), 0  }
  0x12   : > { %175 = sbr.rel (%p172_p10) target bundleno = 524 (0x20c), region = 32  ;;  %430 = vmatprep.subr.bf16.mxu0 (!%p172_p10), %v592_v5  ;;  %s593_s6 = smov (!%p172_p10), 126   ;;  %438 = vmatprep.mubr.msk.bf16.mxu0 (!%p172_p10), %vm595_vm3, %v592_v5  ;;  %v598_v10 = vmov (!%p172_p10), 0   ;;  %v215_v11 = vld [vmem:[#allocation2] sm:$0x1] (!%p172_p10)  ;;  %vm240_vm4 = vcmask (!%p172_p10), 1043456   ;;  %v257_v23 = vlaneseq (!%p172_p10) }
  0x13   : > { %s594_s7 = smov (!%p172_p10), 127   ;;  %s596_s8 = smov (!%p172_p10), 125   ;;  %507 = vset.pattern.permute.xlu1 (!%p172_p10), %v598_v10  ;;  %508 = vset.pattern.permute.xlu0 (!%p172_p10), %v598_v10  ;;  %v214_v22 = vld [vmem:[%s741_s1] sm:$0x1] (!%p172_p10)  ;;  %vm261_vm5 = vcmask (!%p172_p10), 457728   ;;  %vm309_vm6 = vcmask (!%p172_p10), 253952  }
  0x14   : > { %s597_s9 = smov (!%p172_p10), 124   ;;  %s599_s10 = smov (!%p172_p10), 123   ;;  %v258_v24 = vshrl.u32 (!%p172_p10), %v257_v23, 7 }
  0x15   : > { %s600_s11 = smov (!%p172_p10), 122   ;;  %s197_s2 = sand.u32 (!%p172_p10), 1, %s573_s15  }
  0x16   : > { %v259_v25 = vsub.s32 (!%p172_p10), 0, %v258_v24  ;;  %s422_s20 = sshll.u32 (!%p172_p10), %s581_s17, 4  ;;  %s198_s22 = scalar_lea.vmem (!%p172_p10), [#allocation3], %s197_s2 }
  0x17   : > { %s325_s24 = sshll.u32 (!%p172_p10), %s198_s22, 4  ;;  %s693_s29 = scalar_lea.hbm (!%p172_p10), %s743_s3, %s422_s20  ;;  %s695_s24 = int_to_ptr.vmem [resolvable:$true] %s325_s24 }
  0x18   : > { %s312_s30 = scalar_lea.sflag (!%p172_p10), [#allocation4], %s197_s2 }
  0x19   : > { %s200_s27 = scalar_select %p199_p11, %s581_s17, 1 }
  0x1a   : > { %s601_s17 = smov [#allocation3]  }
  0x1b   : > { %s420_s28 = sshll.u32 %s200_s27, 3 }
  0x1c   : > { %s202_s4 = scalar_lea.vmem %s740_s0, %s420_s28 }
  0x1d   : > { %v210_v1 = vld [vmem:[%s202_s4] sm:$0xff]  ;;  %s511_s4 = scalar_lea.vmem %s695_s24, 16 }
  0x1e   : > { %vm211_vm0 = vcmp.ge.f32.partialorder %v210_v1, 0.0  ;;  %v212_v2 = vmul.f32 0.1, %v210_v1  ;;  %p512_p12 = scmp.ne.s32.totalorder %s695_s24, %s511_s4 }
  0x20   : > { %v213_v3 = vsel %vm211_vm0, %v210_v1, %v212_v2  ;;  %p513_p13 = pnand %p512_p12, %p665_p4 }
  0x21   : > { %v216_v4 = vpack.c.bf16 %v213_v3, %v213_v3 }
  0x22   : > { %p514_p0 = pneg %p513_p13 }
  0x23   : > { %218 = vrot.lane.b32.xlu0 %v216_v4, %s591_s5  ;;  %s515_s5 = sshll.u32 %s601_s17, 4  ;;  %s516_s5 = int_to_ptr.vmem [resolvable:$false] %s515_s5 }
  0x24   : > { %p518_p1 = scmp.lt.s32.totalorder %s695_s24, %s516_s5 }
  0x95   : > { %v219_v6 = vpop.permute.xlu0 %218 }
  0x96   : > { %v223_v7 = vsel %vm220_vm1, 0, %v219_v6 }
  0x97   : > { %v225_v8 = vsel %vm224_vm2, %v223_v7, 0 }
  0x98   : > { %230 = vrot.lane.b32.xlu1 %v225_v8, %s593_s6  ;;  %v227_v9 = vrot.slane %v225_v8, 4  ;;  %s517_s6 = scalar_lea.vmem %s516_s5, 32 }
  0x99   : > { %p519_p2 = scmp.lt.s32.totalorder %s517_s6, %s511_s4 }
  0x9a   : > { %228 = vrot.lane.b32.xlu0 %v227_v9, %s594_s7 }
  0x9b   : > { %p520_p3 = por %p519_p2, %p518_p1 }
  0x9c   : > { %232 = vrot.lane.b32.xlu1 %v227_v9, %s596_s8 }
  0x9d   : > { %p521_p5 = pnand %p520_p3, %p514_p0 }
  0x9e   : > { %234 = vrot.lane.b32.xlu0 %v225_v8, %s597_s9 }
  0xa0   : > { %236 = vrot.lane.b32.xlu1 %v227_v9, %s599_s10 }
  0xa2   : > { %238 = vrot.lane.b32.xlu0 %v225_v8, %s600_s11 }
  0xa4   : > { %254 = vperm.xlu1 %507, %v215_v11  }
 0x10a   : > { %v231_v12 = vpop.permute.xlu1 %230 }
 0x10c   : > { %v229_v13 = vpop.permute.xlu0 %228 }
 0x10d   : > { %v242_v14 = vsel %vm240_vm4, %v225_v8, %v229_v13 }
 0x10e   : > { %v233_v15 = vpop.permute.xlu1 %232  ;;  %431 = vmatpush3.bf16.msra.mxu0 %v242_v14 }
 0x10f   : > { %432 = vmatprep.subr.bf16.mxu0 %v592_v5  ;;  %v246_v17 = vsel %vm240_vm4, %v231_v12, %v233_v15 }
 0x110   : > { %v235_v16 = vpop.permute.xlu0 %234 }
 0x112   : > { %v237_v18 = vpop.permute.xlu1 %236  ;;  %433 = vmatpush3.bf16.msra.mxu0 %v246_v17 }
 0x113   : > { %434 = vmatprep.subr.bf16.mxu0 %v592_v5  ;;  %v250_v19 = vsel %vm240_vm4, %v235_v16, %v237_v18 }
 0x114   : > { %v239_v20 = vpop.permute.xlu0 %238 }
 0x115   : > { %v266_v21 = vsel %vm240_vm4, %v239_v20, 0 }
 0x116   : > { %435 = vmatpush3.bf16.msra.mxu0 %v250_v19 }
 0x117   : > { %436 = vmatprep.subr.bf16.mxu0 %v592_v5 }
 0x11a   : > { %437 = vmatpush3.bf16.msra.mxu0 %v266_v21 }
 0x11d   : > { %439 = vmatmul.mubr.msk.bf16.vlgmr.msra.gmra.mrb[0].mxu0 %vm261_vm5, %v214_v22 }
 0x123   : > { %v255_v26 = vpop.permute.xlu1 %254 }
 0x124   : > { %v260_v27 = vrot.slane %v255_v26, %v259_v25 }
 0x1f0   : > { %v302_v28 = vpop.f32.mrb[0].mxu0 }
 0x1f1   : > { %v303_v29 = vadd.f32 %v302_v28, %v260_v27  ;;  %v440_v30 = vpop.f32.mrb[1].mxu0 }
 0x1f2   : > { %v305_v31 = vpop.f32.mrb[2].mxu0 }
 0x1f3   : > { %509 = vtanh.f32 %v303_v29  ;;  %v441_v32 = vpop.f32.mrb[3].mxu0 }
 0x1fd   : > { %v510_v33 = vpop.eup %509 }
 0x1fe   : > { %310 = vst.msk [vmem:[%s198_s22] sm:$0x1] %vm309_vm6, %v510_v33 }
 0x1ff   : > { %524 = shalt.err (!%p521_p5)
}
 0x200   : > { %s525_s7 = scalar_lea.hbm %s693_s29, 16  ;;  %s529_s10 = scalar_lea.hbm %s743_s3, 32 }
 0x201   : > { %p526_p6 = scmp.ne.s32.totalorder %s693_s29, %s525_s7  ;;  %p530_p10 = scmp.lt.u32.totalorder %s693_s29, %s743_s3 }
 0x202   : > { %p531_p11 = scmp.lt.u32.totalorder %s529_s10, %s525_s7  ;;  %p533_p13 = scmp.lt.u32.totalorder %s525_s7, %s693_s29 }
 0x203   : > { %p527_p7 = pnand %p526_p6, %p665_p4 }
 0x204   : > { %p532_p12 = por %p531_p11, %p530_p10 }
 0x205   : > { %p528_p9 = pneg %p527_p7 }
 0x206   : > { %p534_p0 = por %p533_p13, %p532_p12 }
 0x208   : > { %p535_p1 = pnand %p534_p0, %p528_p9 }
 0x20a   : > { %538 = shalt.err (!%p535_p1)
}
 0x20b   : > { %442 = dma.vmem_to_hbm [thread:$0]  (%p665_p4), %s695_s24, 16, %s693_s29, %s312_s30  }
 0x20c PF: > { %p448_p2 = scmp.ge.s32.totalorder %s589_s19, 2  ;;  %s337_s13 = sand.u32 1, %s569_s14  }
 0x20d   : > { %s338_s2 = scalar_lea.sflag [#allocation4], %s337_s13 }
 0x20e   : > { %p445_p3 = pnand %p448_p2, %p672_p8 }
 0x210   : > { %564 = dma.done.wait (!%p445_p3), %s338_s2, 16  }
 0x211   : > { %566 = vsyncadd (!%p445_p3), %s338_s2, 4294967280  ;;  %s18_s19 = sadd.s32 1, %s589_s19   ;;  %s746_s14 = smov %s573_s15 }
 0x212   : > { %p15_p5 = scmp.ge.s32.totalorder %s18_s19, 4   ;;  %s747_s15 = smov %s577_s16 }
 0x213   : > { %s748_s16 = smov %s678_s26  ;;  %s749_s17 = smov %s585_s18 }
 0x214   : > { %s750_s18 = smov %s752_s21  ;;  %17 = sbr.rel (!%p15_p5) target bundleno = 7 (0x7), region = 73 }
 0x21b   :  { %342 = vsyncpa [#allocation4], 1 }
 0x21c   :  { %344 = vsyncpa [#allocation4 + $0x1], 1 }

// kernel: _lambda_.22
= control target key start
LH: loop header
LB: loop body
LE: loop exit
PB: predicated region body
PF: predicated region fallthrough
CT: control target
= control target key end

     0   :  { %s2444_s18 = smov 0   ;;  %s2818_s0 = inlined_call_operand.vmem [shape: f32[2,8,32], index: 0, kind: input, shape index: {}]   ;;  %s2819_s1 = inlined_call_operand.vmem [shape: bf16[2,8,24], index: 1, kind: input, shape index: {}]   ;;  %s2820_s2 = inlined_call_operand.vmem [shape: f32[2,8,1], index: 2, kind: input, shape index: {}]   ;;  %s2821_s3 = inlined_call_operand.vmem [shape: bf16[2,2,8,16,24], index: 3, kind: input, shape index: {}]   ;;  %s2822_s4 = inlined_call_operand.vmem [shape: f32[2,2,8,16,1], index: 4, kind: input, shape index: {}]   ;;  %s2823_s5 = inlined_call_operand.vmem [shape: f32[2,8,32], index: 5, kind: output, shape index: {}]  }
   0x1 LB: > { %s1913_s19 = sadd.s32 4294967295, %s2389_s18   ;;  %p1917_p0 = scmp.ge.s32.totalorder %s2389_s18, 1  ;;  %s2389_s18 = sphi %s2444_s18, %s15_s18  }
   0x2   : > { %p206_p1 = scmp.lt.s32.totalorder %s2389_s18, 3 }
   0x4   : > { %p207_p2 = pnand %p1917_p0, %p206_p1 }
   0x5   : > { %p242_p3 = scmp.lt.s32.totalorder (!%p207_p2), %s1913_s19, 1  ;;  %s2391_s28 = smov (!%p207_p2), 1   ;;  %v2392_v4 = vmov (!%p207_p2), 0.0   ;;  %vm271_vm1 = vcmask (!%p207_p2), 7168   ;;  %vm2393_vm2 = vmmov (!%p207_p2), 0   ;;  %vm275_vm3 = vcmask (!%p207_p2), 269312  }
   0x6   : > { %210 = sbr.rel (%p207_p2) target bundleno = 2438 (0x986), region = 40  ;;  %2094 = vmatprep.subr.bf16.mxu0 (!%p207_p2), %v2392_v4  ;;  %2102 = vmatprep.subr.bf16.mxu1 (!%p207_p2), %v2392_v4  ;;  %v2394_v7 = vmov (!%p207_p2), 0   ;;  %s2395_s29 = smov (!%p207_p2), 126   ;;  %v266_v10 = vld [vmem:[%s2820_s2] sm:$0xff] (!%p207_p2)  ;;  %vm283_vm4 = vcmask (!%p207_p2), 1043456   ;;  %vm292_vm5 = vcmask (!%p207_p2), 195584  }
   0x7   : > { %2098 = vmatprep.mubr.msk.bf16.mxu0 (!%p207_p2), %vm2393_vm2, %v2392_v4  ;;  %2106 = vmatprep.mubr.msk.bf16.mxu1 (!%p207_p2), %vm2393_vm2, %v2392_v4  ;;  %s2396_s7 = smov (!%p207_p2), 127   ;;  %v265_v15 = vld [vmem:[%s2819_s1] sm:$0xf] (!%p207_p2)  ;;  %s2397_s10 = smov (!%p207_p2), 124   ;;  %vm433_vm7 = vcmask (!%p207_p2), 31744   ;;  %vm522_vm8 = vcmask (!%p207_p2), 64544  }
   0x8   : > { %2269 = vset.pattern.permute.xlu1 (!%p207_p2), %v2394_v7  ;;  %2270 = vset.pattern.permute.xlu0 (!%p207_p2), %v2394_v7  ;;  %s2398_s11 = smov (!%p207_p2), 116   ;;  %s2399_s12 = smov (!%p207_p2), 120   ;;  %vm610_vm9 = vcmask (!%p207_p2), 97344   ;;  %vm698_vm10 = vcmask (!%p207_p2), 130144   ;;  %vm786_vm11 = vcmask (!%p207_p2), 162944   ;;  %vm874_vm12 = vcmask (!%p207_p2), 195744  }
   0x9   : > { %s2400_s13 = smov (!%p207_p2), 108   ;;  %s2401_s14 = smov (!%p207_p2), 112   ;;  %vm962_vm13 = vcmask (!%p207_p2), 228544   ;;  %vm1050_vm14 = vcmask (!%p207_p2), 261344  }
   0xa   : > { %s2402_s15 = smov (!%p207_p2), 100   ;;  %s2403_s17 = smov (!%p207_p2), 104  }
   0xb   : > { %s2406_s30 = smov (!%p207_p2), 12   ;;  %s2407_s6 = smov (!%p207_p2), 16  }
   0xc   : > { %s2408_s8 = smov (!%p207_p2), 20   ;;  %s2825_s9 = smov (!%p207_p2), 24  }
   0xd   : > { %s2829_s19 = smov (!%p242_p3, %s1913_s19), 1  ;;  %s2412_s22 = smov 122  }
   0xe   : > { %s1918_s20 = sshll.u32 %s2829_s19, 3  ;;  %s2038_s21 = sshll.u32 %s2829_s19, 7 }
   0xf   : > { %s245_s24 = scalar_lea.vmem %s2818_s0, %s1918_s20  ;;  %s2464_s27 = scalar_lea.vmem %s2821_s3, %s2038_s21 }
  0x10   : > { %v2466_v0 = vld [vmem:[%s245_s24] sm:$0xff]  ;;  %s2039_s16 = sshll.u32 %s2829_s19, 8  ;;  %v2272_v55 = vld [vmem:[%s2464_s27 + $0x8] sm:$0xff]   ;;  %v2273_v60 = vld [vmem:[%s2464_s27 + $0x10] sm:$0xff]   ;;  %s2616_s26 = scalar_lea.vmem %s2823_s5, %s1918_s20 }
  0x11   : > { %vm262_vm0 = vcmp.ge.f32.partialorder %v2466_v0, 0.0  ;;  %v263_v1 = vmul.f32 0.2, %v2466_v0  ;;  %v2271_v33 = vld [vmem:[%s2464_s27] sm:$0xff]   ;;  %s2524_s23 = scalar_lea.vmem %s2822_s4, %s2039_s16  ;;  %v2274_v63 = vld [vmem:[%s2464_s27 + $0x18] sm:$0xff]   ;;  %s2404_s19 = smov 4  }
  0x12   : > { %v1937_v34 = vld [vmem:[%s2524_s23 + $0x20] sm:$0xff]  ;;  %v1930_v35 = vld [vmem:[%s2524_s23 + $0x10] sm:$0xff]  ;;  %v1938_v40 = vld [vmem:[%s2524_s23 + $0x28] sm:$0xff]  ;;  %s2405_s20 = smov 8   ;;  %s2824_s16 = smov 28  }
  0x13   : > { %v264_v2 = vsel %vm262_vm0, %v2466_v0, %v263_v1  ;;  %v1958_v36 = vld [vmem:[%s2524_s23 + $0x50] sm:$0xff]  ;;  %v1951_v39 = vld [vmem:[%s2524_s23 + $0x40] sm:$0xff]  ;;  %v1952_v42 = vld [vmem:[%s2524_s23 + $0x48] sm:$0xff]  ;;  %s2411_s21 = smov 3   ;;  %vm1064_vm0 = vcmask 23552   ;;  %s2413_s24 = smov 125  }
  0x14   : > { %v267_v3 = vpack.c.bf16 %v264_v2, %v264_v2  ;;  %v1944_v37 = vld [vmem:[%s2524_s23 + $0x30] sm:$0xff]  ;;  %v1965_v41 = vld [vmem:[%s2524_s23 + $0x60] sm:$0xff]  ;;  %v1931_v43 = vld [vmem:[%s2524_s23 + $0x18] sm:$0xff] }
  0x15   : > { %v1972_v38 = vld [vmem:[%s2524_s23 + $0x70] sm:$0xff]  ;;  %v1966_v44 = vld [vmem:[%s2524_s23 + $0x68] sm:$0xff]  ;;  %v1945_v45 = vld [vmem:[%s2524_s23 + $0x38] sm:$0xff] }
  0x16   : > { %269 = vrot.lane.b32.xlu0 %v267_v3, %s2391_s28  ;;  %v360_v46 = vld [vmem:[%s2524_s23] sm:$0xff]  ;;  %v1959_v47 = vld [vmem:[%s2524_s23 + $0x58] sm:$0xff]  ;;  %v361_v49 = vld [vmem:[%s2524_s23 + $0x8] sm:$0xff] }
  0x17   : > { %v1973_v48 = vld [vmem:[%s2524_s23 + $0x78] sm:$0xff] }
  0x88   : > { %v270_v5 = vpop.permute.xlu0 %269 }
  0x89   : > { %v274_v6 = vsel %vm271_vm1, 0, %v270_v5  ;;  %v2275_v5 = vld [vmem:[%s2464_s27 + $0x20] sm:$0xff]  }
  0x8a   : > { %v276_v8 = vsel %vm275_vm3, %v274_v6, 0 }
  0x8b   : > { %v278_v9 = vrot.slane %v276_v8, 4  ;;  %281 = vrot.lane.b32.xlu1 %v276_v8, %s2395_s29 }
  0x8d   : > { %279 = vrot.lane.b32.xlu0 %v278_v9, %s2396_s7  ;;  %v2276_v9 = vld [vmem:[%s2464_s27 + $0x28] sm:$0xff]  }
  0x8f   : > { %289 = vperm.xlu1 %2269, %v266_v10  }
  0xfd   : > { %v282_v13 = vpop.permute.xlu1 %281 }
  0xfe   : > { %v297_v14 = vsel %vm283_vm4, %v282_v13, 0  ;;  %v2277_v13 = vld [vmem:[%s2464_s27 + $0x30] sm:$0xff]  }
  0xff   : > { %v280_v11 = vpop.permute.xlu0 %279 }
 0x100   : > { %v285_v12 = vsel %vm283_vm4, %v276_v8, %v280_v11 }
 0x101   : > { %2095 = vmatpush3.bf16.msra.mxu0 %v285_v12 }
 0x102   : > { %2096 = vmatprep.subr.bf16.mxu0 %v2392_v4 }
 0x105   : > { %2097 = vmatpush3.bf16.msra.mxu0 %v297_v14 }
 0x106   : > { %2110 = vmatprep.subr.bf16.mxu0 %v2392_v4 }
 0x108   : > { %2099 = vmatmul.mubr.msk.bf16.vlgmr.msra.gmra.mrb[0].mxu0 %vm292_vm5, %v265_v15  ;;  %v2278_v15 = vld [vmem:[%s2464_s27 + $0x38] sm:$0xff]  }
 0x109   : > { %2114 = vmatprep.mubr.msk.bf16.mxu0 %vm2393_vm2, %v2392_v4 }
 0x10e   : > { %v290_v16 = vpop.permute.xlu1 %289 }
 0x1db   : > { %v333_v17 = vpop.f32.mrb[0].mxu0 }
 0x1dc   : > { %v334_v18 = vadd.f32 %v333_v17, %v290_v16  ;;  %v2100_v19 = vpop.f32.mrb[1].mxu0 }
 0x1dd   : > { %v336_v20 = vpop.f32.mrb[2].mxu0 }
 0x1de   : > { %vm339_vm6 = vcmp.ge.f32.partialorder %v334_v18, 0.0  ;;  %v340_v21 = vmul.f32 0.2, %v334_v18  ;;  %v2101_v22 = vpop.f32.mrb[3].mxu0 }
 0x1e0   : > { %v341_v23 = vsel %vm339_vm6, %v334_v18, %v340_v21  ;;  %vm1067_vm6 = vcmask 285696  }
 0x1e1   : > { %v342_v24 = vpack.c.bf16 %v341_v23, %v341_v23 }
 0x1e3   : > { %344 = vrot.lane.b32.xlu0 %v342_v24, %s2391_s28 }
 0x255   : > { %v345_v25 = vpop.permute.xlu0 %344 }
 0x256   : > { %v347_v26 = vsel %vm271_vm1, 0, %v345_v25 }
 0x257   : > { %v348_v27 = vsel %vm275_vm3, %v347_v26, 0 }
 0x258   : > { %v350_v28 = vrot.slane %v348_v27, 4  ;;  %353 = vrot.lane.b32.xlu0 %v348_v27, %s2395_s29 }
 0x25a   : > { %351 = vrot.lane.b32.xlu1 %v350_v28, %s2396_s7 }
 0x2ca   : > { %v354_v29 = vpop.permute.xlu0 %353 }
 0x2cb   : > { %459 = vrot.lane.b32.xlu0 %v354_v29, %s2397_s10  ;;  %v381_v32 = vsel %vm283_vm4, %v354_v29, 0 }
 0x2cc   : > { %v352_v30 = vpop.permute.xlu1 %351 }
 0x2cd   : > { %v356_v31 = vsel %vm283_vm4, %v348_v27, %v352_v30 }
 0x2ce   : > { %457 = vrot.lane.b32.xlu1 %v356_v31, %s2397_s10  ;;  %2103 = vmatpush3.bf16.msra.mxu1 %v356_v31 }
 0x2cf   : > { %633 = vrot.lane.b32.xlu0 %v356_v31, %s2398_s11  ;;  %2104 = vmatprep.subr.bf16.mxu1 %v2392_v4 }
 0x2d2   : > { %545 = vrot.lane.b32.xlu1 %v356_v31, %s2399_s12  ;;  %2105 = vmatpush3.bf16.msra.mxu1 %v381_v32 }
 0x2d3   : > { %635 = vrot.lane.b32.xlu0 %v354_v29, %s2398_s11  ;;  %2118 = vmatprep.subr.bf16.mxu1 %v2392_v4 }
 0x2d5   : > { %2107 = vmatmul.mubr.msk.bf16.vlgmr.msra.gmra.mrb[0].mxu1 %vm292_vm5, %v2271_v33 }
 0x2d6   : > { %547 = vrot.lane.b32.xlu1 %v354_v29, %s2399_s12  ;;  %2122 = vmatprep.mubr.msk.bf16.mxu1 %vm2393_vm2, %v2392_v4 }
 0x2d7   : > { %809 = vrot.lane.b32.xlu0 %v356_v31, %s2400_s13 }
 0x2da   : > { %721 = vrot.lane.b32.xlu1 %v356_v31, %s2401_s14 }
 0x2db   : > { %811 = vrot.lane.b32.xlu0 %v354_v29, %s2400_s13 }
 0x2de   : > { %723 = vrot.lane.b32.xlu1 %v354_v29, %s2401_s14 }
 0x2df   : > { %985 = vrot.lane.b32.xlu0 %v356_v31, %s2402_s15 }
 0x2e2   : > { %897 = vrot.lane.b32.xlu1 %v356_v31, %s2403_s17 }
 0x2e3   : > { %987 = vrot.lane.b32.xlu0 %v354_v29, %s2402_s15 }
 0x2e6   : > { %899 = vrot.lane.b32.xlu1 %v354_v29, %s2403_s17 }
 0x2e7   : > { %532 = vperm.xlu0 %2270, %v1937_v34  }
 0x2ea   : > { %443 = vperm.xlu1 %2269, %v1930_v35  }
 0x2eb   : > { %796 = vperm.xlu0 %2270, %v1958_v36  }
 0x2ee   : > { %620 = vperm.xlu1 %2269, %v1944_v37  }
 0x2ef   : > { %972 = vperm.xlu0 %2270, %v1972_v38  }
 0x2f2   : > { %708 = vperm.xlu1 %2269, %v1951_v39  }
 0x2f3   : > { %537 = vperm.xlu0 %2270, %v1938_v40  }
 0x2f6   : > { %884 = vperm.xlu1 %2269, %v1965_v41  }
 0x2f7   : > { %713 = vperm.xlu0 %2270, %v1952_v42  }
 0x2fa   : > { %448 = vperm.xlu1 %2269, %v1931_v43  }
 0x2fb   : > { %889 = vperm.xlu0 %2270, %v1966_v44  }
 0x2fe   : > { %625 = vperm.xlu1 %2269, %v1945_v45  }
 0x2ff   : > { %364 = vperm.xlu0 %2270, %v360_v46  }
 0x302   : > { %801 = vperm.xlu1 %2269, %v1959_v47  }
 0x306   : > { %977 = vperm.xlu1 %2269, %v1973_v48  }
 0x30a   : > { %369 = vperm.xlu1 %2269, %v361_v49  }
 0x33d   : > { %v460_v50 = vpop.permute.xlu0 %459 }
 0x33e   : > { %v466_v53 = vsel %vm283_vm4, %v460_v50, 0 }
 0x340   : > { %v458_v51 = vpop.permute.xlu1 %457 }
 0x341   : > { %v634_v52 = vpop.permute.xlu0 %633  ;;  %2111 = vmatpush3.bf16.msra.mxu0 %v458_v51 }
 0x342   : > { %2112 = vmatprep.subr.bf16.mxu0 %v2392_v4 }
 0x344   : > { %v546_v54 = vpop.permute.xlu1 %545 }
 0x345   : > { %v636_v56 = vpop.permute.xlu0 %635  ;;  %2113 = vmatpush3.bf16.msra.mxu0 %v466_v53  ;;  %2119 = vmatpush3.bf16.msra.mxu1 %v546_v54 }
 0x346   : > { %2126 = vmatprep.subr.bf16.mxu0 %v2392_v4  ;;  %2120 = vmatprep.subr.bf16.mxu1 %v2392_v4  ;;  %v642_v61 = vsel %vm283_vm4, %v636_v56, 0 }
 0x348   : > { %2115 = vmatmul.mubr.msk.bf16.vlgmr.msra.gmra.mrb[4].mxu0 %vm292_vm5, %v2272_v55  ;;  %v548_v57 = vpop.permute.xlu1 %547 }
 0x349   : > { %v554_v58 = vsel %vm283_vm4, %v548_v57, 0  ;;  %v810_v59 = vpop.permute.xlu0 %809  ;;  %2127 = vmatpush3.bf16.msra.mxu0 %v634_v52  ;;  %2130 = vmatprep.mubr.msk.bf16.mxu0 %vm2393_vm2, %v2392_v4 }
 0x34a   : > { %2121 = vmatpush3.bf16.msra.mxu1 %v554_v58  ;;  %2128 = vmatprep.subr.bf16.mxu0 %v2392_v4 }
 0x34b   : > { %2134 = vmatprep.subr.bf16.mxu1 %v2392_v4 }
 0x34c   : > { %v722_v62 = vpop.permute.xlu1 %721 }
 0x34d   : > { %v812_v1 = vpop.permute.xlu0 %811  ;;  %2123 = vmatmul.mubr.msk.bf16.vlgmr.msra.gmra.mrb[4].mxu1 %vm292_vm5, %v2273_v60  ;;  %2129 = vmatpush3.bf16.msra.mxu0 %v642_v61 }
 0x34e   : > { %2135 = vmatpush3.bf16.msra.mxu1 %v722_v62  ;;  %2142 = vmatprep.subr.bf16.mxu0 %v2392_v4  ;;  %v818_v7 = vsel %vm283_vm4, %v812_v1, 0 }
 0x34f   : > { %2136 = vmatprep.subr.bf16.mxu1 %v2392_v4  ;;  %2138 = vmatprep.mubr.msk.bf16.mxu1 %vm2393_vm2, %v2392_v4 }
 0x350   : > { %2131 = vmatmul.mubr.msk.bf16.vlgmr.msra.gmra.mrb[8].mxu0 %vm292_vm5, %v2274_v63  ;;  %v724_v2 = vpop.permute.xlu1 %723 }
 0x351   : > { %v730_v3 = vsel %vm283_vm4, %v724_v2, 0  ;;  %2143 = vmatpush3.bf16.msra.mxu0 %v810_v59  ;;  %2146 = vmatprep.mubr.msk.bf16.mxu0 %vm2393_vm2, %v2392_v4  ;;  %v986_v6 = vpop.permute.xlu0 %985 }
 0x352   : > { %2137 = vmatpush3.bf16.msra.mxu1 %v730_v3  ;;  %2144 = vmatprep.subr.bf16.mxu0 %v2392_v4 }
 0x353   : > { %2150 = vmatprep.subr.bf16.mxu1 %v2392_v4 }
 0x354   : > { %v898_v8 = vpop.permute.xlu1 %897 }
 0x355   : > { %2139 = vmatmul.mubr.msk.bf16.vlgmr.msra.gmra.mrb[8].mxu1 %vm292_vm5, %v2275_v5  ;;  %2145 = vmatpush3.bf16.msra.mxu0 %v818_v7  ;;  %v988_v11 = vpop.permute.xlu0 %987 }
 0x356   : > { %2151 = vmatpush3.bf16.msra.mxu1 %v898_v8  ;;  %2158 = vmatprep.subr.bf16.mxu0 %v2392_v4  ;;  %v994_v14 = vsel %vm283_vm4, %v988_v11, 0 }
 0x357   : > { %2152 = vmatprep.subr.bf16.mxu1 %v2392_v4  ;;  %2154 = vmatprep.mubr.msk.bf16.mxu1 %vm2393_vm2, %v2392_v4 }
 0x358   : > { %2147 = vmatmul.mubr.msk.bf16.vlgmr.msra.gmra.mrb[12].mxu0 %vm292_vm5, %v2276_v9  ;;  %v900_v10 = vpop.permute.xlu1 %899 }
 0x359   : > { %v906_v12 = vsel %vm283_vm4, %v900_v10, 0  ;;  %2159 = vmatpush3.bf16.msra.mxu0 %v986_v6  ;;  %2162 = vmatprep.mubr.msk.bf16.mxu0 %vm2393_vm2, %v2392_v4 }
 0x35a   : > { %2153 = vmatpush3.bf16.msra.mxu1 %v906_v12  ;;  %2160 = vmatprep.subr.bf16.mxu0 %v2392_v4 }
 0x35b   : > { %2166 = vmatprep.subr.bf16.mxu1 %v2392_v4 }
 0x35d   : > { %2155 = vmatmul.mubr.msk.bf16.vlgmr.msra.gmra.mrb[12].mxu1 %vm292_vm5, %v2277_v13  ;;  %2161 = vmatpush3.bf16.msra.mxu0 %v994_v14 }
 0x35e   : > { %2170 = vmatprep.mubr.msk.bf16.mxu1 %vm2393_vm2, %v2392_v4  ;;  %2174 = vmatprep.subr.bf16.mxu0 %v2392_v4 }
 0x360   : > { %2163 = vmatmul.mubr.msk.bf16.vlgmr.msra.gmra.mrb[16].mxu0 %vm292_vm5, %v2278_v15 }
 0x361   : > { %2178 = vmatprep.mubr.msk.bf16.mxu0 %vm2393_vm2, %v2392_v4 }
 0x366   : > { %v533_v16 = vpop.permute.xlu0 %532 }
 0x369   : > { %v444_v17 = vpop.permute.xlu1 %443 }
 0x36a   : > { %v2593_v18 = vpop.permute.xlu0 %796 }
 0x36d   : > { %v621_v19 = vpop.permute.xlu1 %620 }
 0x36e   : > { %v2595_v20 = vpop.permute.xlu0 %972 }
 0x371   : > { %v709_v21 = vpop.permute.xlu1 %708 }
 0x372   : > { %v2597_v22 = vpop.permute.xlu0 %537 }
 0x375   : > { %v2599_v23 = vpop.permute.xlu1 %884 }
 0x376   : > { %v2601_v24 = vpop.permute.xlu0 %713 }
 0x379   : > { %v449_v25 = vpop.permute.xlu1 %448 }
 0x37a   : > { %v2603_v26 = vpop.permute.xlu0 %889 }
 0x37d   : > { %v2605_v27 = vpop.permute.xlu1 %625 }
 0x37e   : > { %v365_v28 = vpop.permute.xlu0 %364 }
 0x381   : > { %v2607_v29 = vpop.permute.xlu1 %801 }
 0x385   : > { %v2609_v36 = vpop.permute.xlu1 %977 }
 0x389   : > { %v370_v37 = vpop.permute.xlu1 %369 }
 0x3a8   : > { %v417_v30 = vpop.f32.mrb[0].mxu1 }
 0x3a9   : > { %v418_v31 = vadd.f32 %v417_v30, %v365_v28  ;;  %v2108_v32 = vpop.f32.mrb[1].mxu1 }
 0x3aa   : > { %v420_v33 = vpop.f32.mrb[2].mxu1 }
 0x3ab   : > { %v1927_v34 = vmul.f32 -1.442695, %v418_v31  ;;  %v2109_v35 = vpop.f32.mrb[3].mxu1  ;;  %v421_v38 = vadd.f32 %v420_v33, %v370_v37 }
 0x3ad   : > { %2287 = vpow2.f32 %v1927_v34 }
 0x3ae   : > { %2289 = vtanh.f32 %v421_v38 }
 0x3b7   : > { %v2288_v39 = vpop.eup %2287 }
 0x3b8   : > { %v427_v40 = vadd.f32 1.0, %v2288_v39  ;;  %v2290_v41 = vpop.eup %2289 }
 0x3ba   : > { %2291 = vrcp.f32 %v427_v40 }
 0x3c4   : > { %v2292_v42 = vpop.eup %2291 }
 0x3c5   : > { %v431_v43 = vmul.f32 %v2292_v42, %v2290_v41 }
 0x3c7   : > { %v432_v44 = vadd.f32 %v431_v43, %v2466_v0 }
 0x3c9   : > { %434 = vst.msk [vmem:[%s2616_s26] sm:$0xff] %vm433_vm7, %v432_v44 }
 0x41b   : > { %v502_v45 = vpop.f32.mrb[4].mxu0 }
 0x41c   : > { %v503_v46 = vadd.f32 %v502_v45, %v444_v17  ;;  %v2116_v47 = vpop.f32.mrb[5].mxu0 }
 0x41d   : > { %v505_v48 = vpop.f32.mrb[6].mxu0 }
 0x41e   : > { %v1934_v49 = vmul.f32 -1.442695, %v503_v46  ;;  %v2117_v50 = vpop.f32.mrb[7].mxu0  ;;  %v506_v63 = vadd.f32 %v505_v48, %v449_v25 }
 0x420   : > { %2293 = vpow2.f32 %v1934_v49  ;;  %v590_v51 = vpop.f32.mrb[4].mxu1 }
 0x421   : > { %v591_v52 = vadd.f32 %v590_v51, %v533_v16  ;;  %v2124_v53 = vpop.f32.mrb[5].mxu1 }
 0x422   : > { %v593_v54 = vpop.f32.mrb[6].mxu1 }
 0x423   : > { %v1941_v55 = vmul.f32 -1.442695, %v591_v52  ;;  %v2125_v56 = vpop.f32.mrb[7].mxu1  ;;  %v678_v57 = vpop.f32.mrb[8].mxu0  ;;  %v594_v13 = vadd.f32 %v593_v54, %v2597_v22 }
 0x424   : > { %v679_v58 = vadd.f32 %v678_v57, %v621_v19  ;;  %v2132_v59 = vpop.f32.mrb[9].mxu0 }
 0x425   : > { %2295 = vpow2.f32 %v1941_v55  ;;  %v681_v60 = vpop.f32.mrb[10].mxu0 }
 0x426   : > { %v1948_v61 = vmul.f32 -1.442695, %v679_v58  ;;  %v2133_v62 = vpop.f32.mrb[11].mxu0 }
 0x428   : > { %2297 = vpow2.f32 %v1948_v61  ;;  %v766_v1 = vpop.f32.mrb[8].mxu1 }
 0x429   : > { %v767_v2 = vadd.f32 %v766_v1, %v709_v21  ;;  %v2140_v3 = vpop.f32.mrb[9].mxu1  ;;  %2299 = vtanh.f32 %v506_v63  ;;  %v682_v21 = vadd.f32 %v681_v60, %v2605_v27 }
 0x42a   : > { %v2294_v5 = vpop.eup %2293  ;;  %v769_v6 = vpop.f32.mrb[10].mxu1 }
 0x42b   : > { %v512_v7 = vadd.f32 1.0, %v2294_v5  ;;  %v1955_v8 = vmul.f32 -1.442695, %v767_v2  ;;  %v2141_v9 = vpop.f32.mrb[11].mxu1  ;;  %v854_v10 = vpop.f32.mrb[12].mxu0  ;;  %v770_v39 = vadd.f32 %v769_v6, %v2601_v24 }
 0x42c   : > { %v855_v11 = vadd.f32 %v854_v10, %v2593_v18  ;;  %v2148_v12 = vpop.f32.mrb[13].mxu0 }
 0x42d   : > { %2301 = vrcp.f32 %v512_v7  ;;  %v857_v14 = vpop.f32.mrb[14].mxu0 }
 0x42e   : > { %2303 = vpow2.f32 %v1955_v8  ;;  %v1962_v15 = vmul.f32 -1.442695, %v855_v11  ;;  %v2149_v16 = vpop.f32.mrb[15].mxu0  ;;  %v858_v43 = vadd.f32 %v857_v14, %v2607_v29 }
 0x42f   : > { %v2296_v17 = vpop.eup %2295 }
 0x430   : > { %v600_v19 = vadd.f32 1.0, %v2296_v17  ;;  %2305 = vpow2.f32 %v1962_v15  ;;  %v942_v25 = vpop.f32.mrb[12].mxu1 }
 0x431   : > { %2307 = vtanh.f32 %v594_v13  ;;  %v943_v28 = vadd.f32 %v942_v25, %v2599_v23  ;;  %v2156_v30 = vpop.f32.mrb[13].mxu1 }
 0x432   : > { %v2298_v31 = vpop.eup %2297  ;;  %2309 = vrcp.f32 %v600_v19  ;;  %v945_v18 = vpop.f32.mrb[14].mxu1 }
 0x433   : > { %v688_v32 = vadd.f32 1.0, %v2298_v31  ;;  %v1969_v33 = vmul.f32 -1.442695, %v943_v28  ;;  %v2157_v22 = vpop.f32.mrb[15].mxu1  ;;  %v1030_v34 = vpop.f32.mrb[16].mxu0  ;;  %2311 = vtanh.f32 %v682_v21  ;;  %v946_v50 = vadd.f32 %v945_v18, %v2603_v26 }
 0x434   : > { %v1031_v35 = vadd.f32 %v1030_v34, %v2595_v20  ;;  %v2164_v37 = vpop.f32.mrb[17].mxu0  ;;  %v2300_v27 = vpop.eup %2299 }
 0x435   : > { %2313 = vrcp.f32 %v688_v32  ;;  %v1033_v38 = vpop.f32.mrb[18].mxu0 }
 0x436   : > { %2315 = vpow2.f32 %v1969_v33  ;;  %v1976_v40 = vmul.f32 -1.442695, %v1031_v35  ;;  %v2165_v23 = vpop.f32.mrb[19].mxu0  ;;  %v1034_v52 = vadd.f32 %v1033_v38, %v2609_v36  ;;  %v1977_v38 = vld [vmem:[%s2819_s1 + $0x4] sm:$0xf] }
 0x437   : > { %v2302_v41 = vpop.eup %2301 }
 0x438   : > { %v2304_v42 = vpop.eup %2303  ;;  %2317 = vpow2.f32 %v1976_v40  ;;  %v516_v44 = vmul.f32 %v2302_v41, %v2300_v27 }
 0x439   : > { %v776_v45 = vadd.f32 1.0, %v2304_v42  ;;  %2319 = vtanh.f32 %v770_v39 }
 0x43a   : > { %v2306_v46 = vpop.eup %2305  ;;  %518 = vrot.lane.b32.xlu0 %v516_v44, %s2404_s19 }
 0x43b   : > { %v2308_v20 = vpop.eup %2307  ;;  %2321 = vrcp.f32 %v776_v45  ;;  %v864_v47 = vadd.f32 1.0, %v2306_v46 }
 0x43c   : > { %v2310_v48 = vpop.eup %2309  ;;  %2323 = vtanh.f32 %v858_v43 }
 0x43d   : > { %2325 = vrcp.f32 %v864_v47  ;;  %v604_v24 = vmul.f32 %v2310_v48, %v2308_v20  ;;  %v2312_v49 = vpop.eup %2311 }
 0x43e   : > { %2327 = vtanh.f32 %v946_v50 }
 0x43f   : > { %v2314_v51 = vpop.eup %2313  ;;  %606 = vrot.lane.b32.xlu1 %v604_v24, %s2405_s20 }
 0x440   : > { %v2316_v29 = vpop.eup %2315  ;;  %v692_v53 = vmul.f32 %v2314_v51, %v2312_v49 }
 0x441   : > { %v952_v54 = vadd.f32 1.0, %v2316_v29  ;;  %v2279_v29 = vld [vmem:[%s2464_s27 + $0x40] sm:$0xff]  }
 0x442   : > { %v2318_v55 = vpop.eup %2317  ;;  %694 = vrot.lane.b32.xlu0 %v692_v53, %s2406_s30  ;;  %v1989_v53 = vld [vmem:[%s2524_s23 + $0x90] sm:$0xff] }
 0x443   : > { %2329 = vrcp.f32 %v952_v54  ;;  %v1040_v56 = vadd.f32 1.0, %v2318_v55  ;;  %v2320_v57 = vpop.eup %2319  ;;  %v2010_v54 = vld [vmem:[%s2524_s23 + $0xc0] sm:$0xff]  ;;  %v2003_v55 = vld [vmem:[%s2524_s23 + $0xb0] sm:$0xff] }
 0x444   : > { %2331 = vtanh.f32 %v1034_v52  ;;  %v1996_v52 = vld [vmem:[%s2524_s23 + $0xa0] sm:$0xff] }
 0x445   : > { %v2322_v58 = vpop.eup %2321  ;;  %2333 = vrcp.f32 %v1040_v56  ;;  %v2024_v56 = vld [vmem:[%s2524_s23 + $0xe0] sm:$0xff] }
 0x446   : > { %v2324_v26 = vpop.eup %2323  ;;  %v780_v59 = vmul.f32 %v2322_v58, %v2320_v57  ;;  %v2017_v57 = vld [vmem:[%s2524_s23 + $0xd0] sm:$0xff]  ;;  %v1990_v58 = vld [vmem:[%s2524_s23 + $0x98] sm:$0xff] }
 0x447   : > { %v2326_v60 = vpop.eup %2325 }
 0x448   : > { %782 = vrot.lane.b32.xlu1 %v780_v59, %s2407_s6  ;;  %v868_v36 = vmul.f32 %v2326_v60, %v2324_v26  ;;  %v2328_v61 = vpop.eup %2327  ;;  %v2031_v26 = vld [vmem:[%s2524_s23 + $0xf0] sm:$0xff]  ;;  %v2004_v59 = vld [vmem:[%s2524_s23 + $0xb8] sm:$0xff]  ;;  %v1997_v60 = vld [vmem:[%s2524_s23 + $0xa8] sm:$0xff] }
 0x44a   : > { %870 = vrot.lane.b32.xlu0 %v868_v36, %s2408_s8  ;;  %v2018_v36 = vld [vmem:[%s2524_s23 + $0xd8] sm:$0xff] }
 0x44d   : > { %v2330_v62 = vpop.eup %2329 }
 0x44e   : > { %v2332_v63 = vpop.eup %2331  ;;  %v956_v1 = vmul.f32 %v2330_v62, %v2328_v61  ;;  %v2011_v61 = vld [vmem:[%s2524_s23 + $0xc8] sm:$0xff]  ;;  %v2032_v62 = vld [vmem:[%s2524_s23 + $0xf8] sm:$0xff] }
 0x44f   : > { %v2334_v2 = vpop.eup %2333 }
 0x450   : > { %958 = vrot.lane.b32.xlu1 %v956_v1, %s2825_s9  ;;  %v1044_v3 = vmul.f32 %v2334_v2, %v2332_v63  ;;  %v2025_v63 = vld [vmem:[%s2524_s23 + $0xe8] sm:$0xff]  ;;  %v1982_v2 = vld [vmem:[%s2524_s23 + $0x80] sm:$0xff] }
 0x451   : > { %v1983_v1 = vld [vmem:[%s2524_s23 + $0x88] sm:$0xff] }
 0x452   : > { %1046 = vrot.lane.b32.xlu0 %v1044_v3, %s2824_s16 }
 0x4ac   : > { %v519_v5 = vpop.permute.xlu0 %518 }
 0x4ad   : > { %v521_v6 = vadd.f32 %v519_v5, %v2466_v0 }
 0x4af   : > { %523 = vst.msk [vmem:[%s2616_s26] sm:$0xff] %vm522_vm8, %v521_v6 }
 0x4b1   : > { %v607_v7 = vpop.permute.xlu1 %606 }
 0x4b2   : > { %v609_v8 = vadd.f32 %v607_v7, %v2466_v0 }
 0x4b4   : > { %611 = vst.msk [vmem:[%s2616_s26] sm:$0xff] %vm610_vm9, %v609_v8  ;;  %v695_v9 = vpop.permute.xlu0 %694 }
 0x4b5   : > { %v697_v10 = vadd.f32 %v695_v9, %v2466_v0  ;;  %v2280_v9 = vld [vmem:[%s2464_s27 + $0x48] sm:$0xff]  }
 0x4b7   : > { %699 = vst.msk [vmem:[%s2616_s26] sm:$0xff] %vm698_vm10, %v697_v10 }
 0x4ba   : > { %v783_v11 = vpop.permute.xlu1 %782 }
 0x4bb   : > { %v785_v12 = vadd.f32 %v783_v11, %v2466_v0 }
 0x4bc   : > { %v871_v13 = vpop.permute.xlu0 %870 }
 0x4bd   : > { %787 = vst.msk [vmem:[%s2616_s26] sm:$0xff] %vm786_vm11, %v785_v12  ;;  %v873_v14 = vadd.f32 %v871_v13, %v2466_v0 }
 0x4bf   : > { %875 = vst.msk [vmem:[%s2616_s26] sm:$0xff] %vm874_vm12, %v873_v14  ;;  %v2281_v14 = vld [vmem:[%s2464_s27 + $0x50] sm:$0xff]  }
 0x4c2   : > { %v959_v15 = vpop.permute.xlu1 %958 }
 0x4c3   : > { %v961_v16 = vadd.f32 %v959_v15, %v2466_v0 }
 0x4c4   : > { %v1047_v17 = vpop.permute.xlu0 %1046 }
 0x4c5   : > { %963 = vst.msk [vmem:[%s2616_s26] sm:$0xff] %vm962_vm13, %v961_v16  ;;  %v1049_v19 = vadd.f32 %v1047_v17, %v2466_v0  ;;  %v1978_v0 = vld [vmem:[%s2820_s2 + $0x8] sm:$0xff]  ;;  %v2282_v17 = vld [vmem:[%s2464_s27 + $0x58] sm:$0xff]  }
 0x4c7   : > { %1051 = vst.msk [vmem:[%s2616_s26] sm:$0xff] %vm1050_vm14, %v1049_v19 }
 0x4ce   : > { %v2659_v21 = vld [vmem:[%s2616_s26] sm:$0xff] }
 0x4cf   : > { %vm1053_vm15 = vcmp.ge.f32.partialorder %v2659_v21, 0.0  ;;  %v1054_v25 = vmul.f32 0.2, %v2659_v21 }
 0x4d1   : > { %v1055_v28 = vsel %vm1053_vm15, %v2659_v21, %v1054_v25 }
 0x4d2   : > { %v1060_v30 = vpack.c.bf16 %v1055_v28, %v1055_v28 }
 0x4d4   : > { %1062 = vrot.lane.b32.xlu1 %v1060_v30, %s2411_s21  ;;  %v2283_v30 = vld [vmem:[%s2464_s27 + $0x60] sm:$0xff]  }
 0x546   : > { %v1063_v31 = vpop.permute.xlu1 %1062 }
 0x547   : > { %v1066_v18 = vsel %vm1064_vm0, 0, %v1063_v31 }
 0x548   : > { %v1068_v32 = vsel %vm1067_vm6, %v1066_v18, 0 }
 0x549   : > { %v1070_v33 = vrot.slane %v1068_v32, 4  ;;  %1073 = vrot.lane.b32.xlu1 %v1068_v32, %s2412_s22 }
 0x54b   : > { %1071 = vrot.lane.b32.xlu0 %v1070_v33, %s2413_s24  ;;  %v2284_v33 = vld [vmem:[%s2464_s27 + $0x68] sm:$0xff]  }
 0x54f   : > { %1080 = vperm.xlu0 %2270, %v1978_v0  }
 0x5bb   : > { %v1074_v35 = vpop.permute.xlu1 %1073 }
 0x5bc   : > { %v1087_v37 = vsel %vm283_vm4, %v1074_v35, 0  ;;  %v2285_v35 = vld [vmem:[%s2464_s27 + $0x70] sm:$0xff]  }
 0x5bd   : > { %v1072_v22 = vpop.permute.xlu0 %1071 }
 0x5be   : > { %v1076_v34 = vsel %vm283_vm4, %v1068_v32, %v1072_v22 }
 0x5bf   : > { %2167 = vmatpush3.bf16.msra.mxu1 %v1076_v34 }
 0x5c0   : > { %2168 = vmatprep.subr.bf16.mxu1 %v2392_v4 }
 0x5c3   : > { %2169 = vmatpush3.bf16.msra.mxu1 %v1087_v37 }
 0x5c4   : > { %2182 = vmatprep.subr.bf16.mxu1 %v2392_v4 }
 0x5c6   : > { %2171 = vmatmul.mubr.msk.bf16.vlgmr.msra.gmra.mrb[16].mxu1 %vm292_vm5, %v1977_v38  ;;  %v2286_v38 = vld [vmem:[%s2464_s27 + $0x78] sm:$0xff]   ;;  %s2826_s27 = smov 24  }
 0x5c7   : > { %2186 = vmatprep.mubr.msk.bf16.mxu1 %vm2393_vm2, %v2392_v4 }
 0x5ce   : > { %v1081_v27 = vpop.permute.xlu0 %1080 }
 0x699   : > { %v1123_v39 = vpop.f32.mrb[16].mxu1 }
 0x69a   : > { %v1124_v40 = vadd.f32 %v1123_v39, %v1081_v27  ;;  %v2172_v23 = vpop.f32.mrb[17].mxu1 }
 0x69b   : > { %v1126_v41 = vpop.f32.mrb[18].mxu1 }
 0x69c   : > { %vm1129_vm15 = vcmp.ge.f32.partialorder %v1124_v40, 0.0  ;;  %v1130_v42 = vmul.f32 0.2, %v1124_v40  ;;  %v2173_v43 = vpop.f32.mrb[19].mxu1 }
 0x69e   : > { %v1131_v44 = vsel %vm1129_vm15, %v1124_v40, %v1130_v42 }
 0x69f   : > { %v1132_v45 = vpack.c.bf16 %v1131_v44, %v1131_v44 }
 0x6a1   : > { %1134 = vrot.lane.b32.xlu1 %v1132_v45, %s2391_s28  ;;  %s2827_s28 = smov 28  }
 0x713   : > { %v1135_v46 = vpop.permute.xlu1 %1134 }
 0x714   : > { %v1137_v20 = vsel %vm271_vm1, 0, %v1135_v46 }
 0x715   : > { %v1138_v47 = vsel %vm275_vm3, %v1137_v20, 0 }
 0x716   : > { %v1140_v48 = vrot.slane %v1138_v47, 4  ;;  %1143 = vrot.lane.b32.xlu1 %v1138_v47, %s2395_s29 }
 0x718   : > { %1141 = vrot.lane.b32.xlu0 %v1140_v48, %s2396_s7 }
 0x788   : > { %v1144_v24 = vpop.permute.xlu1 %1143 }
 0x789   : > { %1250 = vrot.lane.b32.xlu1 %v1144_v24, %s2397_s10  ;;  %v1173_v51 = vsel %vm283_vm4, %v1144_v24, 0 }
 0x78a   : > { %v1142_v49 = vpop.permute.xlu0 %1141 }
 0x78b   : > { %v1146_v50 = vsel %vm283_vm4, %v1138_v47, %v1142_v49 }
 0x78c   : > { %1248 = vrot.lane.b32.xlu0 %v1146_v50, %s2397_s10  ;;  %2175 = vmatpush3.bf16.msra.mxu0 %v1146_v50 }
 0x78d   : > { %1422 = vrot.lane.b32.xlu1 %v1146_v50, %s2398_s11  ;;  %2176 = vmatprep.subr.bf16.mxu0 %v2392_v4 }
 0x790   : > { %1335 = vrot.lane.b32.xlu0 %v1146_v50, %s2399_s12  ;;  %2177 = vmatpush3.bf16.msra.mxu0 %v1173_v51 }
 0x791   : > { %1424 = vrot.lane.b32.xlu1 %v1144_v24, %s2398_s11  ;;  %2190 = vmatprep.subr.bf16.mxu0 %v2392_v4 }
 0x793   : > { %2179 = vmatmul.mubr.msk.bf16.vlgmr.msra.gmra.mrb[20].mxu0 %vm292_vm5, %v2279_v29 }
 0x794   : > { %1337 = vrot.lane.b32.xlu0 %v1144_v24, %s2399_s12  ;;  %2194 = vmatprep.mubr.msk.bf16.mxu0 %vm2393_vm2, %v2392_v4 }
 0x795   : > { %1596 = vrot.lane.b32.xlu1 %v1146_v50, %s2400_s13 }
 0x798   : > { %1509 = vrot.lane.b32.xlu0 %v1146_v50, %s2401_s14 }
 0x799   : > { %1598 = vrot.lane.b32.xlu1 %v1144_v24, %s2400_s13 }
 0x79c   : > { %1511 = vrot.lane.b32.xlu0 %v1144_v24, %s2401_s14 }
 0x79d   : > { %1770 = vrot.lane.b32.xlu1 %v1146_v50, %s2402_s15 }
 0x7a0   : > { %1683 = vrot.lane.b32.xlu0 %v1146_v50, %s2403_s17 }
 0x7a1   : > { %1772 = vrot.lane.b32.xlu1 %v1144_v24, %s2402_s15 }
 0x7a4   : > { %1685 = vrot.lane.b32.xlu0 %v1144_v24, %s2403_s17 }
 0x7a5   : > { %1322 = vperm.xlu1 %2269, %v1996_v52  }
 0x7a8   : > { %1234 = vperm.xlu0 %2270, %v1989_v53  }
 0x7a9   : > { %1496 = vperm.xlu1 %2269, %v2010_v54  }
 0x7ac   : > { %1409 = vperm.xlu0 %2270, %v2003_v55  }
 0x7ad   : > { %1670 = vperm.xlu1 %2269, %v2024_v56  }
 0x7b0   : > { %1583 = vperm.xlu0 %2270, %v2017_v57  }
 0x7b1   : > { %1239 = vperm.xlu1 %2269, %v1990_v58  }
 0x7b4   : > { %1757 = vperm.xlu0 %2270, %v2031_v26  }
 0x7b5   : > { %1414 = vperm.xlu1 %2269, %v2004_v59  }
 0x7b8   : > { %1327 = vperm.xlu0 %2270, %v1997_v60  }
 0x7b9   : > { %1588 = vperm.xlu1 %2269, %v2018_v36  }
 0x7bc   : > { %1501 = vperm.xlu0 %2270, %v2011_v61  }
 0x7bd   : > { %1762 = vperm.xlu1 %2269, %v2032_v62  }
 0x7c0   : > { %1675 = vperm.xlu0 %2270, %v2025_v63  }
 0x7c1   : > { %1161 = vperm.xlu1 %2269, %v1983_v1  }
 0x7c4   : > { %1156 = vperm.xlu0 %2270, %v1982_v2  }
 0x7fb   : > { %v1251_v3 = vpop.permute.xlu1 %1250 }
 0x7fc   : > { %v1257_v7 = vsel %vm283_vm4, %v1251_v3, 0 }
 0x7fe   : > { %v1249_v5 = vpop.permute.xlu0 %1248 }
 0x7ff   : > { %v1423_v6 = vpop.permute.xlu1 %1422  ;;  %2183 = vmatpush3.bf16.msra.mxu1 %v1249_v5 }
 0x800   : > { %2184 = vmatprep.subr.bf16.mxu1 %v2392_v4 }
 0x802   : > { %v1336_v8 = vpop.permute.xlu0 %1335 }
 0x803   : > { %v1425_v10 = vpop.permute.xlu1 %1424  ;;  %2185 = vmatpush3.bf16.msra.mxu1 %v1257_v7  ;;  %2191 = vmatpush3.bf16.msra.mxu0 %v1336_v8 }
 0x804   : > { %2198 = vmatprep.subr.bf16.mxu1 %v2392_v4  ;;  %2192 = vmatprep.subr.bf16.mxu0 %v2392_v4  ;;  %v1431_v15 = vsel %vm283_vm4, %v1425_v10, 0 }
 0x806   : > { %2187 = vmatmul.mubr.msk.bf16.vlgmr.msra.gmra.mrb[20].mxu1 %vm292_vm5, %v2280_v9  ;;  %v1338_v11 = vpop.permute.xlu0 %1337 }
 0x807   : > { %v1344_v12 = vsel %vm283_vm4, %v1338_v11, 0  ;;  %v1597_v13 = vpop.permute.xlu1 %1596  ;;  %2199 = vmatpush3.bf16.msra.mxu1 %v1423_v6  ;;  %2202 = vmatprep.mubr.msk.bf16.mxu1 %vm2393_vm2, %v2392_v4 }
 0x808   : > { %2193 = vmatpush3.bf16.msra.mxu0 %v1344_v12  ;;  %2200 = vmatprep.subr.bf16.mxu1 %v2392_v4 }
 0x809   : > { %2206 = vmatprep.subr.bf16.mxu0 %v2392_v4 }
 0x80a   : > { %v1510_v16 = vpop.permute.xlu0 %1509 }
 0x80b   : > { %v1599_v19 = vpop.permute.xlu1 %1598  ;;  %2195 = vmatmul.mubr.msk.bf16.vlgmr.msra.gmra.mrb[24].mxu0 %vm292_vm5, %v2281_v14  ;;  %2201 = vmatpush3.bf16.msra.mxu1 %v1431_v15 }
 0x80c   : > { %2207 = vmatpush3.bf16.msra.mxu0 %v1510_v16  ;;  %2214 = vmatprep.subr.bf16.mxu1 %v2392_v4  ;;  %v1605_v18 = vsel %vm283_vm4, %v1599_v19, 0 }
 0x80d   : > { %2208 = vmatprep.subr.bf16.mxu0 %v2392_v4  ;;  %2210 = vmatprep.mubr.msk.bf16.mxu0 %vm2393_vm2, %v2392_v4 }
 0x80e   : > { %2203 = vmatmul.mubr.msk.bf16.vlgmr.msra.gmra.mrb[24].mxu1 %vm292_vm5, %v2282_v17  ;;  %v1512_v25 = vpop.permute.xlu0 %1511 }
 0x80f   : > { %v1518_v28 = vsel %vm283_vm4, %v1512_v25, 0  ;;  %2215 = vmatpush3.bf16.msra.mxu1 %v1597_v13  ;;  %2218 = vmatprep.mubr.msk.bf16.mxu1 %vm2393_vm2, %v2392_v4  ;;  %v1771_v31 = vpop.permute.xlu1 %1770 }
 0x810   : > { %2209 = vmatpush3.bf16.msra.mxu0 %v1518_v28  ;;  %2216 = vmatprep.subr.bf16.mxu1 %v2392_v4 }
 0x811   : > { %2222 = vmatprep.subr.bf16.mxu0 %v2392_v4 }
 0x812   : > { %v1684_v32 = vpop.permute.xlu0 %1683 }
 0x813   : > { %2211 = vmatmul.mubr.msk.bf16.vlgmr.msra.gmra.mrb[28].mxu0 %vm292_vm5, %v2283_v30  ;;  %2217 = vmatpush3.bf16.msra.mxu1 %v1605_v18  ;;  %v1773_v22 = vpop.permute.xlu1 %1772 }
 0x814   : > { %2223 = vmatpush3.bf16.msra.mxu0 %v1684_v32  ;;  %2230 = vmatprep.subr.bf16.mxu1 %v2392_v4  ;;  %v1779_v37 = vsel %vm283_vm4, %v1773_v22, 0 }
 0x815   : > { %2224 = vmatprep.subr.bf16.mxu0 %v2392_v4  ;;  %2226 = vmatprep.mubr.msk.bf16.mxu0 %vm2393_vm2, %v2392_v4 }
 0x816   : > { %2219 = vmatmul.mubr.msk.bf16.vlgmr.msra.gmra.mrb[28].mxu1 %vm292_vm5, %v2284_v33  ;;  %v1686_v0 = vpop.permute.xlu0 %1685 }
 0x817   : > { %v1692_v34 = vsel %vm283_vm4, %v1686_v0, 0  ;;  %2231 = vmatpush3.bf16.msra.mxu1 %v1771_v31  ;;  %2234 = vmatprep.mubr.msk.bf16.mxu1 %vm2393_vm2, %v2392_v4 }
 0x818   : > { %2225 = vmatpush3.bf16.msra.mxu0 %v1692_v34  ;;  %2232 = vmatprep.subr.bf16.mxu1 %v2392_v4 }
 0x81b   : > { %2227 = vmatmul.mubr.msk.bf16.vlgmr.msra.gmra.mrb[32].mxu0 %vm292_vm5, %v2285_v35  ;;  %2233 = vmatpush3.bf16.msra.mxu1 %v1779_v37 }
 0x81e   : > { %2235 = vmatmul.mubr.msk.bf16.vlgmr.msra.gmra.mrb[32].mxu1 %vm292_vm5, %v2286_v38 }
 0x824   : > { %v1323_v40 = vpop.permute.xlu1 %1322 }
 0x827   : > { %v1235_v27 = vpop.permute.xlu0 %1234 }
 0x828   : > { %v1497_v41 = vpop.permute.xlu1 %1496 }
 0x82b   : > { %v1410_v39 = vpop.permute.xlu0 %1409 }
 0x82c   : > { %v2765_v43 = vpop.permute.xlu1 %1670 }
 0x82f   : > { %v1584_v23 = vpop.permute.xlu0 %1583 }
 0x830   : > { %v1240_v45 = vpop.permute.xlu1 %1239 }
 0x833   : > { %v2763_v42 = vpop.permute.xlu0 %1757 }
 0x834   : > { %v2769_v46 = vpop.permute.xlu1 %1414 }
 0x837   : > { %v1328_v44 = vpop.permute.xlu0 %1327 }
 0x838   : > { %v2773_v47 = vpop.permute.xlu1 %1588 }
 0x83b   : > { %v2767_v4 = vpop.permute.xlu0 %1501 }
 0x83c   : > { %v2775_v53 = vpop.permute.xlu1 %1762 }
 0x83f   : > { %v2771_v20 = vpop.permute.xlu0 %1675 }
 0x840   : > { %v1162_v54 = vpop.permute.xlu1 %1161 }
 0x843   : > { %v1157_v48 = vpop.permute.xlu0 %1156 }
 0x866   : > { %v1209_v24 = vpop.f32.mrb[20].mxu0 }
 0x867   : > { %v1210_v49 = vadd.f32 %v1209_v24, %v1157_v48  ;;  %v2180_v50 = vpop.f32.mrb[21].mxu0 }
 0x868   : > { %v1212_v51 = vpop.f32.mrb[22].mxu0 }
 0x869   : > { %v1986_v29 = vmul.f32 -1.442695, %v1210_v49  ;;  %v2181_v52 = vpop.f32.mrb[23].mxu0  ;;  %v1213_v55 = vadd.f32 %v1212_v51, %v1162_v54 }
 0x86b   : > { %2335 = vpow2.f32 %v1986_v29 }
 0x86c   : > { %2337 = vtanh.f32 %v1213_v55 }
 0x875   : > { %v2336_v56 = vpop.eup %2335 }
 0x876   : > { %v1219_v57 = vadd.f32 1.0, %v2336_v56  ;;  %v2338_v58 = vpop.eup %2337 }
 0x878   : > { %2339 = vrcp.f32 %v1219_v57 }
 0x882   : > { %v2340_v26 = vpop.eup %2339 }
 0x883   : > { %v1223_v59 = vmul.f32 %v2340_v26, %v2338_v58 }
 0x885   : > { %v1224_v60 = vadd.f32 %v1223_v59, %v2659_v21 }
 0x887   : > { %1225 = vst.msk [vmem:[%s2616_s26] sm:$0xff] %vm433_vm7, %v1224_v60 }
 0x8d9   : > { %v1293_v36 = vpop.f32.mrb[20].mxu1 }
 0x8da   : > { %v1294_v61 = vadd.f32 %v1293_v36, %v1235_v27  ;;  %v2188_v62 = vpop.f32.mrb[21].mxu1 }
 0x8db   : > { %v1296_v63 = vpop.f32.mrb[22].mxu1 }
 0x8dc   : > { %v1993_v1 = vmul.f32 -1.442695, %v1294_v61  ;;  %v2189_v2 = vpop.f32.mrb[23].mxu1  ;;  %v1297_v16 = vadd.f32 %v1296_v63, %v1240_v45 }
 0x8de   : > { %2341 = vpow2.f32 %v1993_v1  ;;  %v1380_v3 = vpop.f32.mrb[24].mxu0 }
 0x8df   : > { %v1381_v5 = vadd.f32 %v1380_v3, %v1323_v40  ;;  %v2196_v6 = vpop.f32.mrb[25].mxu0 }
 0x8e0   : > { %v1383_v7 = vpop.f32.mrb[26].mxu0 }
 0x8e1   : > { %v2000_v8 = vmul.f32 -1.442695, %v1381_v5  ;;  %v2197_v9 = vpop.f32.mrb[27].mxu0  ;;  %v1467_v10 = vpop.f32.mrb[24].mxu1  ;;  %v1384_v34 = vadd.f32 %v1383_v7, %v1328_v44 }
 0x8e2   : > { %v1468_v11 = vadd.f32 %v1467_v10, %v1410_v39  ;;  %v2204_v12 = vpop.f32.mrb[25].mxu1 }
 0x8e3   : > { %2343 = vpow2.f32 %v2000_v8  ;;  %v1470_v13 = vpop.f32.mrb[26].mxu1 }
 0x8e4   : > { %v2007_v14 = vmul.f32 -1.442695, %v1468_v11  ;;  %v2205_v15 = vpop.f32.mrb[27].mxu1  ;;  %v1471_v40 = vadd.f32 %v1470_v13, %v2769_v46 }
 0x8e6   : > { %2345 = vpow2.f32 %v2007_v14  ;;  %v1554_v17 = vpop.f32.mrb[28].mxu0 }
 0x8e7   : > { %v1555_v19 = vadd.f32 %v1554_v17, %v1497_v41  ;;  %v2212_v25 = vpop.f32.mrb[29].mxu0  ;;  %2347 = vtanh.f32 %v1297_v16 }
 0x8e8   : > { %v2342_v28 = vpop.eup %2341  ;;  %v1557_v30 = vpop.f32.mrb[30].mxu0 }
 0x8e9   : > { %v1303_v31 = vadd.f32 1.0, %v2342_v28  ;;  %v2014_v18 = vmul.f32 -1.442695, %v1555_v19  ;;  %v2213_v32 = vpop.f32.mrb[31].mxu0  ;;  %v1641_v33 = vpop.f32.mrb[28].mxu1  ;;  %v1558_v55 = vadd.f32 %v1557_v30, %v2767_v4 }
 0x8ea   : > { %v1642_v0 = vadd.f32 %v1641_v33, %v1584_v23  ;;  %v2220_v22 = vpop.f32.mrb[29].mxu1 }
 0x8eb   : > { %2349 = vrcp.f32 %v1303_v31  ;;  %v1644_v35 = vpop.f32.mrb[30].mxu1 }
 0x8ec   : > { %2351 = vpow2.f32 %v2014_v18  ;;  %v2021_v37 = vmul.f32 -1.442695, %v1642_v0  ;;  %v2221_v38 = vpop.f32.mrb[31].mxu1  ;;  %v1645_v26 = vadd.f32 %v1644_v35, %v2773_v47 }
 0x8ed   : > { %v2344_v27 = vpop.eup %2343 }
 0x8ee   : > { %v1390_v39 = vadd.f32 1.0, %v2344_v27  ;;  %2353 = vpow2.f32 %v2021_v37  ;;  %v1728_v41 = vpop.f32.mrb[32].mxu0 }
 0x8ef   : > { %2355 = vtanh.f32 %v1384_v34  ;;  %v1729_v45 = vadd.f32 %v1728_v41, %v2765_v43  ;;  %v2228_v48 = vpop.f32.mrb[33].mxu0 }
 0x8f0   : > { %v2346_v24 = vpop.eup %2345  ;;  %2357 = vrcp.f32 %v1390_v39  ;;  %v1731_v23 = vpop.f32.mrb[34].mxu0 }
 0x8f1   : > { %v1477_v49 = vadd.f32 1.0, %v2346_v24  ;;  %v2028_v50 = vmul.f32 -1.442695, %v1729_v45  ;;  %v2229_v44 = vpop.f32.mrb[35].mxu0  ;;  %v1815_v51 = vpop.f32.mrb[32].mxu1  ;;  %2359 = vtanh.f32 %v1471_v40  ;;  %v1732_v1 = vadd.f32 %v1731_v23, %v2771_v20 }
 0x8f2   : > { %v1816_v29 = vadd.f32 %v1815_v51, %v2763_v42  ;;  %v2236_v52 = vpop.f32.mrb[33].mxu1  ;;  %v2348_v46 = vpop.eup %2347 }
 0x8f3   : > { %2361 = vrcp.f32 %v1477_v49  ;;  %v1818_v54 = vpop.f32.mrb[34].mxu1 }
 0x8f4   : > { %2363 = vpow2.f32 %v2028_v50  ;;  %v2035_v56 = vmul.f32 -1.442695, %v1816_v29  ;;  %v2237_v43 = vpop.f32.mrb[35].mxu1  ;;  %v1819_v3 = vadd.f32 %v1818_v54, %v2775_v53 }
 0x8f5   : > { %v2350_v57 = vpop.eup %2349 }
 0x8f6   : > { %v2352_v58 = vpop.eup %2351  ;;  %2365 = vpow2.f32 %v2035_v56  ;;  %v1307_v59 = vmul.f32 %v2350_v57, %v2348_v46 }
 0x8f7   : > { %v1564_v60 = vadd.f32 1.0, %v2352_v58  ;;  %2367 = vtanh.f32 %v1558_v55 }
 0x8f8   : > { %v2354_v36 = vpop.eup %2353  ;;  %1309 = vrot.lane.b32.xlu0 %v1307_v59, %s2404_s19 }
 0x8f9   : > { %v2356_v42 = vpop.eup %2355  ;;  %2369 = vrcp.f32 %v1564_v60  ;;  %v1651_v61 = vadd.f32 1.0, %v2354_v36 }
 0x8fa   : > { %v2358_v62 = vpop.eup %2357  ;;  %2371 = vtanh.f32 %v1645_v26 }
 0x8fb   : > { %2373 = vrcp.f32 %v1651_v61  ;;  %v1394_v4 = vmul.f32 %v2358_v62, %v2356_v42  ;;  %v2360_v63 = vpop.eup %2359 }
 0x8fc   : > { %2375 = vtanh.f32 %v1732_v1 }
 0x8fd   : > { %v2362_v2 = vpop.eup %2361  ;;  %1396 = vrot.lane.b32.xlu1 %v1394_v4, %s2405_s20 }
 0x8fe   : > { %v2364_v47 = vpop.eup %2363  ;;  %v1481_v5 = vmul.f32 %v2362_v2, %v2360_v63 }
 0x8ff   : > { %v1738_v6 = vadd.f32 1.0, %v2364_v47 }
 0x900   : > { %v2366_v7 = vpop.eup %2365  ;;  %1483 = vrot.lane.b32.xlu0 %v1481_v5, %s2406_s30 }
 0x901   : > { %2377 = vrcp.f32 %v1738_v6  ;;  %v1825_v8 = vadd.f32 1.0, %v2366_v7  ;;  %v2368_v9 = vpop.eup %2367 }
 0x902   : > { %2379 = vtanh.f32 %v1819_v3 }
 0x903   : > { %v2370_v10 = vpop.eup %2369  ;;  %2381 = vrcp.f32 %v1825_v8 }
 0x904   : > { %v2372_v11 = vpop.eup %2371  ;;  %v1568_v20 = vmul.f32 %v2370_v10, %v2368_v9 }
 0x905   : > { %v2374_v12 = vpop.eup %2373 }
 0x906   : > { %1570 = vrot.lane.b32.xlu1 %v1568_v20, %s2407_s6  ;;  %v1655_v53 = vmul.f32 %v2374_v12, %v2372_v11  ;;  %v2376_v13 = vpop.eup %2375 }
 0x908   : > { %1657 = vrot.lane.b32.xlu0 %v1655_v53, %s2408_s8 }
 0x90b   : > { %v2378_v14 = vpop.eup %2377 }
 0x90c   : > { %v2380_v15 = vpop.eup %2379  ;;  %v1742_v16 = vmul.f32 %v2378_v14, %v2376_v13 }
 0x90d   : > { %v2382_v17 = vpop.eup %2381 }
 0x90e   : > { %1744 = vrot.lane.b32.xlu1 %v1742_v16, %s2826_s27  ;;  %v1829_v19 = vmul.f32 %v2382_v17, %v2380_v15 }
 0x910   : > { %1831 = vrot.lane.b32.xlu0 %v1829_v19, %s2827_s28 }
 0x96a   : > { %v1310_v25 = vpop.permute.xlu0 %1309 }
 0x96b   : > { %v1312_v28 = vadd.f32 %v1310_v25, %v2659_v21 }
 0x96d   : > { %1313 = vst.msk [vmem:[%s2616_s26] sm:$0xff] %vm522_vm8, %v1312_v28 }
 0x96f   : > { %v1397_v30 = vpop.permute.xlu1 %1396 }
 0x970   : > { %v1399_v31 = vadd.f32 %v1397_v30, %v2659_v21 }
 0x972   : > { %1400 = vst.msk [vmem:[%s2616_s26] sm:$0xff] %vm610_vm9, %v1399_v31  ;;  %v1484_v18 = vpop.permute.xlu0 %1483 }
 0x973   : > { %v1486_v32 = vadd.f32 %v1484_v18, %v2659_v21 }
 0x975   : > { %1487 = vst.msk [vmem:[%s2616_s26] sm:$0xff] %vm698_vm10, %v1486_v32 }
 0x978   : > { %v1571_v33 = vpop.permute.xlu1 %1570 }
 0x979   : > { %v1573_v0 = vadd.f32 %v1571_v33, %v2659_v21 }
 0x97a   : > { %v1658_v22 = vpop.permute.xlu0 %1657 }
 0x97b   : > { %1574 = vst.msk [vmem:[%s2616_s26] sm:$0xff] %vm786_vm11, %v1573_v0  ;;  %v1660_v34 = vadd.f32 %v1658_v22, %v2659_v21 }
 0x97d   : > { %1661 = vst.msk [vmem:[%s2616_s26] sm:$0xff] %vm874_vm12, %v1660_v34 }
 0x980   : > { %v1745_v35 = vpop.permute.xlu1 %1744 }
 0x981   : > { %v1747_v37 = vadd.f32 %v1745_v35, %v2659_v21 }
 0x982   : > { %v1832_v38 = vpop.permute.xlu0 %1831 }
 0x983   : > { %1748 = vst.msk [vmem:[%s2616_s26] sm:$0xff] %vm962_vm13, %v1747_v37  ;;  %v1834_v27 = vadd.f32 %v1832_v38, %v2659_v21 }
 0x985   : > { %1835 = vst.msk [vmem:[%s2616_s26] sm:$0xff] %vm1050_vm14, %v1834_v27 }
 0x986 PF: > { %s15_s18 = sadd.s32 1, %s2389_s18  }
 0x987   : > { %p12_p4 = scmp.ge.s32.totalorder %s15_s18, 4  }
 0x989   :  { %14 = sbr.rel (!%p12_p4) target bundleno = 1 (0x1), region = 108 }

</bundles_post_ra>
